<compile_context>
chip_gen: v5e
topology: v5e:2x2
jax: 0.10.0
libtpu: 0.0.40
codegen_flags: <defaults>
</compile_context>

<pallas_src>
import jax
import jax.numpy as jnp
from jax.experimental import pallas as pl
from jax.experimental.pallas import tpu as pltpu


def _round_up(x, m):
    return (x + m - 1) // m * m


def _gru_att_kernel(x_ref,                                   # (S, TB, V) bf16, time-major
                    wih_f_ref, whh_f_ref, bi_f_ref, bhhn_f_ref,  # (V,3HP) (HP,3HP) (1,3HP) (1,HP)
                    wih_b_ref, whh_b_ref, bi_b_ref, bhhn_b_ref,
                    wa_ref, ba_ref,                          # (2HP, A) bf16, (1, A) f32
                    att_wt_ref,                              # (A, DP) bf16 = att_weight.T padded
                    onehot_ref,                              # (TB, DP) f32 one-hot of z
                    wfc_ref, bfc_ref,                        # (2HP, O) bf16, (1, O) f32
                    out_ref,                                 # (TB, O) f32
                    h_ref):                                  # scratch (S, TB, 2HP) f32
    S, TB, V = x_ref.shape
    HP = whh_f_ref.shape[0]                                  # padded per-gate hidden width (128)
    bf16 = jnp.bfloat16

    # ---- hoisted input projections: one (S*TB, V) @ (V, 3*HP) matmul per direction ----
    # b_hh_r / b_hh_z already folded into bi_*; gate layout [r | z | n], each HP lanes.
    x2 = x_ref[...].reshape(S * TB, V)
    gi_f = (jnp.dot(x2, wih_f_ref[...], preferred_element_type=jnp.float32)
            + bi_f_ref[...]).reshape(S, TB, 3 * HP)
    gi_b = (jnp.dot(x2, wih_b_ref[...], preferred_element_type=jnp.float32)
            + bi_b_ref[...]).reshape(S, TB, 3 * HP)

    # hoist the (1, HP) -> (TB, HP) broadcasts out of the unrolled recurrence
    bhhn_f = jnp.broadcast_to(bhhn_f_ref[...], (TB, HP))
    bhhn_b = jnp.broadcast_to(bhhn_b_ref[...], (TB, HP))

    def gru_cell(h_prev, gi_t, whh_ref, bhhn):
        # single gate-packed recurrent matmul (the only matmul on the serial chain)
        gh = jnp.dot(h_prev.astype(bf16), whh_ref[...],
                     preferred_element_type=jnp.float32)      # (TB, 3*HP)
        rz = jax.nn.sigmoid(gi_t[:, :2 * HP] + gh[:, :2 * HP])  # fused r,z sigmoid
        r = rz[:, :HP]
        z = rz[:, HP:]
        n = jnp.tanh(gi_t[:, 2 * HP:] + r * (gh[:, 2 * HP:] + bhhn))
        return (1.0 - z) * n + z * h_prev                     # h carried in f32

    # ---- fused bidirectional recurrence, fully unrolled (S static & small) ----
    h_f = jnp.zeros((TB, HP), jnp.float32)
    h_b = jnp.zeros((TB, HP), jnp.float32)
    for t in range(S):
        tr = S - 1 - t
        h_f = gru_cell(h_f, gi_f[t], whh_f_ref, bhhn_f)
        h_b = gru_cell(h_b, gi_b[tr], whh_b_ref, bhhn_b)
        h_ref[t, :, :HP] = h_f                                # fwd in lanes [0, HP)
        h_ref[tr, :, HP:] = h_b                               # bwd in lanes [HP, 2HP)

    h_all = h_ref[...]                                        # (S, TB, 2*HP) f32
    h2 = h_all.reshape(S * TB, 2 * HP)

    # ---- attention: hr = tanh(att_fc([h_fwd ; h_bwd])) as one K=2*HP matmul ----
    # TODO(synk): stream hr per time step / use bf16 tanh on v6e+ if TB/S/A scale up.
    pre = (jnp.dot(h2.astype(bf16), wa_ref[...],
                   preferred_element_type=jnp.float32) + ba_ref[...])   # (S*TB, A)
    hr = jnp.tanh(pre).astype(bf16)

    # u[s, b] = <hr[s, b, :], att_weight[z[b], :]>  via MXU matmul + one-hot column select
    logits = jnp.dot(hr, att_wt_ref[...],
                     preferred_element_type=jnp.float32)                # (S*TB, DP)
    logits3 = logits.reshape(S, TB, -1)
    u = jnp.sum(logits3 * onehot_ref[...][None], axis=-1, keepdims=True)  # (S, TB, 1)

    # softmax over the sequence axis
    u_max = jnp.max(u, axis=0, keepdims=True)
    e = jnp.exp(u - u_max)
    denom = jnp.sum(e, axis=0, keepdims=True)
    att = e * pl.reciprocal(denom, approx=True)                         # (S, TB, 1)

    # attention-weighted sum of hidden states (== bmm(h^T, att)), kept in f32
    pooled = jnp.sum(att * h_all, axis=0)                               # (TB, 2*HP)

    # TODO(synk): nn.Dropout treated as identity (inference semantics).
    out_ref[...] = (jnp.dot(pooled.astype(bf16), wfc_ref[...],
                            preferred_element_type=jnp.float32)
                    + bfc_ref[...])                                     # (TB, O) lane-dense


def init_params(key, vocab, vec_len, hidden, att_len, domain_num):
    shapes = {
        'emb': (vocab, vec_len),
        'w_ih_f': (3 * hidden, vec_len), 'w_hh_f': (3 * hidden, hidden),
        'b_ih_f': (3 * hidden,), 'b_hh_f': (3 * hidden,),
        'w_ih_b': (3 * hidden, vec_len), 'w_hh_b': (3 * hidden, hidden),
        'b_ih_b': (3 * hidden,), 'b_hh_b': (3 * hidden,),
        'att_fc_w': (att_len, 2 * hidden), 'att_fc_b': (att_len,),
        'att_weight': (domain_num, att_len),
        'fc_w': (2, 2 * hidden), 'fc_b': (2,),
    }
    names = list(shapes)
    keys = jax.random.split(key, len(names))
    return {n: 0.1 * jax.random.normal(k, shapes[n], jnp.float32)
            for n, k in zip(names, keys)}


def pallas_forward(x_idx, z_idx, p):
    B, S = x_idx.shape
    H = p['w_hh_f'].shape[1]
    V = p['emb'].shape[1]
    A0 = p['att_weight'].shape[1]
    D = p['att_weight'].shape[0]

    HP = _round_up(H, 128)        # padded per-gate hidden lane block (32 -> 128)
    A = _round_up(A0, 128)        # 500 -> 512
    DP = _round_up(D, 128)        # domain logits lanes
    O = 128                       # lane-dense logits (first 2 columns used)

    # batch tile: >= 2 tiles whenever B > 8 (so both v7x TCs get work), cap 128.
    if B <= 8:
        TB = 8
    else:
        TB = min(128, _round_up(-(-B // 2), 8))
    B_pad = _round_up(B, TB)

    f32, bf16 = jnp.float32, jnp.bfloat16

    # glue: embedding gather, time-major transpose, batch pad, bf16 cast
    xs = jnp.transpose(p['emb'][x_idx], (1, 0, 2))                  # (S, B, V)
    xs = jnp.pad(xs, ((0, 0), (0, B_pad - B), (0, 0))).astype(bf16)
    z_pad = jnp.pad(z_idx, (0, B_pad - B))
    onehot = jax.nn.one_hot(z_pad, DP, dtype=f32)                   # (B_pad, DP)

    def pack_ih(w, b_ih, b_hh):
        # (3H, V) -> (V, 3*HP) bf16 ; bias (1, 3*HP) f32 with b_hh folded for r,z only
        wp = jnp.zeros((V, 3 * HP), f32)
        bp = jnp.zeros((1, 3 * HP), f32)
        for g in range(3):                                          # [r, z, n]
            wp = wp.at[:, g * HP:g * HP + H].set(w[g * H:(g + 1) * H].T)
            bg = b_ih[g * H:(g + 1) * H]
            if g < 2:
                bg = bg + b_hh[g * H:(g + 1) * H]
            bp = bp.at[0, g * HP:g * HP + H].set(bg)
        return wp.astype(bf16), bp

    def pack_hh(w):
        # (3H, H) -> (HP, 3*HP) bf16, zero-padded rows/cols
        wp = jnp.zeros((HP, 3 * HP), f32)
        for g in range(3):
            wp = wp.at[:H, g * HP:g * HP + H].set(w[g * H:(g + 1) * H].T)
        return wp.astype(bf16)

    wih_f, bi_f = pack_ih(p['w_ih_f'], p['b_ih_f'], p['b_hh_f'])
    wih_b, bi_b = pack_ih(p['w_ih_b'], p['b_ih_b'], p['b_hh_b'])
    whh_f, whh_b = pack_hh(p['w_hh_f']), pack_hh(p['w_hh_b'])
    bhhn_f = jnp.zeros((1, HP), f32).at[0, :H].set(p['b_hh_f'][2 * H:])
    bhhn_b = jnp.zeros((1, HP), f32).at[0, :H].set(p['b_hh_b'][2 * H:])

    # attention projection kept unsplit: (2*HP, A), fwd rows [0,H), bwd rows [HP, HP+H)
    wa = jnp.zeros((2 * HP, A), f32)
    wa = wa.at[:H, :A0].set(p['att_fc_w'][:, :H].T)
    wa = wa.at[HP:HP + H, :A0].set(p['att_fc_w'][:, H:].T)
    wa = wa.astype(bf16)
    ba = jnp.pad(p['att_fc_b'], (0, A - A0))[None, :]               # (1, A) f32

    att_wt = (jnp.zeros((A, DP), f32)
              .at[:A0, :D].set(p['att_weight'].T).astype(bf16))     # (A, DP)

    wfc = jnp.zeros((2 * HP, O), f32)
    wfc = wfc.at[:H, :2].set(p['fc_w'][:, :H].T)
    wfc = wfc.at[HP:HP + H, :2].set(p['fc_w'][:, H:].T)
    wfc = wfc.astype(bf16)
    bfc = jnp.pad(p['fc_b'], (0, O - 2))[None, :]                   # (1, O) f32

    full = lambda a: pl.BlockSpec(a.shape, lambda i, _nd=a.ndim: (0,) * _nd)
    in_specs = [
        pl.BlockSpec((S, TB, V), lambda i: (0, i, 0)),              # xs
        full(wih_f), full(whh_f), full(bi_f), full(bhhn_f),
        full(wih_b), full(whh_b), full(bi_b), full(bhhn_b),
        full(wa), full(ba), full(att_wt),
        pl.BlockSpec((TB, DP), lambda i: (i, 0)),                   # onehot
        full(wfc), full(bfc),
    ]

    out = pl.pallas_call(
        _gru_att_kernel,
        out_shape=jax.ShapeDtypeStruct((B_pad, O), jnp.float32),
        grid=(B_pad // TB,),
        in_specs=in_specs,
        out_specs=pl.BlockSpec((TB, O), lambda i: (i, 0)),
        scratch_shapes=[pltpu.VMEM((S, TB, 2 * HP), jnp.float32)],
        compiler_params=pltpu.CompilerParams(
            dimension_semantics=("parallel",)),     # independent batch tiles (2 TCs on v7x)
    )(xs, wih_f, whh_f, bi_f, bhhn_f, wih_b, whh_b, bi_b, bhhn_b,
      wa, ba, att_wt, onehot, wfc, bfc)
    return out[:B, :2]                                              # (B, 2)


def reference_forward(x_idx, z_idx, p):
    """Pure-JAX replica of the PyTorch forward (inference mode, f32)."""
    B, S = x_idx.shape
    H = p['w_hh_f'].shape[1]
    xs = jnp.transpose(p['emb'][x_idx], (1, 0, 2))                  # (S, B, V)

    def run_dir(wih, whh, bih, bhh, reverse):
        h = jnp.zeros((B, H), jnp.float32)
        outs = [None] * S
        order = range(S - 1, -1, -1) if reverse else range(S)
        for t in order:
            gi = xs[t] @ wih.T + bih
            gh = h @ whh.T + bhh
            r = jax.nn.sigmoid(gi[:, :H] + gh[:, :H])
            zg = jax.nn.sigmoid(gi[:, H:2 * H] + gh[:, H:2 * H])
            n = jnp.tanh(gi[:, 2 * H:] + r * gh[:, 2 * H:])
            h = (1.0 - zg) * n + zg * h
            outs[t] = h
        return jnp.stack(outs, axis=0)                              # (S, B, H)

    hf = run_dir(p['w_ih_f'], p['w_hh_f'], p['b_ih_f'], p['b_hh_f'], False)
    hb = run_dir(p['w_ih_b'], p['w_hh_b'], p['b_ih_b'], p['b_hh_b'], True)
    h = jnp.transpose(jnp.concatenate([hf, hb], axis=-1), (1, 0, 2))  # (B, S, 2H)
    hr = jnp.tanh(h @ p['att_fc_w'].T + p['att_fc_b'])                # (B, S, A)
    u = jnp.einsum('bsa,ba->bs', hr, p['att_weight'][z_idx])
    att = jax.nn.softmax(u, axis=1)
    out = jnp.einsum('bs,bsd->bd', att, h)                            # (B, 2H)
    return out @ p['fc_w'].T + p['fc_b']


if __name__ == "__main__":
    B, S = 2, 8               # batch_size, remain_l
    vocab, V = 50, 32         # word2vec rows, vec_len
    H, A, D = 32, 500, 4      # attention_dim, att_len (fixed 500), domain_num

    key = jax.random.PRNGKey(0)
    kp, kx, kz = jax.random.split(key, 3)
    params = init_params(kp, vocab, V, H, A, D)
    x_idx = jax.random.randint(kx, (B, S), 0, vocab, dtype=jnp.int32)
    z_idx = jax.random.randint(kz, (B,), 0, D, dtype=jnp.int32)

    out = jax.block_until_ready(pallas_forward(x_idx, z_idx, params))
    ref = jax.block_until_ready(reference_forward(x_idx, z_idx, params))

    assert out.shape == (B, 2), out.shape
    assert bool(jnp.all(jnp.isfinite(out)))
    # bf16 MXU operands (f32 accumulate) on the kernel vs. pure-f32 reference:
    # allow a slightly looser tolerance than bit-level f32 parity.
    assert bool(jnp.allclose(out, ref, atol=2e-2, rtol=2e-2)), (out, ref)
    print("KERNEL_OK")
</pallas_src>

<mosaic_0001>
module attributes {stable_mosaic.version = 11 : i64} {
  func.func @_gru_att_kernel(%arg0: i32, %arg1: memref<8x8x32xbf16, #tpu.memory_space<vmem>>, %arg2: memref<32x384xbf16, #tpu.memory_space<vmem>>, %arg3: memref<128x384xbf16, #tpu.memory_space<vmem>>, %arg4: memref<1x384xf32, #tpu.memory_space<vmem>>, %arg5: memref<1x128xf32, #tpu.memory_space<vmem>>, %arg6: memref<32x384xbf16, #tpu.memory_space<vmem>>, %arg7: memref<128x384xbf16, #tpu.memory_space<vmem>>, %arg8: memref<1x384xf32, #tpu.memory_space<vmem>>, %arg9: memref<1x128xf32, #tpu.memory_space<vmem>>, %arg10: memref<256x512xbf16, #tpu.memory_space<vmem>>, %arg11: memref<1x512xf32, #tpu.memory_space<vmem>>, %arg12: memref<512x128xbf16, #tpu.memory_space<vmem>>, %arg13: memref<8x128xf32, #tpu.memory_space<vmem>>, %arg14: memref<256x128xbf16, #tpu.memory_space<vmem>>, %arg15: memref<1x128xf32, #tpu.memory_space<vmem>>, %arg16: memref<8x128xf32, #tpu.memory_space<vmem>>, %arg17: memref<8x8x256xf32, #tpu.memory_space<vmem>>) attributes {dimension_semantics = [#tpu.dimension_semantics<parallel>], iteration_bounds = array<i64: 1>, scalar_prefetch = 0 : i64, scratch_operands = 1 : i64, tpu.core_type = #tpu.core_type<tc>, window_params = [{transform_indices = @transform_0, window_bounds = array<i64: 8, 8, 32>}, {pipeline_mode = #tpu.pipeline_mode<synchronous>, transform_indices = @transform_1, window_bounds = array<i64: 32, 384>}, {pipeline_mode = #tpu.pipeline_mode<synchronous>, transform_indices = @transform_2, window_bounds = array<i64: 128, 384>}, {pipeline_mode = #tpu.pipeline_mode<synchronous>, transform_indices = @transform_3, window_bounds = array<i64: 1, 384>}, {pipeline_mode = #tpu.pipeline_mode<synchronous>, transform_indices = @transform_4, window_bounds = array<i64: 1, 128>}, {pipeline_mode = #tpu.pipeline_mode<synchronous>, transform_indices = @transform_5, window_bounds = array<i64: 32, 384>}, {pipeline_mode = #tpu.pipeline_mode<synchronous>, transform_indices = @transform_6, window_bounds = array<i64: 128, 384>}, {pipeline_mode = #tpu.pipeline_mode<synchronous>, transform_indices = @transform_7, window_bounds = array<i64: 1, 384>}, {pipeline_mode = #tpu.pipeline_mode<synchronous>, transform_indices = @transform_8, window_bounds = array<i64: 1, 128>}, {pipeline_mode = #tpu.pipeline_mode<synchronous>, transform_indices = @transform_9, window_bounds = array<i64: 256, 512>}, {pipeline_mode = #tpu.pipeline_mode<synchronous>, transform_indices = @transform_10, window_bounds = array<i64: 1, 512>}, {pipeline_mode = #tpu.pipeline_mode<synchronous>, transform_indices = @transform_11, window_bounds = array<i64: 512, 128>}, {transform_indices = @transform_12, window_bounds = array<i64: 8, 128>}, {pipeline_mode = #tpu.pipeline_mode<synchronous>, transform_indices = @transform_13, window_bounds = array<i64: 256, 128>}, {pipeline_mode = #tpu.pipeline_mode<synchronous>, transform_indices = @transform_14, window_bounds = array<i64: 1, 128>}, {transform_indices = @transform_15, window_bounds = array<i64: 8, 128>}]} {
    %c0 = arith.constant 0 : index
    %c0_0 = arith.constant 0 : index
    %c0_1 = arith.constant 0 : index
    %0 = vector.load %arg1[%c0, %c0_0, %c0_1] : memref<8x8x32xbf16, #tpu.memory_space<vmem>>, vector<8x8x32xbf16>
    %1 = vector.shape_cast %0 : vector<8x8x32xbf16> to vector<64x32xbf16>
    %c0_2 = arith.constant 0 : index
    %c0_3 = arith.constant 0 : index
    %2 = vector.load %arg2[%c0_2, %c0_3] : memref<32x384xbf16, #tpu.memory_space<vmem>>, vector<32x384xbf16>
    %cst = arith.constant dense<0.000000e+00> : vector<64x384xf32>
    %3 = tpu.matmul %1, %2, %cst {dimension_numbers = #tpu.dot_dimension_numbers<[1], [0], [0], [1], [0, 0, 1, 1], [], []>} : vector<64x32xbf16>, vector<32x384xbf16>, vector<64x384xf32> -> vector<64x384xf32>
    %c0_4 = arith.constant 0 : index
    %c0_5 = arith.constant 0 : index
    %4 = vector.load %arg4[%c0_4, %c0_5] : memref<1x384xf32, #tpu.memory_space<vmem>>, vector<1x384xf32>
    %5 = vector.broadcast %4 : vector<1x384xf32> to vector<64x384xf32>
    %6 = arith.addf %3, %5 : vector<64x384xf32>
    %7 = vector.shape_cast %6 : vector<64x384xf32> to vector<8x8x384xf32>
    %c0_6 = arith.constant 0 : index
    %c0_7 = arith.constant 0 : index
    %8 = vector.load %arg6[%c0_6, %c0_7] : memref<32x384xbf16, #tpu.memory_space<vmem>>, vector<32x384xbf16>
    %cst_8 = arith.constant dense<0.000000e+00> : vector<64x384xf32>
    %9 = tpu.matmul %1, %8, %cst_8 {dimension_numbers = #tpu.dot_dimension_numbers<[1], [0], [0], [1], [0, 0, 1, 1], [], []>} : vector<64x32xbf16>, vector<32x384xbf16>, vector<64x384xf32> -> vector<64x384xf32>
    %c0_9 = arith.constant 0 : index
    %c0_10 = arith.constant 0 : index
    %10 = vector.load %arg8[%c0_9, %c0_10] : memref<1x384xf32, #tpu.memory_space<vmem>>, vector<1x384xf32>
    %11 = vector.broadcast %10 : vector<1x384xf32> to vector<64x384xf32>
    %12 = arith.addf %9, %11 : vector<64x384xf32>
    %13 = vector.shape_cast %12 : vector<64x384xf32> to vector<8x8x384xf32>
    %c0_11 = arith.constant 0 : index
    %c0_12 = arith.constant 0 : index
    %14 = vector.load %arg5[%c0_11, %c0_12] : memref<1x128xf32, #tpu.memory_space<vmem>>, vector<1x128xf32>
    %15 = vector.shape_cast %14 : vector<1x128xf32> to vector<1x128xf32>
    %16 = vector.broadcast %15 : vector<1x128xf32> to vector<8x128xf32>
    %c0_13 = arith.constant 0 : index
    %c0_14 = arith.constant 0 : index
    %17 = vector.load %arg9[%c0_13, %c0_14] : memref<1x128xf32, #tpu.memory_space<vmem>>, vector<1x128xf32>
    %18 = vector.shape_cast %17 : vector<1x128xf32> to vector<1x128xf32>
    %19 = vector.broadcast %18 : vector<1x128xf32> to vector<8x128xf32>
    %cst_15 = arith.constant 0.000000e+00 : f32
    %20 = vector.broadcast %cst_15 : f32 to vector<8x128xf32>
    %cst_16 = arith.constant 0.000000e+00 : f32
    %21 = vector.broadcast %cst_16 : f32 to vector<8x128xf32>
    %22 = vector.extract_strided_slice %7 {offsets = [0, 0, 0], sizes = [1, 8, 384], strides = [1, 1, 1]} : vector<8x8x384xf32> to vector<1x8x384xf32>
    %23 = vector.shape_cast %22 : vector<1x8x384xf32> to vector<8x384xf32>
    %24 = arith.truncf %20 : vector<8x128xf32> to vector<8x128xbf16>
    %c0_17 = arith.constant 0 : index
    %c0_18 = arith.constant 0 : index
    %25 = vector.load %arg3[%c0_17, %c0_18] : memref<128x384xbf16, #tpu.memory_space<vmem>>, vector<128x384xbf16>
    %cst_19 = arith.constant dense<0.000000e+00> : vector<8x384xf32>
    %26 = tpu.matmul %24, %25, %cst_19 {dimension_numbers = #tpu.dot_dimension_numbers<[1], [0], [0], [1], [0, 0, 1, 1], [], []>} : vector<8x128xbf16>, vector<128x384xbf16>, vector<8x384xf32> -> vector<8x384xf32>
    %27 = vector.extract_strided_slice %23 {offsets = [0, 0], sizes = [8, 256], strides = [1, 1]} : vector<8x384xf32> to vector<8x256xf32>
    %28 = vector.extract_strided_slice %26 {offsets = [0, 0], sizes = [8, 256], strides = [1, 1]} : vector<8x384xf32> to vector<8x256xf32>
    %29 = arith.addf %27, %28 : vector<8x256xf32>
    %30 = arith.negf %29 : vector<8x256xf32>
    %31 = math.exp %30 : vector<8x256xf32>
    %cst_20 = arith.constant 1.000000e+00 : f32
    %32 = vector.broadcast %cst_20 : f32 to vector<8x256xf32>
    %33 = arith.addf %32, %31 : vector<8x256xf32>
    %34 = arith.divf %32, %33 : vector<8x256xf32>
    %35 = vector.extract_strided_slice %34 {offsets = [0, 0], sizes = [8, 128], strides = [1, 1]} : vector<8x256xf32> to vector<8x128xf32>
    %36 = vector.extract_strided_slice %34 {offsets = [0, 128], sizes = [8, 128], strides = [1, 1]} : vector<8x256xf32> to vector<8x128xf32>
    %37 = vector.extract_strided_slice %23 {offsets = [0, 256], sizes = [8, 128], strides = [1, 1]} : vector<8x384xf32> to vector<8x128xf32>
    %38 = vector.extract_strided_slice %26 {offsets = [0, 256], sizes = [8, 128], strides = [1, 1]} : vector<8x384xf32> to vector<8x128xf32>
    %39 = arith.addf %38, %16 : vector<8x128xf32>
    %40 = arith.mulf %35, %39 : vector<8x128xf32>
    %41 = arith.addf %37, %40 : vector<8x128xf32>
    %42 = math.tanh %41 : vector<8x128xf32>
    %cst_21 = arith.constant 1.000000e+00 : f32
    %43 = vector.broadcast %cst_21 : f32 to vector<8x128xf32>
    %44 = arith.subf %43, %36 : vector<8x128xf32>
    %45 = arith.mulf %44, %42 : vector<8x128xf32>
    %46 = arith.mulf %36, %20 : vector<8x128xf32>
    %47 = arith.addf %45, %46 : vector<8x128xf32>
    %48 = vector.extract_strided_slice %13 {offsets = [7, 0, 0], sizes = [1, 8, 384], strides = [1, 1, 1]} : vector<8x8x384xf32> to vector<1x8x384xf32>
    %49 = vector.shape_cast %48 : vector<1x8x384xf32> to vector<8x384xf32>
    %50 = arith.truncf %21 : vector<8x128xf32> to vector<8x128xbf16>
    %c0_22 = arith.constant 0 : index
    %c0_23 = arith.constant 0 : index
    %51 = vector.load %arg7[%c0_22, %c0_23] : memref<128x384xbf16, #tpu.memory_space<vmem>>, vector<128x384xbf16>
    %cst_24 = arith.constant dense<0.000000e+00> : vector<8x384xf32>
    %52 = tpu.matmul %50, %51, %cst_24 {dimension_numbers = #tpu.dot_dimension_numbers<[1], [0], [0], [1], [0, 0, 1, 1], [], []>} : vector<8x128xbf16>, vector<128x384xbf16>, vector<8x384xf32> -> vector<8x384xf32>
    %53 = vector.extract_strided_slice %49 {offsets = [0, 0], sizes = [8, 256], strides = [1, 1]} : vector<8x384xf32> to vector<8x256xf32>
    %54 = vector.extract_strided_slice %52 {offsets = [0, 0], sizes = [8, 256], strides = [1, 1]} : vector<8x384xf32> to vector<8x256xf32>
    %55 = arith.addf %53, %54 : vector<8x256xf32>
    %56 = arith.negf %55 : vector<8x256xf32>
    %57 = math.exp %56 : vector<8x256xf32>
    %cst_25 = arith.constant 1.000000e+00 : f32
    %58 = vector.broadcast %cst_25 : f32 to vector<8x256xf32>
    %59 = arith.addf %58, %57 : vector<8x256xf32>
    %60 = arith.divf %58, %59 : vector<8x256xf32>
    %61 = vector.extract_strided_slice %60 {offsets = [0, 0], sizes = [8, 128], strides = [1, 1]} : vector<8x256xf32> to vector<8x128xf32>
    %62 = vector.extract_strided_slice %60 {offsets = [0, 128], sizes = [8, 128], strides = [1, 1]} : vector<8x256xf32> to vector<8x128xf32>
    %63 = vector.extract_strided_slice %49 {offsets = [0, 256], sizes = [8, 128], strides = [1, 1]} : vector<8x384xf32> to vector<8x128xf32>
    %64 = vector.extract_strided_slice %52 {offsets = [0, 256], sizes = [8, 128], strides = [1, 1]} : vector<8x384xf32> to vector<8x128xf32>
    %65 = arith.addf %64, %19 : vector<8x128xf32>
    %66 = arith.mulf %61, %65 : vector<8x128xf32>
    %67 = arith.addf %63, %66 : vector<8x128xf32>
    %68 = math.tanh %67 : vector<8x128xf32>
    %cst_26 = arith.constant 1.000000e+00 : f32
    %69 = vector.broadcast %cst_26 : f32 to vector<8x128xf32>
    %70 = arith.subf %69, %62 : vector<8x128xf32>
    %71 = arith.mulf %70, %68 : vector<8x128xf32>
    %72 = arith.mulf %62, %21 : vector<8x128xf32>
    %73 = arith.addf %71, %72 : vector<8x128xf32>
    %c0_27 = arith.constant 0 : index
    %c0_28 = arith.constant 0 : index
    %c0_29 = arith.constant 0 : index
    %74 = vector.load %arg17[%c0_27, %c0_28, %c0_29] : memref<8x8x256xf32, #tpu.memory_space<vmem>>, vector<1x8x128xf32>
    %75 = vector.shape_cast %74 : vector<1x8x128xf32> to vector<8x128xf32>
    %76 = vector.shape_cast %47 : vector<8x128xf32> to vector<1x8x128xf32>
    tpu.vector_store %arg17[%c0_27, %c0_28, %c0_29], %76 {strides = array<i32>} : memref<8x8x256xf32, #tpu.memory_space<vmem>>, vector<1x8x128xf32>,
    %c7 = arith.constant 7 : index
    %c0_30 = arith.constant 0 : index
    %c128 = arith.constant 128 : index
    %77 = vector.load %arg17[%c7, %c0_30, %c128] : memref<8x8x256xf32, #tpu.memory_space<vmem>>, vector<1x8x128xf32>
    %78 = vector.shape_cast %77 : vector<1x8x128xf32> to vector<8x128xf32>
    %79 = vector.shape_cast %73 : vector<8x128xf32> to vector<1x8x128xf32>
    tpu.vector_store %arg17[%c7, %c0_30, %c128], %79 {strides = array<i32>} : memref<8x8x256xf32, #tpu.memory_space<vmem>>, vector<1x8x128xf32>,
    %80 = vector.extract_strided_slice %7 {offsets = [1, 0, 0], sizes = [1, 8, 384], strides = [1, 1, 1]} : vector<8x8x384xf32> to vector<1x8x384xf32>
    %81 = vector.shape_cast %80 : vector<1x8x384xf32> to vector<8x384xf32>
    %82 = arith.truncf %47 : vector<8x128xf32> to vector<8x128xbf16>
    %c0_31 = arith.constant 0 : index
    %c0_32 = arith.constant 0 : index
    %83 = vector.load %arg3[%c0_31, %c0_32] : memref<128x384xbf16, #tpu.memory_space<vmem>>, vector<128x384xbf16>
    %cst_33 = arith.constant dense<0.000000e+00> : vector<8x384xf32>
    %84 = tpu.matmul %82, %83, %cst_33 {dimension_numbers = #tpu.dot_dimension_numbers<[1], [0], [0], [1], [0, 0, 1, 1], [], []>} : vector<8x128xbf16>, vector<128x384xbf16>, vector<8x384xf32> -> vector<8x384xf32>
    %85 = vector.extract_strided_slice %81 {offsets = [0, 0], sizes = [8, 256], strides = [1, 1]} : vector<8x384xf32> to vector<8x256xf32>
    %86 = vector.extract_strided_slice %84 {offsets = [0, 0], sizes = [8, 256], strides = [1, 1]} : vector<8x384xf32> to vector<8x256xf32>
    %87 = arith.addf %85, %86 : vector<8x256xf32>
    %88 = arith.negf %87 : vector<8x256xf32>
    %89 = math.exp %88 : vector<8x256xf32>
    %cst_34 = arith.constant 1.000000e+00 : f32
    %90 = vector.broadcast %cst_34 : f32 to vector<8x256xf32>
    %91 = arith.addf %90, %89 : vector<8x256xf32>
    %92 = arith.divf %90, %91 : vector<8x256xf32>
    %93 = vector.extract_strided_slice %92 {offsets = [0, 0], sizes = [8, 128], strides = [1, 1]} : vector<8x256xf32> to vector<8x128xf32>
    %94 = vector.extract_strided_slice %92 {offsets = [0, 128], sizes = [8, 128], strides = [1, 1]} : vector<8x256xf32> to vector<8x128xf32>
    %95 = vector.extract_strided_slice %81 {offsets = [0, 256], sizes = [8, 128], strides = [1, 1]} : vector<8x384xf32> to vector<8x128xf32>
    %96 = vector.extract_strided_slice %84 {offsets = [0, 256], sizes = [8, 128], strides = [1, 1]} : vector<8x384xf32> to vector<8x128xf32>
    %97 = arith.addf %96, %16 : vector<8x128xf32>
    %98 = arith.mulf %93, %97 : vector<8x128xf32>
    %99 = arith.addf %95, %98 : vector<8x128xf32>
    %100 = math.tanh %99 : vector<8x128xf32>
    %cst_35 = arith.constant 1.000000e+00 : f32
    %101 = vector.broadcast %cst_35 : f32 to vector<8x128xf32>
    %102 = arith.subf %101, %94 : vector<8x128xf32>
    %103 = arith.mulf %102, %100 : vector<8x128xf32>
    %104 = arith.mulf %94, %47 : vector<8x128xf32>
    %105 = arith.addf %103, %104 : vector<8x128xf32>
    %106 = vector.extract_strided_slice %13 {offsets = [6, 0, 0], sizes = [1, 8, 384], strides = [1, 1, 1]} : vector<8x8x384xf32> to vector<1x8x384xf32>
    %107 = vector.shape_cast %106 : vector<1x8x384xf32> to vector<8x384xf32>
    %108 = arith.truncf %73 : vector<8x128xf32> to vector<8x128xbf16>
    %c0_36 = arith.constant 0 : index
    %c0_37 = arith.constant 0 : index
    %109 = vector.load %arg7[%c0_36, %c0_37] : memref<128x384xbf16, #tpu.memory_space<vmem>>, vector<128x384xbf16>
    %cst_38 = arith.constant dense<0.000000e+00> : vector<8x384xf32>
    %110 = tpu.matmul %108, %109, %cst_38 {dimension_numbers = #tpu.dot_dimension_numbers<[1], [0], [0], [1], [0, 0, 1, 1], [], []>} : vector<8x128xbf16>, vector<128x384xbf16>, vector<8x384xf32> -> vector<8x384xf32>
    %111 = vector.extract_strided_slice %107 {offsets = [0, 0], sizes = [8, 256], strides = [1, 1]} : vector<8x384xf32> to vector<8x256xf32>
    %112 = vector.extract_strided_slice %110 {offsets = [0, 0], sizes = [8, 256], strides = [1, 1]} : vector<8x384xf32> to vector<8x256xf32>
    %113 = arith.addf %111, %112 : vector<8x256xf32>
    %114 = arith.negf %113 : vector<8x256xf32>
    %115 = math.exp %114 : vector<8x256xf32>
    %cst_39 = arith.constant 1.000000e+00 : f32
    %116 = vector.broadcast %cst_39 : f32 to vector<8x256xf32>
    %117 = arith.addf %116, %115 : vector<8x256xf32>
    %118 = arith.divf %116, %117 : vector<8x256xf32>
    %119 = vector.extract_strided_slice %118 {offsets = [0, 0], sizes = [8, 128], strides = [1, 1]} : vector<8x256xf32> to vector<8x128xf32>
    %120 = vector.extract_strided_slice %118 {offsets = [0, 128], sizes = [8, 128], strides = [1, 1]} : vector<8x256xf32> to vector<8x128xf32>
    %121 = vector.extract_strided_slice %107 {offsets = [0, 256], sizes = [8, 128], strides = [1, 1]} : vector<8x384xf32> to vector<8x128xf32>
    %122 = vector.extract_strided_slice %110 {offsets = [0, 256], sizes = [8, 128], strides = [1, 1]} : vector<8x384xf32> to vector<8x128xf32>
    %123 = arith.addf %122, %19 : vector<8x128xf32>
    %124 = arith.mulf %119, %123 : vector<8x128xf32>
    %125 = arith.addf %121, %124 : vector<8x128xf32>
    %126 = math.tanh %125 : vector<8x128xf32>
    %cst_40 = arith.constant 1.000000e+00 : f32
    %127 = vector.broadcast %cst_40 : f32 to vector<8x128xf32>
    %128 = arith.subf %127, %120 : vector<8x128xf32>
    %129 = arith.mulf %128, %126 : vector<8x128xf32>
    %130 = arith.mulf %120, %73 : vector<8x128xf32>
    %131 = arith.addf %129, %130 : vector<8x128xf32>
    %c1 = arith.constant 1 : index
    %c0_41 = arith.constant 0 : index
    %c0_42 = arith.constant 0 : index
    %132 = vector.load %arg17[%c1, %c0_41, %c0_42] : memref<8x8x256xf32, #tpu.memory_space<vmem>>, vector<1x8x128xf32>
    %133 = vector.shape_cast %132 : vector<1x8x128xf32> to vector<8x128xf32>
    %134 = vector.shape_cast %105 : vector<8x128xf32> to vector<1x8x128xf32>
    tpu.vector_store %arg17[%c1, %c0_41, %c0_42], %134 {strides = array<i32>} : memref<8x8x256xf32, #tpu.memory_space<vmem>>, vector<1x8x128xf32>,
    %c6 = arith.constant 6 : index
    %c0_43 = arith.constant 0 : index
    %c128_44 = arith.constant 128 : index
    %135 = vector.load %arg17[%c6, %c0_43, %c128_44] : memref<8x8x256xf32, #tpu.memory_space<vmem>>, vector<1x8x128xf32>
    %136 = vector.shape_cast %135 : vector<1x8x128xf32> to vector<8x128xf32>
    %137 = vector.shape_cast %131 : vector<8x128xf32> to vector<1x8x128xf32>
    tpu.vector_store %arg17[%c6, %c0_43, %c128_44], %137 {strides = array<i32>} : memref<8x8x256xf32, #tpu.memory_space<vmem>>, vector<1x8x128xf32>,
    %138 = vector.extract_strided_slice %7 {offsets = [2, 0, 0], sizes = [1, 8, 384], strides = [1, 1, 1]} : vector<8x8x384xf32> to vector<1x8x384xf32>
    %139 = vector.shape_cast %138 : vector<1x8x384xf32> to vector<8x384xf32>
    %140 = arith.truncf %105 : vector<8x128xf32> to vector<8x128xbf16>
    %c0_45 = arith.constant 0 : index
    %c0_46 = arith.constant 0 : index
    %141 = vector.load %arg3[%c0_45, %c0_46] : memref<128x384xbf16, #tpu.memory_space<vmem>>, vector<128x384xbf16>
    %cst_47 = arith.constant dense<0.000000e+00> : vector<8x384xf32>
    %142 = tpu.matmul %140, %141, %cst_47 {dimension_numbers = #tpu.dot_dimension_numbers<[1], [0], [0], [1], [0, 0, 1, 1], [], []>} : vector<8x128xbf16>, vector<128x384xbf16>, vector<8x384xf32> -> vector<8x384xf32>
    %143 = vector.extract_strided_slice %139 {offsets = [0, 0], sizes = [8, 256], strides = [1, 1]} : vector<8x384xf32> to vector<8x256xf32>
    %144 = vector.extract_strided_slice %142 {offsets = [0, 0], sizes = [8, 256], strides = [1, 1]} : vector<8x384xf32> to vector<8x256xf32>
    %145 = arith.addf %143, %144 : vector<8x256xf32>
    %146 = arith.negf %145 : vector<8x256xf32>
    %147 = math.exp %146 : vector<8x256xf32>
    %cst_48 = arith.constant 1.000000e+00 : f32
    %148 = vector.broadcast %cst_48 : f32 to vector<8x256xf32>
    %149 = arith.addf %148, %147 : vector<8x256xf32>
    %150 = arith.divf %148, %149 : vector<8x256xf32>
    %151 = vector.extract_strided_slice %150 {offsets = [0, 0], sizes = [8, 128], strides = [1, 1]} : vector<8x256xf32> to vector<8x128xf32>
    %152 = vector.extract_strided_slice %150 {offsets = [0, 128], sizes = [8, 128], strides = [1, 1]} : vector<8x256xf32> to vector<8x128xf32>
    %153 = vector.extract_strided_slice %139 {offsets = [0, 256], sizes = [8, 128], strides = [1, 1]} : vector<8x384xf32> to vector<8x128xf32>
    %154 = vector.extract_strided_slice %142 {offsets = [0, 256], sizes = [8, 128], strides = [1, 1]} : vector<8x384xf32> to vector<8x128xf32>
    %155 = arith.addf %154, %16 : vector<8x128xf32>
    %156 = arith.mulf %151, %155 : vector<8x128xf32>
    %157 = arith.addf %153, %156 : vector<8x128xf32>
    %158 = math.tanh %157 : vector<8x128xf32>
    %cst_49 = arith.constant 1.000000e+00 : f32
    %159 = vector.broadcast %cst_49 : f32 to vector<8x128xf32>
    %160 = arith.subf %159, %152 : vector<8x128xf32>
    %161 = arith.mulf %160, %158 : vector<8x128xf32>
    %162 = arith.mulf %152, %105 : vector<8x128xf32>
    %163 = arith.addf %161, %162 : vector<8x128xf32>
    %164 = vector.extract_strided_slice %13 {offsets = [5, 0, 0], sizes = [1, 8, 384], strides = [1, 1, 1]} : vector<8x8x384xf32> to vector<1x8x384xf32>
    %165 = vector.shape_cast %164 : vector<1x8x384xf32> to vector<8x384xf32>
    %166 = arith.truncf %131 : vector<8x128xf32> to vector<8x128xbf16>
    %c0_50 = arith.constant 0 : index
    %c0_51 = arith.constant 0 : index
    %167 = vector.load %arg7[%c0_50, %c0_51] : memref<128x384xbf16, #tpu.memory_space<vmem>>, vector<128x384xbf16>
    %cst_52 = arith.constant dense<0.000000e+00> : vector<8x384xf32>
    %168 = tpu.matmul %166, %167, %cst_52 {dimension_numbers = #tpu.dot_dimension_numbers<[1], [0], [0], [1], [0, 0, 1, 1], [], []>} : vector<8x128xbf16>, vector<128x384xbf16>, vector<8x384xf32> -> vector<8x384xf32>
    %169 = vector.extract_strided_slice %165 {offsets = [0, 0], sizes = [8, 256], strides = [1, 1]} : vector<8x384xf32> to vector<8x256xf32>
    %170 = vector.extract_strided_slice %168 {offsets = [0, 0], sizes = [8, 256], strides = [1, 1]} : vector<8x384xf32> to vector<8x256xf32>
    %171 = arith.addf %169, %170 : vector<8x256xf32>
    %172 = arith.negf %171 : vector<8x256xf32>
    %173 = math.exp %172 : vector<8x256xf32>
    %cst_53 = arith.constant 1.000000e+00 : f32
    %174 = vector.broadcast %cst_53 : f32 to vector<8x256xf32>
    %175 = arith.addf %174, %173 : vector<8x256xf32>
    %176 = arith.divf %174, %175 : vector<8x256xf32>
    %177 = vector.extract_strided_slice %176 {offsets = [0, 0], sizes = [8, 128], strides = [1, 1]} : vector<8x256xf32> to vector<8x128xf32>
    %178 = vector.extract_strided_slice %176 {offsets = [0, 128], sizes = [8, 128], strides = [1, 1]} : vector<8x256xf32> to vector<8x128xf32>
    %179 = vector.extract_strided_slice %165 {offsets = [0, 256], sizes = [8, 128], strides = [1, 1]} : vector<8x384xf32> to vector<8x128xf32>
    %180 = vector.extract_strided_slice %168 {offsets = [0, 256], sizes = [8, 128], strides = [1, 1]} : vector<8x384xf32> to vector<8x128xf32>
    %181 = arith.addf %180, %19 : vector<8x128xf32>
    %182 = arith.mulf %177, %181 : vector<8x128xf32>
    %183 = arith.addf %179, %182 : vector<8x128xf32>
    %184 = math.tanh %183 : vector<8x128xf32>
    %cst_54 = arith.constant 1.000000e+00 : f32
    %185 = vector.broadcast %cst_54 : f32 to vector<8x128xf32>
    %186 = arith.subf %185, %178 : vector<8x128xf32>
    %187 = arith.mulf %186, %184 : vector<8x128xf32>
    %188 = arith.mulf %178, %131 : vector<8x128xf32>
    %189 = arith.addf %187, %188 : vector<8x128xf32>
    %c2 = arith.constant 2 : index
    %c0_55 = arith.constant 0 : index
    %c0_56 = arith.constant 0 : index
    %190 = vector.load %arg17[%c2, %c0_55, %c0_56] : memref<8x8x256xf32, #tpu.memory_space<vmem>>, vector<1x8x128xf32>
    %191 = vector.shape_cast %190 : vector<1x8x128xf32> to vector<8x128xf32>
    %192 = vector.shape_cast %163 : vector<8x128xf32> to vector<1x8x128xf32>
    tpu.vector_store %arg17[%c2, %c0_55, %c0_56], %192 {strides = array<i32>} : memref<8x8x256xf32, #tpu.memory_space<vmem>>, vector<1x8x128xf32>,
    %c5 = arith.constant 5 : index
    %c0_57 = arith.constant 0 : index
    %c128_58 = arith.constant 128 : index
    %193 = vector.load %arg17[%c5, %c0_57, %c128_58] : memref<8x8x256xf32, #tpu.memory_space<vmem>>, vector<1x8x128xf32>
    %194 = vector.shape_cast %193 : vector<1x8x128xf32> to vector<8x128xf32>
    %195 = vector.shape_cast %189 : vector<8x128xf32> to vector<1x8x128xf32>
    tpu.vector_store %arg17[%c5, %c0_57, %c128_58], %195 {strides = array<i32>} : memref<8x8x256xf32, #tpu.memory_space<vmem>>, vector<1x8x128xf32>,
    %196 = vector.extract_strided_slice %7 {offsets = [3, 0, 0], sizes = [1, 8, 384], strides = [1, 1, 1]} : vector<8x8x384xf32> to vector<1x8x384xf32>
    %197 = vector.shape_cast %196 : vector<1x8x384xf32> to vector<8x384xf32>
    %198 = arith.truncf %163 : vector<8x128xf32> to vector<8x128xbf16>
    %c0_59 = arith.constant 0 : index
    %c0_60 = arith.constant 0 : index
    %199 = vector.load %arg3[%c0_59, %c0_60] : memref<128x384xbf16, #tpu.memory_space<vmem>>, vector<128x384xbf16>
    %cst_61 = arith.constant dense<0.000000e+00> : vector<8x384xf32>
    %200 = tpu.matmul %198, %199, %cst_61 {dimension_numbers = #tpu.dot_dimension_numbers<[1], [0], [0], [1], [0, 0, 1, 1], [], []>} : vector<8x128xbf16>, vector<128x384xbf16>, vector<8x384xf32> -> vector<8x384xf32>
    %201 = vector.extract_strided_slice %197 {offsets = [0, 0], sizes = [8, 256], strides = [1, 1]} : vector<8x384xf32> to vector<8x256xf32>
    %202 = vector.extract_strided_slice %200 {offsets = [0, 0], sizes = [8, 256], strides = [1, 1]} : vector<8x384xf32> to vector<8x256xf32>
    %203 = arith.addf %201, %202 : vector<8x256xf32>
    %204 = arith.negf %203 : vector<8x256xf32>
    %205 = math.exp %204 : vector<8x256xf32>
    %cst_62 = arith.constant 1.000000e+00 : f32
    %206 = vector.broadcast %cst_62 : f32 to vector<8x256xf32>
    %207 = arith.addf %206, %205 : vector<8x256xf32>
    %208 = arith.divf %206, %207 : vector<8x256xf32>
    %209 = vector.extract_strided_slice %208 {offsets = [0, 0], sizes = [8, 128], strides = [1, 1]} : vector<8x256xf32> to vector<8x128xf32>
    %210 = vector.extract_strided_slice %208 {offsets = [0, 128], sizes = [8, 128], strides = [1, 1]} : vector<8x256xf32> to vector<8x128xf32>
    %211 = vector.extract_strided_slice %197 {offsets = [0, 256], sizes = [8, 128], strides = [1, 1]} : vector<8x384xf32> to vector<8x128xf32>
    %212 = vector.extract_strided_slice %200 {offsets = [0, 256], sizes = [8, 128], strides = [1, 1]} : vector<8x384xf32> to vector<8x128xf32>
    %213 = arith.addf %212, %16 : vector<8x128xf32>
    %214 = arith.mulf %209, %213 : vector<8x128xf32>
    %215 = arith.addf %211, %214 : vector<8x128xf32>
    %216 = math.tanh %215 : vector<8x128xf32>
    %cst_63 = arith.constant 1.000000e+00 : f32
    %217 = vector.broadcast %cst_63 : f32 to vector<8x128xf32>
    %218 = arith.subf %217, %210 : vector<8x128xf32>
    %219 = arith.mulf %218, %216 : vector<8x128xf32>
    %220 = arith.mulf %210, %163 : vector<8x128xf32>
    %221 = arith.addf %219, %220 : vector<8x128xf32>
    %222 = vector.extract_strided_slice %13 {offsets = [4, 0, 0], sizes = [1, 8, 384], strides = [1, 1, 1]} : vector<8x8x384xf32> to vector<1x8x384xf32>
    %223 = vector.shape_cast %222 : vector<1x8x384xf32> to vector<8x384xf32>
    %224 = arith.truncf %189 : vector<8x128xf32> to vector<8x128xbf16>
    %c0_64 = arith.constant 0 : index
    %c0_65 = arith.constant 0 : index
    %225 = vector.load %arg7[%c0_64, %c0_65] : memref<128x384xbf16, #tpu.memory_space<vmem>>, vector<128x384xbf16>
    %cst_66 = arith.constant dense<0.000000e+00> : vector<8x384xf32>
    %226 = tpu.matmul %224, %225, %cst_66 {dimension_numbers = #tpu.dot_dimension_numbers<[1], [0], [0], [1], [0, 0, 1, 1], [], []>} : vector<8x128xbf16>, vector<128x384xbf16>, vector<8x384xf32> -> vector<8x384xf32>
    %227 = vector.extract_strided_slice %223 {offsets = [0, 0], sizes = [8, 256], strides = [1, 1]} : vector<8x384xf32> to vector<8x256xf32>
    %228 = vector.extract_strided_slice %226 {offsets = [0, 0], sizes = [8, 256], strides = [1, 1]} : vector<8x384xf32> to vector<8x256xf32>
    %229 = arith.addf %227, %228 : vector<8x256xf32>
    %230 = arith.negf %229 : vector<8x256xf32>
    %231 = math.exp %230 : vector<8x256xf32>
    %cst_67 = arith.constant 1.000000e+00 : f32
    %232 = vector.broadcast %cst_67 : f32 to vector<8x256xf32>
    %233 = arith.addf %232, %231 : vector<8x256xf32>
    %234 = arith.divf %232, %233 : vector<8x256xf32>
    %235 = vector.extract_strided_slice %234 {offsets = [0, 0], sizes = [8, 128], strides = [1, 1]} : vector<8x256xf32> to vector<8x128xf32>
    %236 = vector.extract_strided_slice %234 {offsets = [0, 128], sizes = [8, 128], strides = [1, 1]} : vector<8x256xf32> to vector<8x128xf32>
    %237 = vector.extract_strided_slice %223 {offsets = [0, 256], sizes = [8, 128], strides = [1, 1]} : vector<8x384xf32> to vector<8x128xf32>
    %238 = vector.extract_strided_slice %226 {offsets = [0, 256], sizes = [8, 128], strides = [1, 1]} : vector<8x384xf32> to vector<8x128xf32>
    %239 = arith.addf %238, %19 : vector<8x128xf32>
    %240 = arith.mulf %235, %239 : vector<8x128xf32>
    %241 = arith.addf %237, %240 : vector<8x128xf32>
    %242 = math.tanh %241 : vector<8x128xf32>
    %cst_68 = arith.constant 1.000000e+00 : f32
    %243 = vector.broadcast %cst_68 : f32 to vector<8x128xf32>
    %244 = arith.subf %243, %236 : vector<8x128xf32>
    %245 = arith.mulf %244, %242 : vector<8x128xf32>
    %246 = arith.mulf %236, %189 : vector<8x128xf32>
    %247 = arith.addf %245, %246 : vector<8x128xf32>
    %c3 = arith.constant 3 : index
    %c0_69 = arith.constant 0 : index
    %c0_70 = arith.constant 0 : index
    %248 = vector.load %arg17[%c3, %c0_69, %c0_70] : memref<8x8x256xf32, #tpu.memory_space<vmem>>, vector<1x8x128xf32>
    %249 = vector.shape_cast %248 : vector<1x8x128xf32> to vector<8x128xf32>
    %250 = vector.shape_cast %221 : vector<8x128xf32> to vector<1x8x128xf32>
    tpu.vector_store %arg17[%c3, %c0_69, %c0_70], %250 {strides = array<i32>} : memref<8x8x256xf32, #tpu.memory_space<vmem>>, vector<1x8x128xf32>,
    %c4 = arith.constant 4 : index
    %c0_71 = arith.constant 0 : index
    %c128_72 = arith.constant 128 : index
    %251 = vector.load %arg17[%c4, %c0_71, %c128_72] : memref<8x8x256xf32, #tpu.memory_space<vmem>>, vector<1x8x128xf32>
    %252 = vector.shape_cast %251 : vector<1x8x128xf32> to vector<8x128xf32>
    %253 = vector.shape_cast %247 : vector<8x128xf32> to vector<1x8x128xf32>
    tpu.vector_store %arg17[%c4, %c0_71, %c128_72], %253 {strides = array<i32>} : memref<8x8x256xf32, #tpu.memory_space<vmem>>, vector<1x8x128xf32>,
    %254 = vector.extract_strided_slice %7 {offsets = [4, 0, 0], sizes = [1, 8, 384], strides = [1, 1, 1]} : vector<8x8x384xf32> to vector<1x8x384xf32>
    %255 = vector.shape_cast %254 : vector<1x8x384xf32> to vector<8x384xf32>
    %256 = arith.truncf %221 : vector<8x128xf32> to vector<8x128xbf16>
    %c0_73 = arith.constant 0 : index
    %c0_74 = arith.constant 0 : index
    %257 = vector.load %arg3[%c0_73, %c0_74] : memref<128x384xbf16, #tpu.memory_space<vmem>>, vector<128x384xbf16>
    %cst_75 = arith.constant dense<0.000000e+00> : vector<8x384xf32>
    %258 = tpu.matmul %256, %257, %cst_75 {dimension_numbers = #tpu.dot_dimension_numbers<[1], [0], [0], [1], [0, 0, 1, 1], [], []>} : vector<8x128xbf16>, vector<128x384xbf16>, vector<8x384xf32> -> vector<8x384xf32>
    %259 = vector.extract_strided_slice %255 {offsets = [0, 0], sizes = [8, 256], strides = [1, 1]} : vector<8x384xf32> to vector<8x256xf32>
    %260 = vector.extract_strided_slice %258 {offsets = [0, 0], sizes = [8, 256], strides = [1, 1]} : vector<8x384xf32> to vector<8x256xf32>
    %261 = arith.addf %259, %260 : vector<8x256xf32>
    %262 = arith.negf %261 : vector<8x256xf32>
    %263 = math.exp %262 : vector<8x256xf32>
    %cst_76 = arith.constant 1.000000e+00 : f32
    %264 = vector.broadcast %cst_76 : f32 to vector<8x256xf32>
    %265 = arith.addf %264, %263 : vector<8x256xf32>
    %266 = arith.divf %264, %265 : vector<8x256xf32>
    %267 = vector.extract_strided_slice %266 {offsets = [0, 0], sizes = [8, 128], strides = [1, 1]} : vector<8x256xf32> to vector<8x128xf32>
    %268 = vector.extract_strided_slice %266 {offsets = [0, 128], sizes = [8, 128], strides = [1, 1]} : vector<8x256xf32> to vector<8x128xf32>
    %269 = vector.extract_strided_slice %255 {offsets = [0, 256], sizes = [8, 128], strides = [1, 1]} : vector<8x384xf32> to vector<8x128xf32>
    %270 = vector.extract_strided_slice %258 {offsets = [0, 256], sizes = [8, 128], strides = [1, 1]} : vector<8x384xf32> to vector<8x128xf32>
    %271 = arith.addf %270, %16 : vector<8x128xf32>
    %272 = arith.mulf %267, %271 : vector<8x128xf32>
    %273 = arith.addf %269, %272 : vector<8x128xf32>
    %274 = math.tanh %273 : vector<8x128xf32>
    %cst_77 = arith.constant 1.000000e+00 : f32
    %275 = vector.broadcast %cst_77 : f32 to vector<8x128xf32>
    %276 = arith.subf %275, %268 : vector<8x128xf32>
    %277 = arith.mulf %276, %274 : vector<8x128xf32>
    %278 = arith.mulf %268, %221 : vector<8x128xf32>
    %279 = arith.addf %277, %278 : vector<8x128xf32>
    %280 = vector.extract_strided_slice %13 {offsets = [3, 0, 0], sizes = [1, 8, 384], strides = [1, 1, 1]} : vector<8x8x384xf32> to vector<1x8x384xf32>
    %281 = vector.shape_cast %280 : vector<1x8x384xf32> to vector<8x384xf32>
    %282 = arith.truncf %247 : vector<8x128xf32> to vector<8x128xbf16>
    %c0_78 = arith.constant 0 : index
    %c0_79 = arith.constant 0 : index
    %283 = vector.load %arg7[%c0_78, %c0_79] : memref<128x384xbf16, #tpu.memory_space<vmem>>, vector<128x384xbf16>
    %cst_80 = arith.constant dense<0.000000e+00> : vector<8x384xf32>
    %284 = tpu.matmul %282, %283, %cst_80 {dimension_numbers = #tpu.dot_dimension_numbers<[1], [0], [0], [1], [0, 0, 1, 1], [], []>} : vector<8x128xbf16>, vector<128x384xbf16>, vector<8x384xf32> -> vector<8x384xf32>
    %285 = vector.extract_strided_slice %281 {offsets = [0, 0], sizes = [8, 256], strides = [1, 1]} : vector<8x384xf32> to vector<8x256xf32>
    %286 = vector.extract_strided_slice %284 {offsets = [0, 0], sizes = [8, 256], strides = [1, 1]} : vector<8x384xf32> to vector<8x256xf32>
    %287 = arith.addf %285, %286 : vector<8x256xf32>
    %288 = arith.negf %287 : vector<8x256xf32>
    %289 = math.exp %288 : vector<8x256xf32>
    %cst_81 = arith.constant 1.000000e+00 : f32
    %290 = vector.broadcast %cst_81 : f32 to vector<8x256xf32>
    %291 = arith.addf %290, %289 : vector<8x256xf32>
    %292 = arith.divf %290, %291 : vector<8x256xf32>
    %293 = vector.extract_strided_slice %292 {offsets = [0, 0], sizes = [8, 128], strides = [1, 1]} : vector<8x256xf32> to vector<8x128xf32>
    %294 = vector.extract_strided_slice %292 {offsets = [0, 128], sizes = [8, 128], strides = [1, 1]} : vector<8x256xf32> to vector<8x128xf32>
    %295 = vector.extract_strided_slice %281 {offsets = [0, 256], sizes = [8, 128], strides = [1, 1]} : vector<8x384xf32> to vector<8x128xf32>
    %296 = vector.extract_strided_slice %284 {offsets = [0, 256], sizes = [8, 128], strides = [1, 1]} : vector<8x384xf32> to vector<8x128xf32>
    %297 = arith.addf %296, %19 : vector<8x128xf32>
    %298 = arith.mulf %293, %297 : vector<8x128xf32>
    %299 = arith.addf %295, %298 : vector<8x128xf32>
    %300 = math.tanh %299 : vector<8x128xf32>
    %cst_82 = arith.constant 1.000000e+00 : f32
    %301 = vector.broadcast %cst_82 : f32 to vector<8x128xf32>
    %302 = arith.subf %301, %294 : vector<8x128xf32>
    %303 = arith.mulf %302, %300 : vector<8x128xf32>
    %304 = arith.mulf %294, %247 : vector<8x128xf32>
    %305 = arith.addf %303, %304 : vector<8x128xf32>
    %c4_83 = arith.constant 4 : index
    %c0_84 = arith.constant 0 : index
    %c0_85 = arith.constant 0 : index
    %306 = vector.load %arg17[%c4_83, %c0_84, %c0_85] : memref<8x8x256xf32, #tpu.memory_space<vmem>>, vector<1x8x128xf32>
    %307 = vector.shape_cast %306 : vector<1x8x128xf32> to vector<8x128xf32>
    %308 = vector.shape_cast %279 : vector<8x128xf32> to vector<1x8x128xf32>
    tpu.vector_store %arg17[%c4_83, %c0_84, %c0_85], %308 {strides = array<i32>} : memref<8x8x256xf32, #tpu.memory_space<vmem>>, vector<1x8x128xf32>,
    %c3_86 = arith.constant 3 : index
    %c0_87 = arith.constant 0 : index
    %c128_88 = arith.constant 128 : index
    %309 = vector.load %arg17[%c3_86, %c0_87, %c128_88] : memref<8x8x256xf32, #tpu.memory_space<vmem>>, vector<1x8x128xf32>
    %310 = vector.shape_cast %309 : vector<1x8x128xf32> to vector<8x128xf32>
    %311 = vector.shape_cast %305 : vector<8x128xf32> to vector<1x8x128xf32>
    tpu.vector_store %arg17[%c3_86, %c0_87, %c128_88], %311 {strides = array<i32>} : memref<8x8x256xf32, #tpu.memory_space<vmem>>, vector<1x8x128xf32>,
    %312 = vector.extract_strided_slice %7 {offsets = [5, 0, 0], sizes = [1, 8, 384], strides = [1, 1, 1]} : vector<8x8x384xf32> to vector<1x8x384xf32>
    %313 = vector.shape_cast %312 : vector<1x8x384xf32> to vector<8x384xf32>
    %314 = arith.truncf %279 : vector<8x128xf32> to vector<8x128xbf16>
    %c0_89 = arith.constant 0 : index
    %c0_90 = arith.constant 0 : index
    %315 = vector.load %arg3[%c0_89, %c0_90] : memref<128x384xbf16, #tpu.memory_space<vmem>>, vector<128x384xbf16>
    %cst_91 = arith.constant dense<0.000000e+00> : vector<8x384xf32>
    %316 = tpu.matmul %314, %315, %cst_91 {dimension_numbers = #tpu.dot_dimension_numbers<[1], [0], [0], [1], [0, 0, 1, 1], [], []>} : vector<8x128xbf16>, vector<128x384xbf16>, vector<8x384xf32> -> vector<8x384xf32>
    %317 = vector.extract_strided_slice %313 {offsets = [0, 0], sizes = [8, 256], strides = [1, 1]} : vector<8x384xf32> to vector<8x256xf32>
    %318 = vector.extract_strided_slice %316 {offsets = [0, 0], sizes = [8, 256], strides = [1, 1]} : vector<8x384xf32> to vector<8x256xf32>
    %319 = arith.addf %317, %318 : vector<8x256xf32>
    %320 = arith.negf %319 : vector<8x256xf32>
    %321 = math.exp %320 : vector<8x256xf32>
    %cst_92 = arith.constant 1.000000e+00 : f32
    %322 = vector.broadcast %cst_92 : f32 to vector<8x256xf32>
    %323 = arith.addf %322, %321 : vector<8x256xf32>
    %324 = arith.divf %322, %323 : vector<8x256xf32>
    %325 = vector.extract_strided_slice %324 {offsets = [0, 0], sizes = [8, 128], strides = [1, 1]} : vector<8x256xf32> to vector<8x128xf32>
    %326 = vector.extract_strided_slice %324 {offsets = [0, 128], sizes = [8, 128], strides = [1, 1]} : vector<8x256xf32> to vector<8x128xf32>
    %327 = vector.extract_strided_slice %313 {offsets = [0, 256], sizes = [8, 128], strides = [1, 1]} : vector<8x384xf32> to vector<8x128xf32>
    %328 = vector.extract_strided_slice %316 {offsets = [0, 256], sizes = [8, 128], strides = [1, 1]} : vector<8x384xf32> to vector<8x128xf32>
    %329 = arith.addf %328, %16 : vector<8x128xf32>
    %330 = arith.mulf %325, %329 : vector<8x128xf32>
    %331 = arith.addf %327, %330 : vector<8x128xf32>
    %332 = math.tanh %331 : vector<8x128xf32>
    %cst_93 = arith.constant 1.000000e+00 : f32
    %333 = vector.broadcast %cst_93 : f32 to vector<8x128xf32>
    %334 = arith.subf %333, %326 : vector<8x128xf32>
    %335 = arith.mulf %334, %332 : vector<8x128xf32>
    %336 = arith.mulf %326, %279 : vector<8x128xf32>
    %337 = arith.addf %335, %336 : vector<8x128xf32>
    %338 = vector.extract_strided_slice %13 {offsets = [2, 0, 0], sizes = [1, 8, 384], strides = [1, 1, 1]} : vector<8x8x384xf32> to vector<1x8x384xf32>
    %339 = vector.shape_cast %338 : vector<1x8x384xf32> to vector<8x384xf32>
    %340 = arith.truncf %305 : vector<8x128xf32> to vector<8x128xbf16>
    %c0_94 = arith.constant 0 : index
    %c0_95 = arith.constant 0 : index
    %341 = vector.load %arg7[%c0_94, %c0_95] : memref<128x384xbf16, #tpu.memory_space<vmem>>, vector<128x384xbf16>
    %cst_96 = arith.constant dense<0.000000e+00> : vector<8x384xf32>
    %342 = tpu.matmul %340, %341, %cst_96 {dimension_numbers = #tpu.dot_dimension_numbers<[1], [0], [0], [1], [0, 0, 1, 1], [], []>} : vector<8x128xbf16>, vector<128x384xbf16>, vector<8x384xf32> -> vector<8x384xf32>
    %343 = vector.extract_strided_slice %339 {offsets = [0, 0], sizes = [8, 256], strides = [1, 1]} : vector<8x384xf32> to vector<8x256xf32>
    %344 = vector.extract_strided_slice %342 {offsets = [0, 0], sizes = [8, 256], strides = [1, 1]} : vector<8x384xf32> to vector<8x256xf32>
    %345 = arith.addf %343, %344 : vector<8x256xf32>
    %346 = arith.negf %345 : vector<8x256xf32>
    %347 = math.exp %346 : vector<8x256xf32>
    %cst_97 = arith.constant 1.000000e+00 : f32
    %348 = vector.broadcast %cst_97 : f32 to vector<8x256xf32>
    %349 = arith.addf %348, %347 : vector<8x256xf32>
    %350 = arith.divf %348, %349 : vector<8x256xf32>
    %351 = vector.extract_strided_slice %350 {offsets = [0, 0], sizes = [8, 128], strides = [1, 1]} : vector<8x256xf32> to vector<8x128xf32>
    %352 = vector.extract_strided_slice %350 {offsets = [0, 128], sizes = [8, 128], strides = [1, 1]} : vector<8x256xf32> to vector<8x128xf32>
    %353 = vector.extract_strided_slice %339 {offsets = [0, 256], sizes = [8, 128], strides = [1, 1]} : vector<8x384xf32> to vector<8x128xf32>
    %354 = vector.extract_strided_slice %342 {offsets = [0, 256], sizes = [8, 128], strides = [1, 1]} : vector<8x384xf32> to vector<8x128xf32>
    %355 = arith.addf %354, %19 : vector<8x128xf32>
    %356 = arith.mulf %351, %355 : vector<8x128xf32>
    %357 = arith.addf %353, %356 : vector<8x128xf32>
    %358 = math.tanh %357 : vector<8x128xf32>
    %cst_98 = arith.constant 1.000000e+00 : f32
    %359 = vector.broadcast %cst_98 : f32 to vector<8x128xf32>
    %360 = arith.subf %359, %352 : vector<8x128xf32>
    %361 = arith.mulf %360, %358 : vector<8x128xf32>
    %362 = arith.mulf %352, %305 : vector<8x128xf32>
    %363 = arith.addf %361, %362 : vector<8x128xf32>
    %c5_99 = arith.constant 5 : index
    %c0_100 = arith.constant 0 : index
    %c0_101 = arith.constant 0 : index
    %364 = vector.load %arg17[%c5_99, %c0_100, %c0_101] : memref<8x8x256xf32, #tpu.memory_space<vmem>>, vector<1x8x128xf32>
    %365 = vector.shape_cast %364 : vector<1x8x128xf32> to vector<8x128xf32>
    %366 = vector.shape_cast %337 : vector<8x128xf32> to vector<1x8x128xf32>
    tpu.vector_store %arg17[%c5_99, %c0_100, %c0_101], %366 {strides = array<i32>} : memref<8x8x256xf32, #tpu.memory_space<vmem>>, vector<1x8x128xf32>,
    %c2_102 = arith.constant 2 : index
    %c0_103 = arith.constant 0 : index
    %c128_104 = arith.constant 128 : index
    %367 = vector.load %arg17[%c2_102, %c0_103, %c128_104] : memref<8x8x256xf32, #tpu.memory_space<vmem>>, vector<1x8x128xf32>
    %368 = vector.shape_cast %367 : vector<1x8x128xf32> to vector<8x128xf32>
    %369 = vector.shape_cast %363 : vector<8x128xf32> to vector<1x8x128xf32>
    tpu.vector_store %arg17[%c2_102, %c0_103, %c128_104], %369 {strides = array<i32>} : memref<8x8x256xf32, #tpu.memory_space<vmem>>, vector<1x8x128xf32>,
    %370 = vector.extract_strided_slice %7 {offsets = [6, 0, 0], sizes = [1, 8, 384], strides = [1, 1, 1]} : vector<8x8x384xf32> to vector<1x8x384xf32>
    %371 = vector.shape_cast %370 : vector<1x8x384xf32> to vector<8x384xf32>
    %372 = arith.truncf %337 : vector<8x128xf32> to vector<8x128xbf16>
    %c0_105 = arith.constant 0 : index
    %c0_106 = arith.constant 0 : index
    %373 = vector.load %arg3[%c0_105, %c0_106] : memref<128x384xbf16, #tpu.memory_space<vmem>>, vector<128x384xbf16>
    %cst_107 = arith.constant dense<0.000000e+00> : vector<8x384xf32>
    %374 = tpu.matmul %372, %373, %cst_107 {dimension_numbers = #tpu.dot_dimension_numbers<[1], [0], [0], [1], [0, 0, 1, 1], [], []>} : vector<8x128xbf16>, vector<128x384xbf16>, vector<8x384xf32> -> vector<8x384xf32>
    %375 = vector.extract_strided_slice %371 {offsets = [0, 0], sizes = [8, 256], strides = [1, 1]} : vector<8x384xf32> to vector<8x256xf32>
    %376 = vector.extract_strided_slice %374 {offsets = [0, 0], sizes = [8, 256], strides = [1, 1]} : vector<8x384xf32> to vector<8x256xf32>
    %377 = arith.addf %375, %376 : vector<8x256xf32>
    %378 = arith.negf %377 : vector<8x256xf32>
    %379 = math.exp %378 : vector<8x256xf32>
    %cst_108 = arith.constant 1.000000e+00 : f32
    %380 = vector.broadcast %cst_108 : f32 to vector<8x256xf32>
    %381 = arith.addf %380, %379 : vector<8x256xf32>
    %382 = arith.divf %380, %381 : vector<8x256xf32>
    %383 = vector.extract_strided_slice %382 {offsets = [0, 0], sizes = [8, 128], strides = [1, 1]} : vector<8x256xf32> to vector<8x128xf32>
    %384 = vector.extract_strided_slice %382 {offsets = [0, 128], sizes = [8, 128], strides = [1, 1]} : vector<8x256xf32> to vector<8x128xf32>
    %385 = vector.extract_strided_slice %371 {offsets = [0, 256], sizes = [8, 128], strides = [1, 1]} : vector<8x384xf32> to vector<8x128xf32>
    %386 = vector.extract_strided_slice %374 {offsets = [0, 256], sizes = [8, 128], strides = [1, 1]} : vector<8x384xf32> to vector<8x128xf32>
    %387 = arith.addf %386, %16 : vector<8x128xf32>
    %388 = arith.mulf %383, %387 : vector<8x128xf32>
    %389 = arith.addf %385, %388 : vector<8x128xf32>
    %390 = math.tanh %389 : vector<8x128xf32>
    %cst_109 = arith.constant 1.000000e+00 : f32
    %391 = vector.broadcast %cst_109 : f32 to vector<8x128xf32>
    %392 = arith.subf %391, %384 : vector<8x128xf32>
    %393 = arith.mulf %392, %390 : vector<8x128xf32>
    %394 = arith.mulf %384, %337 : vector<8x128xf32>
    %395 = arith.addf %393, %394 : vector<8x128xf32>
    %396 = vector.extract_strided_slice %13 {offsets = [1, 0, 0], sizes = [1, 8, 384], strides = [1, 1, 1]} : vector<8x8x384xf32> to vector<1x8x384xf32>
    %397 = vector.shape_cast %396 : vector<1x8x384xf32> to vector<8x384xf32>
    %398 = arith.truncf %363 : vector<8x128xf32> to vector<8x128xbf16>
    %c0_110 = arith.constant 0 : index
    %c0_111 = arith.constant 0 : index
    %399 = vector.load %arg7[%c0_110, %c0_111] : memref<128x384xbf16, #tpu.memory_space<vmem>>, vector<128x384xbf16>
    %cst_112 = arith.constant dense<0.000000e+00> : vector<8x384xf32>
    %400 = tpu.matmul %398, %399, %cst_112 {dimension_numbers = #tpu.dot_dimension_numbers<[1], [0], [0], [1], [0, 0, 1, 1], [], []>} : vector<8x128xbf16>, vector<128x384xbf16>, vector<8x384xf32> -> vector<8x384xf32>
    %401 = vector.extract_strided_slice %397 {offsets = [0, 0], sizes = [8, 256], strides = [1, 1]} : vector<8x384xf32> to vector<8x256xf32>
    %402 = vector.extract_strided_slice %400 {offsets = [0, 0], sizes = [8, 256], strides = [1, 1]} : vector<8x384xf32> to vector<8x256xf32>
    %403 = arith.addf %401, %402 : vector<8x256xf32>
    %404 = arith.negf %403 : vector<8x256xf32>
    %405 = math.exp %404 : vector<8x256xf32>
    %cst_113 = arith.constant 1.000000e+00 : f32
    %406 = vector.broadcast %cst_113 : f32 to vector<8x256xf32>
    %407 = arith.addf %406, %405 : vector<8x256xf32>
    %408 = arith.divf %406, %407 : vector<8x256xf32>
    %409 = vector.extract_strided_slice %408 {offsets = [0, 0], sizes = [8, 128], strides = [1, 1]} : vector<8x256xf32> to vector<8x128xf32>
    %410 = vector.extract_strided_slice %408 {offsets = [0, 128], sizes = [8, 128], strides = [1, 1]} : vector<8x256xf32> to vector<8x128xf32>
    %411 = vector.extract_strided_slice %397 {offsets = [0, 256], sizes = [8, 128], strides = [1, 1]} : vector<8x384xf32> to vector<8x128xf32>
    %412 = vector.extract_strided_slice %400 {offsets = [0, 256], sizes = [8, 128], strides = [1, 1]} : vector<8x384xf32> to vector<8x128xf32>
    %413 = arith.addf %412, %19 : vector<8x128xf32>
    %414 = arith.mulf %409, %413 : vector<8x128xf32>
    %415 = arith.addf %411, %414 : vector<8x128xf32>
    %416 = math.tanh %415 : vector<8x128xf32>
    %cst_114 = arith.constant 1.000000e+00 : f32
    %417 = vector.broadcast %cst_114 : f32 to vector<8x128xf32>
    %418 = arith.subf %417, %410 : vector<8x128xf32>
    %419 = arith.mulf %418, %416 : vector<8x128xf32>
    %420 = arith.mulf %410, %363 : vector<8x128xf32>
    %421 = arith.addf %419, %420 : vector<8x128xf32>
    %c6_115 = arith.constant 6 : index
    %c0_116 = arith.constant 0 : index
    %c0_117 = arith.constant 0 : index
    %422 = vector.load %arg17[%c6_115, %c0_116, %c0_117] : memref<8x8x256xf32, #tpu.memory_space<vmem>>, vector<1x8x128xf32>
    %423 = vector.shape_cast %422 : vector<1x8x128xf32> to vector<8x128xf32>
    %424 = vector.shape_cast %395 : vector<8x128xf32> to vector<1x8x128xf32>
    tpu.vector_store %arg17[%c6_115, %c0_116, %c0_117], %424 {strides = array<i32>} : memref<8x8x256xf32, #tpu.memory_space<vmem>>, vector<1x8x128xf32>,
    %c1_118 = arith.constant 1 : index
    %c0_119 = arith.constant 0 : index
    %c128_120 = arith.constant 128 : index
    %425 = vector.load %arg17[%c1_118, %c0_119, %c128_120] : memref<8x8x256xf32, #tpu.memory_space<vmem>>, vector<1x8x128xf32>
    %426 = vector.shape_cast %425 : vector<1x8x128xf32> to vector<8x128xf32>
    %427 = vector.shape_cast %421 : vector<8x128xf32> to vector<1x8x128xf32>
    tpu.vector_store %arg17[%c1_118, %c0_119, %c128_120], %427 {strides = array<i32>} : memref<8x8x256xf32, #tpu.memory_space<vmem>>, vector<1x8x128xf32>,
    %428 = vector.extract_strided_slice %7 {offsets = [7, 0, 0], sizes = [1, 8, 384], strides = [1, 1, 1]} : vector<8x8x384xf32> to vector<1x8x384xf32>
    %429 = vector.shape_cast %428 : vector<1x8x384xf32> to vector<8x384xf32>
    %430 = arith.truncf %395 : vector<8x128xf32> to vector<8x128xbf16>
    %c0_121 = arith.constant 0 : index
    %c0_122 = arith.constant 0 : index
    %431 = vector.load %arg3[%c0_121, %c0_122] : memref<128x384xbf16, #tpu.memory_space<vmem>>, vector<128x384xbf16>
    %cst_123 = arith.constant dense<0.000000e+00> : vector<8x384xf32>
    %432 = tpu.matmul %430, %431, %cst_123 {dimension_numbers = #tpu.dot_dimension_numbers<[1], [0], [0], [1], [0, 0, 1, 1], [], []>} : vector<8x128xbf16>, vector<128x384xbf16>, vector<8x384xf32> -> vector<8x384xf32>
    %433 = vector.extract_strided_slice %429 {offsets = [0, 0], sizes = [8, 256], strides = [1, 1]} : vector<8x384xf32> to vector<8x256xf32>
    %434 = vector.extract_strided_slice %432 {offsets = [0, 0], sizes = [8, 256], strides = [1, 1]} : vector<8x384xf32> to vector<8x256xf32>
    %435 = arith.addf %433, %434 : vector<8x256xf32>
    %436 = arith.negf %435 : vector<8x256xf32>
    %437 = math.exp %436 : vector<8x256xf32>
    %cst_124 = arith.constant 1.000000e+00 : f32
    %438 = vector.broadcast %cst_124 : f32 to vector<8x256xf32>
    %439 = arith.addf %438, %437 : vector<8x256xf32>
    %440 = arith.divf %438, %439 : vector<8x256xf32>
    %441 = vector.extract_strided_slice %440 {offsets = [0, 0], sizes = [8, 128], strides = [1, 1]} : vector<8x256xf32> to vector<8x128xf32>
    %442 = vector.extract_strided_slice %440 {offsets = [0, 128], sizes = [8, 128], strides = [1, 1]} : vector<8x256xf32> to vector<8x128xf32>
    %443 = vector.extract_strided_slice %429 {offsets = [0, 256], sizes = [8, 128], strides = [1, 1]} : vector<8x384xf32> to vector<8x128xf32>
    %444 = vector.extract_strided_slice %432 {offsets = [0, 256], sizes = [8, 128], strides = [1, 1]} : vector<8x384xf32> to vector<8x128xf32>
    %445 = arith.addf %444, %16 : vector<8x128xf32>
    %446 = arith.mulf %441, %445 : vector<8x128xf32>
    %447 = arith.addf %443, %446 : vector<8x128xf32>
    %448 = math.tanh %447 : vector<8x128xf32>
    %cst_125 = arith.constant 1.000000e+00 : f32
    %449 = vector.broadcast %cst_125 : f32 to vector<8x128xf32>
    %450 = arith.subf %449, %442 : vector<8x128xf32>
    %451 = arith.mulf %450, %448 : vector<8x128xf32>
    %452 = arith.mulf %442, %395 : vector<8x128xf32>
    %453 = arith.addf %451, %452 : vector<8x128xf32>
    %454 = vector.extract_strided_slice %13 {offsets = [0, 0, 0], sizes = [1, 8, 384], strides = [1, 1, 1]} : vector<8x8x384xf32> to vector<1x8x384xf32>
    %455 = vector.shape_cast %454 : vector<1x8x384xf32> to vector<8x384xf32>
    %456 = arith.truncf %421 : vector<8x128xf32> to vector<8x128xbf16>
    %c0_126 = arith.constant 0 : index
    %c0_127 = arith.constant 0 : index
    %457 = vector.load %arg7[%c0_126, %c0_127] : memref<128x384xbf16, #tpu.memory_space<vmem>>, vector<128x384xbf16>
    %cst_128 = arith.constant dense<0.000000e+00> : vector<8x384xf32>
    %458 = tpu.matmul %456, %457, %cst_128 {dimension_numbers = #tpu.dot_dimension_numbers<[1], [0], [0], [1], [0, 0, 1, 1], [], []>} : vector<8x128xbf16>, vector<128x384xbf16>, vector<8x384xf32> -> vector<8x384xf32>
    %459 = vector.extract_strided_slice %455 {offsets = [0, 0], sizes = [8, 256], strides = [1, 1]} : vector<8x384xf32> to vector<8x256xf32>
    %460 = vector.extract_strided_slice %458 {offsets = [0, 0], sizes = [8, 256], strides = [1, 1]} : vector<8x384xf32> to vector<8x256xf32>
    %461 = arith.addf %459, %460 : vector<8x256xf32>
    %462 = arith.negf %461 : vector<8x256xf32>
    %463 = math.exp %462 : vector<8x256xf32>
    %cst_129 = arith.constant 1.000000e+00 : f32
    %464 = vector.broadcast %cst_129 : f32 to vector<8x256xf32>
    %465 = arith.addf %464, %463 : vector<8x256xf32>
    %466 = arith.divf %464, %465 : vector<8x256xf32>
    %467 = vector.extract_strided_slice %466 {offsets = [0, 0], sizes = [8, 128], strides = [1, 1]} : vector<8x256xf32> to vector<8x128xf32>
    %468 = vector.extract_strided_slice %466 {offsets = [0, 128], sizes = [8, 128], strides = [1, 1]} : vector<8x256xf32> to vector<8x128xf32>
    %469 = vector.extract_strided_slice %455 {offsets = [0, 256], sizes = [8, 128], strides = [1, 1]} : vector<8x384xf32> to vector<8x128xf32>
    %470 = vector.extract_strided_slice %458 {offsets = [0, 256], sizes = [8, 128], strides = [1, 1]} : vector<8x384xf32> to vector<8x128xf32>
    %471 = arith.addf %470, %19 : vector<8x128xf32>
    %472 = arith.mulf %467, %471 : vector<8x128xf32>
    %473 = arith.addf %469, %472 : vector<8x128xf32>
    %474 = math.tanh %473 : vector<8x128xf32>
    %cst_130 = arith.constant 1.000000e+00 : f32
    %475 = vector.broadcast %cst_130 : f32 to vector<8x128xf32>
    %476 = arith.subf %475, %468 : vector<8x128xf32>
    %477 = arith.mulf %476, %474 : vector<8x128xf32>
    %478 = arith.mulf %468, %421 : vector<8x128xf32>
    %479 = arith.addf %477, %478 : vector<8x128xf32>
    %c7_131 = arith.constant 7 : index
    %c0_132 = arith.constant 0 : index
    %c0_133 = arith.constant 0 : index
    %480 = vector.load %arg17[%c7_131, %c0_132, %c0_133] : memref<8x8x256xf32, #tpu.memory_space<vmem>>, vector<1x8x128xf32>
    %481 = vector.shape_cast %480 : vector<1x8x128xf32> to vector<8x128xf32>
    %482 = vector.shape_cast %453 : vector<8x128xf32> to vector<1x8x128xf32>
    tpu.vector_store %arg17[%c7_131, %c0_132, %c0_133], %482 {strides = array<i32>} : memref<8x8x256xf32, #tpu.memory_space<vmem>>, vector<1x8x128xf32>,
    %c0_134 = arith.constant 0 : index
    %c0_135 = arith.constant 0 : index
    %c128_136 = arith.constant 128 : index
    %483 = vector.load %arg17[%c0_134, %c0_135, %c128_136] : memref<8x8x256xf32, #tpu.memory_space<vmem>>, vector<1x8x128xf32>
    %484 = vector.shape_cast %483 : vector<1x8x128xf32> to vector<8x128xf32>
    %485 = vector.shape_cast %479 : vector<8x128xf32> to vector<1x8x128xf32>
    tpu.vector_store %arg17[%c0_134, %c0_135, %c128_136], %485 {strides = array<i32>} : memref<8x8x256xf32, #tpu.memory_space<vmem>>, vector<1x8x128xf32>,
    %c0_137 = arith.constant 0 : index
    %c0_138 = arith.constant 0 : index
    %c0_139 = arith.constant 0 : index
    %486 = vector.load %arg17[%c0_137, %c0_138, %c0_139] : memref<8x8x256xf32, #tpu.memory_space<vmem>>, vector<8x8x256xf32>
    %487 = vector.shape_cast %486 : vector<8x8x256xf32> to vector<64x256xf32>
    %488 = arith.truncf %487 : vector<64x256xf32> to vector<64x256xbf16>
    %c0_140 = arith.constant 0 : index
    %c0_141 = arith.constant 0 : index
    %489 = vector.load %arg10[%c0_140, %c0_141] : memref<256x512xbf16, #tpu.memory_space<vmem>>, vector<256x512xbf16>
    %cst_142 = arith.constant dense<0.000000e+00> : vector<64x512xf32>
    %490 = tpu.matmul %488, %489, %cst_142 {dimension_numbers = #tpu.dot_dimension_numbers<[1], [0], [0], [1], [0, 0, 1, 1], [], []>} : vector<64x256xbf16>, vector<256x512xbf16>, vector<64x512xf32> -> vector<64x512xf32>
    %c0_143 = arith.constant 0 : index
    %c0_144 = arith.constant 0 : index
    %491 = vector.load %arg11[%c0_143, %c0_144] : memref<1x512xf32, #tpu.memory_space<vmem>>, vector<1x512xf32>
    %492 = vector.broadcast %491 : vector<1x512xf32> to vector<64x512xf32>
    %493 = arith.addf %490, %492 : vector<64x512xf32>
    %494 = math.tanh %493 : vector<64x512xf32>
    %495 = arith.truncf %494 : vector<64x512xf32> to vector<64x512xbf16>
    %c0_145 = arith.constant 0 : index
    %c0_146 = arith.constant 0 : index
    %496 = vector.load %arg12[%c0_145, %c0_146] : memref<512x128xbf16, #tpu.memory_space<vmem>>, vector<512x128xbf16>
    %cst_147 = arith.constant dense<0.000000e+00> : vector<64x128xf32>
    %497 = tpu.matmul %495, %496, %cst_147 {dimension_numbers = #tpu.dot_dimension_numbers<[1], [0], [0], [1], [0, 0, 1, 1], [], []>} : vector<64x512xbf16>, vector<512x128xbf16>, vector<64x128xf32> -> vector<64x128xf32>
    %498 = vector.shape_cast %497 : vector<64x128xf32> to vector<8x8x128xf32>
    %c0_148 = arith.constant 0 : index
    %c0_149 = arith.constant 0 : index
    %499 = vector.load %arg13[%c0_148, %c0_149] : memref<8x128xf32, #tpu.memory_space<vmem>>, vector<8x128xf32>
    %500 = vector.shape_cast %499 : vector<8x128xf32> to vector<1x8x128xf32>
    %501 = vector.broadcast %500 : vector<1x8x128xf32> to vector<8x8x128xf32>
    %502 = arith.mulf %498, %501 : vector<8x8x128xf32>
    %cst_150 = arith.constant dense<0.000000e+00> : vector<8x8xf32>
    %503 = vector.multi_reduction <add>, %502, %cst_150 [2] : vector<8x8x128xf32> to vector<8x8xf32>
    %504 = vector.shape_cast %503 : vector<8x8xf32> to vector<8x8x1xf32>
    %cst_151 = arith.constant dense<0xFF800000> : vector<8x1xf32>
    %505 = vector.multi_reduction <maximumf>, %504, %cst_151 [0] : vector<8x8x1xf32> to vector<8x1xf32>
    %506 = vector.shape_cast %505 : vector<8x1xf32> to vector<1x8x1xf32>
    %507 = vector.broadcast %506 : vector<1x8x1xf32> to vector<8x8x1xf32>
    %508 = arith.subf %504, %507 : vector<8x8x1xf32>
    %509 = math.exp %508 : vector<8x8x1xf32>
    %cst_152 = arith.constant dense<0.000000e+00> : vector<8x1xf32>
    %510 = vector.multi_reduction <add>, %509, %cst_152 [0] : vector<8x8x1xf32> to vector<8x1xf32>
    %511 = vector.shape_cast %510 : vector<8x1xf32> to vector<1x8x1xf32>
    %512 = tpu.reciprocal %511 {approx = true} : vector<1x8x1xf32> -> vector<1x8x1xf32>
    %513 = vector.broadcast %512 : vector<1x8x1xf32> to vector<8x8x1xf32>
    %514 = arith.mulf %509, %513 : vector<8x8x1xf32>
    %515 = vector.broadcast %514 : vector<8x8x1xf32> to vector<8x8x256xf32>
    %516 = arith.mulf %515, %486 : vector<8x8x256xf32>
    %cst_153 = arith.constant dense<0.000000e+00> : vector<8x256xf32>
    %517 = vector.multi_reduction <add>, %516, %cst_153 [0] : vector<8x8x256xf32> to vector<8x256xf32>
    %518 = arith.truncf %517 : vector<8x256xf32> to vector<8x256xbf16>
    %c0_154 = arith.constant 0 : index
    %c0_155 = arith.constant 0 : index
    %519 = vector.load %arg14[%c0_154, %c0_155] : memref<256x128xbf16, #tpu.memory_space<vmem>>, vector<256x128xbf16>
    %cst_156 = arith.constant dense<0.000000e+00> : vector<8x128xf32>
    %520 = tpu.matmul %518, %519, %cst_156 {dimension_numbers = #tpu.dot_dimension_numbers<[1], [0], [0], [1], [0, 0, 1, 1], [], []>} : vector<8x256xbf16>, vector<256x128xbf16>, vector<8x128xf32> -> vector<8x128xf32>
    %c0_157 = arith.constant 0 : index
    %c0_158 = arith.constant 0 : index
    %521 = vector.load %arg15[%c0_157, %c0_158] : memref<1x128xf32, #tpu.memory_space<vmem>>, vector<1x128xf32>
    %522 = vector.broadcast %521 : vector<1x128xf32> to vector<8x128xf32>
    %523 = arith.addf %520, %522 : vector<8x128xf32>
    %c0_159 = arith.constant 0 : index
    %c0_160 = arith.constant 0 : index
    %524 = vector.load %arg16[%c0_159, %c0_160] : memref<8x128xf32, #tpu.memory_space<vmem>>, vector<8x128xf32>
    tpu.vector_store %arg16[%c0_159, %c0_160], %523 {strides = array<i32>} : memref<8x128xf32, #tpu.memory_space<vmem>>, vector<8x128xf32>,
    return
  }
  func.func @transform_0(%arg0: i32) -> (i32, i32, i32) {
    %c0_i32 = arith.constant 0 : i32
    %c0_i32_0 = arith.constant 0 : i32
    %c0_i32_1 = arith.constant 0 : i32
    return %c0_i32, %arg0, %c0_i32_0 : i32, i32, i32
  }
  func.func @transform_1(%arg0: i32) -> (i32, i32) {
    %c0_i32 = arith.constant 0 : i32
    %c0_i32_0 = arith.constant 0 : i32
    %c0_i32_1 = arith.constant 0 : i32
    return %c0_i32, %c0_i32_0 : i32, i32
  }
  func.func @transform_2(%arg0: i32) -> (i32, i32) {
    %c0_i32 = arith.constant 0 : i32
    %c0_i32_0 = arith.constant 0 : i32
    %c0_i32_1 = arith.constant 0 : i32
    return %c0_i32, %c0_i32_0 : i32, i32
  }
  func.func @transform_3(%arg0: i32) -> (i32, i32) {
    %c0_i32 = arith.constant 0 : i32
    %c0_i32_0 = arith.constant 0 : i32
    %c0_i32_1 = arith.constant 0 : i32
    return %c0_i32, %c0_i32_0 : i32, i32
  }
  func.func @transform_4(%arg0: i32) -> (i32, i32) {
    %c0_i32 = arith.constant 0 : i32
    %c0_i32_0 = arith.constant 0 : i32
    %c0_i32_1 = arith.constant 0 : i32
    return %c0_i32, %c0_i32_0 : i32, i32
  }
  func.func @transform_5(%arg0: i32) -> (i32, i32) {
    %c0_i32 = arith.constant 0 : i32
    %c0_i32_0 = arith.constant 0 : i32
    %c0_i32_1 = arith.constant 0 : i32
    return %c0_i32, %c0_i32_0 : i32, i32
  }
  func.func @transform_6(%arg0: i32) -> (i32, i32) {
    %c0_i32 = arith.constant 0 : i32
    %c0_i32_0 = arith.constant 0 : i32
    %c0_i32_1 = arith.constant 0 : i32
    return %c0_i32, %c0_i32_0 : i32, i32
  }
  func.func @transform_7(%arg0: i32) -> (i32, i32) {
    %c0_i32 = arith.constant 0 : i32
    %c0_i32_0 = arith.constant 0 : i32
    %c0_i32_1 = arith.constant 0 : i32
    return %c0_i32, %c0_i32_0 : i32, i32
  }
  func.func @transform_8(%arg0: i32) -> (i32, i32) {
    %c0_i32 = arith.constant 0 : i32
    %c0_i32_0 = arith.constant 0 : i32
    %c0_i32_1 = arith.constant 0 : i32
    return %c0_i32, %c0_i32_0 : i32, i32
  }
  func.func @transform_9(%arg0: i32) -> (i32, i32) {
    %c0_i32 = arith.constant 0 : i32
    %c0_i32_0 = arith.constant 0 : i32
    %c0_i32_1 = arith.constant 0 : i32
    return %c0_i32, %c0_i32_0 : i32, i32
  }
  func.func @transform_10(%arg0: i32) -> (i32, i32) {
    %c0_i32 = arith.constant 0 : i32
    %c0_i32_0 = arith.constant 0 : i32
    %c0_i32_1 = arith.constant 0 : i32
    return %c0_i32, %c0_i32_0 : i32, i32
  }
  func.func @transform_11(%arg0: i32) -> (i32, i32) {
    %c0_i32 = arith.constant 0 : i32
    %c0_i32_0 = arith.constant 0 : i32
    %c0_i32_1 = arith.constant 0 : i32
    return %c0_i32, %c0_i32_0 : i32, i32
  }
  func.func @transform_12(%arg0: i32) -> (i32, i32) {
    %c0_i32 = arith.constant 0 : i32
    %c0_i32_0 = arith.constant 0 : i32
    return %arg0, %c0_i32 : i32, i32
  }
  func.func @transform_13(%arg0: i32) -> (i32, i32) {
    %c0_i32 = arith.constant 0 : i32
    %c0_i32_0 = arith.constant 0 : i32
    %c0_i32_1 = arith.constant 0 : i32
    return %c0_i32, %c0_i32_0 : i32, i32
  }
  func.func @transform_14(%arg0: i32) -> (i32, i32) {
    %c0_i32 = arith.constant 0 : i32
    %c0_i32_0 = arith.constant 0 : i32
    %c0_i32_1 = arith.constant 0 : i32
    return %c0_i32, %c0_i32_0 : i32, i32
  }
  func.func @transform_15(%arg0: i32) -> (i32, i32) {
    %c0_i32 = arith.constant 0 : i32
    %c0_i32_0 = arith.constant 0 : i32
    return %arg0, %c0_i32 : i32, i32
  }
}

</mosaic_0001>

<bundles_post_ra>
// kernel: tpu_custom_call.1
= control target key start
LH: loop header
LB: loop body
LE: loop exit
PB: predicated region body
PF: predicated region fallthrough
CT: control target
= control target key end

     0   :  { %20 = vsyncpa [#allocation4], 0  ;;  %s9938_s0 = inlined_call_operand.hbm [shape: bf16[8,8,32], index: 0, kind: input, shape index: {}]   ;;  %s9939_s1 = inlined_call_operand.hbm [shape: bf16[32,384], index: 1, kind: input, shape index: {}]   ;;  %s9940_s2 = inlined_call_operand.hbm [shape: bf16[128,384], index: 2, kind: input, shape index: {}]   ;;  %s9941_s3 = inlined_call_operand.hbm [shape: f32[1,384], index: 3, kind: input, shape index: {}]   ;;  %s9942_s4 = inlined_call_operand.hbm [shape: f32[1,128], index: 4, kind: input, shape index: {}]   ;;  %s9943_s5 = inlined_call_operand.hbm [shape: bf16[32,384], index: 5, kind: input, shape index: {}]   ;;  %s9944_s6 = inlined_call_operand.hbm [shape: bf16[128,384], index: 6, kind: input, shape index: {}]   ;;  %s9945_s7 = inlined_call_operand.vmem [shape: f32[1,384], index: 7, kind: input, shape index: {}]   ;;  %s9946_s8 = inlined_call_operand.hbm [shape: f32[1,128], index: 8, kind: input, shape index: {}]   ;;  %s9947_s9 = inlined_call_operand.hbm [shape: bf16[256,512], index: 9, kind: input, shape index: {}]   ;;  %s9948_s10 = inlined_call_operand.hbm [shape: f32[1,512], index: 10, kind: input, shape index: {}]   ;;  %s9949_s11 = inlined_call_operand.hbm [shape: bf16[512,128], index: 11, kind: input, shape index: {}]   ;;  %s9950_s12 = inlined_call_operand.vmem [shape: f32[8,128], index: 12, kind: input, shape index: {}]   ;;  %s9951_s13 = inlined_call_operand.hbm [shape: bf16[256,128], index: 13, kind: input, shape index: {}]   ;;  %s9952_s14 = inlined_call_operand.vmem [shape: f32[1,128], index: 14, kind: input, shape index: {}]   ;;  %s9953_s15 = inlined_call_operand.hbm [shape: f32[8,128], index: 15, kind: output, shape index: {}]  }
   0x1   :  { %21 = vsyncpa [#allocation7], 0 }
   0x2   :  { %22 = vsyncpa [#allocation10], 0 }
   0x3   :  { %23 = vsyncpa [#allocation13], 0 }
   0x4   :  { %24 = vsyncpa [#allocation16], 0 }
   0x5   :  { %25 = vsyncpa [#allocation19], 0 }
   0x6   :  { %26 = vsyncpa [#allocation22], 0  ;;  %s45_s20 = sshll.u32 %s9939_s1, 4  ;;  %s46_s20 = int_to_ptr.hbm [resolvable:$true] %s45_s20 }
   0x7   :  { %27 = vsyncpa [#allocation5], 0  ;;  %s9110_s21 = smov [#allocation6]   ;;  %s72_s25 = sshll.u32 %s9941_s3, 4  ;;  %s73_s25 = int_to_ptr.hbm [resolvable:$true] %s72_s25 }
   0x8   :  { %s47_s22 = sshll.u32 %s9110_s21, 4  ;;  %s9111_s26 = smov 192   ;;  %s48_s22 = int_to_ptr.vmem [resolvable:$true] %s47_s22 }
   0x9   :  { %s9112_s27 = smov 12   ;;  %s9113_s28 = smov [#allocation9]  }
   0xa   :  { %53 = dma.hbm_to_vmem [thread:$0]  %s46_s20, 768, %s48_s22, [#allocation7], %s9111_s26, %s9111_s26, %s9112_s27  }
   0xb   :  { %s74_s29 = sshll.u32 %s9113_s28, 4  ;;  %s93_s16 = sshll.u32 %s9943_s5, 4  ;;  %s75_s29 = int_to_ptr.vmem [resolvable:$true] %s74_s29  ;;  %s94_s16 = int_to_ptr.hbm [resolvable:$true] %s93_s16 }
   0xc   :  { %77 = dma.hbm_to_vmem [thread:$0]  %s73_s25, 48, %s75_s29, [#allocation10]  }
   0xd   :  { %s122_s3 = sshll.u32 %s9946_s8, 4  ;;  %s9114_s19 = smov [#allocation12]   ;;  %s123_s3 = int_to_ptr.hbm [resolvable:$true] %s122_s3 }
   0xe   :  { %s95_s21 = sshll.u32 %s9114_s19, 4  ;;  %s9115_s20 = smov [#allocation15]   ;;  %s96_s21 = int_to_ptr.vmem [resolvable:$true] %s95_s21 }
   0xf   :  { %101 = dma.hbm_to_vmem [thread:$0]  %s94_s16, 768, %s96_s21, [#allocation13], %s9111_s26, %s9111_s26, %s9112_s27  }
  0x10   :  { %s124_s22 = sshll.u32 %s9115_s20, 4  ;;  %s146_s5 = sshll.u32 %s9948_s10, 4  ;;  %s125_s22 = int_to_ptr.vmem [resolvable:$true] %s124_s22  ;;  %s147_s5 = int_to_ptr.hbm [resolvable:$true] %s146_s5 }
  0x11   :  { %127 = dma.hbm_to_vmem [thread:$0]  %s123_s3, 16, %s125_s22, [#allocation16]  }
  0x12   :  { %s32_s8 = sshll.u32 %s9938_s0, 4  ;;  %s9116_s29 = smov [#allocation18]   ;;  %s33_s8 = int_to_ptr.hbm [resolvable:$true] %s32_s8 }
  0x13   :  { %s148_s30 = sshll.u32 %s9116_s29, 4  ;;  %s9117_s1 = smov [#allocation3]   ;;  %s149_s30 = int_to_ptr.vmem [resolvable:$true] %s148_s30 }
  0x14   :  { %151 = dma.hbm_to_vmem [thread:$0]  %s147_s5, 64, %s149_s30, [#allocation19]  }
  0x15   :  { %s34_s16 = sshll.u32 %s9117_s1, 4  ;;  %s9118_s17 = smov 64   ;;  %s35_s16 = int_to_ptr.vmem [resolvable:$true] %s34_s16 }
  0x16   :  { %s9119_s18 = smov 4   ;;  %s58_s19 = sshll.u32 %s9940_s2, 4  ;;  %s59_s19 = int_to_ptr.hbm [resolvable:$true] %s58_s19 }
  0x17   :  { %40 = dma.hbm_to_vmem [thread:$0]  %s33_s8, 512, %s35_s16, [#allocation4], %s9118_s17, %s9118_s17, %s9119_s18  }
  0x18   :  { %s9120_s0 = smov [#allocation8]   ;;  %s83_s23 = sshll.u32 %s9942_s4, 4  ;;  %s84_s23 = int_to_ptr.hbm [resolvable:$true] %s83_s23 }
  0x19   :  { %s60_s21 = sshll.u32 %s9120_s0, 4  ;;  %s9121_s24 = smov [#allocation11]   ;;  %s61_s21 = int_to_ptr.vmem [resolvable:$true] %s60_s21 }
  0x1a   :  { %66 = dma.hbm_to_vmem [thread:$0]  %s59_s19, 3072, %s61_s21, [#allocation7], %s9111_s26, %s9111_s26, %s9112_s27  }
  0x1b   :  { %s85_s5 = sshll.u32 %s9121_s24, 4  ;;  %s106_s8 = sshll.u32 %s9944_s6, 4  ;;  %s86_s5 = int_to_ptr.vmem [resolvable:$true] %s85_s5  ;;  %s107_s8 = int_to_ptr.hbm [resolvable:$true] %s106_s8 }
  0x1c   :  { %88 = dma.hbm_to_vmem [thread:$0]  %s84_s23, 16, %s86_s5, [#allocation10]  }
  0x1d   :  { %s132_s30 = sshll.u32 %s9947_s9, 4  ;;  %s9122_s1 = smov [#allocation14]   ;;  %s133_s30 = int_to_ptr.hbm [resolvable:$true] %s132_s30 }
  0x1e   :  { %s108_s4 = sshll.u32 %s9122_s1, 4  ;;  %s9123_s16 = smov [#allocation17]   ;;  %s109_s4 = int_to_ptr.vmem [resolvable:$true] %s108_s4 }
  0x1f   :  { %114 = dma.hbm_to_vmem [thread:$0]  %s107_s8, 3072, %s109_s4, [#allocation13], %s9111_s26, %s9111_s26, %s9112_s27  }
  0x20   :  { %s134_s10 = sshll.u32 %s9123_s16, 4  ;;  %s9124_s3 = smov 256   ;;  %s135_s10 = int_to_ptr.vmem [resolvable:$true] %s134_s10 }
  0x21   :  { %s9125_s6 = smov 16   ;;  %s156_s21 = sshll.u32 %s9949_s11, 4  ;;  %s157_s21 = int_to_ptr.hbm [resolvable:$true] %s156_s21 }
  0x22   :  { %140 = dma.hbm_to_vmem [thread:$0]  %s133_s30, 8192, %s135_s10, [#allocation16], %s9124_s3, %s9124_s3, %s9125_s6  }
  0x23   :  { %s9126_s9 = smov [#allocation20]   ;;  %s171_s24 = sshll.u32 %s9951_s13, 4  ;;  %s172_s24 = int_to_ptr.hbm [resolvable:$true] %s171_s24 }
  0x24   :  { %s158_s20 = sshll.u32 %s9126_s9, 4  ;;  %s9127_s26 = smov [#allocation21]   ;;  %s159_s20 = int_to_ptr.vmem [resolvable:$true] %s158_s20 }
  0x25   :  { %164 = dma.hbm_to_vmem [thread:$0]  %s157_s21, 4096, %s159_s20, [#allocation19], %s9118_s17, %s9118_s17, %s9119_s18  }
  0x26   :  { %s173_s27 = sshll.u32 %s9127_s26, 4  ;;  %s174_s27 = int_to_ptr.vmem [resolvable:$true] %s173_s27 }
  0x27   :  { %179 = dma.hbm_to_vmem [thread:$0]  %s172_s24, 2048, %s174_s27, [#allocation22], %s9118_s17, %s9118_s17, %s9119_s18  }
  0x28   :  { %9094 = dma.done.wait [#allocation4], 512  }
  0x29   :  { %9095 = vsyncadd [#allocation4], 4294966784 }
  0x2a   :  { %9096 = dma.done.wait [#allocation7], 3840  }
  0x2b   :  { %9097 = vsyncadd [#allocation7], 4294963456 }
  0x2c   :  { %9098 = dma.done.wait [#allocation10], 64  }
  0x2d   :  { %9099 = vsyncadd [#allocation10], 4294967232 }
  0x2e   :  { %9100 = dma.done.wait [#allocation13], 3840  }
  0x2f   :  { %9101 = vsyncadd [#allocation13], 4294963456 }
  0x30   :  { %9102 = dma.done.wait [#allocation16], 8208  }
  0x31   :  { %9103 = vsyncadd [#allocation16], 4294959088 }
  0x32   :  { %9104 = dma.done.wait [#allocation19], 4160  }
  0x33   :  { %9105 = vsyncadd [#allocation19], 4294963136 }
  0x34   :  { %9106 = dma.done.wait [#allocation22], 2048  }
  0x35   :  { %9107 = vsyncadd [#allocation22], 4294965248  ;;  %v5925_v0 = vld [vmem:[#allocation6 + $0x18] sm:$0xf]  ;;  %v8007_v1 = vld [vmem:[#allocation6 + $0x20] sm:$0xf0] }
  0x36   :  { %v8006_v2 = vld [vmem:[#allocation6 + $0x1c] sm:$0xf]  ;;  %v5926_v3 = vor.u32 %v8007_v1, %v5925_v0  ;;  %v5927_v4 = vld [vmem:[#allocation6 + $0x24] sm:$0xf0]  ;;  %v5933_v5 = vld [vmem:[#allocation6 + $0x20] sm:$0xf] }
  0x37   :  { %v8008_v6 = vld [vmem:[#allocation6 + $0x28] sm:$0xf0]  ;;  %v5930_v7 = vor.u32 %v8006_v2, %v5927_v4  ;;  %v8013_v10 = vld [vmem:[#allocation12 + $0x20] sm:$0xf0]  ;;  %v5913_v11 = vld [vmem:[#allocation6] sm:$0xf] }
  0x38   :  { %v5934_v8 = vor.u32 %v8008_v6, %v5933_v5  ;;  %v5961_v9 = vld [vmem:[#allocation12 + $0x18] sm:$0xf]  ;;  %326 = vmatpush.bf16.msra.mxu0 %v5926_v3  ;;  %v8003_v14 = vld [vmem:[#allocation6 + $0x4] sm:$0xf]  ;;  %v5921_v18 = vld [vmem:[#allocation6 + $0x8] sm:$0xf] }
  0x39   :  { %v5962_v12 = vor.u32 %v8013_v10, %v5961_v9  ;;  %v8004_v13 = vld [vmem:[#allocation6 + $0x8] sm:$0xf0]  ;;  %v5915_v15 = vld [vmem:[#allocation6 + $0xc] sm:$0xf0]  ;;  %355 = vmatpush.bf16.msra.mxu1 %v5930_v7  ;;  %v8005_v19 = vld [vmem:[#allocation6 + $0x10] sm:$0xf0] }
  0x3a   :  { %384 = vmatpush.bf16.msra.mxu2 %v5934_v8  ;;  %v5914_v16 = vor.u32 %v8004_v13, %v5913_v11  ;;  %v5918_v17 = vor.u32 %v8003_v14, %v5915_v15  ;;  %v5949_v20 = vld [vmem:[#allocation12] sm:$0xf]  ;;  %v5922_v21 = vor.u32 %v8005_v19, %v5921_v18  ;;  %v8010_v22 = vld [vmem:[#allocation12 + $0x8] sm:$0xf0]  ;;  %v8012_v23 = vld [vmem:[#allocation12 + $0x1c] sm:$0xf] }
  0x3b   :  { %461 = vmatpush.bf16.msra.mxu3 %v5962_v12  ;;  %v5950_v24 = vor.u32 %v8010_v22, %v5949_v20  ;;  %v9267_v25 = vld [vmem:[#allocation3] sm:$0xff]  ;;  %vm307_vm0 = vcmask 261120   ;;  %v5969_v27 = vld [vmem:[#allocation12 + $0x20] sm:$0xf]  ;;  %v8036_v30 = vld [vmem:[#allocation8 + $0xac] sm:$0xf] }
  0x3c   :  { %v5963_v26 = vld [vmem:[#allocation12 + $0x24] sm:$0xf0]  ;;  %327 = vmatpush.bf16.msra.mxu0 %v5914_v16  ;;  %v8014_v29 = vld [vmem:[#allocation12 + $0x28] sm:$0xf0]  ;;  %v6071_v31 = vld [vmem:[#allocation8 + $0xb4] sm:$0xf0] }
  0x3d   :  { %v5966_v28 = vor.u32 %v8012_v23, %v5963_v26  ;;  %356 = vmatpush.bf16.msra.mxu1 %v5918_v17  ;;  %v5970_v32 = vor.u32 %v8014_v29, %v5969_v27  ;;  %v6074_v33 = vor.u32 %v8036_v30, %v6071_v31  ;;  %v6069_v34 = vld [vmem:[#allocation8 + $0xa8] sm:$0xf]  ;;  %v8033_v35 = vld [vmem:[#allocation8 + $0x94] sm:$0xf]  ;;  %v6059_v36 = vld [vmem:[#allocation8 + $0x9c] sm:$0xf0] }
  0x3e   :  { %385 = vmatpush.bf16.msra.mxu2 %v5922_v21  ;;  %v8037_v37 = vld [vmem:[#allocation8 + $0xb0] sm:$0xf0]  ;;  %v8009_v39 = vld [vmem:[#allocation12 + $0x4] sm:$0xf]  ;;  %v6057_v41 = vld [vmem:[#allocation8 + $0x90] sm:$0xf]  ;;  %v6062_v42 = vor.u32 %v8033_v35, %v6059_v36 }
  0x3f   :  { %462 = vmatpush.bf16.msra.mxu3 %v5950_v24  ;;  %5935 = vmatmul.msk.bf16.vlgmr.msra.gmra.mxu0 %vm307_vm0, %v9267_v25  ;;  %v6070_v38 = vor.u32 %v8037_v37, %v6069_v34  ;;  %v5951_v40 = vld [vmem:[#allocation12 + $0xc] sm:$0xf0]  ;;  %v8030_v43 = vld [vmem:[#allocation8 + $0x7c] sm:$0xf]  ;;  %v6047_v46 = vld [vmem:[#allocation8 + $0x84] sm:$0xf0] }
  0x40   :  { %490 = vmatpush.bf16.msrb.mxu0 %v5966_v28  ;;  %5939 = vmatmul.msk.bf16.vlgmr.msra.gmra.mxu1 %vm307_vm0, %v9267_v25  ;;  %v5954_v44 = vor.u32 %v8009_v39, %v5951_v40  ;;  %v8034_v45 = vld [vmem:[#allocation8 + $0x98] sm:$0xf0]  ;;  %v6045_v48 = vld [vmem:[#allocation8 + $0x78] sm:$0xf]  ;;  %v8031_v49 = vld [vmem:[#allocation8 + $0x80] sm:$0xf0]  ;;  %v6050_v50 = vor.u32 %v8030_v43, %v6047_v46 }
  0x41   :  { %519 = vmatpush.bf16.msrb.mxu1 %v5970_v32  ;;  %5943 = vmatmul.msk.bf16.vlgmr.msra.gmra.mxu2 %vm307_vm0, %v9267_v25  ;;  %v6058_v47 = vor.u32 %v8034_v45, %v6057_v41  ;;  %v8027_v51 = vld [vmem:[#allocation8 + $0x64] sm:$0xf]  ;;  %v6046_v52 = vor.u32 %v8031_v49, %v6045_v48  ;;  %v6035_v53 = vld [vmem:[#allocation8 + $0x6c] sm:$0xf0]  ;;  %v6033_v54 = vld [vmem:[#allocation8 + $0x60] sm:$0xf] }
  0x42   :  { %5971 = vmatmul.msk.bf16.vlgmr.msra.gmra.mxu3 %vm307_vm0, %v9267_v25  ;;  %710 = vmatpush.bf16.msrb.mxu2 %v6070_v38  ;;  %v8028_v55 = vld [vmem:[#allocation8 + $0x68] sm:$0xf0]  ;;  %v6038_v56 = vor.u32 %v8027_v51, %v6035_v53  ;;  %v9277_v58 = vld [vmem:[#allocation3 + $0x8] sm:$0xff]  ;;  %v6021_v62 = vld [vmem:[#allocation8 + $0x48] sm:$0xf]  ;;  %s9129_s5 = smov [#allocation23]  }
  0x43   :  { %723 = vmatpush.bf16.msrb.mxu3 %v6074_v33  ;;  %v6034_v57 = vor.u32 %v8028_v55, %v6033_v54  ;;  %v8024_v59 = vld [vmem:[#allocation8 + $0x4c] sm:$0xf]  ;;  %v6023_v60 = vld [vmem:[#allocation8 + $0x54] sm:$0xf0]  ;;  %v8025_v63 = vld [vmem:[#allocation8 + $0x50] sm:$0xf0] }
  0x44   :  { %491 = vmatpush.bf16.msrb.mxu0 %v5954_v44  ;;  %v6026_v61 = vor.u32 %v8024_v59, %v6023_v60  ;;  %v8021_v0 = vld [vmem:[#allocation8 + $0x34] sm:$0xf]  ;;  %v6011_v1 = vld [vmem:[#allocation8 + $0x3c] sm:$0xf0]  ;;  %v6022_v2 = vor.u32 %v8025_v63, %v6021_v62  ;;  %v5957_v3 = vld [vmem:[#allocation12 + $0x8] sm:$0xf] }
  0x45   :  { %v8011_v4 = vld [vmem:[#allocation12 + $0x10] sm:$0xf0]  ;;  %v6009_v5 = vld [vmem:[#allocation8 + $0x30] sm:$0xf]  ;;  %v6014_v6 = vor.u32 %v8021_v0, %v6011_v1  ;;  %v5999_v10 = vld [vmem:[#allocation8 + $0x24] sm:$0xf0] }
  0x46   :  { %711 = vmatpush.bf16.msrb.mxu2 %v6058_v47  ;;  %v8018_v7 = vld [vmem:[#allocation8 + $0x1c] sm:$0xf]  ;;  %v5958_v8 = vor.u32 %v8011_v4, %v5957_v3  ;;  %v5997_v12 = vld [vmem:[#allocation8 + $0x18] sm:$0xf]  ;;  %v8019_v13 = vld [vmem:[#allocation8 + $0x20] sm:$0xf0] }
  0x47   :  { %724 = vmatpush.bf16.msrb.mxu3 %v6062_v42  ;;  %v8022_v9 = vld [vmem:[#allocation8 + $0x38] sm:$0xf0]  ;;  %v6002_v14 = vor.u32 %v8018_v7, %v5999_v10  ;;  %v8015_v15 = vld [vmem:[#allocation8 + $0x4] sm:$0xf]  ;;  %v5998_v16 = vor.u32 %v8019_v13, %v5997_v12  ;;  %v5987_v17 = vld [vmem:[#allocation8 + $0xc] sm:$0xf0] }
  0x48   :  { %v6010_v11 = vor.u32 %v8022_v9, %v6009_v5  ;;  %520 = vmatpush.bf16.msrb.mxu1 %v5958_v8  ;;  %v5985_v18 = vld [vmem:[#allocation8] sm:$0xf]  ;;  %v8016_v19 = vld [vmem:[#allocation8 + $0x8] sm:$0xf0]  ;;  %v5990_v22 = vor.u32 %v8015_v15, %v5987_v17  ;;  %v6077_v24 = vld [vmem:[#allocation8 + $0xb0] sm:$0xf] }
  0x49   :  { %v6167_v20 = vld [vmem:[#allocation14 + $0xa8] sm:$0xf]  ;;  %v8061_v21 = vld [vmem:[#allocation14 + $0xb0] sm:$0xf0]  ;;  %v5986_v23 = vor.u32 %v8016_v19, %v5985_v18  ;;  %v6155_v29 = vld [vmem:[#allocation14 + $0x90] sm:$0xf] }
  0x4a   :  { %712 = vmatpush.bf16.msrb.mxu2 %v6046_v52  ;;  %v8038_v26 = vld [vmem:[#allocation8 + $0xb8] sm:$0xf0]  ;;  %v9287_v27 = vld [vmem:[#allocation3 + $0x10] sm:$0xff]  ;;  %v6168_v28 = vor.u32 %v8061_v21, %v6167_v20  ;;  %v8058_v30 = vld [vmem:[#allocation14 + $0x98] sm:$0xf0]  ;;  %s5877_s25 = sshll.u32 %s9129_s5, 4  ;;  %s5878_s25 = int_to_ptr.vmem [resolvable:$true] %s5877_s25 }
  0x4b   :  { %725 = vmatpush.bf16.msrb.mxu3 %v6050_v50  ;;  %v6078_v31 = vor.u32 %v8038_v26, %v6077_v24  ;;  %v6156_v32 = vor.u32 %v8058_v30, %v6155_v29  ;;  %v6065_v33 = vld [vmem:[#allocation8 + $0x98] sm:$0xf]  ;;  %v8035_v34 = vld [vmem:[#allocation8 + $0xa0] sm:$0xf0]  ;;  %v6143_v35 = vld [vmem:[#allocation14 + $0x78] sm:$0xf] }
  0x4c   :  { %v8055_v36 = vld [vmem:[#allocation14 + $0x80] sm:$0xf0]  ;;  %v8060_v37 = vld [vmem:[#allocation14 + $0xac] sm:$0xf]  ;;  %v6169_v38 = vld [vmem:[#allocation14 + $0xb4] sm:$0xf0]  ;;  %v6066_v39 = vor.u32 %v8035_v34, %v6065_v33 }
  0x4d   :  { %v6172_v40 = vor.u32 %v8060_v37, %v6169_v38  ;;  %v6053_v41 = vld [vmem:[#allocation8 + $0x80] sm:$0xf]  ;;  %v8032_v42 = vld [vmem:[#allocation8 + $0x88] sm:$0xf0]  ;;  %v6144_v43 = vor.u32 %v8055_v36, %v6143_v35  ;;  %v6157_v45 = vld [vmem:[#allocation14 + $0x9c] sm:$0xf0] }
  0x4e   :  { %713 = vmatpush.bf16.msrb.mxu2 %v6034_v57  ;;  %v8057_v44 = vld [vmem:[#allocation14 + $0x94] sm:$0xf]  ;;  %v6131_v46 = vld [vmem:[#allocation14 + $0x60] sm:$0xf]  ;;  %v8052_v47 = vld [vmem:[#allocation14 + $0x68] sm:$0xf0]  ;;  %v6054_v49 = vor.u32 %v8032_v42, %v6053_v41 }
  0x4f   :  { %726 = vmatpush.bf16.msrb.mxu3 %v6038_v56  ;;  %5936 = vmatmul.msk.bf16.gmra.mxu0 %vm307_vm0, %v9277_v58  ;;  %v6160_v48 = vor.u32 %v8057_v44, %v6157_v45  ;;  %v6041_v50 = vld [vmem:[#allocation8 + $0x68] sm:$0xf]  ;;  %v8029_v51 = vld [vmem:[#allocation8 + $0x70] sm:$0xf0]  ;;  %v6132_v52 = vor.u32 %v8052_v47, %v6131_v46  ;;  %v6119_v53 = vld [vmem:[#allocation14 + $0x48] sm:$0xf] }
  0x50   :  { %5940 = vmatmul.msk.bf16.gmra.mxu1 %vm307_vm0, %v9277_v58  ;;  %970 = vmatpush.bf16.msra.mxu0 %v6172_v40  ;;  %v8049_v54 = vld [vmem:[#allocation14 + $0x50] sm:$0xf0]  ;;  %v6042_v55 = vor.u32 %v8029_v51, %v6041_v50  ;;  %v6029_v56 = vld [vmem:[#allocation8 + $0x50] sm:$0xf]  ;;  %v8026_v57 = vld [vmem:[#allocation8 + $0x58] sm:$0xf0] }
  0x51   :  { %5944 = vmatmul.msk.bf16.gmra.mxu2 %vm307_vm0, %v9277_v58  ;;  %v9297_v59 = vld [vmem:[#allocation3 + $0x18] sm:$0xff]  ;;  %v6120_v60 = vor.u32 %v8049_v54, %v6119_v53  ;;  %v8046_v62 = vld [vmem:[#allocation14 + $0x38] sm:$0xf0]  ;;  %v6030_v63 = vor.u32 %v8026_v57, %v6029_v56  ;;  %v6017_v1 = vld [vmem:[#allocation8 + $0x38] sm:$0xf]  ;;  %v9128_v30 = vmov 0  }
  0x52   :  { %5972 = vmatmul.msk.bf16.gmra.mxu3 %vm307_vm0, %v9277_v58  ;;  %714 = vmatpush.bf16.msrb.mxu2 %v6022_v2  ;;  %v8023_v2 = vld [vmem:[#allocation8 + $0x40] sm:$0xf0]  ;;  %v6095_v3 = vld [vmem:[#allocation14 + $0x18] sm:$0xf]  ;;  %v8043_v4 = vld [vmem:[#allocation14 + $0x20] sm:$0xf0] }
  0x53   :  { %727 = vmatpush.bf16.msrb.mxu3 %v6026_v61  ;;  %v6107_v61 = vld [vmem:[#allocation14 + $0x30] sm:$0xf]  ;;  %v8054_v5 = vld [vmem:[#allocation14 + $0x7c] sm:$0xf]  ;;  %v6018_v7 = vor.u32 %v8023_v2, %v6017_v1  ;;  %v8020_v12 = vld [vmem:[#allocation8 + $0x28] sm:$0xf0]  ;;  %v6096_v13 = vor.u32 %v8043_v4, %v6095_v3 }
  0x54   :  { %971 = vmatpush.bf16.msra.mxu0 %v6160_v48  ;;  %v6108_v0 = vor.u32 %v8046_v62, %v6107_v61  ;;  %v6175_v8 = vld [vmem:[#allocation14 + $0xb0] sm:$0xf]  ;;  %v8062_v10 = vld [vmem:[#allocation14 + $0xb8] sm:$0xf0]  ;;  %v8040_v18 = vld [vmem:[#allocation14 + $0x8] sm:$0xf0] }
  0x55   :  { %v6176_v15 = vor.u32 %v8062_v10, %v6175_v8  ;;  %v6133_v17 = vld [vmem:[#allocation14 + $0x6c] sm:$0xf0]  ;;  %v6163_v20 = vld [vmem:[#allocation14 + $0x98] sm:$0xf]  ;;  %v8059_v21 = vld [vmem:[#allocation14 + $0xa0] sm:$0xf0] }
  0x56   :  { %715 = vmatpush.bf16.msrb.mxu2 %v6010_v11  ;;  %v6005_v11 = vld [vmem:[#allocation8 + $0x20] sm:$0xf]  ;;  %v5993_v24 = vld [vmem:[#allocation8 + $0x8] sm:$0xf]  ;;  %v8017_v26 = vld [vmem:[#allocation8 + $0x10] sm:$0xf0] }
  0x57   :  { %728 = vmatpush.bf16.msrb.mxu3 %v6014_v6  ;;  %v6145_v6 = vld [vmem:[#allocation14 + $0x84] sm:$0xf0]  ;;  %983 = vmatpush.bf16.msra.mxu1 %v6176_v15  ;;  %v5994_v29 = vor.u32 %v8017_v26, %v5993_v24  ;;  %v6151_v33 = vld [vmem:[#allocation14 + $0x80] sm:$0xf]  ;;  %v8056_v35 = vld [vmem:[#allocation14 + $0x88] sm:$0xf0] }
  0x58   :  { %v6148_v9 = vor.u32 %v8054_v5, %v6145_v6  ;;  %v8045_v36 = vld [vmem:[#allocation14 + $0x34] sm:$0xf]  ;;  %v6109_v37 = vld [vmem:[#allocation14 + $0x3c] sm:$0xf0]  ;;  %v6152_v38 = vor.u32 %v8056_v35, %v6151_v33  ;;  %v8042_v44 = vld [vmem:[#allocation14 + $0x1c] sm:$0xf] }
  0x59   :  { %v8053_v40 = vld [vmem:[#allocation14 + $0x70] sm:$0xf0]  ;;  %v6112_v41 = vor.u32 %v8045_v36, %v6109_v37  ;;  %v6097_v45 = vld [vmem:[#allocation14 + $0x24] sm:$0xf0]  ;;  %v6115_v47 = vld [vmem:[#allocation14 + $0x38] sm:$0xf] }
  0x5a   :  { %716 = vmatpush.bf16.msrb.mxu2 %v5998_v16  ;;  %v8051_v16 = vld [vmem:[#allocation14 + $0x64] sm:$0xf]  ;;  %972 = vmatpush.bf16.msra.mxu0 %v6148_v9  ;;  %v6100_v48 = vor.u32 %v8042_v44, %v6097_v45  ;;  %v6085_v51 = vld [vmem:[#allocation14 + $0xc] sm:$0xf0]  ;;  %v6103_v54 = vld [vmem:[#allocation14 + $0x20] sm:$0xf] }
  0x5b   :  { %729 = vmatpush.bf16.msrb.mxu3 %v6002_v14  ;;  %v6083_v14 = vld [vmem:[#allocation14] sm:$0xf]  ;;  %v6136_v19 = vor.u32 %v8051_v16, %v6133_v17  ;;  %v8039_v50 = vld [vmem:[#allocation14 + $0x4] sm:$0xf]  ;;  %v8041_v57 = vld [vmem:[#allocation14 + $0x10] sm:$0xf0] }
  0x5c   :  { %v6088_v53 = vor.u32 %v8039_v50, %v6085_v51  ;;  %v247_v4 = vld [vmem:[#allocation9] sm:$0x7]  ;;  %v6267_v44 = vld [vmem:[#allocation8 + $0xb4] sm:$0xf0]  ;;  %v6273_v45 = vld [vmem:[#allocation8 + $0xb0] sm:$0xf] }
  0x5d   :  { %v9344_v5 = vperm.slane %v247_v4, 0  ;;  %s5879_s2 = sshll.u32 %s9953_s15, 4  ;;  %s5880_s2 = int_to_ptr.hbm [resolvable:$true] %s5879_s2 }
  0x5e   :  { %717 = vmatpush.bf16.msrb.mxu2 %v5986_v23  ;;  %v6164_v23 = vor.u32 %v8059_v21, %v6163_v20  ;;  %973 = vmatpush.bf16.msra.mxu0 %v6136_v19 }
  0x5f   :  { %730 = vmatpush.bf16.msrb.mxu3 %v5990_v22  ;;  %5937 = vmatmul.msk.bf16.gmra.mxu0 %vm307_vm0, %v9287_v27  ;;  %v6006_v22 = vor.u32 %v8020_v12, %v6005_v11 }
  0x60   :  { %5941 = vmatmul.msk.bf16.gmra.mxu1 %vm307_vm0, %v9287_v27 }
  0x61   :  { %5945 = vmatmul.msk.bf16.gmra.mxu2 %vm307_vm0, %v9287_v27  ;;  %984 = vmatpush.bf16.msra.mxu1 %v6164_v23 }
  0x62   :  { %5973 = vmatmul.msk.bf16.gmra.mxu3 %vm307_vm0, %v9287_v27  ;;  %736 = vmatpush.bf16.msra.mxu2 %v6078_v31  ;;  %v8048_v31 = vld [vmem:[#allocation14 + $0x4c] sm:$0xf] }
  0x63   :  { %957 = vmatpush.bf16.msra.mxu3 %v6168_v28  ;;  %v6084_v28 = vor.u32 %v8040_v18, %v6083_v14 }
  0x65   :  { %985 = vmatpush.bf16.msra.mxu1 %v6152_v38 }
  0x66   :  { %737 = vmatpush.bf16.msra.mxu2 %v6066_v39  ;;  %v6139_v39 = vld [vmem:[#allocation14 + $0x68] sm:$0xf] }
  0x67   :  { %958 = vmatpush.bf16.msra.mxu3 %v6156_v32  ;;  %v6121_v32 = vld [vmem:[#allocation14 + $0x54] sm:$0xf0]  ;;  %v6140_v42 = vor.u32 %v8053_v40, %v6139_v39  ;;  %v6265_v40 = vld [vmem:[#allocation8 + $0xa8] sm:$0xf] }
  0x68   :  { %v6124_v34 = vor.u32 %v8048_v31, %v6121_v32 }
  0x69   :  { %986 = vmatpush.bf16.msra.mxu1 %v6140_v42  ;;  %v8084_v42 = vld [vmem:[#allocation8 + $0xac] sm:$0xf] }
  0x6a   :  { %738 = vmatpush.bf16.msra.mxu2 %v6054_v49  ;;  %974 = vmatpush.bf16.msra.mxu0 %v6124_v34  ;;  %v8047_v49 = vld [vmem:[#allocation14 + $0x40] sm:$0xf0]  ;;  %v6270_v50 = vor.u32 %v8084_v42, %v6267_v44 }
  0x6b   :  { %959 = vmatpush.bf16.msra.mxu3 %v6144_v43  ;;  %v8050_v43 = vld [vmem:[#allocation14 + $0x58] sm:$0xf0] }
  0x6e   :  { %739 = vmatpush.bf16.msra.mxu2 %v6042_v55  ;;  %975 = vmatpush.bf16.msra.mxu0 %v6112_v41  ;;  %v8044_v55 = vld [vmem:[#allocation14 + $0x28] sm:$0xf0]  ;;  %v8085_v41 = vld [vmem:[#allocation8 + $0xb0] sm:$0xf0] }
  0x6f   :  { %960 = vmatpush.bf16.msra.mxu3 %v6132_v52  ;;  %5938 = vmatmul.msk.bf16.gmra.mxu0 %vm307_vm0, %v9297_v59  ;;  %v6116_v52 = vor.u32 %v8047_v49, %v6115_v47  ;;  %v6104_v56 = vor.u32 %v8044_v55, %v6103_v54  ;;  %v6253_v54 = vld [vmem:[#allocation8 + $0x90] sm:$0xf]  ;;  %v8082_v55 = vld [vmem:[#allocation8 + $0x98] sm:$0xf0] }
  0x70   :  { %5942 = vmatmul.msk.bf16.gmra.mxu1 %vm307_vm0, %v9297_v59 }
  0x71   :  { %5946 = vmatmul.msk.bf16.gmra.mxu2 %vm307_vm0, %v9297_v59 }
  0x72   :  { %5974 = vmatmul.msk.bf16.gmra.mxu3 %vm307_vm0, %v9297_v59  ;;  %740 = vmatpush.bf16.msra.mxu2 %v6030_v63  ;;  %v9330_v63 = vld [vmem:[%s9945_s7] sm:$0x7] }
  0x73   :  { %961 = vmatpush.bf16.msra.mxu3 %v6120_v60  ;;  %976 = vmatpush.bf16.msra.mxu0 %v6100_v48 }
  0x76   :  { %741 = vmatpush.bf16.msra.mxu2 %v6018_v7  ;;  %v9348_v7 = vperm.slane %v247_v4, 1 }
  0x77   :  { %962 = vmatpush.bf16.msra.mxu3 %v6108_v0  ;;  %977 = vmatpush.bf16.msra.mxu0 %v6088_v53  ;;  %v9333_v0 = vperm.slane %v9330_v63, 0 }
  0x7a   :  { %742 = vmatpush.bf16.msra.mxu2 %v6006_v22 }
  0x7b   :  { %963 = vmatpush.bf16.msra.mxu3 %v6096_v13  ;;  %v9358_v13 = vperm.slane %v247_v4, 2 }
  0x7e   :  { %743 = vmatpush.bf16.msra.mxu2 %v5994_v29 }
  0x7f   :  { %964 = vmatpush.bf16.msra.mxu3 %v6084_v28  ;;  %5975 = vmatmul.msk.bf16.vlgmr.msrb.gmra.mxu0 %vm307_vm0, %v9267_v25 }
  0x80   :  { %5979 = vmatmul.msk.bf16.vlgmr.msrb.gmra.mxu1 %vm307_vm0, %v9267_v25  ;;  %v6127_v25 = vld [vmem:[#allocation14 + $0x50] sm:$0xf] }
  0x81   :  { %718 = vmatmul.bf16.vlgmr.msrb.gmra.mxu2 %v9128_v30  ;;  %v6128_v46 = vor.u32 %v8050_v43, %v6127_v25  ;;  %v6266_v43 = vor.u32 %v8085_v41, %v6265_v40  ;;  %v8080_v40 = vld [vmem:[#allocation8 + $0x88] sm:$0xf0] }
  0x82   :  { %731 = vmatmul.bf16.vlgmr.msrb.gmra.mxu3 %v9128_v30 }
  0x83   :  { %987 = vmatpush.bf16.msra.mxu1 %v6128_v46  ;;  %v8086_v46 = vld [vmem:[#allocation8 + $0xb8] sm:$0xf0]  ;;  %1208 = vmatpush.bf16.msrb.mxu2 %v6266_v43 }
  0x84   :  { %v6274_v51 = vor.u32 %v8086_v46, %v6273_v45  ;;  %1221 = vmatpush.bf16.msrb.mxu3 %v6270_v50  ;;  %v6229_v46 = vld [vmem:[#allocation8 + $0x60] sm:$0xf]  ;;  %v8075_v50 = vld [vmem:[#allocation8 + $0x64] sm:$0xf] }
  0x86   :  { %1234 = vmatpush.bf16.msrb.mxu0 %v6274_v51 }
  0x87   :  { %988 = vmatpush.bf16.msra.mxu1 %v6116_v52 }
  0x8b   :  { %989 = vmatpush.bf16.msra.mxu1 %v6104_v56  ;;  %v8081_v56 = vld [vmem:[#allocation8 + $0x94] sm:$0xf] }
  0x8f   :  { %5976 = vmatmul.msk.bf16.gmra.mxu0 %vm307_vm0, %v9277_v58 }
  0x90   :  { %5980 = vmatmul.msk.bf16.gmra.mxu1 %vm307_vm0, %v9277_v58  ;;  %v6091_v58 = vld [vmem:[#allocation14 + $0x8] sm:$0xf] }
  0x91   :  { %744 = vmatmul.bf16.vlgmr.msra.gmra.mxu2 %v9128_v30  ;;  %v6092_v60 = vor.u32 %v8041_v57, %v6091_v58  ;;  %v6254_v58 = vor.u32 %v8082_v55, %v6253_v54  ;;  %v6255_v57 = vld [vmem:[#allocation8 + $0x9c] sm:$0xf0]  ;;  %v6231_v54 = vld [vmem:[#allocation8 + $0x6c] sm:$0xf0]  ;;  %v6237_v55 = vld [vmem:[#allocation8 + $0x68] sm:$0xf] }
  0x92   :  { %965 = vmatmul.bf16.vlgmr.msra.gmra.mxu3 %v9128_v30  ;;  %v6258_v4 = vor.u32 %v8081_v56, %v6255_v57  ;;  %v6234_v56 = vor.u32 %v8075_v50, %v6231_v54  ;;  %v6205_v50 = vld [vmem:[#allocation8 + $0x30] sm:$0xf] }
  0x93   :  { %990 = vmatpush.bf16.msra.mxu1 %v6092_v60  ;;  %v6261_v60 = vld [vmem:[#allocation8 + $0x98] sm:$0xf]  ;;  %1209 = vmatpush.bf16.msrb.mxu2 %v6254_v58  ;;  %v8077_v58 = vld [vmem:[#allocation8 + $0x70] sm:$0xf0] }
  0x94   :  { %1222 = vmatpush.bf16.msrb.mxu3 %v6258_v4  ;;  %v6238_v57 = vor.u32 %v8077_v58, %v6237_v55  ;;  %v8073_v4 = vld [vmem:[#allocation8 + $0x50] sm:$0xf0] }
  0x95   :  { %v8069_v55 = vld [vmem:[#allocation8 + $0x34] sm:$0xf] }
  0x9f   :  { %5977 = vmatmul.msk.bf16.gmra.mxu0 %vm307_vm0, %v9287_v27 }
  0xa0   :  { %5981 = vmatmul.msk.bf16.gmra.mxu1 %vm307_vm0, %v9287_v27 }
  0xaf   :  { %5978 = vmatmul.msk.bf16.gmra.mxu0 %vm307_vm0, %v9297_v59 }
  0xb0   :  { %5982 = vmatmul.msk.bf16.gmra.mxu1 %vm307_vm0, %v9297_v59 }
  0xbc   :  { %v9323_v61 = vpop.f32.mrf.mxu0 }
  0xbd   :  { %v9325_v62 = vpop.f32.mrf.mxu1 }
  0xbf   :  { %978 = vmatmul.bf16.vlgmr.msra.gmra.mxu0 %v9128_v30 }
  0xc0   :  { %991 = vmatmul.bf16.vlgmr.msra.gmra.mxu1 %v9128_v30 }
  0xc4   :  { %v9335_v27 = vpop.f32.mrf.mxu2  ;;  %v9337_v2 = vpop.f32.mrf.mxu0 }
  0xc5   :  { %v464_v1 = vpop.f32.mrf.mxu3  ;;  %v9342_v3 = vpop.f32.mrf.mxu1 }
  0xc6   :  { %v9340_v59 = vadd.f32 %v464_v1, %v9333_v0  ;;  %v8083_v1 = vld [vmem:[#allocation8 + $0xa0] sm:$0xf0] }
  0xc8   :  { %9954 = vst [vmem:[#allocation32_spill] sm:$0xff] %v9340_v59  ;;  %v8105_v59 = vld [vmem:[#allocation14 + $0x94] sm:$0xf] }
  0xcc   :  { %v9346_v6 = vpop.f32.mrf.mxu2  ;;  %v334_v9 = vpop.f32.mrf.mxu0 }
  0xcd   :  { %v9350_v8 = vpop.f32.mrf.mxu3  ;;  %v9353_v10 = vadd.f32 %v334_v9, %v9344_v5  ;;  %v363_v11 = vpop.f32.mrf.mxu1  ;;  %v6262_v9 = vor.u32 %v8083_v1, %v6261_v60  ;;  %v330_v60 = vadd.f32 %v9323_v61, %v9344_v5  ;;  %v6217_v1 = vld [vmem:[#allocation8 + $0x48] sm:$0xf] }
  0xce   :  { %9955 = vst [vmem:[#allocation33_spill] sm:$0xff] %v9350_v8  ;;  %v9356_v12 = vadd.f32 %v363_v11, %v9348_v7  ;;  %v9411_v11 = vperm.slane %v9330_v63, 1  ;;  %v6311_v8 = vld [vmem:[#allocation14 + $0x38] sm:$0xf] }
  0xcf   :  { %1235 = vmatpush.bf16.msrb.mxu0 %v6262_v9  ;;  %v8072_v9 = vld [vmem:[#allocation8 + $0x4c] sm:$0xf] }
  0xd4   :  { %v392_v14 = vpop.f32.mrf.mxu2  ;;  %v9363_v17 = vpop.f32.mrf.mxu0 }
  0xd5   :  { %v9361_v15 = vadd.f32 %v392_v14, %v9358_v13  ;;  %v469_v16 = vpop.f32.mrf.mxu3  ;;  %v9368_v19 = vpop.f32.mrf.mxu1  ;;  %v9414_v14 = vperm.slane %v9330_v63, 2 }
  0xd6   :  { %v9366_v18 = vadd.f32 %v469_v16, %v9333_v0  ;;  %v6241_v16 = vld [vmem:[#allocation8 + $0x78] sm:$0xf] }
  0xdc   :  { %v9370_v20 = vpop.f32.mrf.mxu2  ;;  %v339_v22 = vpop.f32.mrf.mxu0 }
  0xdd   :  { %v9372_v21 = vpop.f32.mrf.mxu3  ;;  %v9375_v23 = vadd.f32 %v339_v22, %v9344_v5  ;;  %v368_v24 = vpop.f32.mrf.mxu1  ;;  %v8079_v22 = vld [vmem:[#allocation8 + $0x80] sm:$0xf0] }
  0xde   :  { %v9378_v26 = vadd.f32 %v368_v24, %v9348_v7  ;;  %v8078_v24 = vld [vmem:[#allocation8 + $0x7c] sm:$0xf] }
  0xe4   :  { %v397_v28 = vpop.f32.mrf.mxu2  ;;  %v9383_v31 = vpop.f32.mrf.mxu0 }
  0xe5   :  { %v9381_v29 = vadd.f32 %v397_v28, %v9358_v13  ;;  %v474_v30 = vpop.f32.mrf.mxu3  ;;  %v9388_v33 = vpop.f32.mrf.mxu1 }
  0xe6   :  { %v9386_v32 = vadd.f32 %v474_v30, %v9333_v0  ;;  %v6242_v30 = vor.u32 %v8079_v22, %v6241_v16  ;;  %v359_v16 = vadd.f32 %v9325_v62, %v9348_v7  ;;  %v8070_v62 = vld [vmem:[#allocation8 + $0x38] sm:$0xf0] }
  0xe7   :  { %v6206_v54 = vor.u32 %v8070_v62, %v6205_v50 }
  0xe8   :  { %1210 = vmatpush.bf16.msrb.mxu2 %v6242_v30  ;;  %v6219_v30 = vld [vmem:[#allocation8 + $0x54] sm:$0xf0] }
  0xec   :  { %v9390_v34 = vpop.f32.mrf.mxu2  ;;  %v344_v36 = vpop.f32.mrf.mxu0 }
  0xed   :  { %v9392_v35 = vpop.f32.mrf.mxu3  ;;  %v9395_v37 = vadd.f32 %v344_v36, %v9344_v5  ;;  %v373_v38 = vpop.f32.mrf.mxu1  ;;  %v6243_v36 = vld [vmem:[#allocation8 + $0x84] sm:$0xf0] }
  0xee   :  { %v9398_v39 = vadd.f32 %v373_v38, %v9348_v7  ;;  %v6249_v38 = vld [vmem:[#allocation8 + $0x80] sm:$0xf] }
  0xef   :  { %9956 = vst [vmem:[#allocation34_spill] sm:$0xff] %v9395_v37  ;;  %v6250_v43 = vor.u32 %v8080_v40, %v6249_v38  ;;  %v8074_v38 = vld [vmem:[#allocation8 + $0x58] sm:$0xf0] }
  0xf0   :  { %9957 = vst [vmem:[#allocation35_spill] sm:$0xff] %v9398_v39  ;;  %v8087_v37 = vld [vmem:[#allocation14 + $0x4] sm:$0xf] }
  0xf1   :  { %1236 = vmatpush.bf16.msrb.mxu0 %v6250_v43  ;;  %v6222_v43 = vor.u32 %v8072_v9, %v6219_v30  ;;  %v8067_v9 = vld [vmem:[#allocation8 + $0x20] sm:$0xf0]  ;;  %v6195_v30 = vld [vmem:[#allocation8 + $0x24] sm:$0xf0] }
  0xf4   :  { %v402_v25 = vpop.f32.mrf.mxu2  ;;  %v9403_v49 = vpop.f32.mrf.mxu0 }
  0xf5   :  { %v9401_v47 = vadd.f32 %v402_v25, %v9358_v13  ;;  %v479_v48 = vpop.f32.mrf.mxu3  ;;  %9959 = vst [vmem:[#allocation37_spill] sm:$0xff] %v9403_v49  ;;  %v9408_v53 = vpop.f32.mrf.mxu1  ;;  %v6246_v25 = vor.u32 %v8078_v24, %v6243_v36  ;;  %1237 = vmatpush.bf16.msrb.mxu0 %v6238_v57  ;;  %v6218_v24 = vor.u32 %v8073_v4, %v6217_v1  ;;  %v6225_v36 = vld [vmem:[#allocation8 + $0x50] sm:$0xf]  ;;  %v6213_v57 = vld [vmem:[#allocation8 + $0x38] sm:$0xf] }
  0xf6   :  { %v9406_v52 = vadd.f32 %v479_v48, %v9333_v0  ;;  %9960 = vst [vmem:[#allocation38_spill] sm:$0xff] %v9408_v53  ;;  %v8076_v48 = vld [vmem:[#allocation8 + $0x68] sm:$0xf0]  ;;  %v6193_v4 = vld [vmem:[#allocation8 + $0x18] sm:$0xf] }
  0xf7   :  { %9958 = vst [vmem:[#allocation36_spill] sm:$0xff] %v9401_v47  ;;  %1223 = vmatpush.bf16.msrb.mxu3 %v6246_v25  ;;  %v6230_v51 = vor.u32 %v8076_v48, %v6229_v46  ;;  %v8107_v49 = vld [vmem:[#allocation14 + $0xa0] sm:$0xf0] }
  0xf9   :  { %1211 = vmatpush.bf16.msrb.mxu2 %v6230_v51 }
  0xfb   :  { %1224 = vmatpush.bf16.msrb.mxu3 %v6234_v56  ;;  %v6207_v56 = vld [vmem:[#allocation8 + $0x3c] sm:$0xf0] }
  0xfc   :  { %v9416_v28 = vpop.f32.mrf.mxu2  ;;  %v493_v42 = vpop.f32.mrf.mxu0  ;;  %v6210_v58 = vor.u32 %v8069_v55, %v6207_v56  ;;  %v8063_v55 = vld [vmem:[#allocation8 + $0x4] sm:$0xf] }
  0xfd   :  { %9961 = vst [vmem:[#allocation39_spill] sm:$0xff] %v9416_v28  ;;  %v9418_v41 = vpop.f32.mrf.mxu3  ;;  %v9421_v63 = vadd.f32 %v493_v42, %v9411_v11  ;;  %v522_v44 = vpop.f32.mrf.mxu1  ;;  %1212 = vmatpush.bf16.msrb.mxu2 %v6218_v24  ;;  %v6194_v24 = vor.u32 %v8067_v9, %v6193_v4  ;;  %v6189_v9 = vld [vmem:[#allocation8 + $0x8] sm:$0xf] }
  0xfe   :  { %v9424_v45 = vadd.f32 %v522_v44, %v9414_v14  ;;  %v6226_v44 = vor.u32 %v8074_v38, %v6225_v36  ;;  %v6201_v36 = vld [vmem:[#allocation8 + $0x20] sm:$0xf]  ;;  %v8068_v38 = vld [vmem:[#allocation8 + $0x28] sm:$0xf0] }
  0xff   :  { %9962 = vst [vmem:[#allocation40_spill] sm:$0xff] %v9421_v63  ;;  %1225 = vmatpush.bf16.msrb.mxu3 %v6222_v43 }
 0x100   :  { %9963 = vst [vmem:[#allocation41_spill] sm:$0xff] %v9424_v45  ;;  %1238 = vmatpush.bf16.msrb.mxu0 %v6226_v44  ;;  %v6202_v44 = vor.u32 %v8068_v38, %v6201_v36 }
 0x101   :  { %1213 = vmatpush.bf16.msrb.mxu2 %v6206_v54  ;;  %v8064_v54 = vld [vmem:[#allocation8 + $0x8] sm:$0xf0] }
 0x103   :  { %1226 = vmatpush.bf16.msrb.mxu3 %v6210_v58 }
 0x104   :  { %v719_v22 = vpop.f32.mrf.mxu2  ;;  %v9430_v25 = vpop.f32.mrf.mxu0 }
 0x105   :  { %v749_v40 = vadd.f32 %v719_v22, %v330_v60  ;;  %v732_v42 = vpop.f32.mrf.mxu3  ;;  %9964 = vst [vmem:[#allocation42_spill] sm:$0xff] %v9430_v25  ;;  %v9432_v46 = vpop.f32.mrf.mxu1  ;;  %v8071_v60 = vld [vmem:[#allocation8 + $0x40] sm:$0xf0]  ;;  %1214 = vmatpush.bf16.msrb.mxu2 %v6194_v24 }
 0x106   :  { %v750_v61 = vadd.f32 %v732_v42, %v359_v16  ;;  %9965 = vst [vmem:[#allocation43_spill] sm:$0xff] %v9432_v46  ;;  %v6214_v1 = vor.u32 %v8071_v60, %v6213_v57  ;;  %v8066_v16 = vld [vmem:[#allocation8 + $0x1c] sm:$0xf]  ;;  %v6183_v60 = vld [vmem:[#allocation8 + $0xc] sm:$0xf0] }
 0x107   :  { %v6079_v48 = vmul.f32 -1.442695, %v749_v40  ;;  %v6198_v43 = vor.u32 %v8066_v16, %v6195_v30  ;;  %v6186_v4 = vor.u32 %v8063_v55, %v6183_v60  ;;  %v8065_v16 = vld [vmem:[#allocation8 + $0x10] sm:$0xf0] }
 0x108   :  { %v6080_v51 = vmul.f32 -1.442695, %v750_v61  ;;  %1239 = vmatpush.bf16.msrb.mxu0 %v6214_v1  ;;  %v6190_v24 = vor.u32 %v8065_v16, %v6189_v9 }
 0x109   :  { %8534 = vpow2.f32 %v6079_v48  ;;  %1227 = vmatpush.bf16.msrb.mxu3 %v6198_v43 }
 0x10a   :  { %8536 = vpow2.f32 %v6080_v51  ;;  %v6181_v51 = vld [vmem:[#allocation8] sm:$0xf] }
 0x10b   :  { %v6182_v57 = vor.u32 %v8064_v54, %v6181_v51  ;;  %v9450_v51 = vld [vmem:[#allocation11] ss:$0 sm:$0xff] }
 0x10c   :  { %v721_v22 = vpop.f32.mrf.mxu2  ;;  %v498_v42 = vpop.f32.mrf.mxu0  ;;  %1240 = vmatpush.bf16.msrb.mxu0 %v6202_v44 }
 0x10d   :  { %v734_v40 = vpop.f32.mrf.mxu3  ;;  %v9435_v61 = vadd.f32 %v498_v42, %v9411_v11  ;;  %v527_v48 = vpop.f32.mrf.mxu1  ;;  %1215 = vmatpush.bf16.msrb.mxu2 %v6182_v57  ;;  %1228 = vmatpush.bf16.msrb.mxu3 %v6186_v4 }
 0x10e   :  { %v9438_v62 = vadd.f32 %v527_v48, %v9414_v14  ;;  %v482_v40 = vadd.f32 %v9418_v41, %v9333_v0 }
 0x10f   :  { %9966 = vst [vmem:[#allocation44_spill] sm:$0xff] %v9435_v61  ;;  %v8535_v50 = vpop.eup %8534  ;;  %v6287_v61 = vld [vmem:[#allocation14 + $0x8] sm:$0xf] }
 0x110   :  { %9967 = vst [vmem:[#allocation45_spill] sm:$0xff] %v9438_v62  ;;  %v8537_v56 = vpop.eup %8536  ;;  %v757_v58 = vadd.f32 1.0, %v8535_v50  ;;  %1241 = vmatpush.bf16.msrb.mxu0 %v6190_v24  ;;  %v6281_v62 = vld [vmem:[#allocation14 + $0xc] sm:$0xf0] }
 0x111   :  { %v9440_v1 = vadd.f32 1.0, %v8537_v56 }
 0x112   :  { %8538 = vrcp.f32 %v757_v58  ;;  %v770_v56 = vand.u32 2147483648, %v757_v58  ;;  %v768_v9 = vand.u32 2147483647, %v757_v58  ;;  %vm764_vm2 = vweird.f32 %v757_v58 }
 0x113   :  { %8540 = vrcp.f32 %v9440_v1  ;;  %vm779_vm6 = vweird.f32 %v9440_v1 }
 0x114   :  { %v745_v22 = vpop.f32.mrf.mxu2  ;;  %v9443_v36 = vpop.f32.mrf.mxu0  ;;  %vm769_vm5 = vcmp.eq.f32.partialorder %v768_v9, 8.507059e+37  ;;  %v8109_v9 = vld [vmem:[#allocation14 + $0xb0] sm:$0xf0] }
 0x115   :  { %v966_v30 = vpop.f32.mrf.mxu3  ;;  %v9445_v38 = vpop.f32.mrf.mxu1 }
 0x116   :  { %v996_v50 = vadd.f32 %v966_v30, %v482_v40 }
 0x118   :  { %v8539_v42 = vpop.eup %8538  ;;  %v6177_v63 = vmul.f32 -1.442695, %v996_v50 }
 0x119   :  { %v8541_v43 = vpop.eup %8540  ;;  %v760_v44 = vmul.f32 %v8539_v42, %v757_v58  ;;  %vm765_vm1 = vweird.f32 %v8539_v42  ;;  %v783_v58 = vand.u32 2147483647, %v9440_v1 }
 0x11a   :  { %v775_v48 = vmul.f32 %v8541_v43, %v9440_v1  ;;  %vm766_vm3 = vmor %vm764_vm2, %vm765_vm1  ;;  %vm780_vm4 = vweird.f32 %v8541_v43  ;;  %8542 = vpow2.f32 %v6177_v63 }
 0x11b   :  { %v761_v54 = vsub.f32 1.0, %v760_v44  ;;  %v789_v44 = vadd.f32 %v9450_v51, %v745_v22  ;;  %vm9464_vm7 = vmor %vm779_vm6, %vm780_vm4  ;;  %vm784_vm8 = vcmp.eq.f32.partialorder %v783_v58, 8.507059e+37 }
 0x11c   :  { %v776_v55 = vsub.f32 1.0, %v775_v48  ;;  %v747_v57 = vpop.f32.mrf.mxu2  ;;  %v503_v60 = vpop.f32.mrf.mxu0  ;;  %v771_v48 = vor.u32 1.1754944e-38, %v770_v56 }
 0x11d   :  { %v762_v4 = vmul.f32 %v8539_v42, %v761_v54  ;;  %v968_v16 = vpop.f32.mrf.mxu3  ;;  %v9453_v41 = vadd.f32 %v503_v60, %v9411_v11  ;;  %v532_v45 = vpop.f32.mrf.mxu1 }
 0x11e   :  { %v777_v24 = vmul.f32 %v8541_v43, %v776_v55  ;;  %v9456_v30 = vadd.f32 %v532_v45, %v9414_v14  ;;  %v388_v55 = vadd.f32 %v9335_v27, %v9358_v13  ;;  %v785_v45 = vand.u32 2147483648, %v9440_v1  ;;  %v8108_v27 = vld [vmem:[#allocation14 + $0xac] sm:$0xf]  ;;  %v6371_v1 = vld [vmem:[#allocation14 + $0xb0] sm:$0xf] }
 0x11f   :  { %v763_v40 = vadd.f32 %v8539_v42, %v762_v4  ;;  %v6363_v4 = vld [vmem:[#allocation14 + $0xa8] sm:$0xf] }
 0x120   :  { %v778_v57 = vadd.f32 %v8541_v43, %v777_v24  ;;  %v786_v63 = vor.u32 1.1754944e-38, %v785_v45  ;;  %v8543_v28 = vpop.eup %8542 }
 0x121   :  { %v767_v54 = vsel %vm766_vm3, %v8539_v42, %v763_v40  ;;  %v6364_v40 = vor.u32 %v8109_v9, %v6363_v4  ;;  %v9474_v58 = vadd.f32 1.0, %v8543_v28  ;;  %v8104_v28 = vld [vmem:[#allocation14 + $0x88] sm:$0xf0] }
 0x122   :  { %v772_v60 = vsel %vm769_vm5, %v771_v48, %v767_v54  ;;  %v782_v16 = vsel %vm9464_vm7, %v8541_v43, %v778_v57  ;;  %v6365_v48 = vld [vmem:[#allocation14 + $0xb4] sm:$0xf0]  ;;  %v8110_v54 = vld [vmem:[#allocation14 + $0xb8] sm:$0xf0]  ;;  %v6353_v43 = vld [vmem:[#allocation14 + $0x9c] sm:$0xf0] }
 0x123   :  { %v790_v50 = vmul.f32 %v789_v44, %v772_v60  ;;  %v6368_v44 = vor.u32 %v8108_v27, %v6365_v48  ;;  %1456 = vmatpush.bf16.msrb.mxu1 %v6364_v40  ;;  %v6351_v60 = vld [vmem:[#allocation14 + $0x90] sm:$0xf]  ;;  %v787_v53 = vsel %vm784_vm8, %v786_v63, %v782_v16  ;;  %v6359_v57 = vld [vmem:[#allocation14 + $0x98] sm:$0xf]  ;;  %v6356_v4 = vor.u32 %v8105_v59, %v6353_v43  ;;  %v8103_v27 = vld [vmem:[#allocation14 + $0x80] sm:$0xf0] }
 0x124   :  { %v9468_v42 = vpop.f32.mrf.mxu0  ;;  %v6360_v9 = vor.u32 %v8107_v49, %v6359_v57  ;;  %v793_v45 = vsub.f32 1.0, %v787_v53  ;;  %v6341_v16 = vld [vmem:[#allocation14 + $0x84] sm:$0xf0]  ;;  %v6347_v63 = vld [vmem:[#allocation14 + $0x80] sm:$0xf]  ;;  %vm1011_vm10 = vweird.f32 %v9474_v58 }
 0x125   :  { %v791_v56 = vadd.f32 %v790_v50, %v388_v55  ;;  %v9472_v24 = vpop.f32.mrf.mxu1  ;;  %v6372_v55 = vor.u32 %v8110_v54, %v6371_v1  ;;  %v8106_v50 = vld [vmem:[#allocation14 + $0x98] sm:$0xf0]  ;;  %1469 = vmatpush.bf16.msra.mxu2 %v6368_v44  ;;  %v6327_v57 = vld [vmem:[#allocation14 + $0x60] sm:$0xf] }
 0x126   :  { %v6352_v22 = vor.u32 %v8106_v50, %v6351_v60  ;;  %v8102_v54 = vld [vmem:[#allocation14 + $0x7c] sm:$0xf]  ;;  %v795_v60 = vmul.f32 0.0, %v787_v53  ;;  %v6329_v53 = vld [vmem:[#allocation14 + $0x6c] sm:$0xf0] }
 0x127   :  { %8544 = vtanh.f32 %v791_v56  ;;  %1482 = vmatpush.bf16.msra.mxu3 %v6372_v55  ;;  %v6339_v56 = vld [vmem:[#allocation14 + $0x78] sm:$0xf]  ;;  %v6344_v49 = vor.u32 %v8102_v54, %v6341_v16  ;;  %v6315_v16 = vld [vmem:[#allocation14 + $0x48] sm:$0xf] }
 0x128   :  { %1457 = vmatpush.bf16.msrb.mxu1 %v6352_v22  ;;  %v6340_v1 = vor.u32 %v8103_v27, %v6339_v56  ;;  %v6348_v22 = vor.u32 %v8104_v28, %v6347_v63  ;;  %v8099_v56 = vld [vmem:[#allocation14 + $0x64] sm:$0xf]  ;;  %v6335_v27 = vld [vmem:[#allocation14 + $0x68] sm:$0xf]  ;;  %8546 = vrcp.f32 %v9474_v58  ;;  %v8096_v63 = vld [vmem:[#allocation14 + $0x4c] sm:$0xf] }
 0x129   :  { %1470 = vmatpush.bf16.msra.mxu2 %v6356_v4  ;;  %v8100_v4 = vld [vmem:[#allocation14 + $0x68] sm:$0xf0]  ;;  %v8098_v28 = vld [vmem:[#allocation14 + $0x58] sm:$0xf0] }
 0x12b   :  { %1483 = vmatpush.bf16.msra.mxu3 %v6360_v9 }
 0x12c   :  { %v508_v48 = vpop.f32.mrf.mxu0  ;;  %1458 = vmatpush.bf16.msrb.mxu1 %v6340_v1  ;;  %v8097_v1 = vld [vmem:[#allocation14 + $0x50] sm:$0xf0] }
 0x12d   :  { %v8545_v40 = vpop.eup %8544  ;;  %v9477_v50 = vadd.f32 %v508_v48, %v9411_v11  ;;  %v537_v59 = vpop.f32.mrf.mxu1  ;;  %1471 = vmatpush.bf16.msra.mxu2 %v6344_v49  ;;  %v6332_v48 = vor.u32 %v8099_v56, %v6329_v53  ;;  %v6323_v49 = vld [vmem:[#allocation14 + $0x50] sm:$0xf] }
 0x12e   :  { %v794_v44 = vmul.f32 %v8545_v40, %v793_v45  ;;  %v9480_v55 = vadd.f32 %v537_v59, %v9414_v14  ;;  %v6328_v45 = vor.u32 %v8100_v4, %v6327_v57  ;;  %v8101_v40 = vld [vmem:[#allocation14 + $0x70] sm:$0xf0]  ;;  %v6317_v59 = vld [vmem:[#allocation14 + $0x54] sm:$0xf0]  ;;  %v9489_v56 = vpop.eup %8546  ;;  %v6303_v53 = vld [vmem:[#allocation14 + $0x30] sm:$0xf] }
 0x12f   :  { %1484 = vmatpush.bf16.msra.mxu3 %v6348_v22  ;;  %v6336_v54 = vor.u32 %v8101_v40, %v6335_v27  ;;  %v6320_v4 = vor.u32 %v8096_v63, %v6317_v59  ;;  %v6324_v22 = vor.u32 %v8098_v28, %v6323_v49  ;;  %v8094_v27 = vld [vmem:[#allocation14 + $0x38] sm:$0xf0]  ;;  %v8093_v40 = vld [vmem:[#allocation14 + $0x34] sm:$0xf]  ;;  %v6291_v63 = vld [vmem:[#allocation14 + $0x18] sm:$0xf]  ;;  %vm1012_vm9 = vweird.f32 %v9489_v56 }
 0x130   :  { %v9482_v43 = vadd.f32 %v795_v60, %v794_v44  ;;  %1459 = vmatpush.bf16.msrb.mxu1 %v6328_v45  ;;  %v6316_v60 = vor.u32 %v8097_v1, %v6315_v16  ;;  %v6304_v46 = vor.u32 %v8094_v27, %v6303_v53  ;;  %v8095_v45 = vld [vmem:[#allocation14 + $0x40] sm:$0xf0]  ;;  %v8090_v49 = vld [vmem:[#allocation14 + $0x1c] sm:$0xf]  ;;  %v6299_v53 = vld [vmem:[#allocation14 + $0x20] sm:$0xf] }
 0x131   :  { %1472 = vmatpush.bf16.msra.mxu2 %v6332_v48  ;;  %v6312_v1 = vor.u32 %v8095_v45, %v6311_v8  ;;  %v1007_v48 = vmul.f32 %v9489_v56, %v9474_v58  ;;  %v8091_v59 = vld [vmem:[#allocation14 + $0x20] sm:$0xf0]  ;;  %v8092_v27 = vld [vmem:[#allocation14 + $0x28] sm:$0xf0]  ;;  %vm1013_vm11 = vmor %vm1011_vm10, %vm1012_vm9 }
 0x132   :  { %v1047_v9 = vpack.c.bf16 %v9482_v43, %v9482_v43  ;;  %v6292_v25 = vor.u32 %v8091_v59, %v6291_v63  ;;  %v6300_v8 = vor.u32 %v8092_v27, %v6299_v53  ;;  %v8088_v45 = vld [vmem:[#allocation14 + $0x8] sm:$0xf0]  ;;  %v8089_v63 = vld [vmem:[#allocation14 + $0x10] sm:$0xf0] }
 0x133   :  { %1485 = vmatpush.bf16.msra.mxu3 %v6336_v54 }
 0x134   :  { %1216 = vmatmul.bf16.vlgmr.msrb.gmra.mxu2 %v1047_v9  ;;  %1229 = vmatmul.bf16.vlgmr.msrb.gmra.mxu3 %v1047_v9  ;;  %v510_v44 = vpop.f32.mrf.mxu0 }
 0x135   :  { %1242 = vmatmul.bf16.vlgmr.msrb.gmra.mxu0 %v1047_v9  ;;  %v9487_v57 = vpop.f32.mrf.mxu1  ;;  %1460 = vmatpush.bf16.msrb.mxu1 %v6316_v60  ;;  %v6305_v9 = vld [vmem:[#allocation14 + $0x3c] sm:$0xf0]  ;;  %v511_v54 = vadd.f32 %v510_v44, %v9411_v11  ;;  %v6293_v60 = vld [vmem:[#allocation14 + $0x24] sm:$0xf0] }
 0x136   :  { %1473 = vmatpush.bf16.msra.mxu2 %v6320_v4  ;;  %v6308_v16 = vor.u32 %v8093_v40, %v6305_v9  ;;  %v6296_v4 = vor.u32 %v8090_v49, %v6293_v60  ;;  %v6279_v9 = vld [vmem:[#allocation14] sm:$0xf]  ;;  %v1017_v49 = vand.u32 2147483648, %v9474_v58  ;;  %v540_v27 = vadd.f32 %v9487_v57, %v9414_v14 }
 0x137   :  { %1486 = vmatpush.bf16.msra.mxu3 %v6324_v22  ;;  %v1008_v22 = vsub.f32 1.0, %v1007_v48  ;;  %v6280_v44 = vor.u32 %v8088_v45, %v6279_v9 }
 0x138   :  { %v1018_v60 = vor.u32 1.1754944e-38, %v1017_v49  ;;  %v8133_v49 = vld [vmem:[#allocation8 + $0xb0] sm:$0xf0] }
 0x139   :  { %1461 = vmatpush.bf16.msrb.mxu1 %v6304_v46  ;;  %v6284_v46 = vor.u32 %v8087_v37, %v6281_v62  ;;  %v1015_v37 = vand.u32 2147483647, %v9474_v58 }
 0x13a   :  { %1474 = vmatpush.bf16.msra.mxu2 %v6308_v16  ;;  %v6288_v16 = vor.u32 %v8089_v63, %v6287_v61 }
 0x13b   :  { %1487 = vmatpush.bf16.msra.mxu3 %v6312_v1  ;;  %vm1016_vm12 = vcmp.eq.f32.partialorder %v1015_v37, 8.507059e+37 }
 0x13c   :  { %v979_v28 = vpop.f32.mrf.mxu0 }
 0x13d   :  { %v997_v47 = vadd.f32 %v979_v28, %v511_v54  ;;  %v992_v39 = vpop.f32.mrf.mxu1  ;;  %1462 = vmatpush.bf16.msrb.mxu1 %v6292_v25  ;;  %v1009_v54 = vmul.f32 %v9489_v56, %v1008_v22 }
 0x13e   :  { %1475 = vmatpush.bf16.msra.mxu2 %v6296_v4 }
 0x13f   :  { %v6178_v40 = vmul.f32 -1.442695, %v997_v47  ;;  %1488 = vmatpush.bf16.msra.mxu3 %v6300_v8  ;;  %v9495_v47 = vld [vmem:[#allocation15] ss:$0 sm:$0xff]  ;;  %v1010_v25 = vadd.f32 %v9489_v56, %v1009_v54 }
 0x140   :  { %v1036_v62 = vadd.f32 %v9495_v47, %v992_v39 }
 0x141   :  { %8548 = vpow2.f32 %v6178_v40  ;;  %1463 = vmatpush.bf16.msrb.mxu1 %v6280_v44  ;;  %v1014_v61 = vsel %vm1013_vm11, %v9489_v56, %v1010_v25 }
 0x142   :  { %1476 = vmatpush.bf16.msra.mxu2 %v6284_v46  ;;  %v1019_v53 = vsel %vm1016_vm12, %v1018_v60, %v1014_v61  ;;  %v6463_v61 = vld [vmem:[#allocation8 + $0xb4] sm:$0xf0]  ;;  %v8134_v60 = vld [vmem:[#allocation8 + $0xb8] sm:$0xf0] }
 0x143   :  { %1489 = vmatpush.bf16.msra.mxu3 %v6288_v16  ;;  %v1037_v4 = vmul.f32 %v1036_v62, %v1019_v53  ;;  %v6469_v62 = vld [vmem:[#allocation8 + $0xb0] sm:$0xf] }
 0x144   :  { %v981_v1 = vpop.f32.mrf.mxu0 }
 0x145   :  { %v994_v59 = vpop.f32.mrf.mxu1  ;;  %v1038_v40 = vadd.f32 %v1037_v4, %v540_v27  ;;  %v6470_v27 = vor.u32 %v8134_v60, %v6469_v62  ;;  %v6449_v4 = vld [vmem:[#allocation8 + $0x90] sm:$0xf] }
 0x146   :  { %v6427_v60 = vld [vmem:[#allocation8 + $0x6c] sm:$0xf0] }
 0x147   :  { %v8549_v48 = vpop.eup %8548  ;;  %1734 = vmatpush.bf16.msrb.mxu2 %v6470_v27  ;;  %v8125_v27 = vld [vmem:[#allocation8 + $0x70] sm:$0xf0] }
 0x148   :  { %v1005_v28 = vadd.f32 1.0, %v8549_v48  ;;  %v6461_v48 = vld [vmem:[#allocation8 + $0xa8] sm:$0xf] }
 0x149   :  { %v6462_v37 = vor.u32 %v8133_v49, %v6461_v48 }
 0x14a   :  { %8550 = vrcp.f32 %v1005_v28  ;;  %v1032_v45 = vand.u32 2147483648, %v1005_v28  ;;  %v1030_v58 = vand.u32 2147483647, %v1005_v28  ;;  %vm1026_vm14 = vweird.f32 %v1005_v28 }
 0x14b   :  { %8552 = vtanh.f32 %v1038_v40  ;;  %1708 = vmatpush.bf16.msra.mxu0 %v6462_v37  ;;  %v8124_v37 = vld [vmem:[#allocation8 + $0x68] sm:$0xf0] }
 0x14c   :  { %v1033_v39 = vor.u32 1.1754944e-38, %v1032_v45  ;;  %vm1031_vm0 = vcmp.eq.f32.partialorder %v1030_v58, 8.507059e+37  ;;  %v6457_v45 = vld [vmem:[#allocation8 + $0x98] sm:$0xf] }
 0x150   :  { %v8551_v8 = vpop.eup %8550 }
 0x151   :  { %v1022_v22 = vmul.f32 %v8551_v8, %v1005_v28  ;;  %vm1027_vm13 = vweird.f32 %v8551_v8  ;;  %v8553_v16 = vpop.eup %8552  ;;  %v8132_v28 = vld [vmem:[#allocation8 + $0xac] sm:$0xf] }
 0x152   :  { %vm1028_vm15 = vmor %vm1026_vm14, %vm1027_vm13  ;;  %v6466_v53 = vor.u32 %v8132_v28, %v6463_v61  ;;  %v6425_v28 = vld [vmem:[#allocation8 + $0x60] sm:$0xf]  ;;  %v8123_v61 = vld [vmem:[#allocation8 + $0x64] sm:$0xf] }
 0x153   :  { %v1023_v9 = vsub.f32 1.0, %v1022_v22  ;;  %v8129_v22 = vld [vmem:[#allocation8 + $0x94] sm:$0xf]  ;;  %v6426_v62 = vor.u32 %v8124_v37, %v6425_v28  ;;  %v8118_v37 = vld [vmem:[#allocation8 + $0x38] sm:$0xf0] }
 0x154   :  { %1721 = vmatpush.bf16.msra.mxu1 %v6466_v53  ;;  %v6433_v53 = vld [vmem:[#allocation8 + $0x68] sm:$0xf] }
 0x155   :  { %v1024_v44 = vmul.f32 %v8551_v8, %v1023_v9  ;;  %v6451_v9 = vld [vmem:[#allocation8 + $0x9c] sm:$0xf0] }
 0x156   :  { %v6454_v58 = vor.u32 %v8129_v22, %v6451_v9  ;;  %v332_v22 = vadd.f32 %v9337_v2, %v9344_v5  ;;  %v6413_v9 = vld [vmem:[#allocation8 + $0x48] sm:$0xf] }
 0x157   :  { %v1025_v46 = vadd.f32 %v8551_v8, %v1024_v44  ;;  %v8131_v44 = vld [vmem:[#allocation8 + $0xa0] sm:$0xf0] }
 0x158   :  { %1722 = vmatpush.bf16.msra.mxu1 %v6454_v58 }
 0x159   :  { %v1029_v56 = vsel %vm1028_vm15, %v8551_v8, %v1025_v46  ;;  %v8130_v8 = vld [vmem:[#allocation8 + $0x98] sm:$0xf0]  ;;  %v6458_v46 = vor.u32 %v8131_v44, %v6457_v45  ;;  %v8121_v45 = vld [vmem:[#allocation8 + $0x50] sm:$0xf0]  ;;  %v8120_v44 = vld [vmem:[#allocation8 + $0x4c] sm:$0xf] }
 0x15a   :  { %v1034_v63 = vsel %vm1031_vm0, %v1033_v39, %v1029_v56  ;;  %v6450_v40 = vor.u32 %v8130_v8, %v6449_v4  ;;  %v6437_v39 = vld [vmem:[#allocation8 + $0x78] sm:$0xf]  ;;  %v8127_v56 = vld [vmem:[#allocation8 + $0x80] sm:$0xf0]  ;;  %v6430_v4 = vor.u32 %v8123_v61, %v6427_v60  ;;  %v6434_v8 = vor.u32 %v8125_v27, %v6433_v53  ;;  %v8117_v61 = vld [vmem:[#allocation8 + $0x34] sm:$0xf] }
 0x15b   :  { %v1040_v54 = vsub.f32 1.0, %v1034_v63  ;;  %v1042_v1 = vmul.f32 0.0, %v1034_v63  ;;  %1735 = vmatpush.bf16.msrb.mxu2 %v6458_v46  ;;  %v8126_v63 = vld [vmem:[#allocation8 + $0x7c] sm:$0xf]  ;;  %v6409_v27 = vld [vmem:[#allocation8 + $0x38] sm:$0xf] }
 0x15c   :  { %1709 = vmatpush.bf16.msra.mxu0 %v6450_v40  ;;  %v361_v40 = vadd.f32 %v9342_v3, %v9348_v7  ;;  %v6401_v3 = vld [vmem:[#allocation8 + $0x30] sm:$0xf] }
 0x15d   :  { %v1041_v57 = vmul.f32 %v8553_v16, %v1040_v54  ;;  %v6438_v54 = vor.u32 %v8127_v56, %v6437_v39  ;;  %v6439_v16 = vld [vmem:[#allocation8 + $0x84] sm:$0xf0]  ;;  %v6414_v39 = vor.u32 %v8121_v45, %v6413_v9  ;;  %v6415_v56 = vld [vmem:[#allocation8 + $0x54] sm:$0xf0]  ;;  %v6402_v60 = vor.u32 %v8118_v37, %v6401_v3  ;;  %v8114_v9 = vld [vmem:[#allocation8 + $0x1c] sm:$0xf] }
 0x15e   :  { %v6391_v45 = vld [vmem:[#allocation8 + $0x24] sm:$0xf0]  ;;  %v6379_v3 = vld [vmem:[#allocation8 + $0xc] sm:$0xf0] }
 0x15f   :  { %v9506_v59 = vadd.f32 %v1042_v1, %v1041_v57  ;;  %v6445_v57 = vld [vmem:[#allocation8 + $0x80] sm:$0xf]  ;;  %v8128_v1 = vld [vmem:[#allocation8 + $0x88] sm:$0xf0] }
 0x160   :  { %v6446_v48 = vor.u32 %v8128_v1, %v6445_v57  ;;  %1710 = vmatpush.bf16.msra.mxu0 %v6438_v54  ;;  %v8122_v54 = vld [vmem:[#allocation8 + $0x58] sm:$0xf0]  ;;  %v6418_v1 = vor.u32 %v8120_v44, %v6415_v56 }
 0x161   :  { %v1295_v25 = vpack.c.bf16 %v9506_v59, %v9506_v59 }
 0x162   :  { %1736 = vmatpush.bf16.msrb.mxu2 %v6446_v48 }
 0x163   :  { %1464 = vmatmul.bf16.vlgmr.msrb.gmra.mxu1 %v1295_v25  ;;  %1477 = vmatmul.bf16.vlgmr.msra.gmra.mxu2 %v1295_v25 }
 0x164   :  { %1490 = vmatmul.bf16.vlgmr.msra.gmra.mxu3 %v1295_v25  ;;  %v6442_v25 = vor.u32 %v8126_v63, %v6439_v16  ;;  %1711 = vmatpush.bf16.msra.mxu0 %v6426_v62  ;;  %v6421_v63 = vld [vmem:[#allocation8 + $0x50] sm:$0xf]  ;;  %v6403_v62 = vld [vmem:[#allocation8 + $0x3c] sm:$0xf0] }
 0x165   :  { %v6406_v53 = vor.u32 %v8117_v61, %v6403_v62  ;;  %v6385_v62 = vld [vmem:[#allocation8 + $0x8] sm:$0xf] }
 0x166   :  { %1723 = vmatpush.bf16.msra.mxu1 %v6442_v25  ;;  %1737 = vmatpush.bf16.msrb.mxu2 %v6434_v8  ;;  %v6422_v25 = vor.u32 %v8122_v54, %v6421_v63  ;;  %v6389_v8 = vld [vmem:[#allocation8 + $0x18] sm:$0xf] }
 0x168   :  { %1712 = vmatpush.bf16.msra.mxu0 %v6414_v39  ;;  %v8116_v39 = vld [vmem:[#allocation8 + $0x28] sm:$0xf0] }
 0x16a   :  { %1724 = vmatpush.bf16.msra.mxu1 %v6430_v4  ;;  %1738 = vmatpush.bf16.msrb.mxu2 %v6422_v25  ;;  %v8119_v4 = vld [vmem:[#allocation8 + $0x40] sm:$0xf0] }
 0x16b   :  { %v8111_v25 = vld [vmem:[#allocation8 + $0x4] sm:$0xf] }
 0x16c   :  { %1713 = vmatpush.bf16.msra.mxu0 %v6402_v60  ;;  %v6382_v61 = vor.u32 %v8111_v25, %v6379_v3  ;;  %v8113_v60 = vld [vmem:[#allocation8 + $0x10] sm:$0xf0] }
 0x16d   :  { %v8158_v25 = vld [vmem:[#allocation14 + $0xb8] sm:$0xf0] }
 0x16e   :  { %1725 = vmatpush.bf16.msra.mxu1 %v6418_v1  ;;  %v8112_v1 = vld [vmem:[#allocation8 + $0x8] sm:$0xf0] }
 0x172   :  { %1726 = vmatpush.bf16.msra.mxu1 %v6406_v53  ;;  %v6386_v53 = vor.u32 %v8113_v60, %v6385_v62 }
 0x1b2   :  { %v9510_v49 = vpop.f32.mrf.mxu0 }
 0x1b7   :  { %v1217_v58 = vpop.f32.mrf.mxu2  ;;  %v1230_v46 = vpop.f32.mrf.mxu3 }
 0x1b8   :  { %v1247_v16 = vadd.f32 %v1217_v58, %v332_v22  ;;  %v1248_v57 = vadd.f32 %v1230_v46, %v361_v40  ;;  %v6410_v22 = vor.u32 %v8119_v4, %v6409_v27  ;;  %v8115_v40 = vld [vmem:[#allocation8 + $0x20] sm:$0xf0]  ;;  %v6394_v58 = vor.u32 %v8114_v9, %v6391_v45  ;;  %v6397_v46 = vld [vmem:[#allocation8 + $0x20] sm:$0xf] }
 0x1b9   :  { %v6390_v44 = vor.u32 %v8115_v40, %v6389_v8  ;;  %v6398_v54 = vor.u32 %v8116_v39, %v6397_v46  ;;  %v6559_v39 = vld [vmem:[#allocation14 + $0xa8] sm:$0xf] }
 0x1ba   :  { %v6275_v2 = vmul.f32 -1.442695, %v1247_v16  ;;  %v6276_v48 = vmul.f32 -1.442695, %v1248_v57  ;;  %v1245_v28 = vpop.f32.mrf.mxu0  ;;  %1739 = vmatpush.bf16.msrb.mxu2 %v6410_v22  ;;  %1727 = vmatpush.bf16.msra.mxu1 %v6394_v58  ;;  %v6377_v57 = vld [vmem:[#allocation8] sm:$0xf] }
 0x1bb   :  { %1714 = vmatpush.bf16.msra.mxu0 %v6390_v44  ;;  %v6378_v28 = vor.u32 %v8112_v1, %v6377_v57  ;;  %v6561_v57 = vld [vmem:[#allocation14 + $0xb4] sm:$0xf0]  ;;  %v6567_v1 = vld [vmem:[#allocation14 + $0xb0] sm:$0xf] }
 0x1bc   :  { %8554 = vpow2.f32 %v6275_v2  ;;  %v6568_v3 = vor.u32 %v8158_v25, %v6567_v1  ;;  %v6537_v25 = vld [vmem:[#allocation14 + $0x84] sm:$0xf0] }
 0x1bd   :  { %8556 = vpow2.f32 %v6276_v48 }
 0x1be   :  { %1740 = vmatpush.bf16.msrb.mxu2 %v6398_v54  ;;  %1728 = vmatpush.bf16.msra.mxu1 %v6382_v61  ;;  %v1287_v61 = vadd.f32 %v9450_v51, %v9510_v49  ;;  %v6549_v49 = vld [vmem:[#allocation14 + $0x9c] sm:$0xf0] }
 0x1bf   :  { %v1219_v56 = vpop.f32.mrf.mxu2  ;;  %v1232_v63 = vpop.f32.mrf.mxu3  ;;  %1715 = vmatpush.bf16.msra.mxu0 %v6378_v28 }
 0x1c0   :  { %v8157_v56 = vld [vmem:[#allocation14 + $0xb0] sm:$0xf0]  ;;  %v8156_v63 = vld [vmem:[#allocation14 + $0xac] sm:$0xf] }
 0x1c1   :  { %v6564_v28 = vor.u32 %v8156_v63, %v6561_v57  ;;  %v8151_v57 = vld [vmem:[#allocation14 + $0x80] sm:$0xf0] }
 0x1c2   :  { %v8555_v16 = vpop.eup %8554  ;;  %1741 = vmatpush.bf16.msrb.mxu2 %v6386_v53  ;;  %1982 = vmatpush.bf16.msrb.mxu1 %v6568_v3 }
 0x1c3   :  { %v8557_v2 = vpop.eup %8556  ;;  %v1255_v48 = vadd.f32 1.0, %v8555_v16  ;;  %v6560_v16 = vor.u32 %v8157_v56, %v6559_v39  ;;  %1969 = vmatpush.bf16.msrb.mxu0 %v6564_v28  ;;  %v8152_v28 = vld [vmem:[#allocation14 + $0x88] sm:$0xf0] }
 0x1c4   :  { %v9516_v37 = vadd.f32 1.0, %v8557_v2 }
 0x1c5   :  { %8558 = vrcp.f32 %v1255_v48  ;;  %v1268_v9 = vand.u32 2147483648, %v1255_v48  ;;  %v1266_v58 = vand.u32 2147483647, %v1255_v48  ;;  %vm1262_vm2 = vweird.f32 %v1255_v48  ;;  %1956 = vmatpush.bf16.msrb.mxu3 %v6560_v16  ;;  %v6535_v16 = vld [vmem:[#allocation14 + $0x78] sm:$0xf] }
 0x1c6   :  { %8560 = vrcp.f32 %v9516_v37  ;;  %v1283_v60 = vand.u32 2147483648, %v9516_v37  ;;  %vm1277_vm6 = vweird.f32 %v9516_v37  ;;  %v6536_v1 = vor.u32 %v8151_v57, %v6535_v16  ;;  %v6519_v16 = vld [vmem:[#allocation14 + $0x50] sm:$0xf]  ;;  %v8146_v57 = vld [vmem:[#allocation14 + $0x58] sm:$0xf0] }
 0x1c7   :  { %v1269_v2 = vor.u32 1.1754944e-38, %v1268_v9  ;;  %vm1267_vm4 = vcmp.eq.f32.partialorder %v1266_v58, 8.507059e+37  ;;  %v390_v9 = vadd.f32 %v9346_v6, %v9358_v13  ;;  %v1281_v58 = vand.u32 2147483647, %v9516_v37 }
 0x1c9   :  { %vm1282_vm8 = vcmp.eq.f32.partialorder %v1281_v58, 8.507059e+37 }
 0x1cb   :  { %v8559_v27 = vpop.eup %8558 }
 0x1cc   :  { %v9519_v4 = vpop.eup %8560  ;;  %v1258_v8 = vmul.f32 %v8559_v27, %v1255_v48  ;;  %vm1263_vm1 = vweird.f32 %v8559_v27  ;;  %v6547_v48 = vld [vmem:[#allocation14 + $0x90] sm:$0xf] }
 0x1cd   :  { %v1273_v22 = vmul.f32 %v9519_v4, %v9516_v37  ;;  %vm1264_vm3 = vmor %vm1262_vm2, %vm1263_vm1  ;;  %vm1278_vm5 = vweird.f32 %v9519_v4  ;;  %v8150_v37 = vld [vmem:[#allocation14 + $0x7c] sm:$0xf] }
 0x1ce   :  { %v1259_v40 = vsub.f32 1.0, %v1258_v8  ;;  %vm9535_vm7 = vmor %vm1277_vm6, %vm1278_vm5  ;;  %v6540_v3 = vor.u32 %v8150_v37, %v6537_v25  ;;  %v6520_v25 = vor.u32 %v8146_v57, %v6519_v16  ;;  %v8136_v57 = vld [vmem:[#allocation14 + $0x8] sm:$0xf0] }
 0x1cf   :  { %v1274_v45 = vsub.f32 1.0, %v1273_v22  ;;  %v8154_v22 = vld [vmem:[#allocation14 + $0x98] sm:$0xf0] }
 0x1d0   :  { %v1260_v44 = vmul.f32 %v8559_v27, %v1259_v40  ;;  %v8153_v40 = vld [vmem:[#allocation14 + $0x94] sm:$0xf]  ;;  %v6548_v51 = vor.u32 %v8154_v22, %v6547_v48  ;;  %v6525_v48 = vld [vmem:[#allocation14 + $0x6c] sm:$0xf0]  ;;  %v6531_v22 = vld [vmem:[#allocation14 + $0x68] sm:$0xf] }
 0x1d1   :  { %v1275_v46 = vmul.f32 %v9519_v4, %v1274_v45 }
 0x1d2   :  { %v1261_v54 = vadd.f32 %v8559_v27, %v1260_v44  ;;  %v8155_v44 = vld [vmem:[#allocation14 + $0xa0] sm:$0xf0]  ;;  %1957 = vmatpush.bf16.msrb.mxu3 %v6548_v51 }
 0x1d3   :  { %v1276_v8 = vadd.f32 %v9519_v4, %v1275_v46  ;;  %v6552_v46 = vor.u32 %v8153_v40, %v6549_v49  ;;  %v8149_v40 = vld [vmem:[#allocation14 + $0x70] sm:$0xf0] }
 0x1d4   :  { %v1265_v62 = vsel %vm1264_vm3, %v8559_v27, %v1261_v54  ;;  %v6555_v27 = vld [vmem:[#allocation14 + $0x98] sm:$0xf]  ;;  %v1284_v54 = vor.u32 1.1754944e-38, %v1283_v60  ;;  %v6523_v60 = vld [vmem:[#allocation14 + $0x60] sm:$0xf]  ;;  %v6532_v51 = vor.u32 %v8149_v40, %v6531_v22 }
 0x1d5   :  { %v1270_v53 = vsel %vm1267_vm4, %v1269_v2, %v1265_v62  ;;  %v6556_v39 = vor.u32 %v8155_v44, %v6555_v27  ;;  %v1280_v6 = vsel %vm9535_vm7, %v9519_v4, %v1276_v8  ;;  %1970 = vmatpush.bf16.msrb.mxu0 %v6552_v46  ;;  %v6543_v2 = vld [vmem:[#allocation14 + $0x80] sm:$0xf]  ;;  %v8147_v4 = vld [vmem:[#allocation14 + $0x64] sm:$0xf]  ;;  %v6511_v46 = vld [vmem:[#allocation14 + $0x48] sm:$0xf] }
 0x1d6   :  { %v1288_v45 = vmul.f32 %v1287_v61, %v1270_v53  ;;  %v6544_v61 = vor.u32 %v8152_v28, %v6543_v2  ;;  %v1285_v62 = vsel %vm1282_vm8, %v1284_v54, %v1280_v6  ;;  %1958 = vmatpush.bf16.msrb.mxu3 %v6536_v1  ;;  %v8148_v53 = vld [vmem:[#allocation14 + $0x68] sm:$0xf0]  ;;  %v6513_v6 = vld [vmem:[#allocation14 + $0x54] sm:$0xf0] }
 0x1d7   :  { %1983 = vmatpush.bf16.msrb.mxu1 %v6556_v39  ;;  %v6524_v8 = vor.u32 %v8148_v53, %v6523_v60  ;;  %v1293_v58 = vmul.f32 %v1285_v62, %v9482_v43  ;;  %v8145_v39 = vld [vmem:[#allocation14 + $0x50] sm:$0xf0]  ;;  %v6501_v60 = vld [vmem:[#allocation14 + $0x3c] sm:$0xf0]  ;;  %v6507_v53 = vld [vmem:[#allocation14 + $0x38] sm:$0xf] }
 0x1d8   :  { %v1289_v56 = vadd.f32 %v1288_v45, %v390_v9  ;;  %v1291_v9 = vsub.f32 1.0, %v1285_v62  ;;  %v6528_v45 = vor.u32 %v8147_v4, %v6525_v48  ;;  %v6512_v54 = vor.u32 %v8145_v39, %v6511_v46  ;;  %v8141_v62 = vld [vmem:[#allocation14 + $0x34] sm:$0xf]  ;;  %v8143_v4 = vld [vmem:[#allocation14 + $0x40] sm:$0xf0] }
 0x1d9   :  { %1971 = vmatpush.bf16.msrb.mxu0 %v6540_v3  ;;  %v6499_v3 = vld [vmem:[#allocation14 + $0x30] sm:$0xf]  ;;  %v6504_v48 = vor.u32 %v8141_v62, %v6501_v60  ;;  %v6508_v22 = vor.u32 %v8143_v4, %v6507_v53  ;;  %v6489_v46 = vld [vmem:[#allocation14 + $0x24] sm:$0xf0]  ;;  %v6495_v39 = vld [vmem:[#allocation14 + $0x20] sm:$0xf] }
 0x1da   :  { %8562 = vtanh.f32 %v1289_v56  ;;  %1959 = vmatpush.bf16.msrb.mxu3 %v6524_v8  ;;  %v8144_v56 = vld [vmem:[#allocation14 + $0x4c] sm:$0xf] }
 0x1db   :  { %1984 = vmatpush.bf16.msrb.mxu1 %v6544_v61  ;;  %v6516_v1 = vor.u32 %v8144_v56, %v6513_v6  ;;  %v8142_v61 = vld [vmem:[#allocation14 + $0x38] sm:$0xf0] }
 0x1dd   :  { %1972 = vmatpush.bf16.msrb.mxu0 %v6528_v45 }
 0x1de   :  { %1960 = vmatpush.bf16.msrb.mxu3 %v6512_v54 }
 0x1df   :  { %1985 = vmatpush.bf16.msrb.mxu1 %v6532_v51  ;;  %v6487_v51 = vld [vmem:[#allocation14 + $0x18] sm:$0xf] }
 0x1e0   :  { %v8563_v49 = vpop.eup %8562  ;;  %v1465_v27 = vpop.f32.mrf.mxu1 }
 0x1e1   :  { %v1292_v44 = vmul.f32 %v8563_v49, %v1291_v9  ;;  %v1495_v63 = vadd.f32 %v1465_v27, %v9406_v52  ;;  %1973 = vmatpush.bf16.msrb.mxu0 %v6516_v1  ;;  %v6500_v52 = vor.u32 %v8142_v61, %v6499_v3  ;;  %v8139_v49 = vld [vmem:[#allocation14 + $0x20] sm:$0xf0]  ;;  %v8138_v27 = vld [vmem:[#allocation14 + $0x1c] sm:$0xf]  ;;  %v8137_v61 = vld [vmem:[#allocation14 + $0x10] sm:$0xf0] }
 0x1e2   :  { %v6492_v56 = vor.u32 %v8138_v27, %v6489_v46 }
 0x1e3   :  { %v9544_v37 = vadd.f32 %v1293_v58, %v1292_v44  ;;  %v6373_v2 = vmul.f32 -1.442695, %v1495_v63  ;;  %1986 = vmatpush.bf16.msrb.mxu1 %v6520_v25  ;;  %1961 = vmatpush.bf16.msrb.mxu3 %v6500_v52  ;;  %v6488_v58 = vor.u32 %v8139_v49, %v6487_v51  ;;  %v8140_v63 = vld [vmem:[#allocation14 + $0x28] sm:$0xf0]  ;;  %v8135_v25 = vld [vmem:[#allocation14 + $0x4] sm:$0xf] }
 0x1e4   :  { %v6496_v6 = vor.u32 %v8140_v63, %v6495_v39 }
 0x1e5   :  { %v1547_v28 = vpack.c.bf16 %v9544_v37, %v9544_v37  ;;  %8564 = vpow2.f32 %v6373_v2  ;;  %1974 = vmatpush.bf16.msrb.mxu0 %v6504_v48  ;;  %v6477_v2 = vld [vmem:[#allocation14 + $0xc] sm:$0xf0] }
 0x1e6   :  { %v1478_v8 = vpop.f32.mrf.mxu2  ;;  %v6480_v52 = vor.u32 %v8135_v25, %v6477_v2 }
 0x1e7   :  { %1716 = vmatmul.bf16.vlgmr.msra.gmra.mxu0 %v1547_v28  ;;  %1729 = vmatmul.bf16.vlgmr.msra.gmra.mxu1 %v1547_v28  ;;  %v1496_v40 = vadd.f32 %v1478_v8, %v9477_v50  ;;  %v1491_v9 = vpop.f32.mrf.mxu3  ;;  %v6475_v50 = vld [vmem:[#allocation14] sm:$0xf] }
 0x1e8   :  { %1742 = vmatmul.bf16.vlgmr.msrb.gmra.mxu2 %v1547_v28  ;;  %v1467_v45 = vpop.f32.mrf.mxu1  ;;  %1987 = vmatpush.bf16.msrb.mxu1 %v6508_v22  ;;  %v6476_v1 = vor.u32 %v8136_v57, %v6475_v50  ;;  %v6483_v28 = vld [vmem:[#allocation14 + $0x8] sm:$0xf] }
 0x1e9   :  { %v6374_v44 = vmul.f32 -1.442695, %v1496_v40  ;;  %1962 = vmatpush.bf16.msrb.mxu3 %v6488_v58  ;;  %1975 = vmatpush.bf16.msrb.mxu0 %v6492_v56  ;;  %v6484_v60 = vor.u32 %v8137_v61, %v6483_v28  ;;  %v1535_v56 = vadd.f32 %v9495_v47, %v1491_v9 }
 0x1eb   :  { %v8565_v54 = vpop.eup %8564  ;;  %8566 = vpow2.f32 %v6374_v44 }
 0x1ec   :  { %v1503_v16 = vadd.f32 1.0, %v8565_v54  ;;  %1988 = vmatpush.bf16.msrb.mxu1 %v6496_v6 }
 0x1ed   :  { %1963 = vmatpush.bf16.msrb.mxu3 %v6476_v1  ;;  %1976 = vmatpush.bf16.msrb.mxu0 %v6480_v52 }
 0x1ee   :  { %8568 = vrcp.f32 %v1503_v16  ;;  %v1480_v3 = vpop.f32.mrf.mxu2  ;;  %v1516_v40 = vand.u32 2147483648, %v1503_v16  ;;  %v1514_v51 = vand.u32 2147483647, %v1503_v16  ;;  %vm1510_vm10 = vweird.f32 %v1503_v16 }
 0x1ef   :  { %v1493_v62 = vpop.f32.mrf.mxu3 }
 0x1f0   :  { %1989 = vmatpush.bf16.msrb.mxu1 %v6484_v60  ;;  %v1517_v58 = vor.u32 1.1754944e-38, %v1516_v40  ;;  %vm1515_vm12 = vcmp.eq.f32.partialorder %v1514_v51, 8.507059e+37  ;;  %v8181_v60 = vld [vmem:[#allocation8 + $0xb0] sm:$0xf0]  ;;  %v6645_v51 = vld [vmem:[#allocation8 + $0x90] sm:$0xf] }
 0x1f1   :  { %v8567_v53 = vpop.eup %8566 }
 0x1f2   :  { %v1504_v4 = vadd.f32 1.0, %v8567_v53  ;;  %v8180_v53 = vld [vmem:[#allocation8 + $0xac] sm:$0xf] }
 0x1f4   :  { %v8569_v8 = vpop.eup %8568  ;;  %8570 = vrcp.f32 %v1504_v4  ;;  %v1531_v6 = vand.u32 2147483648, %v1504_v4  ;;  %v1529_v57 = vand.u32 2147483647, %v1504_v4  ;;  %vm1525_vm14 = vweird.f32 %v1504_v4 }
 0x1f5   :  { %v1506_v48 = vmul.f32 %v8569_v8, %v1503_v16  ;;  %vm1511_vm9 = vweird.f32 %v8569_v8 }
 0x1f6   :  { %vm1512_vm11 = vmor %vm1510_vm10, %vm1511_vm9  ;;  %v1532_v2 = vor.u32 1.1754944e-38, %v1531_v6  ;;  %vm1530_vm0 = vcmp.eq.f32.partialorder %v1529_v57, 8.507059e+37  ;;  %v8175_v6 = vld [vmem:[#allocation8 + $0x80] sm:$0xf0] }
 0x1f7   :  { %v1507_v22 = vsub.f32 1.0, %v1506_v48  ;;  %v6665_v48 = vld [vmem:[#allocation8 + $0xb0] sm:$0xf] }
 0x1f9   :  { %v1508_v45 = vmul.f32 %v8569_v8, %v1507_v22  ;;  %v8182_v22 = vld [vmem:[#allocation8 + $0xb8] sm:$0xf0] }
 0x1fa   :  { %v8571_v49 = vpop.eup %8570 }
 0x1fb   :  { %v1521_v27 = vmul.f32 %v8571_v49, %v1504_v4  ;;  %v1509_v44 = vadd.f32 %v8569_v8, %v1508_v45  ;;  %vm1526_vm13 = vweird.f32 %v8571_v49  ;;  %v6666_v45 = vor.u32 %v8182_v22, %v6665_v48  ;;  %v8169_v48 = vld [vmem:[#allocation8 + $0x50] sm:$0xf0]  ;;  %v8168_v22 = vld [vmem:[#allocation8 + $0x4c] sm:$0xf] }
 0x1fc   :  { %vm1527_vm15 = vmor %vm1525_vm14, %vm1526_vm13 }
 0x1fd   :  { %v1522_v46 = vsub.f32 1.0, %v1521_v27  ;;  %v1513_v39 = vsel %vm1512_vm11, %v8569_v8, %v1509_v44  ;;  %v6659_v8 = vld [vmem:[#allocation8 + $0xb4] sm:$0xf0]  ;;  %2234 = vmatpush.bf16.msra.mxu0 %v6666_v45  ;;  %v8177_v27 = vld [vmem:[#allocation8 + $0x94] sm:$0xf] }
 0x1fe   :  { %v1518_v63 = vsel %vm1515_vm12, %v1517_v58, %v1513_v39  ;;  %v6662_v40 = vor.u32 %v8180_v53, %v6659_v8  ;;  %v6647_v58 = vld [vmem:[#allocation8 + $0x9c] sm:$0xf0]  ;;  %v8179_v39 = vld [vmem:[#allocation8 + $0xa0] sm:$0xf0]  ;;  %v6609_v8 = vld [vmem:[#allocation8 + $0x48] sm:$0xf] }
 0x1ff   :  { %v1523_v54 = vmul.f32 %v8571_v49, %v1522_v46  ;;  %v1536_v50 = vmul.f32 %v1535_v56, %v1518_v63  ;;  %v6653_v46 = vld [vmem:[#allocation8 + $0x98] sm:$0xf]  ;;  %v6650_v56 = vor.u32 %v8177_v27, %v6647_v58  ;;  %v6617_v27 = vld [vmem:[#allocation8 + $0x50] sm:$0xf] }
 0x200   :  { %2221 = vmatpush.bf16.msra.mxu3 %v6662_v40  ;;  %v6654_v63 = vor.u32 %v8179_v39, %v6653_v46 }
 0x201   :  { %v1524_v1 = vadd.f32 %v8571_v49, %v1523_v54  ;;  %v1537_v25 = vadd.f32 %v1536_v50, %v9480_v55  ;;  %v6657_v55 = vld [vmem:[#allocation8 + $0xa8] sm:$0xf]  ;;  %v6633_v54 = vld [vmem:[#allocation8 + $0x78] sm:$0xf]  ;;  %v8174_v50 = vld [vmem:[#allocation8 + $0x7c] sm:$0xf] }
 0x202   :  { %v6658_v4 = vor.u32 %v8181_v60, %v6657_v55  ;;  %2235 = vmatpush.bf16.msra.mxu0 %v6654_v63  ;;  %v6634_v57 = vor.u32 %v8175_v6, %v6633_v54  ;;  %v6629_v55 = vld [vmem:[#allocation8 + $0x68] sm:$0xf]  ;;  %v8173_v60 = vld [vmem:[#allocation8 + $0x70] sm:$0xf0]  ;;  %v6597_v6 = vld [vmem:[#allocation8 + $0x30] sm:$0xf] }
 0x203   :  { %v1528_v16 = vsel %vm1527_vm15, %v8571_v49, %v1524_v1  ;;  %8572 = vtanh.f32 %v1537_v25  ;;  %v8178_v49 = vld [vmem:[#allocation8 + $0x98] sm:$0xf0]  ;;  %v6635_v1 = vld [vmem:[#allocation8 + $0x84] sm:$0xf0]  ;;  %v6641_v25 = vld [vmem:[#allocation8 + $0x80] sm:$0xf] }
 0x204   :  { %v1533_v28 = vsel %vm1530_vm0, %v1532_v2, %v1528_v16  ;;  %2208 = vmatpush.bf16.msra.mxu2 %v6658_v4  ;;  %v6646_v44 = vor.u32 %v8178_v49, %v6645_v51  ;;  %2222 = vmatpush.bf16.msra.mxu3 %v6650_v56  ;;  %v8176_v2 = vld [vmem:[#allocation8 + $0x88] sm:$0xf0]  ;;  %v6638_v16 = vor.u32 %v8174_v50, %v6635_v1  ;;  %v6611_v49 = vld [vmem:[#allocation8 + $0x54] sm:$0xf0]  ;;  %v8166_v50 = vld [vmem:[#allocation8 + $0x38] sm:$0xf0] }
 0x205   :  { %v1539_v3 = vsub.f32 1.0, %v1533_v28  ;;  %v1541_v47 = vmul.f32 %v1533_v28, %v9506_v59  ;;  %v6642_v28 = vor.u32 %v8176_v2, %v6641_v25  ;;  %v6630_v4 = vor.u32 %v8173_v60, %v6629_v55  ;;  %v6599_v1 = vld [vmem:[#allocation8 + $0x3c] sm:$0xf0]  ;;  %v6587_v60 = vld [vmem:[#allocation8 + $0x24] sm:$0xf0] }
 0x206   :  { %v6610_v51 = vor.u32 %v8169_v48, %v6609_v8  ;;  %v6614_v39 = vor.u32 %v8168_v22, %v6611_v49  ;;  %v6598_v25 = vor.u32 %v8166_v50, %v6597_v6 }
 0x207   :  { %2236 = vmatpush.bf16.msra.mxu0 %v6642_v28  ;;  %v8167_v28 = vld [vmem:[#allocation8 + $0x40] sm:$0xf0] }
 0x208   :  { %2209 = vmatpush.bf16.msra.mxu2 %v6646_v44  ;;  %2223 = vmatpush.bf16.msra.mxu3 %v6638_v16  ;;  %v8170_v44 = vld [vmem:[#allocation8 + $0x58] sm:$0xf0]  ;;  %v6605_v16 = vld [vmem:[#allocation8 + $0x38] sm:$0xf] }
 0x209   :  { %v8573_v61 = vpop.eup %8572  ;;  %v6618_v56 = vor.u32 %v8170_v44, %v6617_v27 }
 0x20a   :  { %v1540_v62 = vmul.f32 %v8573_v61, %v1539_v3  ;;  %v6621_v3 = vld [vmem:[#allocation8 + $0x60] sm:$0xf]  ;;  %v8172_v61 = vld [vmem:[#allocation8 + $0x68] sm:$0xf0] }
 0x20b   :  { %2237 = vmatpush.bf16.msra.mxu0 %v6630_v4  ;;  %v8164_v4 = vld [vmem:[#allocation8 + $0x28] sm:$0xf0] }
 0x20c   :  { %v9552_v9 = vadd.f32 %v1541_v47, %v1540_v62  ;;  %2210 = vmatpush.bf16.msra.mxu2 %v6634_v57  ;;  %v8171_v62 = vld [vmem:[#allocation8 + $0x64] sm:$0xf]  ;;  %v6622_v47 = vor.u32 %v8172_v61, %v6621_v3  ;;  %v8165_v57 = vld [vmem:[#allocation8 + $0x34] sm:$0xf] }
 0x20d   :  { %v6602_v2 = vor.u32 %v8165_v57, %v6599_v1  ;;  %v8163_v61 = vld [vmem:[#allocation8 + $0x20] sm:$0xf0] }
 0x20e   :  { %v1795_v52 = vpack.c.bf16 %v9552_v9, %v9552_v9 }
 0x20f   :  { %2238 = vmatpush.bf16.msra.mxu0 %v6618_v56  ;;  %v6581_v56 = vld [vmem:[#allocation8 + $0x8] sm:$0xf] }
 0x210   :  { %1964 = vmatmul.bf16.vlgmr.msrb.gmra.mxu3 %v1795_v52  ;;  %1977 = vmatmul.bf16.vlgmr.msrb.gmra.mxu0 %v1795_v52 }
 0x211   :  { %1990 = vmatmul.bf16.vlgmr.msrb.gmra.mxu1 %v1795_v52  ;;  %v6623_v52 = vld [vmem:[#allocation8 + $0x6c] sm:$0xf0]  ;;  %2211 = vmatpush.bf16.msra.mxu2 %v6622_v47 }
 0x212   :  { %v6626_v53 = vor.u32 %v8171_v62, %v6623_v52  ;;  %v8162_v62 = vld [vmem:[#allocation8 + $0x1c] sm:$0xf] }
 0x213   :  { %v6590_v8 = vor.u32 %v8162_v62, %v6587_v60 }
 0x214   :  { %2224 = vmatpush.bf16.msra.mxu3 %v6626_v53  ;;  %v6593_v53 = vld [vmem:[#allocation8 + $0x20] sm:$0xf] }
 0x215   :  { %2212 = vmatpush.bf16.msra.mxu2 %v6610_v51  ;;  %v6594_v48 = vor.u32 %v8164_v4, %v6593_v53  ;;  %v8159_v51 = vld [vmem:[#allocation8 + $0x4] sm:$0xf] }
 0x218   :  { %2225 = vmatpush.bf16.msra.mxu3 %v6614_v39 }
 0x219   :  { %2213 = vmatpush.bf16.msra.mxu2 %v6598_v25 }
 0x21c   :  { %2226 = vmatpush.bf16.msra.mxu3 %v6602_v2 }
 0x220   :  { %2227 = vmatpush.bf16.msra.mxu3 %v6590_v8 }
 0x264   :  { %v1717_v40 = vpop.f32.mrf.mxu0  ;;  %v1730_v45 = vpop.f32.mrf.mxu1 }
 0x265   :  { %v1747_v58 = vadd.f32 %v1717_v40, %v9353_v10  ;;  %v1748_v46 = vadd.f32 %v1730_v45, %v9356_v12  ;;  %v6606_v10 = vor.u32 %v8167_v28, %v6605_v16  ;;  %v6585_v12 = vld [vmem:[#allocation8 + $0x18] sm:$0xf]  ;;  %v6573_v40 = vld [vmem:[#allocation8] sm:$0xf]  ;;  %v8160_v45 = vld [vmem:[#allocation8 + $0x8] sm:$0xf0] }
 0x266   :  { %v6586_v55 = vor.u32 %v8163_v61, %v6585_v12  ;;  %v6574_v44 = vor.u32 %v8160_v45, %v6573_v40  ;;  %v6755_v45 = vld [vmem:[#allocation14 + $0xa8] sm:$0xf] }
 0x267   :  { %v6471_v63 = vmul.f32 -1.442695, %v1747_v58  ;;  %v6472_v54 = vmul.f32 -1.442695, %v1748_v46  ;;  %2239 = vmatpush.bf16.msra.mxu0 %v6606_v10  ;;  %v6575_v58 = vld [vmem:[#allocation8 + $0xc] sm:$0xf0] }
 0x268   :  { %2214 = vmatpush.bf16.msra.mxu2 %v6586_v55  ;;  %v6578_v39 = vor.u32 %v8159_v51, %v6575_v58  ;;  %v8205_v51 = vld [vmem:[#allocation14 + $0xb0] sm:$0xf0]  ;;  %v6757_v58 = vld [vmem:[#allocation14 + $0xb4] sm:$0xf0] }
 0x269   :  { %8574 = vpow2.f32 %v6471_v63  ;;  %v8161_v63 = vld [vmem:[#allocation8 + $0x10] sm:$0xf0] }
 0x26a   :  { %8576 = vpow2.f32 %v6472_v54  ;;  %2228 = vmatpush.bf16.msra.mxu3 %v6578_v39  ;;  %v6582_v6 = vor.u32 %v8161_v63, %v6581_v56  ;;  %v6763_v39 = vld [vmem:[#allocation14 + $0xb0] sm:$0xf] }
 0x26b   :  { %v1743_v3 = vpop.f32.mrf.mxu2  ;;  %2240 = vmatpush.bf16.msra.mxu0 %v6594_v48 }
 0x26c   :  { %v1719_v47 = vpop.f32.mrf.mxu0  ;;  %v1732_v52 = vpop.f32.mrf.mxu1  ;;  %2215 = vmatpush.bf16.msra.mxu2 %v6574_v44  ;;  %v8204_v44 = vld [vmem:[#allocation14 + $0xac] sm:$0xf] }
 0x26d   :  { %v9558_v52 = vld [vmem:[#allocation11] ss:$0 sm:$0xff]  ;;  %v6760_v63 = vor.u32 %v8204_v44, %v6757_v58  ;;  %v6719_v58 = vld [vmem:[#allocation14 + $0x60] sm:$0xf] }
 0x26e   :  { %v1787_v55 = vadd.f32 %v9558_v52, %v1743_v3 }
 0x26f   :  { %v8575_v22 = vpop.eup %8574  ;;  %2241 = vmatpush.bf16.msra.mxu0 %v6582_v6 }
 0x270   :  { %v8577_v49 = vpop.eup %8576  ;;  %v1755_v27 = vadd.f32 1.0, %v8575_v22  ;;  %2469 = vmatpush.bf16.msrb.mxu2 %v6760_v63 }
 0x271   :  { %v1756_v46 = vadd.f32 1.0, %v8577_v49 }
 0x272   :  { %8578 = vrcp.f32 %v1755_v27  ;;  %v1768_v28 = vand.u32 2147483648, %v1755_v27  ;;  %v1766_v12 = vand.u32 2147483647, %v1755_v27  ;;  %vm1762_vm2 = vweird.f32 %v1755_v27 }
 0x273   :  { %8580 = vrcp.f32 %v1756_v46  ;;  %v1745_v54 = vpop.f32.mrf.mxu2  ;;  %v1783_v4 = vand.u32 2147483648, %v1756_v46  ;;  %vm1777_vm6 = vweird.f32 %v1756_v46  ;;  %v1781_v48 = vand.u32 2147483647, %v1756_v46 }
 0x274   :  { %v1769_v47 = vor.u32 1.1754944e-38, %v1768_v28  ;;  %vm1767_vm5 = vcmp.eq.f32.partialorder %v1766_v12, 8.507059e+37  ;;  %v8206_v54 = vld [vmem:[#allocation14 + $0xb8] sm:$0xf0] }
 0x275   :  { %v1784_v56 = vor.u32 1.1754944e-38, %v1783_v4  ;;  %vm1782_vm8 = vcmp.eq.f32.partialorder %v1781_v48, 8.507059e+37  ;;  %v6733_v4 = vld [vmem:[#allocation14 + $0x84] sm:$0xf0]  ;;  %v8200_v48 = vld [vmem:[#allocation14 + $0x88] sm:$0xf0] }
 0x278   :  { %v8579_v50 = vpop.eup %8578 }
 0x279   :  { %v8581_v57 = vpop.eup %8580  ;;  %v1758_v1 = vmul.f32 %v8579_v50, %v1755_v27  ;;  %vm1763_vm1 = vweird.f32 %v8579_v50  ;;  %v6756_v27 = vor.u32 %v8205_v51, %v6755_v45 }
 0x27a   :  { %v1773_v25 = vmul.f32 %v8581_v57, %v1756_v46  ;;  %vm1764_vm3 = vmor %vm1762_vm2, %vm1763_vm1  ;;  %vm1778_vm4 = vweird.f32 %v8581_v57  ;;  %v6764_v46 = vor.u32 %v8206_v54, %v6763_v39  ;;  %v8195_v39 = vld [vmem:[#allocation14 + $0x64] sm:$0xf]  ;;  %v6721_v54 = vld [vmem:[#allocation14 + $0x6c] sm:$0xf0] }
 0x27b   :  { %v1759_v2 = vsub.f32 1.0, %v1758_v1  ;;  %vm9561_vm7 = vmor %vm1777_vm6, %vm1778_vm4  ;;  %2456 = vmatpush.bf16.msra.mxu1 %v6756_v27  ;;  %v8202_v1 = vld [vmem:[#allocation14 + $0x98] sm:$0xf0] }
 0x27c   :  { %v1774_v16 = vsub.f32 1.0, %v1773_v25  ;;  %v8201_v25 = vld [vmem:[#allocation14 + $0x94] sm:$0xf]  ;;  %2482 = vmatpush.bf16.msrb.mxu3 %v6764_v46  ;;  %v6727_v46 = vld [vmem:[#allocation14 + $0x68] sm:$0xf] }
 0x27d   :  { %v1760_v10 = vmul.f32 %v8579_v50, %v1759_v2  ;;  %v6745_v2 = vld [vmem:[#allocation14 + $0x9c] sm:$0xf0] }
 0x27e   :  { %v1775_v61 = vmul.f32 %v8581_v57, %v1774_v16  ;;  %v8203_v16 = vld [vmem:[#allocation14 + $0xa0] sm:$0xf0]  ;;  %v6748_v28 = vor.u32 %v8201_v25, %v6745_v2  ;;  %v477_v25 = vadd.f32 %v9392_v35, %v9333_v0 }
 0x27f   :  { %v1761_v62 = vadd.f32 %v8579_v50, %v1760_v10 }
 0x280   :  { %v1776_v60 = vadd.f32 %v8581_v57, %v1775_v61  ;;  %2470 = vmatpush.bf16.msrb.mxu2 %v6748_v28  ;;  %v6731_v61 = vld [vmem:[#allocation14 + $0x78] sm:$0xf]  ;;  %v8192_v28 = vld [vmem:[#allocation14 + $0x4c] sm:$0xf] }
 0x281   :  { %v1765_v53 = vsel %vm1764_vm3, %v8579_v50, %v1761_v62  ;;  %v6743_v50 = vld [vmem:[#allocation14 + $0x90] sm:$0xf]  ;;  %v8199_v62 = vld [vmem:[#allocation14 + $0x80] sm:$0xf0] }
 0x282   :  { %v1770_v8 = vsel %vm1767_vm5, %v1769_v47, %v1765_v53  ;;  %v1780_v49 = vsel %vm9561_vm7, %v8581_v57, %v1776_v60  ;;  %v6744_v57 = vor.u32 %v8202_v1, %v6743_v50  ;;  %v8198_v47 = vld [vmem:[#allocation14 + $0x7c] sm:$0xf]  ;;  %v506_v60 = vadd.f32 %v9468_v42, %v9411_v11  ;;  %v8196_v42 = vld [vmem:[#allocation14 + $0x68] sm:$0xf0]  ;;  %v8197_v1 = vld [vmem:[#allocation14 + $0x70] sm:$0xf0] }
 0x283   :  { %v1788_v22 = vmul.f32 %v1787_v55, %v1770_v8  ;;  %v1785_v6 = vsel %vm1782_vm8, %v1784_v56, %v1780_v49  ;;  %v6732_v53 = vor.u32 %v8199_v62, %v6731_v61  ;;  %v6739_v8 = vld [vmem:[#allocation14 + $0x80] sm:$0xf]  ;;  %v6736_v51 = vor.u32 %v8198_v47, %v6733_v4  ;;  %v6709_v61 = vld [vmem:[#allocation14 + $0x54] sm:$0xf0]  ;;  %v6715_v62 = vld [vmem:[#allocation14 + $0x50] sm:$0xf] }
 0x284   :  { %v1791_v12 = vsub.f32 1.0, %v1785_v6  ;;  %2457 = vmatpush.bf16.msra.mxu1 %v6744_v57  ;;  %v1793_v40 = vmul.f32 %v1785_v6, %v9544_v37  ;;  %v6740_v49 = vor.u32 %v8200_v48, %v6739_v8  ;;  %v6720_v63 = vor.u32 %v8196_v42, %v6719_v58  ;;  %v8194_v47 = vld [vmem:[#allocation14 + $0x58] sm:$0xf0]  ;;  %v6695_v8 = vld [vmem:[#allocation14 + $0x30] sm:$0xf] }
 0x285   :  { %v1789_v3 = vadd.f32 %v1788_v22, %v9361_v15  ;;  %v6751_v15 = vld [vmem:[#allocation14 + $0x98] sm:$0xf]  ;;  %2471 = vmatpush.bf16.msrb.mxu2 %v6736_v51  ;;  %v6724_v50 = vor.u32 %v8195_v39, %v6721_v54  ;;  %v6728_v57 = vor.u32 %v8197_v1, %v6727_v46  ;;  %v6716_v35 = vor.u32 %v8194_v47, %v6715_v62  ;;  %v8190_v48 = vld [vmem:[#allocation14 + $0x38] sm:$0xf0]  ;;  %v8191_v58 = vld [vmem:[#allocation14 + $0x40] sm:$0xf0] }
 0x286   :  { %v6752_v10 = vor.u32 %v8203_v16, %v6751_v15  ;;  %v6707_v15 = vld [vmem:[#allocation14 + $0x48] sm:$0xf]  ;;  %v8193_v16 = vld [vmem:[#allocation14 + $0x50] sm:$0xf0]  ;;  %v6703_v51 = vld [vmem:[#allocation14 + $0x38] sm:$0xf] }
 0x287   :  { %8582 = vtanh.f32 %v1789_v3  ;;  %v6683_v42 = vld [vmem:[#allocation14 + $0x18] sm:$0xf]  ;;  %v8187_v39 = vld [vmem:[#allocation14 + $0x20] sm:$0xf0]  ;;  %v8186_v54 = vld [vmem:[#allocation14 + $0x1c] sm:$0xf] }
 0x288   :  { %2483 = vmatpush.bf16.msrb.mxu3 %v6752_v10  ;;  %2458 = vmatpush.bf16.msra.mxu1 %v6732_v53  ;;  %v6685_v46 = vld [vmem:[#allocation14 + $0x24] sm:$0xf0]  ;;  %v8188_v1 = vld [vmem:[#allocation14 + $0x28] sm:$0xf0]  ;;  %v8185_v47 = vld [vmem:[#allocation14 + $0x10] sm:$0xf0] }
 0x289   :  { %2472 = vmatpush.bf16.msrb.mxu2 %v6724_v50  ;;  %v6691_v50 = vld [vmem:[#allocation14 + $0x20] sm:$0xf]  ;;  %v6679_v62 = vld [vmem:[#allocation14 + $0x8] sm:$0xf] }
 0x28c   :  { %2484 = vmatpush.bf16.msrb.mxu3 %v6740_v49  ;;  %2459 = vmatpush.bf16.msra.mxu1 %v6720_v63  ;;  %v6704_v63 = vor.u32 %v8191_v58, %v6703_v51 }
 0x28d   :  { %v8583_v55 = vpop.eup %8582  ;;  %v1978_v45 = vpop.f32.mrf.mxu0 }
 0x28e   :  { %v1792_v22 = vmul.f32 %v8583_v55, %v1791_v12  ;;  %v1996_v3 = vadd.f32 %v1978_v45, %v506_v60  ;;  %v9571_v27 = vpop.f32.mrf.mxu1  ;;  %v6708_v12 = vor.u32 %v8193_v16, %v6707_v15  ;;  %v6712_v60 = vor.u32 %v8192_v28, %v6709_v61  ;;  %v6697_v45 = vld [vmem:[#allocation14 + $0x3c] sm:$0xf0]  ;;  %v8183_v28 = vld [vmem:[#allocation14 + $0x4] sm:$0xf] }
 0x28f   :  { %v6688_v15 = vor.u32 %v8186_v54, %v6685_v46  ;;  %v6692_v16 = vor.u32 %v8188_v1, %v6691_v50  ;;  %v535_v50 = vadd.f32 %v9472_v24, %v9414_v14 }
 0x290   :  { %v9573_v44 = vadd.f32 %v1793_v40, %v1792_v22  ;;  %v6570_v56 = vmul.f32 -1.442695, %v1996_v3  ;;  %2485 = vmatpush.bf16.msrb.mxu3 %v6728_v57  ;;  %2460 = vmatpush.bf16.msra.mxu1 %v6708_v12  ;;  %v6696_v22 = vor.u32 %v8190_v48, %v6695_v8  ;;  %v8189_v40 = vld [vmem:[#allocation14 + $0x34] sm:$0xf]  ;;  %v6671_v57 = vld [vmem:[#allocation14] sm:$0xf] }
 0x291   :  { %2473 = vmatpush.bf16.msrb.mxu2 %v6712_v60  ;;  %v6700_v3 = vor.u32 %v8189_v40, %v6697_v45 }
 0x292   :  { %v2047_v6 = vpack.c.bf16 %v9573_v44, %v9573_v44  ;;  %8584 = vpow2.f32 %v6570_v56 }
 0x293   :  { %v1965_v2 = vpop.f32.mrf.mxu3 }
 0x294   :  { %2216 = vmatmul.bf16.vlgmr.msra.gmra.mxu2 %v2047_v6  ;;  %2229 = vmatmul.bf16.vlgmr.msra.gmra.mxu3 %v2047_v6  ;;  %v1995_v10 = vadd.f32 %v1965_v2, %v477_v25  ;;  %v8184_v2 = vld [vmem:[#allocation14 + $0x8] sm:$0xf0] }
 0x295   :  { %2242 = vmatmul.bf16.vlgmr.msra.gmra.mxu0 %v2047_v6  ;;  %v1980_v55 = vpop.f32.mrf.mxu0  ;;  %2486 = vmatpush.bf16.msrb.mxu3 %v6716_v35  ;;  %v6684_v6 = vor.u32 %v8187_v39, %v6683_v42  ;;  %v6672_v61 = vor.u32 %v8184_v2, %v6671_v57  ;;  %v6680_v35 = vor.u32 %v8185_v47, %v6679_v62  ;;  %v9583_v39 = vld [vmem:[#allocation15] ss:$0 sm:$0xff] }
 0x296   :  { %v6569_v53 = vmul.f32 -1.442695, %v1995_v10  ;;  %v1993_v4 = vpop.f32.mrf.mxu1  ;;  %2461 = vmatpush.bf16.msra.mxu1 %v6696_v22  ;;  %2474 = vmatpush.bf16.msrb.mxu2 %v6700_v3  ;;  %v6673_v10 = vld [vmem:[#allocation14 + $0xc] sm:$0xf0]  ;;  %v8229_v47 = vld [vmem:[#allocation8 + $0xb0] sm:$0xf0] }
 0x297   :  { %v6676_v60 = vor.u32 %v8183_v28, %v6673_v10 }
 0x298   :  { %v8585_v49 = vpop.eup %8584  ;;  %8586 = vpow2.f32 %v6569_v53 }
 0x299   :  { %v9579_v56 = vadd.f32 1.0, %v8585_v49  ;;  %2487 = vmatpush.bf16.msrb.mxu3 %v6704_v63  ;;  %v2035_v63 = vadd.f32 %v9583_v39, %v9571_v27 }
 0x29a   :  { %2462 = vmatpush.bf16.msra.mxu1 %v6684_v6  ;;  %2475 = vmatpush.bf16.msrb.mxu2 %v6688_v15 }
 0x29b   :  { %v1967_v25 = vpop.f32.mrf.mxu3  ;;  %8588 = vrcp.f32 %v9579_v56  ;;  %v2031_v1 = vand.u32 2147483648, %v9579_v56  ;;  %vm2025_vm14 = vweird.f32 %v9579_v56  ;;  %v2029_v57 = vand.u32 2147483647, %v9579_v56 }
 0x29d   :  { %2488 = vmatpush.bf16.msrb.mxu3 %v6692_v16  ;;  %v2032_v16 = vor.u32 1.1754944e-38, %v2031_v1  ;;  %vm2030_vm0 = vcmp.eq.f32.partialorder %v2029_v57, 8.507059e+37  ;;  %v6831_v1 = vld [vmem:[#allocation8 + $0x84] sm:$0xf0]  ;;  %v8224_v57 = vld [vmem:[#allocation8 + $0x88] sm:$0xf0] }
 0x29e   :  { %v8587_v12 = vpop.eup %8586  ;;  %2463 = vmatpush.bf16.msra.mxu1 %v6672_v61  ;;  %2476 = vmatpush.bf16.msrb.mxu2 %v6676_v60 }
 0x29f   :  { %v2003_v55 = vadd.f32 1.0, %v8587_v12 }
 0x2a1   :  { %8590 = vrcp.f32 %v2003_v55  ;;  %v8589_v53 = vpop.eup %8588  ;;  %2489 = vmatpush.bf16.msrb.mxu3 %v6680_v35  ;;  %v2016_v45 = vand.u32 2147483648, %v2003_v55  ;;  %v2014_v49 = vand.u32 2147483647, %v2003_v55  ;;  %vm2010_vm10 = vweird.f32 %v2003_v55  ;;  %v6855_v35 = vld [vmem:[#allocation8 + $0xb4] sm:$0xf0] }
 0x2a2   :  { %v2021_v4 = vmul.f32 %v8589_v53, %v9579_v56  ;;  %vm2026_vm13 = vweird.f32 %v8589_v53  ;;  %v6853_v56 = vld [vmem:[#allocation8 + $0xa8] sm:$0xf] }
 0x2a3   :  { %v2017_v42 = vor.u32 1.1754944e-38, %v2016_v45  ;;  %vm2015_vm12 = vcmp.eq.f32.partialorder %v2014_v49, 8.507059e+37  ;;  %vm2027_vm15 = vmor %vm2025_vm14, %vm2026_vm13  ;;  %v6854_v60 = vor.u32 %v8229_v47, %v6853_v56  ;;  %v8225_v45 = vld [vmem:[#allocation8 + $0x94] sm:$0xf]  ;;  %v6843_v49 = vld [vmem:[#allocation8 + $0x9c] sm:$0xf0] }
 0x2a4   :  { %v2022_v22 = vsub.f32 1.0, %v2021_v4  ;;  %v8230_v4 = vld [vmem:[#allocation8 + $0xb8] sm:$0xf0]  ;;  %v8221_v56 = vld [vmem:[#allocation8 + $0x70] sm:$0xf0] }
 0x2a5   :  { %2708 = vmatpush.bf16.msrb.mxu0 %v6854_v60  ;;  %v337_v60 = vadd.f32 %v9363_v17, %v9344_v5 }
 0x2a6   :  { %v2023_v3 = vmul.f32 %v8589_v53, %v2022_v22  ;;  %v6841_v22 = vld [vmem:[#allocation8 + $0x90] sm:$0xf] }
 0x2a7   :  { %v8591_v8 = vpop.eup %8590 }
 0x2a8   :  { %v2006_v48 = vmul.f32 %v8591_v8, %v2003_v55  ;;  %vm2011_vm9 = vweird.f32 %v8591_v8  ;;  %v2024_v46 = vadd.f32 %v8589_v53, %v2023_v3  ;;  %v8228_v55 = vld [vmem:[#allocation8 + $0xac] sm:$0xf]  ;;  %v6849_v3 = vld [vmem:[#allocation8 + $0x98] sm:$0xf] }
 0x2a9   :  { %vm2012_vm11 = vmor %vm2010_vm10, %vm2011_vm9 }
 0x2aa   :  { %v2007_v40 = vsub.f32 1.0, %v2006_v48  ;;  %v2028_v15 = vsel %vm2027_vm15, %v8589_v53, %v2024_v46  ;;  %v6861_v53 = vld [vmem:[#allocation8 + $0xb0] sm:$0xf]  ;;  %v8223_v46 = vld [vmem:[#allocation8 + $0x80] sm:$0xf0] }
 0x2ab   :  { %v2033_v27 = vsel %vm2030_vm0, %v2032_v16, %v2028_v15  ;;  %v6862_v48 = vor.u32 %v8230_v4, %v6861_v53  ;;  %v6805_v53 = vld [vmem:[#allocation8 + $0x48] sm:$0xf]  ;;  %v8217_v4 = vld [vmem:[#allocation8 + $0x50] sm:$0xf0] }
 0x2ac   :  { %v2008_v51 = vmul.f32 %v8591_v8, %v2007_v40  ;;  %v2039_v28 = vsub.f32 1.0, %v2033_v27  ;;  %v2041_v12 = vmul.f32 %v2033_v27, %v9552_v9  ;;  %v8226_v40 = vld [vmem:[#allocation8 + $0x98] sm:$0xf0]  ;;  %v6817_v27 = vld [vmem:[#allocation8 + $0x60] sm:$0xf] }
 0x2ad   :  { %2734 = vmatpush.bf16.msra.mxu2 %v6862_v48 }
 0x2ae   :  { %v2009_v58 = vadd.f32 %v8591_v8, %v2008_v51  ;;  %v6842_v51 = vor.u32 %v8226_v40, %v6841_v22  ;;  %v6806_v40 = vor.u32 %v8217_v4, %v6805_v53 }
 0x2b0   :  { %v2013_v54 = vsel %vm2012_vm11, %v8591_v8, %v2009_v58  ;;  %v6858_v8 = vor.u32 %v8228_v55, %v6855_v35  ;;  %v8227_v58 = vld [vmem:[#allocation8 + $0xa0] sm:$0xf0]  ;;  %2709 = vmatpush.bf16.msrb.mxu0 %v6842_v51  ;;  %v366_v35 = vadd.f32 %v9368_v19, %v9348_v7  ;;  %v6813_v51 = vld [vmem:[#allocation8 + $0x50] sm:$0xf] }
 0x2b1   :  { %v2018_v6 = vsel %vm2015_vm12, %v2017_v42, %v2013_v54  ;;  %v6846_v42 = vor.u32 %v8225_v45, %v6843_v49  ;;  %v6829_v54 = vld [vmem:[#allocation8 + $0x78] sm:$0xf]  ;;  %v8218_v49 = vld [vmem:[#allocation8 + $0x58] sm:$0xf0]  ;;  %v6793_v19 = vld [vmem:[#allocation8 + $0x30] sm:$0xf] }
 0x2b2   :  { %v2036_v25 = vmul.f32 %v2035_v63, %v2018_v6  ;;  %2721 = vmatpush.bf16.msrb.mxu1 %v6858_v8  ;;  %v6850_v63 = vor.u32 %v8227_v58, %v6849_v3  ;;  %v8222_v6 = vld [vmem:[#allocation8 + $0x7c] sm:$0xf]  ;;  %v8216_v8 = vld [vmem:[#allocation8 + $0x4c] sm:$0xf]  ;;  %v6807_v45 = vld [vmem:[#allocation8 + $0x54] sm:$0xf0] }
 0x2b4   :  { %v2037_v2 = vadd.f32 %v2036_v25, %v535_v50  ;;  %2735 = vmatpush.bf16.msra.mxu2 %v6850_v63  ;;  %v6830_v50 = vor.u32 %v8223_v46, %v6829_v54  ;;  %v6837_v25 = vld [vmem:[#allocation8 + $0x80] sm:$0xf]  ;;  %v6814_v63 = vor.u32 %v8218_v49, %v6813_v51  ;;  %v6771_v49 = vld [vmem:[#allocation8 + $0xc] sm:$0xf0] }
 0x2b5   :  { %v6838_v15 = vor.u32 %v8224_v57, %v6837_v25 }
 0x2b6   :  { %8592 = vtanh.f32 %v2037_v2  ;;  %2722 = vmatpush.bf16.msrb.mxu1 %v6846_v42  ;;  %v6834_v2 = vor.u32 %v8222_v6, %v6831_v1  ;;  %2710 = vmatpush.bf16.msrb.mxu0 %v6830_v50  ;;  %v6810_v42 = vor.u32 %v8216_v8, %v6807_v45  ;;  %v8214_v6 = vld [vmem:[#allocation8 + $0x38] sm:$0xf0]  ;;  %v8213_v50 = vld [vmem:[#allocation8 + $0x34] sm:$0xf]  ;;  %v6795_v1 = vld [vmem:[#allocation8 + $0x3c] sm:$0xf0] }
 0x2b7   :  { %v6794_v25 = vor.u32 %v8214_v6, %v6793_v19  ;;  %v6798_v57 = vor.u32 %v8213_v50, %v6795_v1  ;;  %v6769_v8 = vld [vmem:[#allocation8] sm:$0xf] }
 0x2b8   :  { %2736 = vmatpush.bf16.msra.mxu2 %v6838_v15  ;;  %v8215_v15 = vld [vmem:[#allocation8 + $0x40] sm:$0xf0] }
 0x2ba   :  { %2723 = vmatpush.bf16.msrb.mxu1 %v6834_v2  ;;  %v6801_v2 = vld [vmem:[#allocation8 + $0x38] sm:$0xf] }
 0x2bc   :  { %v8593_v10 = vpop.eup %8592 }
 0x2bd   :  { %v2040_v61 = vmul.f32 %v8593_v10, %v2039_v28  ;;  %v8220_v28 = vld [vmem:[#allocation8 + $0x68] sm:$0xf0]  ;;  %v8219_v10 = vld [vmem:[#allocation8 + $0x64] sm:$0xf] }
 0x2bf   :  { %v9593_v24 = vadd.f32 %v2041_v12, %v2040_v61  ;;  %v6818_v12 = vor.u32 %v8220_v28, %v6817_v27  ;;  %v6819_v61 = vld [vmem:[#allocation8 + $0x6c] sm:$0xf0]  ;;  %v6802_v27 = vor.u32 %v8215_v15, %v6801_v2  ;;  %v6781_v28 = vld [vmem:[#allocation8 + $0x18] sm:$0xf] }
 0x2c0   :  { %v6822_v47 = vor.u32 %v8219_v10, %v6819_v61  ;;  %v8211_v10 = vld [vmem:[#allocation8 + $0x20] sm:$0xf0] }
 0x2c1   :  { %v2295_v62 = vpack.c.bf16 %v9593_v24, %v9593_v24  ;;  %2711 = vmatpush.bf16.msrb.mxu0 %v6818_v12  ;;  %v8210_v12 = vld [vmem:[#allocation8 + $0x1c] sm:$0xf] }
 0x2c2   :  { %2724 = vmatpush.bf16.msrb.mxu1 %v6822_v47  ;;  %v6783_v47 = vld [vmem:[#allocation8 + $0x24] sm:$0xf0] }
 0x2c3   :  { %2464 = vmatmul.bf16.vlgmr.msra.gmra.mxu1 %v2295_v62  ;;  %2477 = vmatmul.bf16.vlgmr.msrb.gmra.mxu2 %v2295_v62 }
 0x2c4   :  { %2490 = vmatmul.bf16.vlgmr.msrb.gmra.mxu3 %v2295_v62  ;;  %v6825_v62 = vld [vmem:[#allocation8 + $0x68] sm:$0xf] }
 0x2c5   :  { %v6826_v55 = vor.u32 %v8221_v56, %v6825_v62  ;;  %2712 = vmatpush.bf16.msrb.mxu0 %v6806_v40  ;;  %v6782_v56 = vor.u32 %v8211_v10, %v6781_v28  ;;  %v8253_v28 = vld [vmem:[#allocation14 + $0xb0] sm:$0xf0]  ;;  %v8252_v10 = vld [vmem:[#allocation14 + $0xac] sm:$0xf] }
 0x2c6   :  { %2725 = vmatpush.bf16.msrb.mxu1 %v6810_v42  ;;  %v6777_v42 = vld [vmem:[#allocation8 + $0x8] sm:$0xf] }
 0x2c7   :  { %2737 = vmatpush.bf16.msra.mxu2 %v6826_v55  ;;  %v6789_v55 = vld [vmem:[#allocation8 + $0x20] sm:$0xf] }
 0x2c9   :  { %2713 = vmatpush.bf16.msrb.mxu0 %v6794_v25 }
 0x2ca   :  { %2726 = vmatpush.bf16.msrb.mxu1 %v6798_v57 }
 0x2cb   :  { %2738 = vmatpush.bf16.msra.mxu2 %v6814_v63  ;;  %v8209_v63 = vld [vmem:[#allocation8 + $0x10] sm:$0xf0] }
 0x2cd   :  { %2714 = vmatpush.bf16.msrb.mxu0 %v6782_v56  ;;  %v6959_v56 = vld [vmem:[#allocation14 + $0xb0] sm:$0xf] }
 0x2cf   :  { %2739 = vmatpush.bf16.msra.mxu2 %v6802_v27  ;;  %v6951_v27 = vld [vmem:[#allocation14 + $0xa8] sm:$0xf] }
 0x312   :  { %v9597_v16 = vpop.f32.mrf.mxu0 }
 0x317   :  { %v2217_v48 = vpop.f32.mrf.mxu2  ;;  %v2230_v22 = vpop.f32.mrf.mxu3 }
 0x318   :  { %v2247_v3 = vadd.f32 %v2217_v48, %v337_v60  ;;  %v2248_v58 = vadd.f32 %v2230_v22, %v366_v35  ;;  %v8212_v60 = vld [vmem:[#allocation8 + $0x28] sm:$0xf0]  ;;  %v6786_v35 = vor.u32 %v8210_v12, %v6783_v47  ;;  %v8207_v22 = vld [vmem:[#allocation8 + $0x4] sm:$0xf]  ;;  %v8254_v47 = vld [vmem:[#allocation14 + $0xb8] sm:$0xf0] }
 0x319   :  { %v6790_v53 = vor.u32 %v8212_v60, %v6789_v55  ;;  %v8208_v48 = vld [vmem:[#allocation8 + $0x8] sm:$0xf0] }
 0x31a   :  { %v6667_v17 = vmul.f32 -1.442695, %v2247_v3  ;;  %v6668_v54 = vmul.f32 -1.442695, %v2248_v58  ;;  %v2245_v46 = vpop.f32.mrf.mxu0  ;;  %2727 = vmatpush.bf16.msrb.mxu1 %v6786_v35  ;;  %v6770_v51 = vor.u32 %v8208_v48, %v6769_v8  ;;  %v6774_v58 = vor.u32 %v8207_v22, %v6771_v49 }
 0x31b   :  { %2740 = vmatpush.bf16.msra.mxu2 %v6790_v53  ;;  %v6960_v35 = vor.u32 %v8254_v47, %v6959_v56  ;;  %v2287_v53 = vadd.f32 %v9558_v52, %v9597_v16  ;;  %v395_v49 = vadd.f32 %v9370_v20, %v9358_v13  ;;  %v6941_v16 = vld [vmem:[#allocation14 + $0x9c] sm:$0xf0]  ;;  %v8244_v56 = vld [vmem:[#allocation14 + $0x68] sm:$0xf0] }
 0x31c   :  { %8594 = vpow2.f32 %v6667_v17  ;;  %2715 = vmatpush.bf16.msrb.mxu0 %v6770_v51  ;;  %v6778_v17 = vor.u32 %v8209_v63, %v6777_v42  ;;  %v8249_v51 = vld [vmem:[#allocation14 + $0x94] sm:$0xf]  ;;  %v6947_v42 = vld [vmem:[#allocation14 + $0x98] sm:$0xf]  ;;  %v8251_v63 = vld [vmem:[#allocation14 + $0xa0] sm:$0xf0] }
 0x31d   :  { %8596 = vpow2.f32 %v6668_v54 }
 0x31e   :  { %2728 = vmatpush.bf16.msrb.mxu1 %v6774_v58 }
 0x31f   :  { %v2219_v61 = vpop.f32.mrf.mxu2  ;;  %v2232_v62 = vpop.f32.mrf.mxu3  ;;  %2741 = vmatpush.bf16.msra.mxu2 %v6778_v17 }
 0x320   :  { %v6952_v61 = vor.u32 %v8253_v28, %v6951_v27  ;;  %v6953_v62 = vld [vmem:[#allocation14 + $0xb4] sm:$0xf0]  ;;  %v6935_v27 = vld [vmem:[#allocation14 + $0x80] sm:$0xf]  ;;  %v8248_v28 = vld [vmem:[#allocation14 + $0x88] sm:$0xf0] }
 0x321   :  { %v6956_v60 = vor.u32 %v8252_v10, %v6953_v62  ;;  %v6915_v62 = vld [vmem:[#allocation14 + $0x60] sm:$0xf] }
 0x322   :  { %v8595_v4 = vpop.eup %8594  ;;  %2956 = vmatpush.bf16.msra.mxu3 %v6952_v61  ;;  %2982 = vmatpush.bf16.msra.mxu1 %v6960_v35  ;;  %v6916_v47 = vor.u32 %v8244_v56, %v6915_v62  ;;  %v8245_v35 = vld [vmem:[#allocation14 + $0x70] sm:$0xf0]  ;;  %v6879_v56 = vld [vmem:[#allocation14 + $0x18] sm:$0xf] }
 0x323   :  { %v8597_v40 = vpop.eup %8596  ;;  %v2255_v45 = vadd.f32 1.0, %v8595_v4  ;;  %2969 = vmatpush.bf16.msra.mxu0 %v6956_v60  ;;  %v6923_v60 = vld [vmem:[#allocation14 + $0x68] sm:$0xf] }
 0x324   :  { %v9603_v3 = vadd.f32 1.0, %v8597_v40  ;;  %v6939_v40 = vld [vmem:[#allocation14 + $0x90] sm:$0xf] }
 0x325   :  { %8598 = vrcp.f32 %v2255_v45  ;;  %v2268_v1 = vand.u32 2147483648, %v2255_v45  ;;  %v2266_v2 = vand.u32 2147483647, %v2255_v45  ;;  %vm2262_vm2 = vweird.f32 %v2255_v45 }
 0x326   :  { %8600 = vrcp.f32 %v9603_v3  ;;  %v2283_v8 = vand.u32 2147483648, %v9603_v3  ;;  %vm2277_vm6 = vweird.f32 %v9603_v3  ;;  %v2281_v17 = vand.u32 2147483647, %v9603_v3 }
 0x327   :  { %v2269_v55 = vor.u32 1.1754944e-38, %v2268_v1  ;;  %vm2267_vm4 = vcmp.eq.f32.partialorder %v2266_v2, 8.507059e+37 }
 0x328   :  { %v2284_v1 = vor.u32 1.1754944e-38, %v2283_v8  ;;  %vm2282_vm8 = vcmp.eq.f32.partialorder %v2281_v17, 8.507059e+37  ;;  %v6924_v8 = vor.u32 %v8245_v35, %v6923_v60  ;;  %v8242_v17 = vld [vmem:[#allocation14 + $0x58] sm:$0xf0]  ;;  %v6881_v35 = vld [vmem:[#allocation14 + $0x24] sm:$0xf0] }
 0x32b   :  { %v8599_v54 = vpop.eup %8598 }
 0x32c   :  { %v9606_v46 = vpop.eup %8600  ;;  %v2258_v19 = vmul.f32 %v8599_v54, %v2255_v45  ;;  %vm2263_vm1 = vweird.f32 %v8599_v54  ;;  %v8250_v45 = vld [vmem:[#allocation14 + $0x98] sm:$0xf0] }
 0x32d   :  { %v2273_v6 = vmul.f32 %v9606_v46, %v9603_v3  ;;  %vm2264_vm3 = vmor %vm2262_vm2, %vm2263_vm1  ;;  %vm2278_vm5 = vweird.f32 %v9606_v46  ;;  %v6940_v52 = vor.u32 %v8250_v45, %v6939_v40  ;;  %v8246_v3 = vld [vmem:[#allocation14 + $0x7c] sm:$0xf] }
 0x32e   :  { %v2259_v50 = vsub.f32 1.0, %v2258_v19  ;;  %v6948_v19 = vor.u32 %v8251_v63, %v6947_v42  ;;  %vm9622_vm7 = vmor %vm2277_vm6, %vm2278_vm5  ;;  %v6905_v42 = vld [vmem:[#allocation14 + $0x54] sm:$0xf0]  ;;  %v6911_v63 = vld [vmem:[#allocation14 + $0x50] sm:$0xf] }
 0x32f   :  { %v2274_v25 = vsub.f32 1.0, %v2273_v6  ;;  %2957 = vmatpush.bf16.msra.mxu3 %v6940_v52 }
 0x330   :  { %v2260_v57 = vmul.f32 %v8599_v54, %v2259_v50  ;;  %2983 = vmatpush.bf16.msra.mxu1 %v6948_v19 }
 0x331   :  { %v2275_v15 = vmul.f32 %v9606_v46, %v2274_v25  ;;  %v6927_v25 = vld [vmem:[#allocation14 + $0x78] sm:$0xf] }
 0x332   :  { %v2261_v12 = vadd.f32 %v8599_v54, %v2260_v57  ;;  %v8247_v57 = vld [vmem:[#allocation14 + $0x80] sm:$0xf0] }
 0x333   :  { %v2276_v22 = vadd.f32 %v9606_v46, %v2275_v15  ;;  %v6928_v2 = vor.u32 %v8247_v57, %v6927_v25  ;;  %v6929_v15 = vld [vmem:[#allocation14 + $0x84] sm:$0xf0]  ;;  %v8238_v25 = vld [vmem:[#allocation14 + $0x38] sm:$0xf0]  ;;  %v8237_v57 = vld [vmem:[#allocation14 + $0x34] sm:$0xf] }
 0x334   :  { %v2265_v4 = vsel %vm2264_vm3, %v8599_v54, %v2261_v12  ;;  %v6944_v54 = vor.u32 %v8249_v51, %v6941_v16  ;;  %v6932_v10 = vor.u32 %v8246_v3, %v6929_v15  ;;  %v6936_v12 = vor.u32 %v8248_v28, %v6935_v27  ;;  %v6903_v51 = vld [vmem:[#allocation14 + $0x48] sm:$0xf]  ;;  %v6893_v3 = vld [vmem:[#allocation14 + $0x3c] sm:$0xf0]  ;;  %v8239_v15 = vld [vmem:[#allocation14 + $0x40] sm:$0xf0] }
 0x335   :  { %v2270_v48 = vsel %vm2267_vm4, %v2269_v55, %v2265_v4  ;;  %v2280_v20 = vsel %vm9622_vm7, %v9606_v46, %v2276_v22  ;;  %2958 = vmatpush.bf16.msra.mxu3 %v6928_v2  ;;  %v8243_v46 = vld [vmem:[#allocation14 + $0x64] sm:$0xf]  ;;  %v6917_v55 = vld [vmem:[#allocation14 + $0x6c] sm:$0xf0]  ;;  %v6899_v2 = vld [vmem:[#allocation14 + $0x38] sm:$0xf]  ;;  %v6896_v28 = vor.u32 %v8237_v57, %v6893_v3 }
 0x336   :  { %v2288_v58 = vmul.f32 %v2287_v53, %v2270_v48  ;;  %2970 = vmatpush.bf16.msra.mxu0 %v6944_v54  ;;  %v2285_v61 = vsel %vm2282_vm8, %v2284_v1, %v2280_v20  ;;  %2984 = vmatpush.bf16.msra.mxu1 %v6936_v12  ;;  %v6920_v4 = vor.u32 %v8243_v46, %v6917_v55  ;;  %v6891_v20 = vld [vmem:[#allocation14 + $0x30] sm:$0xf]  ;;  %v8235_v46 = vld [vmem:[#allocation14 + $0x20] sm:$0xf0] }
 0x337   :  { %v2291_v53 = vsub.f32 1.0, %v2285_v61  ;;  %v2293_v40 = vmul.f32 %v2285_v61, %v9573_v44  ;;  %v6880_v60 = vor.u32 %v8235_v46, %v6879_v56 }
 0x338   :  { %v2289_v6 = vadd.f32 %v2288_v58, %v395_v49  ;;  %v8241_v49 = vld [vmem:[#allocation14 + $0x50] sm:$0xf0]  ;;  %v8240_v58 = vld [vmem:[#allocation14 + $0x4c] sm:$0xf] }
 0x339   :  { %2959 = vmatpush.bf16.msra.mxu3 %v6916_v47  ;;  %v6904_v16 = vor.u32 %v8241_v49, %v6903_v51  ;;  %v6908_v19 = vor.u32 %v8240_v58, %v6905_v42  ;;  %v8234_v47 = vld [vmem:[#allocation14 + $0x1c] sm:$0xf]  ;;  %v8231_v49 = vld [vmem:[#allocation14 + $0x4] sm:$0xf]  ;;  %v6869_v58 = vld [vmem:[#allocation14 + $0xc] sm:$0xf0] }
 0x33a   :  { %8602 = vtanh.f32 %v2289_v6  ;;  %2971 = vmatpush.bf16.msra.mxu0 %v6932_v10  ;;  %2985 = vmatpush.bf16.msra.mxu1 %v6924_v8  ;;  %v6912_v6 = vor.u32 %v8242_v17, %v6911_v63  ;;  %v6900_v10 = vor.u32 %v8239_v15, %v6899_v2  ;;  %v8236_v8 = vld [vmem:[#allocation14 + $0x28] sm:$0xf0]  ;;  %v8233_v42 = vld [vmem:[#allocation14 + $0x10] sm:$0xf0]  ;;  %v6872_v17 = vor.u32 %v8231_v49, %v6869_v58 }
 0x33b   :  { %v8276_v49 = vld [vmem:[#allocation8 + $0xac] sm:$0xf] }
 0x33d   :  { %2960 = vmatpush.bf16.msra.mxu3 %v6904_v16 }
 0x33e   :  { %2972 = vmatpush.bf16.msra.mxu0 %v6920_v4  ;;  %2986 = vmatpush.bf16.msra.mxu1 %v6912_v6  ;;  %v6884_v4 = vor.u32 %v8234_v47, %v6881_v35 }
 0x340   :  { %v8603_v48 = vpop.eup %8602  ;;  %v2465_v45 = vpop.f32.mrf.mxu1 }
 0x341   :  { %v2292_v22 = vmul.f32 %v8603_v48, %v2291_v53  ;;  %v2495_v52 = vadd.f32 %v2465_v45, %v9386_v32  ;;  %v6892_v32 = vor.u32 %v8238_v25, %v6891_v20  ;;  %v6887_v53 = vld [vmem:[#allocation14 + $0x20] sm:$0xf]  ;;  %v8232_v45 = vld [vmem:[#allocation14 + $0x8] sm:$0xf0] }
 0x342   :  { %2973 = vmatpush.bf16.msra.mxu0 %v6908_v19  ;;  %2987 = vmatpush.bf16.msra.mxu1 %v6900_v10 }
 0x343   :  { %v9631_v54 = vadd.f32 %v2293_v40, %v2292_v22  ;;  %v6765_v50 = vmul.f32 -1.442695, %v2495_v52  ;;  %2961 = vmatpush.bf16.msra.mxu3 %v6892_v32  ;;  %v6888_v22 = vor.u32 %v8236_v8, %v6887_v53  ;;  %v6875_v52 = vld [vmem:[#allocation14 + $0x8] sm:$0xf] }
 0x344   :  { %v6876_v19 = vor.u32 %v8233_v42, %v6875_v52  ;;  %v7051_v52 = vld [vmem:[#allocation8 + $0xb4] sm:$0xf0]  ;;  %v8278_v42 = vld [vmem:[#allocation8 + $0xb8] sm:$0xf0] }
 0x345   :  { %v2547_v1 = vpack.c.bf16 %v9631_v54, %v9631_v54  ;;  %8604 = vpow2.f32 %v6765_v50 }
 0x346   :  { %v2478_v27 = vpop.f32.mrf.mxu2  ;;  %2974 = vmatpush.bf16.msra.mxu0 %v6896_v28  ;;  %2988 = vmatpush.bf16.msra.mxu1 %v6888_v22 }
 0x347   :  { %2716 = vmatmul.bf16.vlgmr.msrb.gmra.mxu0 %v2547_v1  ;;  %2729 = vmatmul.bf16.vlgmr.msrb.gmra.mxu1 %v2547_v1  ;;  %v2496_v12 = vadd.f32 %v2478_v27, %v9453_v41  ;;  %v2491_v61 = vpop.f32.mrf.mxu3  ;;  %v6867_v41 = vld [vmem:[#allocation14] sm:$0xf] }
 0x348   :  { %2742 = vmatmul.bf16.vlgmr.msra.gmra.mxu2 %v2547_v1  ;;  %v2467_v62 = vpop.f32.mrf.mxu1  ;;  %2962 = vmatpush.bf16.msra.mxu3 %v6880_v60  ;;  %v6868_v51 = vor.u32 %v8232_v45, %v6867_v41 }
 0x349   :  { %v6766_v55 = vmul.f32 -1.442695, %v2496_v12  ;;  %v2535_v62 = vadd.f32 %v9583_v39, %v2491_v61 }
 0x34a   :  { %2975 = vmatpush.bf16.msra.mxu0 %v6884_v4  ;;  %2989 = vmatpush.bf16.msra.mxu1 %v6876_v19  ;;  %v7037_v19 = vld [vmem:[#allocation8 + $0x90] sm:$0xf] }
 0x34b   :  { %v8605_v48 = vpop.eup %8604  ;;  %8606 = vpow2.f32 %v6766_v55 }
 0x34c   :  { %v2503_v40 = vadd.f32 1.0, %v8605_v48  ;;  %2963 = vmatpush.bf16.msra.mxu3 %v6868_v51  ;;  %v8277_v51 = vld [vmem:[#allocation8 + $0xb0] sm:$0xf0] }
 0x34e   :  { %8608 = vrcp.f32 %v2503_v40  ;;  %v2480_v16 = vpop.f32.mrf.mxu2  ;;  %2976 = vmatpush.bf16.msra.mxu0 %v6872_v17  ;;  %v2516_v57 = vand.u32 2147483648, %v2503_v40  ;;  %v2514_v3 = vand.u32 2147483647, %v2503_v40  ;;  %vm2510_vm10 = vweird.f32 %v2503_v40 }
 0x34f   :  { %v2493_v63 = vpop.f32.mrf.mxu3  ;;  %v7057_v16 = vld [vmem:[#allocation8 + $0xb0] sm:$0xf] }
 0x350   :  { %v2517_v28 = vor.u32 1.1754944e-38, %v2516_v57  ;;  %vm2515_vm12 = vcmp.eq.f32.partialorder %v2514_v3, 8.507059e+37  ;;  %v7054_v63 = vor.u32 %v8276_v49, %v7051_v52  ;;  %v7058_v17 = vor.u32 %v8278_v42, %v7057_v16  ;;  %v8275_v57 = vld [vmem:[#allocation8 + $0xa0] sm:$0xf0]  ;;  %v7003_v49 = vld [vmem:[#allocation8 + $0x54] sm:$0xf0] }
 0x351   :  { %v8607_v6 = vpop.eup %8606  ;;  %v8266_v52 = vld [vmem:[#allocation8 + $0x58] sm:$0xf0] }
 0x352   :  { %v2504_v50 = vadd.f32 1.0, %v8607_v6  ;;  %3219 = vmatpush.bf16.msrb.mxu3 %v7054_v63  ;;  %3232 = vmatpush.bf16.msrb.mxu0 %v7058_v17  ;;  %v8274_v6 = vld [vmem:[#allocation8 + $0x98] sm:$0xf0] }
 0x354   :  { %v8609_v1 = vpop.eup %8608  ;;  %8610 = vrcp.f32 %v2504_v50  ;;  %v2531_v47 = vand.u32 2147483648, %v2504_v50  ;;  %v2529_v60 = vand.u32 2147483647, %v2504_v50  ;;  %vm2525_vm14 = vweird.f32 %v2504_v50 }
 0x355   :  { %v2506_v20 = vmul.f32 %v8609_v1, %v2503_v40  ;;  %vm2511_vm9 = vweird.f32 %v8609_v1 }
 0x356   :  { %vm2512_vm11 = vmor %vm2510_vm10, %vm2511_vm9  ;;  %v2532_v4 = vor.u32 1.1754944e-38, %v2531_v47  ;;  %vm2530_vm0 = vcmp.eq.f32.partialorder %v2529_v60, 8.507059e+37  ;;  %v7013_v47 = vld [vmem:[#allocation8 + $0x60] sm:$0xf]  ;;  %v8267_v60 = vld [vmem:[#allocation8 + $0x64] sm:$0xf] }
 0x357   :  { %v2507_v25 = vsub.f32 1.0, %v2506_v20  ;;  %v7039_v20 = vld [vmem:[#allocation8 + $0x9c] sm:$0xf0] }
 0x359   :  { %v2508_v32 = vmul.f32 %v8609_v1, %v2507_v25  ;;  %v7045_v25 = vld [vmem:[#allocation8 + $0x98] sm:$0xf] }
 0x35a   :  { %v8611_v2 = vpop.eup %8610  ;;  %v7046_v3 = vor.u32 %v8275_v57, %v7045_v25  ;;  %v6991_v25 = vld [vmem:[#allocation8 + $0x3c] sm:$0xf0] }
 0x35b   :  { %v2521_v15 = vmul.f32 %v8611_v2, %v2504_v50  ;;  %v2509_v27 = vadd.f32 %v8609_v1, %v2508_v32  ;;  %vm2526_vm13 = vweird.f32 %v8611_v2  ;;  %v8273_v50 = vld [vmem:[#allocation8 + $0x94] sm:$0xf] }
 0x35c   :  { %vm2527_vm15 = vmor %vm2525_vm14, %vm2526_vm13  ;;  %v7042_v32 = vor.u32 %v8273_v50, %v7039_v20  ;;  %3233 = vmatpush.bf16.msrb.mxu0 %v7046_v3  ;;  %v6989_v50 = vld [vmem:[#allocation8 + $0x30] sm:$0xf]  ;;  %v8261_v20 = vld [vmem:[#allocation8 + $0x34] sm:$0xf] }
 0x35d   :  { %v2522_v10 = vsub.f32 1.0, %v2521_v15  ;;  %v2513_v12 = vsel %vm2512_vm11, %v8609_v1, %v2509_v27  ;;  %v7038_v1 = vor.u32 %v8274_v6, %v7037_v19  ;;  %v8271_v15 = vld [vmem:[#allocation8 + $0x80] sm:$0xf0]  ;;  %v8270_v27 = vld [vmem:[#allocation8 + $0x7c] sm:$0xf] }
 0x35e   :  { %v2518_v56 = vsel %vm2515_vm12, %v2517_v28, %v2513_v12  ;;  %3220 = vmatpush.bf16.msrb.mxu3 %v7042_v32  ;;  %v7033_v12 = vld [vmem:[#allocation8 + $0x80] sm:$0xf]  ;;  %v6994_v32 = vor.u32 %v8261_v20, %v6991_v25  ;;  %v6997_v3 = vld [vmem:[#allocation8 + $0x38] sm:$0xf] }
 0x35f   :  { %v2523_v46 = vmul.f32 %v8611_v2, %v2522_v10  ;;  %v2536_v55 = vmul.f32 %v2535_v62, %v2518_v56  ;;  %v7027_v10 = vld [vmem:[#allocation8 + $0x84] sm:$0xf0]  ;;  %v8272_v62 = vld [vmem:[#allocation8 + $0x88] sm:$0xf0] }
 0x360   :  { %v7030_v56 = vor.u32 %v8270_v27, %v7027_v10  ;;  %v8259_v27 = vld [vmem:[#allocation8 + $0x20] sm:$0xf0] }
 0x361   :  { %v2524_v35 = vadd.f32 %v8611_v2, %v2523_v46  ;;  %v2537_v53 = vadd.f32 %v2536_v55, %v9456_v30  ;;  %v7049_v30 = vld [vmem:[#allocation8 + $0xa8] sm:$0xf]  ;;  %v7034_v46 = vor.u32 %v8272_v62, %v7033_v12  ;;  %v8268_v55 = vld [vmem:[#allocation8 + $0x68] sm:$0xf0] }
 0x362   :  { %v7050_v58 = vor.u32 %v8277_v51, %v7049_v30  ;;  %3221 = vmatpush.bf16.msrb.mxu3 %v7030_v56  ;;  %v6979_v56 = vld [vmem:[#allocation8 + $0x24] sm:$0xf0] }
 0x363   :  { %v2528_v8 = vsel %vm2527_vm15, %v8611_v2, %v2524_v35  ;;  %8612 = vtanh.f32 %v2537_v53  ;;  %v7025_v2 = vld [vmem:[#allocation8 + $0x78] sm:$0xf]  ;;  %3234 = vmatpush.bf16.msrb.mxu0 %v7034_v46  ;;  %v7014_v35 = vor.u32 %v8268_v55, %v7013_v47  ;;  %v7015_v53 = vld [vmem:[#allocation8 + $0x6c] sm:$0xf0]  ;;  %v6985_v46 = vld [vmem:[#allocation8 + $0x20] sm:$0xf] }
 0x364   :  { %v2533_v48 = vsel %vm2530_vm0, %v2532_v4, %v2528_v8  ;;  %3206 = vmatpush.bf16.msrb.mxu2 %v7050_v58  ;;  %v7026_v28 = vor.u32 %v8271_v15, %v7025_v2  ;;  %v7021_v4 = vld [vmem:[#allocation8 + $0x68] sm:$0xf]  ;;  %v8269_v8 = vld [vmem:[#allocation8 + $0x70] sm:$0xf0]  ;;  %v7009_v58 = vld [vmem:[#allocation8 + $0x50] sm:$0xf] }
 0x365   :  { %v2539_v22 = vsub.f32 1.0, %v2533_v48  ;;  %v2541_v39 = vmul.f32 %v2533_v48, %v9593_v24  ;;  %v7018_v48 = vor.u32 %v8267_v60, %v7015_v53  ;;  %v7010_v17 = vor.u32 %v8266_v52, %v7009_v58  ;;  %v8263_v2 = vld [vmem:[#allocation8 + $0x40] sm:$0xf0]  ;;  %v8260_v47 = vld [vmem:[#allocation8 + $0x28] sm:$0xf0] }
 0x366   :  { %v6986_v60 = vor.u32 %v8260_v47, %v6985_v46  ;;  %v6965_v53 = vld [vmem:[#allocation8] sm:$0xf] }
 0x367   :  { %3222 = vmatpush.bf16.msrb.mxu3 %v7018_v48 }
 0x368   :  { %3207 = vmatpush.bf16.msrb.mxu2 %v7038_v1  ;;  %v8262_v1 = vld [vmem:[#allocation8 + $0x38] sm:$0xf0] }
 0x369   :  { %v8613_v40 = vpop.eup %8612  ;;  %v6990_v57 = vor.u32 %v8262_v1, %v6989_v50 }
 0x36a   :  { %v2540_v41 = vmul.f32 %v8613_v40, %v2539_v22  ;;  %v7022_v22 = vor.u32 %v8269_v8, %v7021_v4  ;;  %v7001_v40 = vld [vmem:[#allocation8 + $0x48] sm:$0xf]  ;;  %v8256_v4 = vld [vmem:[#allocation8 + $0x8] sm:$0xf0]  ;;  %v8255_v8 = vld [vmem:[#allocation8 + $0x4] sm:$0xf] }
 0x36c   :  { %v9639_v61 = vadd.f32 %v2541_v39, %v2540_v41  ;;  %3208 = vmatpush.bf16.msrb.mxu2 %v7026_v28  ;;  %3235 = vmatpush.bf16.msrb.mxu0 %v7022_v22  ;;  %v8265_v41 = vld [vmem:[#allocation8 + $0x50] sm:$0xf0]  ;;  %v8264_v39 = vld [vmem:[#allocation8 + $0x4c] sm:$0xf]  ;;  %v8258_v28 = vld [vmem:[#allocation8 + $0x1c] sm:$0xf] }
 0x36d   :  { %v7002_v51 = vor.u32 %v8265_v41, %v7001_v40  ;;  %v7006_v63 = vor.u32 %v8264_v39, %v7003_v49  ;;  %v6982_v55 = vor.u32 %v8258_v28, %v6979_v56  ;;  %v6966_v40 = vor.u32 %v8256_v4, %v6965_v53  ;;  %v6967_v41 = vld [vmem:[#allocation8 + $0xc] sm:$0xf0]  ;;  %v8301_v56 = vld [vmem:[#allocation14 + $0xb0] sm:$0xf0] }
 0x36e   :  { %v2795_v45 = vpack.c.bf16 %v9639_v61, %v9639_v61 }
 0x36f   :  { %3223 = vmatpush.bf16.msrb.mxu3 %v7006_v63 }
 0x370   :  { %2964 = vmatmul.bf16.vlgmr.msra.gmra.mxu3 %v2795_v45  ;;  %2977 = vmatmul.bf16.vlgmr.msra.gmra.mxu0 %v2795_v45 }
 0x371   :  { %2990 = vmatmul.bf16.vlgmr.msra.gmra.mxu1 %v2795_v45  ;;  %3209 = vmatpush.bf16.msrb.mxu2 %v7014_v35 }
 0x372   :  { %3236 = vmatpush.bf16.msrb.mxu0 %v7010_v17 }
 0x373   :  { %3224 = vmatpush.bf16.msrb.mxu3 %v6994_v32  ;;  %v9645_v32 = vld [vmem:[#allocation11] ss:$0 sm:$0xff] }
 0x375   :  { %3210 = vmatpush.bf16.msrb.mxu2 %v7002_v51  ;;  %v8257_v51 = vld [vmem:[#allocation8 + $0x10] sm:$0xf0] }
 0x377   :  { %3225 = vmatpush.bf16.msrb.mxu3 %v6982_v55  ;;  %v8300_v55 = vld [vmem:[#allocation14 + $0xac] sm:$0xf] }
 0x379   :  { %3211 = vmatpush.bf16.msrb.mxu2 %v6990_v57 }
 0x3c4   :  { %v2717_v45 = vpop.f32.mrf.mxu0  ;;  %v2730_v30 = vpop.f32.mrf.mxu1 }
 0x3c5   :  { %v2747_v16 = vadd.f32 %v2717_v45, %v9375_v23  ;;  %v2748_v42 = vadd.f32 %v2730_v30, %v9378_v26  ;;  %v6998_v23 = vor.u32 %v8263_v2, %v6997_v3  ;;  %v6977_v26 = vld [vmem:[#allocation8 + $0x18] sm:$0xf]  ;;  %v6970_v45 = vor.u32 %v8255_v8, %v6967_v41  ;;  %v6973_v30 = vld [vmem:[#allocation8 + $0x8] sm:$0xf]  ;;  %v8302_v8 = vld [vmem:[#allocation14 + $0xb8] sm:$0xf0] }
 0x3c6   :  { %v6978_v62 = vor.u32 %v8259_v27, %v6977_v26  ;;  %v6974_v58 = vor.u32 %v8257_v51, %v6973_v30  ;;  %v8298_v41 = vld [vmem:[#allocation14 + $0x98] sm:$0xf0]  ;;  %v7137_v30 = vld [vmem:[#allocation14 + $0x9c] sm:$0xf0]  ;;  %v8299_v51 = vld [vmem:[#allocation14 + $0xa0] sm:$0xf0] }
 0x3c7   :  { %v6863_v19 = vmul.f32 -1.442695, %v2747_v16  ;;  %v6864_v6 = vmul.f32 -1.442695, %v2748_v42  ;;  %3237 = vmatpush.bf16.msrb.mxu0 %v6998_v23  ;;  %3226 = vmatpush.bf16.msrb.mxu3 %v6970_v45 }
 0x3c8   :  { %3212 = vmatpush.bf16.msrb.mxu2 %v6978_v62  ;;  %v7147_v62 = vld [vmem:[#allocation14 + $0xa8] sm:$0xf] }
 0x3c9   :  { %8614 = vpow2.f32 %v6863_v19  ;;  %v7148_v47 = vor.u32 %v8301_v56, %v7147_v62 }
 0x3ca   :  { %8616 = vpow2.f32 %v6864_v6 }
 0x3cb   :  { %v2743_v15 = vpop.f32.mrf.mxu2  ;;  %3238 = vmatpush.bf16.msrb.mxu0 %v6986_v60  ;;  %v7149_v60 = vld [vmem:[#allocation14 + $0xb4] sm:$0xf0]  ;;  %3454 = vmatpush.bf16.msrb.mxu1 %v7148_v47 }
 0x3cc   :  { %v2719_v10 = vpop.f32.mrf.mxu0  ;;  %v2732_v12 = vpop.f32.mrf.mxu1  ;;  %3213 = vmatpush.bf16.msrb.mxu2 %v6966_v40  ;;  %v2787_v3 = vadd.f32 %v9645_v32, %v2743_v15  ;;  %v7152_v4 = vor.u32 %v8300_v55, %v7149_v60  ;;  %v7135_v40 = vld [vmem:[#allocation14 + $0x90] sm:$0xf]  ;;  %v8293_v60 = vld [vmem:[#allocation14 + $0x70] sm:$0xf0] }
 0x3cd   :  { %v7136_v45 = vor.u32 %v8298_v41, %v7135_v40  ;;  %v8291_v12 = vld [vmem:[#allocation14 + $0x64] sm:$0xf] }
 0x3cf   :  { %v8615_v35 = vpop.eup %8614  ;;  %3239 = vmatpush.bf16.msrb.mxu0 %v6974_v58  ;;  %3455 = vmatpush.bf16.msrb.mxu1 %v7136_v45  ;;  %v7107_v45 = vld [vmem:[#allocation14 + $0x50] sm:$0xf] }
 0x3d0   :  { %v8617_v48 = vpop.eup %8616  ;;  %v2755_v22 = vadd.f32 1.0, %v8615_v35  ;;  %v7155_v35 = vld [vmem:[#allocation14 + $0xb0] sm:$0xf]  ;;  %3467 = vmatpush.bf16.msra.mxu2 %v7152_v4 }
 0x3d1   :  { %v2756_v39 = vadd.f32 1.0, %v8617_v48  ;;  %v7156_v48 = vor.u32 %v8302_v8, %v7155_v35  ;;  %v472_v35 = vadd.f32 %v9372_v21, %v9333_v0  ;;  %v7099_v8 = vld [vmem:[#allocation14 + $0x48] sm:$0xf] }
 0x3d2   :  { %8618 = vrcp.f32 %v2755_v22  ;;  %v2768_v6 = vand.u32 2147483648, %v2755_v22  ;;  %v2766_v1 = vand.u32 2147483647, %v2755_v22  ;;  %vm2762_vm2 = vweird.f32 %v2755_v22 }
 0x3d3   :  { %8620 = vrcp.f32 %v2756_v39  ;;  %v2745_v49 = vpop.f32.mrf.mxu2  ;;  %v2783_v26 = vand.u32 2147483648, %v2756_v39  ;;  %vm2777_vm6 = vweird.f32 %v2756_v39  ;;  %v2781_v28 = vand.u32 2147483647, %v2756_v39  ;;  %3480 = vmatpush.bf16.msra.mxu3 %v7156_v48  ;;  %v8289_v48 = vld [vmem:[#allocation14 + $0x50] sm:$0xf0] }
 0x3d4   :  { %v2769_v57 = vor.u32 1.1754944e-38, %v2768_v6  ;;  %vm2767_vm5 = vcmp.eq.f32.partialorder %v2766_v1, 8.507059e+37  ;;  %v7131_v1 = vld [vmem:[#allocation14 + $0x80] sm:$0xf]  ;;  %v7100_v41 = vor.u32 %v8289_v48, %v7099_v8 }
 0x3d5   :  { %v2784_v53 = vor.u32 1.1754944e-38, %v2783_v26  ;;  %vm2782_vm8 = vcmp.eq.f32.partialorder %v2781_v28, 8.507059e+37 }
 0x3d8   :  { %v8619_v52 = vpop.eup %8618 }
 0x3d9   :  { %v8621_v16 = vpop.eup %8620  ;;  %v2758_v42 = vmul.f32 %v8619_v52, %v2755_v22  ;;  %vm2763_vm1 = vweird.f32 %v8619_v52 }
 0x3da   :  { %v2773_v63 = vmul.f32 %v8621_v16, %v2756_v39  ;;  %vm2764_vm3 = vmor %vm2762_vm2, %vm2763_vm1  ;;  %vm2778_vm4 = vweird.f32 %v8621_v16  ;;  %v8297_v39 = vld [vmem:[#allocation14 + $0x94] sm:$0xf] }
 0x3db   :  { %v2759_v17 = vsub.f32 1.0, %v2758_v42  ;;  %vm9648_vm7 = vmor %vm2777_vm6, %vm2778_vm4  ;;  %v7140_v49 = vor.u32 %v8297_v39, %v7137_v30  ;;  %v8295_v42 = vld [vmem:[#allocation14 + $0x80] sm:$0xf0]  ;;  %v7101_v39 = vld [vmem:[#allocation14 + $0x54] sm:$0xf0] }
 0x3dc   :  { %v2774_v19 = vsub.f32 1.0, %v2773_v63  ;;  %v8294_v63 = vld [vmem:[#allocation14 + $0x7c] sm:$0xf] }
 0x3dd   :  { %v2760_v50 = vmul.f32 %v8619_v52, %v2759_v17  ;;  %3468 = vmatpush.bf16.msra.mxu2 %v7140_v49  ;;  %v8290_v30 = vld [vmem:[#allocation14 + $0x58] sm:$0xf0] }
 0x3de   :  { %v2775_v20 = vmul.f32 %v8621_v16, %v2774_v19  ;;  %v501_v19 = vadd.f32 %v9443_v36, %v9411_v11  ;;  %v8292_v36 = vld [vmem:[#allocation14 + $0x68] sm:$0xf0]  ;;  %v7108_v21 = vor.u32 %v8290_v30, %v7107_v45 }
 0x3df   :  { %v2761_v25 = vadd.f32 %v8619_v52, %v2760_v50  ;;  %v7125_v50 = vld [vmem:[#allocation14 + $0x84] sm:$0xf0] }
 0x3e0   :  { %v2776_v2 = vadd.f32 %v8621_v16, %v2775_v20  ;;  %v8296_v20 = vld [vmem:[#allocation14 + $0x88] sm:$0xf0] }
 0x3e1   :  { %v2765_v23 = vsel %vm2764_vm3, %v8619_v52, %v2761_v25 }
 0x3e2   :  { %v2770_v27 = vsel %vm2767_vm5, %v2769_v57, %v2765_v23  ;;  %v2780_v46 = vsel %vm9648_vm7, %v8621_v16, %v2776_v2  ;;  %v7123_v16 = vld [vmem:[#allocation14 + $0x78] sm:$0xf]  ;;  %v7128_v2 = vor.u32 %v8294_v63, %v7125_v50  ;;  %v7132_v23 = vor.u32 %v8296_v20, %v7131_v1  ;;  %v8285_v63 = vld [vmem:[#allocation14 + $0x34] sm:$0xf]  ;;  %v8287_v1 = vld [vmem:[#allocation14 + $0x40] sm:$0xf0] }
 0x3e3   :  { %v2788_v10 = vmul.f32 %v2787_v3, %v2770_v27  ;;  %v2785_v22 = vsel %vm2782_vm8, %v2784_v53, %v2780_v46  ;;  %v7124_v6 = vor.u32 %v8295_v42, %v7123_v16  ;;  %v7113_v46 = vld [vmem:[#allocation14 + $0x6c] sm:$0xf0]  ;;  %v8286_v16 = vld [vmem:[#allocation14 + $0x38] sm:$0xf0]  ;;  %v7075_v20 = vld [vmem:[#allocation14 + $0x18] sm:$0xf] }
 0x3e4   :  { %v2791_v52 = vsub.f32 1.0, %v2785_v22  ;;  %v2793_v57 = vmul.f32 %v2785_v22, %v9631_v54  ;;  %3469 = vmatpush.bf16.msra.mxu2 %v7128_v2  ;;  %v7116_v55 = vor.u32 %v8291_v12, %v7113_v46  ;;  %v8288_v22 = vld [vmem:[#allocation14 + $0x4c] sm:$0xf]  ;;  %v8282_v2 = vld [vmem:[#allocation14 + $0x1c] sm:$0xf] }
 0x3e5   :  { %v2789_v15 = vadd.f32 %v2788_v10, %v9381_v29  ;;  %v7143_v29 = vld [vmem:[#allocation14 + $0x98] sm:$0xf]  ;;  %3456 = vmatpush.bf16.msrb.mxu1 %v7124_v6  ;;  %v7111_v10 = vld [vmem:[#allocation14 + $0x60] sm:$0xf] }
 0x3e6   :  { %v7144_v58 = vor.u32 %v8299_v51, %v7143_v29  ;;  %v7112_v56 = vor.u32 %v8292_v36, %v7111_v10  ;;  %v7104_v51 = vor.u32 %v8288_v22, %v7101_v39  ;;  %v7083_v10 = vld [vmem:[#allocation14 + $0x20] sm:$0xf]  ;;  %v8284_v36 = vld [vmem:[#allocation14 + $0x28] sm:$0xf0] }
 0x3e7   :  { %8622 = vtanh.f32 %v2789_v15  ;;  %v7119_v15 = vld [vmem:[#allocation14 + $0x68] sm:$0xf] }
 0x3e8   :  { %3481 = vmatpush.bf16.msra.mxu3 %v7144_v58  ;;  %v7120_v53 = vor.u32 %v8293_v60, %v7119_v15  ;;  %3470 = vmatpush.bf16.msra.mxu2 %v7116_v55  ;;  %v7084_v15 = vor.u32 %v8284_v36, %v7083_v10  ;;  %v7065_v55 = vld [vmem:[#allocation14 + $0xc] sm:$0xf0] }
 0x3e9   :  { %3457 = vmatpush.bf16.msrb.mxu1 %v7112_v56  ;;  %v8280_v56 = vld [vmem:[#allocation14 + $0x8] sm:$0xf0] }
 0x3ec   :  { %3482 = vmatpush.bf16.msra.mxu3 %v7132_v23  ;;  %3471 = vmatpush.bf16.msra.mxu2 %v7104_v51  ;;  %v7077_v23 = vld [vmem:[#allocation14 + $0x24] sm:$0xf0] }
 0x3ed   :  { %v8623_v17 = vpop.eup %8622  ;;  %v2978_v3 = vpop.f32.mrf.mxu0  ;;  %3458 = vmatpush.bf16.msrb.mxu1 %v7100_v41  ;;  %v7080_v46 = vor.u32 %v8282_v2, %v7077_v23 }
 0x3ee   :  { %v2792_v25 = vmul.f32 %v8623_v17, %v2791_v52  ;;  %v2996_v26 = vadd.f32 %v2978_v3, %v501_v19  ;;  %v9658_v27 = vpop.f32.mrf.mxu1  ;;  %v7087_v52 = vld [vmem:[#allocation14 + $0x30] sm:$0xf]  ;;  %v7089_v17 = vld [vmem:[#allocation14 + $0x3c] sm:$0xf0]  ;;  %v7095_v19 = vld [vmem:[#allocation14 + $0x38] sm:$0xf] }
 0x3ef   :  { %v7088_v42 = vor.u32 %v8286_v16, %v7087_v52  ;;  %v7092_v50 = vor.u32 %v8285_v63, %v7089_v17  ;;  %v7096_v3 = vor.u32 %v8287_v1, %v7095_v19 }
 0x3f0   :  { %v9660_v28 = vadd.f32 %v2793_v57, %v2792_v25  ;;  %v6962_v62 = vmul.f32 -1.442695, %v2996_v26  ;;  %3483 = vmatpush.bf16.msra.mxu3 %v7120_v53  ;;  %v8283_v25 = vld [vmem:[#allocation14 + $0x20] sm:$0xf0]  ;;  %v7071_v53 = vld [vmem:[#allocation14 + $0x8] sm:$0xf] }
 0x3f1   :  { %3459 = vmatpush.bf16.msrb.mxu1 %v7088_v42  ;;  %v7076_v26 = vor.u32 %v8283_v25, %v7075_v20  ;;  %3472 = vmatpush.bf16.msra.mxu2 %v7092_v50  ;;  %v9670_v42 = vld [vmem:[#allocation15] ss:$0 sm:$0xff]  ;;  %v530_v50 = vadd.f32 %v9445_v38, %v9414_v14 }
 0x3f2   :  { %v3045_v47 = vpack.c.bf16 %v9660_v28, %v9660_v28  ;;  %8624 = vpow2.f32 %v6962_v62  ;;  %v7063_v62 = vld [vmem:[#allocation14] sm:$0xf]  ;;  %v3035_v63 = vadd.f32 %v9670_v42, %v9658_v27 }
 0x3f3   :  { %v2965_v4 = vpop.f32.mrf.mxu3 }
 0x3f4   :  { %3214 = vmatmul.bf16.vlgmr.msrb.gmra.mxu2 %v3045_v47  ;;  %3227 = vmatmul.bf16.vlgmr.msrb.gmra.mxu3 %v3045_v47  ;;  %v2995_v40 = vadd.f32 %v2965_v4, %v472_v35  ;;  %v7064_v35 = vor.u32 %v8280_v56, %v7063_v62  ;;  %v8281_v4 = vld [vmem:[#allocation14 + $0x10] sm:$0xf0]  ;;  %v8325_v56 = vld [vmem:[#allocation8 + $0xb0] sm:$0xf0] }
 0x3f5   :  { %3240 = vmatmul.bf16.vlgmr.msrb.gmra.mxu0 %v3045_v47  ;;  %v2980_v29 = vpop.f32.mrf.mxu0  ;;  %3484 = vmatpush.bf16.msra.mxu3 %v7108_v21  ;;  %v8279_v47 = vld [vmem:[#allocation14 + $0x4] sm:$0xf]  ;;  %v7072_v22 = vor.u32 %v8281_v4, %v7071_v53  ;;  %v7233_v4 = vld [vmem:[#allocation8 + $0x90] sm:$0xf] }
 0x3f6   :  { %v6961_v49 = vmul.f32 -1.442695, %v2995_v40  ;;  %v2993_v58 = vpop.f32.mrf.mxu1  ;;  %3460 = vmatpush.bf16.msrb.mxu1 %v7076_v26  ;;  %3473 = vmatpush.bf16.msra.mxu2 %v7080_v46  ;;  %v7068_v48 = vor.u32 %v8279_v47, %v7065_v55  ;;  %v8324_v46 = vld [vmem:[#allocation8 + $0xac] sm:$0xf]  ;;  %v7247_v47 = vld [vmem:[#allocation8 + $0xb4] sm:$0xf0] }
 0x3f7   :  { %v7253_v55 = vld [vmem:[#allocation8 + $0xb0] sm:$0xf] }
 0x3f8   :  { %v8625_v6 = vpop.eup %8624  ;;  %8626 = vpow2.f32 %v6961_v49 }
 0x3f9   :  { %v9666_v57 = vadd.f32 1.0, %v8625_v6  ;;  %3485 = vmatpush.bf16.msra.mxu3 %v7096_v3 }
 0x3fa   :  { %3461 = vmatpush.bf16.msrb.mxu1 %v7064_v35  ;;  %3474 = vmatpush.bf16.msra.mxu2 %v7068_v48  ;;  %v7250_v35 = vor.u32 %v8324_v46, %v7247_v47  ;;  %v8321_v48 = vld [vmem:[#allocation8 + $0x94] sm:$0xf]  ;;  %v7205_v47 = vld [vmem:[#allocation8 + $0x50] sm:$0xf] }
 0x3fb   :  { %v2967_v12 = vpop.f32.mrf.mxu3  ;;  %8628 = vrcp.f32 %v9666_v57  ;;  %v3031_v1 = vand.u32 2147483648, %v9666_v57  ;;  %vm3025_vm14 = vweird.f32 %v9666_v57  ;;  %v3029_v25 = vand.u32 2147483647, %v9666_v57 }
 0x3fd   :  { %3486 = vmatpush.bf16.msra.mxu3 %v7084_v15  ;;  %v3032_v23 = vor.u32 1.1754944e-38, %v3031_v1  ;;  %vm3030_vm0 = vcmp.eq.f32.partialorder %v3029_v25, 8.507059e+37  ;;  %v8315_v1 = vld [vmem:[#allocation8 + $0x64] sm:$0xf]  ;;  %v7211_v25 = vld [vmem:[#allocation8 + $0x6c] sm:$0xf0] }
 0x3fe   :  { %v8627_v60 = vpop.eup %8626  ;;  %3717 = vmatpush.bf16.msra.mxu1 %v7250_v35 }
 0x3ff   :  { %v3003_v8 = vadd.f32 1.0, %v8627_v60  ;;  %v8326_v60 = vld [vmem:[#allocation8 + $0xb8] sm:$0xf0] }
 0x400   :  { %v7254_v53 = vor.u32 %v8326_v60, %v7253_v55  ;;  %v8314_v55 = vld [vmem:[#allocation8 + $0x58] sm:$0xf0] }
 0x401   :  { %8630 = vrcp.f32 %v3003_v8  ;;  %v8629_v40 = vpop.eup %8628  ;;  %3487 = vmatpush.bf16.msra.mxu3 %v7072_v22  ;;  %v3016_v51 = vand.u32 2147483648, %v3003_v8  ;;  %v3014_v49 = vand.u32 2147483647, %v3003_v8  ;;  %vm3010_vm10 = vweird.f32 %v3003_v8 }
 0x402   :  { %v3021_v41 = vmul.f32 %v8629_v40, %v9666_v57  ;;  %vm3026_vm13 = vweird.f32 %v8629_v40  ;;  %v7245_v57 = vld [vmem:[#allocation8 + $0xa8] sm:$0xf]  ;;  %3730 = vmatpush.bf16.msrb.mxu2 %v7254_v53 }
 0x403   :  { %v3017_v16 = vor.u32 1.1754944e-38, %v3016_v51  ;;  %vm3015_vm12 = vcmp.eq.f32.partialorder %v3014_v49, 8.507059e+37  ;;  %vm3027_vm15 = vmor %vm3025_vm14, %vm3026_vm13  ;;  %v7246_v15 = vor.u32 %v8325_v56, %v7245_v57  ;;  %v8319_v51 = vld [vmem:[#allocation8 + $0x80] sm:$0xf0] }
 0x404   :  { %v3022_v30 = vsub.f32 1.0, %v3021_v41  ;;  %v7241_v41 = vld [vmem:[#allocation8 + $0x98] sm:$0xf] }
 0x405   :  { %3704 = vmatpush.bf16.msra.mxu0 %v7246_v15  ;;  %v7199_v15 = vld [vmem:[#allocation8 + $0x54] sm:$0xf0] }
 0x406   :  { %v3023_v58 = vmul.f32 %v8629_v40, %v3022_v30 }
 0x407   :  { %v8631_v39 = vpop.eup %8630 }
 0x408   :  { %v3006_v45 = vmul.f32 %v8631_v39, %v3003_v8  ;;  %vm3011_vm9 = vweird.f32 %v8631_v39  ;;  %v3024_v19 = vadd.f32 %v8629_v40, %v3023_v58  ;;  %v8322_v8 = vld [vmem:[#allocation8 + $0x98] sm:$0xf0]  ;;  %v7223_v58 = vld [vmem:[#allocation8 + $0x84] sm:$0xf0] }
 0x409   :  { %vm3012_vm11 = vmor %vm3010_vm10, %vm3011_vm9  ;;  %v7234_v22 = vor.u32 %v8322_v8, %v7233_v4  ;;  %v7206_v4 = vor.u32 %v8314_v55, %v7205_v47 }
 0x40a   :  { %v3007_v29 = vsub.f32 1.0, %v3006_v45  ;;  %v3028_v2 = vsel %vm3027_vm15, %v8629_v40, %v3024_v19  ;;  %v7235_v40 = vld [vmem:[#allocation8 + $0x9c] sm:$0xf0] }
 0x40b   :  { %v3033_v27 = vsel %vm3030_vm0, %v3032_v23, %v3028_v2  ;;  %v7238_v45 = vor.u32 %v8321_v48, %v7235_v40  ;;  %3705 = vmatpush.bf16.msra.mxu0 %v7234_v22  ;;  %v8317_v2 = vld [vmem:[#allocation8 + $0x70] sm:$0xf0]  ;;  %v7214_v23 = vor.u32 %v8315_v1, %v7211_v25  ;;  %v8310_v22 = vld [vmem:[#allocation8 + $0x38] sm:$0xf0] }
 0x40c   :  { %v3008_v21 = vmul.f32 %v8631_v39, %v3007_v29  ;;  %v3039_v26 = vsub.f32 1.0, %v3033_v27  ;;  %v3041_v36 = vmul.f32 %v3033_v27, %v9639_v61  ;;  %v7221_v29 = vld [vmem:[#allocation8 + $0x78] sm:$0xf]  ;;  %v8309_v40 = vld [vmem:[#allocation8 + $0x34] sm:$0xf] }
 0x40d   :  { %3718 = vmatpush.bf16.msra.mxu1 %v7238_v45  ;;  %v7222_v49 = vor.u32 %v8319_v51, %v7221_v29  ;;  %v8311_v29 = vld [vmem:[#allocation8 + $0x40] sm:$0xf0] }
 0x40e   :  { %v3009_v52 = vadd.f32 %v8631_v39, %v3008_v21  ;;  %v8318_v21 = vld [vmem:[#allocation8 + $0x7c] sm:$0xf] }
 0x40f   :  { %3706 = vmatpush.bf16.msra.mxu0 %v7222_v49  ;;  %v8307_v49 = vld [vmem:[#allocation8 + $0x20] sm:$0xf0] }
 0x410   :  { %v3013_v17 = vsel %vm3012_vm11, %v8631_v39, %v3009_v52  ;;  %v8323_v39 = vld [vmem:[#allocation8 + $0xa0] sm:$0xf0]  ;;  %v7229_v52 = vld [vmem:[#allocation8 + $0x80] sm:$0xf] }
 0x411   :  { %v3018_v6 = vsel %vm3015_vm12, %v3017_v16, %v3013_v17  ;;  %v7242_v30 = vor.u32 %v8323_v39, %v7241_v41  ;;  %v8320_v16 = vld [vmem:[#allocation8 + $0x88] sm:$0xf0]  ;;  %v7187_v41 = vld [vmem:[#allocation8 + $0x3c] sm:$0xf0] }
 0x412   :  { %v3036_v20 = vmul.f32 %v3035_v63, %v3018_v6  ;;  %v7226_v63 = vor.u32 %v8318_v21, %v7223_v58  ;;  %v7230_v17 = vor.u32 %v8320_v16, %v7229_v52  ;;  %v7209_v6 = vld [vmem:[#allocation8 + $0x60] sm:$0xf]  ;;  %v7190_v45 = vor.u32 %v8309_v40, %v7187_v41  ;;  %v7173_v21 = vld [vmem:[#allocation8 + $0x18] sm:$0xf]  ;;  %v8306_v58 = vld [vmem:[#allocation8 + $0x1c] sm:$0xf] }
 0x413   :  { %3731 = vmatpush.bf16.msrb.mxu2 %v7242_v30  ;;  %v7193_v30 = vld [vmem:[#allocation8 + $0x38] sm:$0xf]  ;;  %v8348_v40 = vld [vmem:[#allocation14 + $0xac] sm:$0xf] }
 0x414   :  { %v3037_v3 = vadd.f32 %v3036_v20, %v530_v50  ;;  %3719 = vmatpush.bf16.msra.mxu1 %v7226_v63  ;;  %v8316_v50 = vld [vmem:[#allocation8 + $0x68] sm:$0xf0]  ;;  %v7194_v51 = vor.u32 %v8311_v29, %v7193_v30  ;;  %v7174_v63 = vor.u32 %v8307_v49, %v7173_v21  ;;  %v7351_v30 = vld [vmem:[#allocation14 + $0xb0] sm:$0xf]  ;;  %v8350_v29 = vld [vmem:[#allocation14 + $0xb8] sm:$0xf0] }
 0x415   :  { %v7210_v20 = vor.u32 %v8316_v50, %v7209_v6  ;;  %v7181_v6 = vld [vmem:[#allocation8 + $0x20] sm:$0xf]  ;;  %v8308_v50 = vld [vmem:[#allocation8 + $0x28] sm:$0xf0]  ;;  %v7352_v49 = vor.u32 %v8350_v29, %v7351_v30 }
 0x416   :  { %8632 = vtanh.f32 %v3037_v3  ;;  %v7217_v3 = vld [vmem:[#allocation8 + $0x68] sm:$0xf] }
 0x417   :  { %3732 = vmatpush.bf16.msrb.mxu2 %v7230_v17  ;;  %v7218_v27 = vor.u32 %v8317_v2, %v7217_v3  ;;  %3707 = vmatpush.bf16.msra.mxu0 %v7210_v20  ;;  %v7175_v17 = vld [vmem:[#allocation8 + $0x24] sm:$0xf0]  ;;  %v7182_v20 = vor.u32 %v8308_v50, %v7181_v6  ;;  %v7161_v3 = vld [vmem:[#allocation8] sm:$0xf]  ;;  %v8304_v2 = vld [vmem:[#allocation8 + $0x8] sm:$0xf0] }
 0x418   :  { %3720 = vmatpush.bf16.msra.mxu1 %v7214_v23  ;;  %v7178_v1 = vor.u32 %v8306_v58, %v7175_v17  ;;  %v8303_v23 = vld [vmem:[#allocation8 + $0x4] sm:$0xf]  ;;  %v8346_v50 = vld [vmem:[#allocation14 + $0x98] sm:$0xf0] }
 0x419   :  { %v7331_v6 = vld [vmem:[#allocation14 + $0x90] sm:$0xf] }
 0x41b   :  { %3733 = vmatpush.bf16.msrb.mxu2 %v7218_v27 }
 0x41c   :  { %v8633_v10 = vpop.eup %8632 }
 0x41d   :  { %v3040_v12 = vmul.f32 %v8633_v10, %v3039_v26  ;;  %v342_v26 = vadd.f32 %v9383_v31, %v9344_v5  ;;  %v371_v10 = vadd.f32 %v9388_v33, %v9348_v7  ;;  %v7185_v33 = vld [vmem:[#allocation8 + $0x30] sm:$0xf] }
 0x41e   :  { %v7186_v39 = vor.u32 %v8310_v22, %v7185_v33  ;;  %v7343_v33 = vld [vmem:[#allocation14 + $0xa8] sm:$0xf]  ;;  %v8349_v22 = vld [vmem:[#allocation14 + $0xb0] sm:$0xf0] }
 0x41f   :  { %v9680_v38 = vadd.f32 %v3041_v36, %v3040_v12  ;;  %v7197_v36 = vld [vmem:[#allocation8 + $0x48] sm:$0xf]  ;;  %v8313_v12 = vld [vmem:[#allocation8 + $0x50] sm:$0xf0]  ;;  %3734 = vmatpush.bf16.msrb.mxu2 %v7206_v4 }
 0x420   :  { %v7198_v46 = vor.u32 %v8313_v12, %v7197_v36  ;;  %v7163_v36 = vld [vmem:[#allocation8 + $0xc] sm:$0xf0] }
 0x421   :  { %v3293_v62 = vpack.c.bf16 %v9680_v38, %v9680_v38 }
 0x422   :  { %3708 = vmatpush.bf16.msra.mxu0 %v7198_v46 }
 0x423   :  { %3462 = vmatmul.bf16.vlgmr.msrb.gmra.mxu1 %v3293_v62  ;;  %3475 = vmatmul.bf16.vlgmr.msra.gmra.mxu2 %v3293_v62 }
 0x424   :  { %3488 = vmatmul.bf16.vlgmr.msra.gmra.mxu3 %v3293_v62  ;;  %v8312_v62 = vld [vmem:[#allocation8 + $0x4c] sm:$0xf]  ;;  %3735 = vmatpush.bf16.msrb.mxu2 %v7194_v51 }
 0x425   :  { %v7202_v53 = vor.u32 %v8312_v62, %v7199_v15  ;;  %v7166_v62 = vor.u32 %v8303_v23, %v7163_v36 }
 0x426   :  { %3709 = vmatpush.bf16.msra.mxu0 %v7186_v39  ;;  %v7344_v39 = vor.u32 %v8349_v22, %v7343_v33  ;;  %v7309_v33 = vld [vmem:[#allocation14 + $0x6c] sm:$0xf0]  ;;  %v7315_v22 = vld [vmem:[#allocation14 + $0x68] sm:$0xf] }
 0x427   :  { %3721 = vmatpush.bf16.msra.mxu1 %v7202_v53 }
 0x428   :  { %3736 = vmatpush.bf16.msrb.mxu2 %v7182_v20  ;;  %3952 = vmatpush.bf16.msrb.mxu3 %v7344_v39  ;;  %v400_v20 = vadd.f32 %v9390_v34, %v9358_v13 }
 0x42a   :  { %3710 = vmatpush.bf16.msra.mxu0 %v7174_v63 }
 0x42b   :  { %3722 = vmatpush.bf16.msra.mxu1 %v7190_v45  ;;  %v7345_v45 = vld [vmem:[#allocation14 + $0xb4] sm:$0xf0] }
 0x42c   :  { %v7348_v21 = vor.u32 %v8348_v40, %v7345_v45  ;;  %v8341_v40 = vld [vmem:[#allocation14 + $0x70] sm:$0xf0] }
 0x42d   :  { %v7316_v45 = vor.u32 %v8341_v40, %v7315_v22  ;;  %v7259_v40 = vld [vmem:[#allocation14] sm:$0xf] }
 0x42f   :  { %3723 = vmatpush.bf16.msra.mxu1 %v7178_v1  ;;  %v8345_v1 = vld [vmem:[#allocation14 + $0x94] sm:$0xf] }
 0x433   :  { %3724 = vmatpush.bf16.msra.mxu1 %v7166_v62 }
 0x437   :  { %3978 = vmatpush.bf16.msrb.mxu1 %v7352_v49  ;;  %v7295_v49 = vld [vmem:[#allocation14 + $0x48] sm:$0xf] }
 0x472   :  { %v9684_v19 = vpop.f32.mrf.mxu0 }
 0x473   :  { %v3285_v58 = vadd.f32 %v9645_v32, %v9684_v19  ;;  %v7332_v32 = vor.u32 %v8346_v50, %v7331_v6  ;;  %v7333_v19 = vld [vmem:[#allocation14 + $0x9c] sm:$0xf0]  ;;  %v7303_v6 = vld [vmem:[#allocation14 + $0x50] sm:$0xf]  ;;  %v8338_v50 = vld [vmem:[#allocation14 + $0x58] sm:$0xf0] }
 0x475   :  { %3953 = vmatpush.bf16.msrb.mxu3 %v7332_v32 }
 0x477   :  { %v3215_v57 = vpop.f32.mrf.mxu2  ;;  %v3228_v56 = vpop.f32.mrf.mxu3 }
 0x478   :  { %v3245_v60 = vadd.f32 %v3215_v57, %v342_v26  ;;  %v3246_v35 = vadd.f32 %v3228_v56, %v371_v10  ;;  %v7162_v10 = vor.u32 %v8304_v2, %v7161_v3  ;;  %v7169_v57 = vld [vmem:[#allocation8 + $0x8] sm:$0xf]  ;;  %v8305_v56 = vld [vmem:[#allocation8 + $0x10] sm:$0xf0]  ;;  %v7339_v3 = vld [vmem:[#allocation14 + $0x98] sm:$0xf] }
 0x479   :  { %v7170_v46 = vor.u32 %v8305_v56, %v7169_v57  ;;  %v8347_v2 = vld [vmem:[#allocation14 + $0xa0] sm:$0xf0]  ;;  %v7319_v57 = vld [vmem:[#allocation14 + $0x78] sm:$0xf] }
 0x47a   :  { %v7059_v31 = vmul.f32 -1.442695, %v3245_v60  ;;  %v7060_v8 = vmul.f32 -1.442695, %v3246_v35  ;;  %v3243_v48 = vpop.f32.mrf.mxu0  ;;  %3711 = vmatpush.bf16.msra.mxu0 %v7162_v10  ;;  %v8343_v56 = vld [vmem:[#allocation14 + $0x80] sm:$0xf0] }
 0x47b   :  { %3737 = vmatpush.bf16.msrb.mxu2 %v7170_v46  ;;  %v7320_v46 = vor.u32 %v8343_v56, %v7319_v57  ;;  %v9980_v57 = vld [vmem:[#allocation44_spill] sm:$0xff] }
 0x47c   :  { %8634 = vpow2.f32 %v7059_v31 }
 0x47d   :  { %8636 = vpow2.f32 %v7060_v8  ;;  %3954 = vmatpush.bf16.msrb.mxu3 %v7320_v46 }
 0x47e   :  { %3965 = vmatpush.bf16.msrb.mxu0 %v7348_v21 }
 0x47f   :  { %v3217_v52 = vpop.f32.mrf.mxu2  ;;  %v3230_v16 = vpop.f32.mrf.mxu3 }
 0x482   :  { %v8635_v25 = vpop.eup %8634 }
 0x483   :  { %v8637_v27 = vpop.eup %8636  ;;  %v3253_v26 = vadd.f32 1.0, %v8635_v25 }
 0x484   :  { %v9690_v12 = vadd.f32 1.0, %v8637_v27  ;;  %v7336_v27 = vor.u32 %v8345_v1, %v7333_v19 }
 0x485   :  { %8638 = vrcp.f32 %v3253_v26  ;;  %v3266_v53 = vand.u32 2147483648, %v3253_v26  ;;  %v3264_v8 = vand.u32 2147483647, %v3253_v26  ;;  %vm3260_vm2 = vweird.f32 %v3253_v26 }
 0x486   :  { %8640 = vrcp.f32 %v9690_v12  ;;  %v3281_v16 = vand.u32 2147483648, %v9690_v12  ;;  %vm3275_vm6 = vweird.f32 %v9690_v12  ;;  %v3279_v23 = vand.u32 2147483647, %v9690_v12  ;;  %3966 = vmatpush.bf16.msrb.mxu0 %v7336_v27  ;;  %v7285_v27 = vld [vmem:[#allocation14 + $0x3c] sm:$0xf0] }
 0x487   :  { %v3267_v51 = vor.u32 1.1754944e-38, %v3266_v53  ;;  %vm3265_vm4 = vcmp.eq.f32.partialorder %v3264_v8, 8.507059e+37  ;;  %v8340_v8 = vld [vmem:[#allocation14 + $0x68] sm:$0xf0] }
 0x488   :  { %v3282_v62 = vor.u32 1.1754944e-38, %v3281_v16  ;;  %vm3280_vm8 = vcmp.eq.f32.partialorder %v3279_v23, 8.507059e+37  ;;  %v8333_v23 = vld [vmem:[#allocation14 + $0x34] sm:$0xf] }
 0x48b   :  { %v8639_v15 = vpop.eup %8638 }
 0x48c   :  { %v9693_v47 = vpop.eup %8640  ;;  %v3256_v55 = vmul.f32 %v8639_v15, %v3253_v26  ;;  %vm3261_vm1 = vweird.f32 %v8639_v15  ;;  %v7340_v26 = vor.u32 %v8347_v2, %v7339_v3  ;;  %v7283_v3 = vld [vmem:[#allocation14 + $0x30] sm:$0xf]  ;;  %v8334_v2 = vld [vmem:[#allocation14 + $0x38] sm:$0xf0] }
 0x48d   :  { %v3271_v60 = vmul.f32 %v9693_v47, %v9690_v12  ;;  %vm3262_vm3 = vmor %vm3260_vm2, %vm3261_vm1  ;;  %vm3276_vm5 = vweird.f32 %v9693_v47  ;;  %v8342_v12 = vld [vmem:[#allocation14 + $0x7c] sm:$0xf] }
 0x48e   :  { %v3257_v35 = vsub.f32 1.0, %v3256_v55  ;;  %vm9709_vm7 = vmor %vm3275_vm6, %vm3276_vm5  ;;  %3979 = vmatpush.bf16.msrb.mxu1 %v7340_v26  ;;  %v7327_v55 = vld [vmem:[#allocation14 + $0x80] sm:$0xf]  ;;  %v7291_v26 = vld [vmem:[#allocation14 + $0x38] sm:$0xf] }
 0x48f   :  { %v3272_v4 = vsub.f32 1.0, %v3271_v60  ;;  %v8344_v60 = vld [vmem:[#allocation14 + $0x88] sm:$0xf0] }
 0x490   :  { %v3258_v31 = vmul.f32 %v8639_v15, %v3257_v35  ;;  %v7328_v53 = vor.u32 %v8344_v60, %v7327_v55  ;;  %v8331_v55 = vld [vmem:[#allocation14 + $0x20] sm:$0xf0]  ;;  %v8330_v60 = vld [vmem:[#allocation14 + $0x1c] sm:$0xf] }
 0x491   :  { %v3273_v48 = vmul.f32 %v9693_v47, %v3272_v4 }
 0x492   :  { %v3259_v41 = vadd.f32 %v8639_v15, %v3258_v31  ;;  %3980 = vmatpush.bf16.msrb.mxu1 %v7328_v53  ;;  %v7307_v31 = vld [vmem:[#allocation14 + $0x60] sm:$0xf] }
 0x493   :  { %v3274_v17 = vadd.f32 %v9693_v47, %v3273_v48  ;;  %v7308_v48 = vor.u32 %v8340_v8, %v7307_v31  ;;  %v7279_v31 = vld [vmem:[#allocation14 + $0x20] sm:$0xf] }
 0x494   :  { %v3263_v52 = vsel %vm3262_vm3, %v8639_v15, %v3259_v41  ;;  %v7321_v15 = vld [vmem:[#allocation14 + $0x84] sm:$0xf0] }
 0x495   :  { %v3268_v63 = vsel %vm3265_vm4, %v3267_v51, %v3263_v52  ;;  %v3278_v34 = vsel %vm9709_vm7, %v9693_v47, %v3274_v17  ;;  %v7324_v35 = vor.u32 %v8342_v12, %v7321_v15  ;;  %v8339_v47 = vld [vmem:[#allocation14 + $0x64] sm:$0xf]  ;;  %3955 = vmatpush.bf16.msrb.mxu3 %v7308_v48  ;;  %v8336_v52 = vld [vmem:[#allocation14 + $0x4c] sm:$0xf]  ;;  %v7297_v17 = vld [vmem:[#allocation14 + $0x54] sm:$0xf0] }
 0x496   :  { %v3286_v25 = vmul.f32 %v3285_v58, %v3268_v63  ;;  %v3283_v4 = vsel %vm3280_vm8, %v3282_v62, %v3278_v34  ;;  %v7312_v39 = vor.u32 %v8339_v47, %v7309_v33  ;;  %3981 = vmatpush.bf16.msrb.mxu1 %v7316_v45  ;;  %v8337_v58 = vld [vmem:[#allocation14 + $0x50] sm:$0xf0]  ;;  %v7288_v62 = vor.u32 %v8333_v23, %v7285_v27  ;;  %v7271_v15 = vld [vmem:[#allocation14 + $0x18] sm:$0xf]  ;;  %v8332_v47 = vld [vmem:[#allocation14 + $0x28] sm:$0xf0] }
 0x497   :  { %3967 = vmatpush.bf16.msrb.mxu0 %v7324_v35  ;;  %v3289_v41 = vsub.f32 1.0, %v3283_v4  ;;  %v3291_v51 = vmul.f32 %v3283_v4, %v9660_v28  ;;  %v7296_v63 = vor.u32 %v8337_v58, %v7295_v49  ;;  %v7272_v53 = vor.u32 %v8331_v55, %v7271_v15  ;;  %v7273_v4 = vld [vmem:[#allocation14 + $0x24] sm:$0xf0]  ;;  %v8327_v45 = vld [vmem:[#allocation14 + $0x4] sm:$0xf] }
 0x498   :  { %v3287_v10 = vadd.f32 %v3286_v25, %v400_v20  ;;  %v7300_v20 = vor.u32 %v8336_v52, %v7297_v17  ;;  %v7304_v25 = vor.u32 %v8338_v50, %v7303_v6  ;;  %v7276_v8 = vor.u32 %v8330_v60, %v7273_v4 }
 0x499   :  { %3956 = vmatpush.bf16.msrb.mxu3 %v7296_v63  ;;  %v7280_v33 = vor.u32 %v8332_v47, %v7279_v31  ;;  %v7449_v47 = vld [vmem:[#allocation8 + $0xb0] sm:$0xf] }
 0x49a   :  { %8642 = vtanh.f32 %v3287_v10  ;;  %3982 = vmatpush.bf16.msrb.mxu1 %v7304_v25  ;;  %v8335_v10 = vld [vmem:[#allocation14 + $0x40] sm:$0xf0] }
 0x49b   :  { %3968 = vmatpush.bf16.msrb.mxu0 %v7312_v39  ;;  %v7292_v34 = vor.u32 %v8335_v10, %v7291_v26 }
 0x49e   :  { %3983 = vmatpush.bf16.msrb.mxu1 %v7292_v34 }
 0x49f   :  { %3969 = vmatpush.bf16.msrb.mxu0 %v7300_v20 }
 0x4a0   :  { %v8643_v30 = vpop.eup %8642  ;;  %v3463_v21 = vpop.f32.mrf.mxu1 }
 0x4a1   :  { %v3290_v29 = vmul.f32 %v8643_v30, %v3289_v41  ;;  %v3493_v16 = vadd.f32 %v3463_v21, %v9366_v18  ;;  %v7284_v18 = vor.u32 %v8334_v2, %v7283_v3  ;;  %v8328_v41 = vld [vmem:[#allocation14 + $0x8] sm:$0xf0]  ;;  %v7261_v30 = vld [vmem:[#allocation14 + $0xc] sm:$0xf0]  ;;  %v8329_v21 = vld [vmem:[#allocation14 + $0x10] sm:$0xf0] }
 0x4a2   :  { %3984 = vmatpush.bf16.msrb.mxu1 %v7280_v33  ;;  %v7260_v39 = vor.u32 %v8328_v41, %v7259_v40  ;;  %v7264_v58 = vor.u32 %v8327_v45, %v7261_v30  ;;  %v8371_v40 = vld [vmem:[#allocation8 + $0xa0] sm:$0xf0]  ;;  %v8368_v45 = vld [vmem:[#allocation8 + $0x88] sm:$0xf0] }
 0x4a3   :  { %v9718_v1 = vadd.f32 %v3291_v51, %v3290_v29  ;;  %v7157_v32 = vmul.f32 -1.442695, %v3493_v16  ;;  %3957 = vmatpush.bf16.msrb.mxu3 %v7284_v18  ;;  %3970 = vmatpush.bf16.msrb.mxu0 %v7288_v62  ;;  %v7267_v29 = vld [vmem:[#allocation14 + $0x8] sm:$0xf] }
 0x4a4   :  { %v7268_v52 = vor.u32 %v8329_v21, %v7267_v29  ;;  %v7413_v29 = vld [vmem:[#allocation8 + $0x68] sm:$0xf] }
 0x4a5   :  { %v3543_v19 = vpack.c.bf16 %v9718_v1, %v9718_v1  ;;  %8644 = vpow2.f32 %v7157_v32 }
 0x4a6   :  { %v3476_v36 = vpop.f32.mrf.mxu2  ;;  %3985 = vmatpush.bf16.msrb.mxu1 %v7268_v52  ;;  %v8372_v52 = vld [vmem:[#allocation8 + $0xac] sm:$0xf] }
 0x4a7   :  { %3712 = vmatmul.bf16.vlgmr.msra.gmra.mxu0 %v3543_v19  ;;  %3725 = vmatmul.bf16.vlgmr.msra.gmra.mxu1 %v3543_v19  ;;  %v3494_v56 = vadd.f32 %v3476_v36, %v9980_v57  ;;  %v3489_v12 = vpop.f32.mrf.mxu3 }
 0x4a8   :  { %3738 = vmatmul.bf16.vlgmr.msrb.gmra.mxu2 %v3543_v19  ;;  %v3465_v46 = vpop.f32.mrf.mxu1  ;;  %3958 = vmatpush.bf16.msrb.mxu3 %v7272_v53  ;;  %v3533_v26 = vadd.f32 %v9670_v42, %v3489_v12 }
 0x4a9   :  { %v7158_v35 = vmul.f32 -1.442695, %v3494_v56  ;;  %3971 = vmatpush.bf16.msrb.mxu0 %v7276_v8  ;;  %v9981_v46 = vld [vmem:[#allocation45_spill] sm:$0xff] }
 0x4ab   :  { %v8645_v48 = vpop.eup %8644  ;;  %8646 = vpow2.f32 %v7158_v35 }
 0x4ac   :  { %v3501_v22 = vadd.f32 1.0, %v8645_v48  ;;  %3959 = vmatpush.bf16.msrb.mxu3 %v7260_v39  ;;  %v8374_v48 = vld [vmem:[#allocation8 + $0xb8] sm:$0xf0]  ;;  %v7425_v39 = vld [vmem:[#allocation8 + $0x80] sm:$0xf] }
 0x4ad   :  { %3972 = vmatpush.bf16.msrb.mxu0 %v7264_v58  ;;  %v7450_v33 = vor.u32 %v8374_v48, %v7449_v47  ;;  %v7426_v30 = vor.u32 %v8368_v45, %v7425_v39  ;;  %v8373_v58 = vld [vmem:[#allocation8 + $0xb0] sm:$0xf0] }
 0x4ae   :  { %8648 = vrcp.f32 %v3501_v22  ;;  %v3478_v51 = vpop.f32.mrf.mxu2  ;;  %v3514_v20 = vand.u32 2147483648, %v3501_v22  ;;  %v3512_v32 = vand.u32 2147483647, %v3501_v22  ;;  %vm3508_vm10 = vweird.f32 %v3501_v22  ;;  %v8353_v47 = vld [vmem:[#allocation8 + $0x10] sm:$0xf0] }
 0x4af   :  { %v3491_v49 = vpop.f32.mrf.mxu3  ;;  %v8365_v51 = vld [vmem:[#allocation8 + $0x70] sm:$0xf0] }
 0x4b0   :  { %v3515_v23 = vor.u32 1.1754944e-38, %v3514_v20  ;;  %vm3513_vm12 = vcmp.eq.f32.partialorder %v3512_v32, 8.507059e+37  ;;  %v7414_v21 = vor.u32 %v8365_v51, %v7413_v29  ;;  %v7441_v49 = vld [vmem:[#allocation8 + $0xa8] sm:$0xf]  ;;  %v8370_v32 = vld [vmem:[#allocation8 + $0x98] sm:$0xf0] }
 0x4b1   :  { %v8647_v16 = vpop.eup %8646  ;;  %4228 = vmatpush.bf16.msra.mxu0 %v7450_v33  ;;  %v7393_v33 = vld [vmem:[#allocation8 + $0x48] sm:$0xf]  ;;  %v7665_v29 = vld [vmem:[#allocation17 + $0xe0] sm:$0xf] }
 0x4b2   :  { %v3502_v63 = vadd.f32 1.0, %v8647_v16  ;;  %v7442_v16 = vor.u32 %v8373_v58, %v7441_v49  ;;  %v8429_v51 = vld [vmem:[#allocation17 + $0xec] sm:$0xf0]  ;;  %v9983_v58 = vld [vmem:[#allocation35_spill] sm:$0xff] }
 0x4b4   :  { %v8649_v17 = vpop.eup %8648  ;;  %8650 = vrcp.f32 %v3502_v63  ;;  %v3529_v62 = vand.u32 2147483648, %v3502_v63  ;;  %v3527_v57 = vand.u32 2147483647, %v3502_v63  ;;  %vm3523_vm14 = vweird.f32 %v3502_v63  ;;  %4202 = vmatpush.bf16.msra.mxu2 %v7442_v16 }
 0x4b5   :  { %v3504_v6 = vmul.f32 %v8649_v17, %v3501_v22  ;;  %vm3509_vm9 = vweird.f32 %v8649_v17  ;;  %v7437_v22 = vld [vmem:[#allocation8 + $0x98] sm:$0xf] }
 0x4b6   :  { %vm3510_vm11 = vmor %vm3508_vm10, %vm3509_vm9  ;;  %v3530_v55 = vor.u32 1.1754944e-38, %v3529_v62  ;;  %vm3528_vm0 = vcmp.eq.f32.partialorder %v3527_v57, 8.507059e+37  ;;  %v7438_v41 = vor.u32 %v8371_v40, %v7437_v22  ;;  %v8366_v62 = vld [vmem:[#allocation8 + $0x7c] sm:$0xf]  ;;  %v7419_v57 = vld [vmem:[#allocation8 + $0x84] sm:$0xf0] }
 0x4b7   :  { %v3505_v50 = vsub.f32 1.0, %v3504_v6  ;;  %v7401_v6 = vld [vmem:[#allocation8 + $0x50] sm:$0xf]  ;;  %v8361_v22 = vld [vmem:[#allocation8 + $0x50] sm:$0xf0] }
 0x4b8   :  { %4229 = vmatpush.bf16.msra.mxu0 %v7438_v41  ;;  %v8360_v40 = vld [vmem:[#allocation8 + $0x4c] sm:$0xf]  ;;  %v7394_v45 = vor.u32 %v8361_v22, %v7393_v33 }
 0x4b9   :  { %v3506_v25 = vmul.f32 %v8649_v17, %v3505_v50  ;;  %v8362_v50 = vld [vmem:[#allocation8 + $0x58] sm:$0xf0] }
 0x4ba   :  { %v8651_v19 = vpop.eup %8650  ;;  %v7402_v20 = vor.u32 %v8362_v50, %v7401_v6  ;;  %v7381_v50 = vld [vmem:[#allocation8 + $0x30] sm:$0xf] }
 0x4bb   :  { %v3519_v3 = vmul.f32 %v8651_v19, %v3502_v63  ;;  %v3507_v2 = vadd.f32 %v8649_v17, %v3506_v25  ;;  %vm3524_vm13 = vweird.f32 %v8651_v19  ;;  %v7443_v63 = vld [vmem:[#allocation8 + $0xb4] sm:$0xf0]  ;;  %v7429_v25 = vld [vmem:[#allocation8 + $0x90] sm:$0xf] }
 0x4bc   :  { %vm3525_vm15 = vmor %vm3523_vm14, %vm3524_vm13  ;;  %4230 = vmatpush.bf16.msra.mxu0 %v7426_v30  ;;  %v7395_v30 = vld [vmem:[#allocation8 + $0x54] sm:$0xf0] }
 0x4bd   :  { %v3520_v18 = vsub.f32 1.0, %v3519_v3  ;;  %v3511_v27 = vsel %vm3510_vm11, %v8649_v17, %v3507_v2  ;;  %v7446_v17 = vor.u32 %v8372_v52, %v7443_v63  ;;  %v7430_v3 = vor.u32 %v8370_v32, %v7429_v25  ;;  %v7431_v2 = vld [vmem:[#allocation8 + $0x9c] sm:$0xf0]  ;;  %v8357_v25 = vld [vmem:[#allocation8 + $0x34] sm:$0xf] }
 0x4be   :  { %v3516_v10 = vsel %vm3513_vm12, %v3515_v23, %v3511_v27  ;;  %v8359_v27 = vld [vmem:[#allocation8 + $0x40] sm:$0xf0]  ;;  %v7398_v16 = vor.u32 %v8360_v40, %v7395_v30  ;;  %v7666_v63 = vor.u32 %v8429_v51, %v7665_v29  ;;  %v7383_v32 = vld [vmem:[#allocation8 + $0x3c] sm:$0xf0]  ;;  %v7617_v40 = vld [vmem:[#allocation17 + $0x80] sm:$0xf] }
 0x4bf   :  { %v3521_v36 = vmul.f32 %v8651_v19, %v3520_v18  ;;  %v3534_v34 = vmul.f32 %v3533_v26, %v3516_v10  ;;  %4215 = vmatpush.bf16.msra.mxu3 %v7446_v17  ;;  %4203 = vmatpush.bf16.msra.mxu2 %v7430_v3  ;;  %v7389_v18 = vld [vmem:[#allocation8 + $0x38] sm:$0xf]  ;;  %v7386_v3 = vor.u32 %v8357_v25, %v7383_v32  ;;  %v8413_v29 = vld [vmem:[#allocation17 + $0x6c] sm:$0xf0] }
 0x4c0   :  { %4231 = vmatpush.bf16.msra.mxu0 %v7414_v21  ;;  %v7390_v26 = vor.u32 %v8359_v27, %v7389_v18  ;;  %v7417_v10 = vld [vmem:[#allocation8 + $0x78] sm:$0xf]  ;;  %v8393_v32 = vld [vmem:[#allocation14 + $0x94] sm:$0xf] }
 0x4c1   :  { %v3522_v56 = vadd.f32 %v8651_v19, %v3521_v36  ;;  %v3535_v15 = vadd.f32 %v3534_v34, %v9981_v46  ;;  %v8367_v36 = vld [vmem:[#allocation8 + $0x80] sm:$0xf0]  ;;  %v7377_v46 = vld [vmem:[#allocation8 + $0x20] sm:$0xf]  ;;  %v9982_v21 = vld [vmem:[#allocation34_spill] sm:$0xff] }
 0x4c2   :  { %v7418_v34 = vor.u32 %v8367_v36, %v7417_v10  ;;  %v8355_v10 = vld [vmem:[#allocation8 + $0x20] sm:$0xf0]  ;;  %v8354_v36 = vld [vmem:[#allocation8 + $0x1c] sm:$0xf] }
 0x4c3   :  { %v3526_v60 = vsel %vm3525_vm15, %v8651_v19, %v3522_v56  ;;  %8652 = vtanh.f32 %v3535_v15  ;;  %v8369_v19 = vld [vmem:[#allocation8 + $0x94] sm:$0xf]  ;;  %v7422_v56 = vor.u32 %v8366_v62, %v7419_v57  ;;  %v8356_v15 = vld [vmem:[#allocation8 + $0x28] sm:$0xf0] }
 0x4c4   :  { %v3531_v35 = vsel %vm3528_vm0, %v3530_v55, %v3526_v60  ;;  %4232 = vmatpush.bf16.msra.mxu0 %v7402_v20  ;;  %v7434_v23 = vor.u32 %v8369_v19, %v7431_v2  ;;  %4204 = vmatpush.bf16.msra.mxu2 %v7418_v34  ;;  %v7378_v55 = vor.u32 %v8356_v15, %v7377_v46  ;;  %v7405_v60 = vld [vmem:[#allocation8 + $0x60] sm:$0xf]  ;;  %v8358_v20 = vld [vmem:[#allocation8 + $0x38] sm:$0xf0]  ;;  %v7649_v2 = vld [vmem:[#allocation17 + $0xc0] sm:$0xf] }
 0x4c5   :  { %v3537_v53 = vsub.f32 1.0, %v3531_v35  ;;  %v3539_v42 = vmul.f32 %v3531_v35, %v9680_v38  ;;  %v8364_v35 = vld [vmem:[#allocation8 + $0x68] sm:$0xf0]  ;;  %v7382_v19 = vor.u32 %v8358_v20, %v7381_v50  ;;  %v7633_v46 = vld [vmem:[#allocation17 + $0xa0] sm:$0xf] }
 0x4c6   :  { %4216 = vmatpush.bf16.msra.mxu3 %v7434_v23  ;;  %v8425_v23 = vld [vmem:[#allocation17 + $0xcc] sm:$0xf0] }
 0x4c7   :  { %v7650_v18 = vor.u32 %v8425_v23, %v7649_v2  ;;  %v8421_v15 = vld [vmem:[#allocation17 + $0xac] sm:$0xf0] }
 0x4c8   :  { %4233 = vmatpush.bf16.msra.mxu0 %v7390_v26  ;;  %v7369_v26 = vld [vmem:[#allocation8 + $0x18] sm:$0xf] }
 0x4c9   :  { %v8653_v4 = vpop.eup %8652  ;;  %v7370_v57 = vor.u32 %v8355_v10, %v7369_v26  ;;  %v8405_v26 = vld [vmem:[#allocation17 + $0x2c] sm:$0xf0] }
 0x4ca   :  { %v3538_v31 = vmul.f32 %v8653_v4, %v3537_v53  ;;  %4217 = vmatpush.bf16.msra.mxu3 %v7422_v56  ;;  %v8363_v53 = vld [vmem:[#allocation8 + $0x64] sm:$0xf]  ;;  %v7406_v4 = vor.u32 %v8364_v35, %v7405_v60  ;;  %v7371_v56 = vld [vmem:[#allocation8 + $0x24] sm:$0xf0]  ;;  %v7634_v60 = vor.u32 %v8421_v15, %v7633_v46  ;;  %v7517_v46 = vld [vmem:[#allocation14 + $0x84] sm:$0xf0] }
 0x4cb   :  { %v7553_v15 = vld [vmem:[#allocation17] sm:$0xf] }
 0x4cc   :  { %v9726_v12 = vadd.f32 %v3539_v42, %v3538_v31  ;;  %v7407_v31 = vld [vmem:[#allocation8 + $0x6c] sm:$0xf0]  ;;  %4234 = vmatpush.bf16.msra.mxu0 %v7378_v55  ;;  %4205 = vmatpush.bf16.msra.mxu2 %v7406_v4  ;;  %v7374_v55 = vor.u32 %v8354_v36, %v7371_v56  ;;  %v8352_v4 = vld [vmem:[#allocation8 + $0x8] sm:$0xf0] }
 0x4cd   :  { %v7410_v42 = vor.u32 %v8363_v53, %v7407_v31  ;;  %v7357_v53 = vld [vmem:[#allocation8] sm:$0xf]  ;;  %v8351_v31 = vld [vmem:[#allocation8 + $0x4] sm:$0xf]  ;;  %v8390_v56 = vld [vmem:[#allocation14 + $0x7c] sm:$0xf] }
 0x4ce   :  { %v3791_v8 = vpack.c.bf16 %v9726_v12, %v9726_v12 }
 0x4cf   :  { %4218 = vmatpush.bf16.msra.mxu3 %v7410_v42 }
 0x4d0   :  { %3960 = vmatmul.bf16.vlgmr.msrb.gmra.mxu3 %v3791_v8  ;;  %3973 = vmatmul.bf16.vlgmr.msrb.gmra.mxu0 %v3791_v8 }
 0x4d1   :  { %3986 = vmatmul.bf16.vlgmr.msrb.gmra.mxu1 %v3791_v8  ;;  %v7365_v8 = vld [vmem:[#allocation8 + $0x8] sm:$0xf]  ;;  %4206 = vmatpush.bf16.msra.mxu2 %v7394_v45  ;;  %v7601_v45 = vld [vmem:[#allocation17 + $0x60] sm:$0xf] }
 0x4d2   :  { %v7366_v48 = vor.u32 %v8353_v47, %v7365_v8  ;;  %v7358_v47 = vor.u32 %v8352_v4, %v7357_v53  ;;  %v7602_v51 = vor.u32 %v8413_v29, %v7601_v45  ;;  %v7520_v53 = vor.u32 %v8390_v56, %v7517_v46  ;;  %v8401_v4 = vld [vmem:[#allocation17 + $0xc] sm:$0xf0]  ;;  %v9987_v46 = vld [vmem:[#allocation42_spill] sm:$0xff] }
 0x4d3   :  { %4219 = vmatpush.bf16.msra.mxu3 %v7398_v16  ;;  %v8397_v29 = vld [vmem:[#allocation14 + $0xb0] sm:$0xf0] }
 0x4d4   :  { %4235 = vmatpush.bf16.msra.mxu0 %v7366_v48  ;;  %v7359_v48 = vld [vmem:[#allocation8 + $0xc] sm:$0xf0] }
 0x4d5   :  { %4207 = vmatpush.bf16.msra.mxu2 %v7382_v19  ;;  %v7362_v22 = vor.u32 %v8351_v31, %v7359_v48  ;;  %v7529_v19 = vld [vmem:[#allocation14 + $0x9c] sm:$0xf0]  ;;  %v7554_v48 = vor.u32 %v8401_v4, %v7553_v15  ;;  %v496_v15 = vadd.f32 %v9987_v46, %v9411_v11  ;;  %v8388_v11 = vld [vmem:[#allocation14 + $0x68] sm:$0xf0] }
 0x4d6   :  { %v7532_v23 = vor.u32 %v8393_v32, %v7529_v19  ;;  %v7527_v32 = vld [vmem:[#allocation14 + $0x90] sm:$0xf]  ;;  %v8394_v19 = vld [vmem:[#allocation14 + $0x98] sm:$0xf0] }
 0x4d7   :  { %4220 = vmatpush.bf16.msra.mxu3 %v7386_v3 }
 0x4d8   :  { %4957 = vmatpush.bf16.msrb.mxu0 %v7666_v63  ;;  %v8409_v63 = vld [vmem:[#allocation17 + $0x4c] sm:$0xf0] }
 0x4d9   :  { %4208 = vmatpush.bf16.msra.mxu2 %v7370_v57 }
 0x4db   :  { %4221 = vmatpush.bf16.msra.mxu3 %v7374_v55 }
 0x4dc   :  { %4958 = vmatpush.bf16.msrb.mxu0 %v7650_v18  ;;  %v7569_v18 = vld [vmem:[#allocation17 + $0x20] sm:$0xf] }
 0x4dd   :  { %4209 = vmatpush.bf16.msra.mxu2 %v7358_v47 }
 0x4df   :  { %4222 = vmatpush.bf16.msra.mxu3 %v7362_v22 }
 0x4e0   :  { %4959 = vmatpush.bf16.msrb.mxu0 %v7634_v60  ;;  %v9742_v60 = vld [vmem:[#allocation11] ss:$0 sm:$0xff] }
 0x524   :  { %v3713_v41 = vpop.f32.mrf.mxu0  ;;  %v3726_v39 = vpop.f32.mrf.mxu1 }
 0x525   :  { %v3743_v49 = vadd.f32 %v3713_v41, %v9982_v21  ;;  %v3744_v52 = vadd.f32 %v3726_v39, %v9983_v58  ;;  %v8417_v41 = vld [vmem:[#allocation17 + $0x8c] sm:$0xf0]  ;;  %v8396_v21 = vld [vmem:[#allocation14 + $0xac] sm:$0xf]  ;;  %v7585_v58 = vld [vmem:[#allocation17 + $0x40] sm:$0xf] }
 0x526   :  { %v7618_v30 = vor.u32 %v8417_v41, %v7617_v40  ;;  %v7586_v20 = vor.u32 %v8409_v63, %v7585_v58  ;;  %v7505_v41 = vld [vmem:[#allocation14 + $0x6c] sm:$0xf0] }
 0x527   :  { %v7255_v17 = vmul.f32 -1.442695, %v3743_v49  ;;  %v7256_v6 = vmul.f32 -1.442695, %v3744_v52  ;;  %v7541_v49 = vld [vmem:[#allocation14 + $0xb4] sm:$0xf0] }
 0x528   :  { %4960 = vmatpush.bf16.msrb.mxu0 %v7618_v30  ;;  %v7544_v16 = vor.u32 %v8396_v21, %v7541_v49  ;;  %v7539_v30 = vld [vmem:[#allocation14 + $0xa8] sm:$0xf]  ;;  %v9986_v21 = vld [vmem:[#allocation36_spill] sm:$0xff] }
 0x529   :  { %8654 = vpow2.f32 %v7255_v17  ;;  %v7540_v58 = vor.u32 %v8397_v29, %v7539_v30  ;;  %v8389_v29 = vld [vmem:[#allocation14 + $0x70] sm:$0xf0] }
 0x52a   :  { %8656 = vpow2.f32 %v7256_v6  ;;  %4463 = vmatpush.bf16.msrb.mxu2 %v7544_v16  ;;  %v8398_v16 = vld [vmem:[#allocation14 + $0xb8] sm:$0xf0] }
 0x52b   :  { %v9732_v27 = vpop.f32.mrf.mxu2  ;;  %4450 = vmatpush.bf16.msra.mxu1 %v7540_v58 }
 0x52c   :  { %v3715_v62 = vpop.f32.mrf.mxu0  ;;  %v3728_v34 = vpop.f32.mrf.mxu1  ;;  %4961 = vmatpush.bf16.msrb.mxu0 %v7602_v51 }
 0x52d   :  { %v7570_v34 = vor.u32 %v8405_v26, %v7569_v18  ;;  %v8381_v26 = vld [vmem:[#allocation14 + $0x34] sm:$0xf] }
 0x52e   :  { %4464 = vmatpush.bf16.msrb.mxu2 %v7532_v23 }
 0x52f   :  { %v8655_v35 = vpop.eup %8654 }
 0x530   :  { %v8657_v42 = vpop.eup %8656  ;;  %v3751_v8 = vadd.f32 1.0, %v8655_v35  ;;  %4962 = vmatpush.bf16.msrb.mxu0 %v7586_v20  ;;  %v3783_v35 = vadd.f32 %v9742_v60, %v9732_v27  ;;  %v8387_v27 = vld [vmem:[#allocation14 + $0x64] sm:$0xf] }
 0x531   :  { %v9734_v33 = vadd.f32 1.0, %v8657_v42  ;;  %v7508_v45 = vor.u32 %v8387_v27, %v7505_v41  ;;  %v7503_v41 = vld [vmem:[#allocation14 + $0x60] sm:$0xf] }
 0x532   :  { %8658 = vrcp.f32 %v3751_v8  ;;  %v3764_v2 = vand.u32 2147483648, %v3751_v8  ;;  %v3762_v36 = vand.u32 2147483647, %v3751_v8  ;;  %vm3758_vm2 = vweird.f32 %v3751_v8  ;;  %4465 = vmatpush.bf16.msrb.mxu2 %v7520_v53 }
 0x533   :  { %8660 = vrcp.f32 %v9734_v33  ;;  %v3741_v39 = vpop.f32.mrf.mxu2  ;;  %vm3773_vm6 = vweird.f32 %v9734_v33  ;;  %v3777_v22 = vand.u32 2147483647, %v9734_v33  ;;  %v7504_v30 = vor.u32 %v8388_v11, %v7503_v41  ;;  %v7455_v11 = vld [vmem:[#allocation14] sm:$0xf] }
 0x534   :  { %v3765_v55 = vor.u32 1.1754944e-38, %v3764_v2  ;;  %vm3763_vm5 = vcmp.eq.f32.partialorder %v3762_v36, 8.507059e+37  ;;  %4963 = vmatpush.bf16.msrb.mxu0 %v7570_v34  ;;  %v8395_v2 = vld [vmem:[#allocation14 + $0xa0] sm:$0xf0]  ;;  %v7511_v39 = vld [vmem:[#allocation14 + $0x68] sm:$0xf] }
 0x535   :  { %vm3778_vm8 = vcmp.eq.f32.partialorder %v3777_v22, 8.507059e+37  ;;  %v8391_v34 = vld [vmem:[#allocation14 + $0x80] sm:$0xf0]  ;;  %v7469_v22 = vld [vmem:[#allocation14 + $0x24] sm:$0xf0] }
 0x536   :  { %4466 = vmatpush.bf16.msrb.mxu2 %v7508_v45 }
 0x538   :  { %v8659_v52 = vpop.eup %8658  ;;  %4964 = vmatpush.bf16.msrb.mxu0 %v7554_v48  ;;  %v8378_v48 = vld [vmem:[#allocation14 + $0x1c] sm:$0xf] }
 0x539   :  { %v9737_v17 = vpop.eup %8660  ;;  %v3754_v6 = vmul.f32 %v8659_v52, %v3751_v8  ;;  %vm3759_vm1 = vweird.f32 %v8659_v52  ;;  %v3779_v8 = vand.u32 2147483648, %v9734_v33  ;;  %v7472_v27 = vor.u32 %v8378_v48, %v7469_v22  ;;  %v8419_v22 = vld [vmem:[#allocation17 + $0xa4] sm:$0xf] }
 0x53a   :  { %v3769_v50 = vmul.f32 %v9737_v17, %v9734_v33  ;;  %vm3760_vm3 = vmor %vm3758_vm2, %vm3759_vm1  ;;  %vm3774_vm4 = vweird.f32 %v9737_v17 }
 0x53b   :  { %v3755_v25 = vsub.f32 1.0, %v3754_v6  ;;  %vm9751_vm7 = vmor %vm3773_vm6, %vm3774_vm4  ;;  %v3780_v33 = vor.u32 1.1754944e-38, %v3779_v8  ;;  %v8384_v6 = vld [vmem:[#allocation14 + $0x4c] sm:$0xf] }
 0x53c   :  { %v3770_v3 = vsub.f32 1.0, %v3769_v50  ;;  %v7493_v50 = vld [vmem:[#allocation14 + $0x54] sm:$0xf0] }
 0x53d   :  { %v3756_v10 = vmul.f32 %v8659_v52, %v3755_v25  ;;  %v7496_v25 = vor.u32 %v8384_v6, %v7493_v50  ;;  %v7491_v6 = vld [vmem:[#allocation14 + $0x48] sm:$0xf]  ;;  %v8385_v50 = vld [vmem:[#allocation14 + $0x50] sm:$0xf0] }
 0x53e   :  { %v3771_v62 = vmul.f32 %v9737_v17, %v3770_v3  ;;  %v7528_v3 = vor.u32 %v8394_v19, %v7527_v32  ;;  %v7492_v32 = vor.u32 %v8385_v50, %v7491_v6  ;;  %v8386_v19 = vld [vmem:[#allocation14 + $0x58] sm:$0xf0]  ;;  %v9775_v50 = vpack.c.bf16 %v9544_v37, %v9482_v43 }
 0x53f   :  { %v3757_v57 = vadd.f32 %v8659_v52, %v3756_v10  ;;  %4467 = vmatpush.bf16.msrb.mxu2 %v7496_v25  ;;  %v7481_v10 = vld [vmem:[#allocation14 + $0x3c] sm:$0xf0] }
 0x540   :  { %v3772_v31 = vadd.f32 %v9737_v17, %v3771_v62  ;;  %4451 = vmatpush.bf16.msra.mxu1 %v7528_v3  ;;  %v7484_v36 = vor.u32 %v8381_v26, %v7481_v10  ;;  %v7515_v62 = vld [vmem:[#allocation14 + $0x78] sm:$0xf]  ;;  %v7479_v10 = vld [vmem:[#allocation14 + $0x30] sm:$0xf] }
 0x541   :  { %v3761_v42 = vsel %vm3760_vm3, %v8659_v52, %v3757_v57  ;;  %v7547_v52 = vld [vmem:[#allocation14 + $0xb0] sm:$0xf]  ;;  %v7523_v57 = vld [vmem:[#allocation14 + $0x80] sm:$0xf]  ;;  %v7667_v3 = vld [vmem:[#allocation17 + $0xf0] sm:$0xf0] }
 0x542   :  { %v3766_v47 = vsel %vm3763_vm5, %v3765_v55, %v3761_v42  ;;  %v3776_v51 = vsel %vm9751_vm7, %v9737_v17, %v3772_v31  ;;  %v7548_v63 = vor.u32 %v8398_v16, %v7547_v52  ;;  %v7535_v17 = vld [vmem:[#allocation14 + $0x98] sm:$0xf]  ;;  %v7516_v55 = vor.u32 %v8391_v34, %v7515_v62  ;;  %v8375_v52 = vld [vmem:[#allocation14 + $0x4] sm:$0xf]  ;;  %v7457_v16 = vld [vmem:[#allocation14 + $0xc] sm:$0xf0] }
 0x543   :  { %v3784_v40 = vmul.f32 %v3783_v35, %v3766_v47  ;;  %v3781_v20 = vsel %vm3778_vm8, %v3780_v33, %v3776_v51  ;;  %v7536_v23 = vor.u32 %v8395_v2, %v7535_v17  ;;  %v8392_v35 = vld [vmem:[#allocation14 + $0x88] sm:$0xf0]  ;;  %4468 = vmatpush.bf16.msrb.mxu2 %v7484_v36  ;;  %v8427_v17 = vld [vmem:[#allocation17 + $0xe4] sm:$0xf]  ;;  %v8382_v36 = vld [vmem:[#allocation14 + $0x38] sm:$0xf0] }
 0x544   :  { %4476 = vmatpush.bf16.msrb.mxu3 %v7548_v63  ;;  %v3787_v18 = vsub.f32 1.0, %v3781_v20  ;;  %v3789_v4 = vmul.f32 %v3781_v20, %v9718_v1  ;;  %v7524_v42 = vor.u32 %v8392_v35, %v7523_v57  ;;  %4452 = vmatpush.bf16.msra.mxu1 %v7516_v55  ;;  %v7460_v63 = vor.u32 %v8375_v52, %v7457_v16  ;;  %v7499_v20 = vld [vmem:[#allocation14 + $0x50] sm:$0xf]  ;;  %v7487_v34 = vld [vmem:[#allocation14 + $0x38] sm:$0xf] }
 0x545   :  { %v3785_v49 = vadd.f32 %v3784_v40, %v9986_v21  ;;  %v7512_v21 = vor.u32 %v8389_v29, %v7511_v39  ;;  %v7480_v62 = vor.u32 %v8382_v36, %v7479_v10  ;;  %v8383_v57 = vld [vmem:[#allocation14 + $0x40] sm:$0xf0]  ;;  %v7651_v55 = vld [vmem:[#allocation17 + $0xd0] sm:$0xf0]  ;;  %v8376_v39 = vld [vmem:[#allocation14 + $0x8] sm:$0xf0] }
 0x546   :  { %v7467_v35 = vld [vmem:[#allocation14 + $0x18] sm:$0xf]  ;;  %v8415_v29 = vld [vmem:[#allocation17 + $0x84] sm:$0xf]  ;;  %v7456_v52 = vor.u32 %v8376_v39, %v7455_v11 }
 0x547   :  { %8662 = vtanh.f32 %v3785_v49  ;;  %4469 = vmatpush.bf16.msrb.mxu2 %v7472_v27  ;;  %v9988_v49 = vld [vmem:[#allocation33_spill] sm:$0xff] }
 0x548   :  { %4477 = vmatpush.bf16.msrb.mxu3 %v7536_v23  ;;  %v467_v58 = vadd.f32 %v9988_v49, %v9333_v0  ;;  %4453 = vmatpush.bf16.msra.mxu1 %v7504_v30  ;;  %v7500_v0 = vor.u32 %v8386_v19, %v7499_v20  ;;  %v7670_v23 = vor.u32 %v8427_v17, %v7667_v3  ;;  %v7635_v27 = vld [vmem:[#allocation17 + $0xb0] sm:$0xf0]  ;;  %v8411_v20 = vld [vmem:[#allocation17 + $0x64] sm:$0xf] }
 0x549   :  { %v7638_v30 = vor.u32 %v8419_v22, %v7635_v27  ;;  %v7619_v49 = vld [vmem:[#allocation17 + $0x90] sm:$0xf0]  ;;  %v8407_v19 = vld [vmem:[#allocation17 + $0x44] sm:$0xf] }
 0x54a   :  { %v7587_v17 = vld [vmem:[#allocation17 + $0x50] sm:$0xf0] }
 0x54b   :  { %4470 = vmatpush.bf16.msrb.mxu2 %v7460_v63 }
 0x54c   :  { %4478 = vmatpush.bf16.msrb.mxu3 %v7524_v42  ;;  %4454 = vmatpush.bf16.msra.mxu1 %v7492_v32  ;;  %v7475_v42 = vld [vmem:[#allocation14 + $0x20] sm:$0xf] }
 0x54d   :  { %v8663_v56 = vpop.eup %8662  ;;  %v3974_v31 = vpop.f32.mrf.mxu0 }
 0x54e   :  { %v3788_v53 = vmul.f32 %v8663_v56, %v3787_v18  ;;  %v3992_v8 = vadd.f32 %v3974_v31, %v496_v15  ;;  %v9762_v47 = vpop.f32.mrf.mxu1  ;;  %v8423_v56 = vld [vmem:[#allocation17 + $0xc4] sm:$0xf]  ;;  %v7488_v15 = vor.u32 %v8383_v57, %v7487_v34 }
 0x54f   :  { %v7654_v31 = vor.u32 %v8423_v56, %v7651_v55 }
 0x550   :  { %v9764_v40 = vadd.f32 %v3789_v4, %v3788_v53  ;;  %v7354_v45 = vmul.f32 -1.442695, %v3992_v8  ;;  %4479 = vmatpush.bf16.msrb.mxu3 %v7512_v21  ;;  %v8379_v53 = vld [vmem:[#allocation14 + $0x20] sm:$0xf0]  ;;  %v8380_v8 = vld [vmem:[#allocation14 + $0x28] sm:$0xf0]  ;;  %4455 = vmatpush.bf16.msra.mxu1 %v7480_v62 }
 0x551   :  { %v7468_v48 = vor.u32 %v8379_v53, %v7467_v35  ;;  %v8377_v21 = vld [vmem:[#allocation14 + $0x10] sm:$0xf0] }
 0x552   :  { %v4041_v51 = vpack.c.bf16 %v9764_v40, %v9764_v40  ;;  %8664 = vpow2.f32 %v7354_v45  ;;  %v7476_v45 = vor.u32 %v8380_v8, %v7475_v42  ;;  %v9779_v42 = vld [vmem:[#allocation15] ss:$0 sm:$0xff] }
 0x553   :  { %v3961_v33 = vpop.f32.mrf.mxu3  ;;  %v4031_v8 = vadd.f32 %v9779_v42, %v9762_v47 }
 0x554   :  { %4210 = vmatmul.bf16.vlgmr.msra.gmra.mxu2 %v4041_v51  ;;  %4223 = vmatmul.bf16.vlgmr.msra.gmra.mxu3 %v4041_v51  ;;  %v3991_v25 = vadd.f32 %v3961_v33, %v467_v58  ;;  %v7622_v33 = vor.u32 %v8415_v29, %v7619_v49 }
 0x555   :  { %4236 = vmatmul.bf16.vlgmr.msra.gmra.mxu0 %v4041_v51  ;;  %v3976_v2 = vpop.f32.mrf.mxu0  ;;  %5015 = vmatpush.bf16.msra.mxu2 %v7670_v23  ;;  %v7463_v51 = vld [vmem:[#allocation14 + $0x8] sm:$0xf] }
 0x556   :  { %v7353_v18 = vmul.f32 -1.442695, %v3991_v25  ;;  %v3989_v26 = vpop.f32.mrf.mxu1  ;;  %4480 = vmatpush.bf16.msrb.mxu3 %v7500_v0  ;;  %4456 = vmatpush.bf16.msra.mxu1 %v7468_v48  ;;  %v7464_v63 = vor.u32 %v8377_v21, %v7463_v51  ;;  %v7603_v25 = vld [vmem:[#allocation17 + $0x70] sm:$0xf0]  ;;  %v7590_v0 = vor.u32 %v8407_v19, %v7587_v17  ;;  %v7673_v17 = vld [vmem:[#allocation17 + $0xe8] sm:$0xf] }
 0x557   :  { %v7606_v32 = vor.u32 %v8411_v20, %v7603_v25  ;;  %v7571_v26 = vld [vmem:[#allocation17 + $0x30] sm:$0xf0] }
 0x558   :  { %v8665_v46 = vpop.eup %8664  ;;  %8666 = vpow2.f32 %v7353_v18  ;;  %v8403_v18 = vld [vmem:[#allocation17 + $0x24] sm:$0xf]  ;;  %v9990_v20 = vld [vmem:[#allocation37_spill] sm:$0xff] }
 0x559   :  { %v9770_v4 = vadd.f32 1.0, %v8665_v46  ;;  %5016 = vmatpush.bf16.msra.mxu2 %v7654_v31  ;;  %v7574_v34 = vor.u32 %v8403_v18, %v7571_v26  ;;  %v8399_v46 = vld [vmem:[#allocation17 + $0x4] sm:$0xf]  ;;  %v347_v25 = vadd.f32 %v9990_v20, %v9344_v5  ;;  %v7675_v26 = vld [vmem:[#allocation17 + $0xf8] sm:$0xf0] }
 0x55a   :  { %4481 = vmatpush.bf16.msrb.mxu3 %v7488_v15  ;;  %4457 = vmatpush.bf16.msra.mxu1 %v7456_v52  ;;  %v7555_v15 = vld [vmem:[#allocation17 + $0x10] sm:$0xf0]  ;;  %v8426_v5 = vld [vmem:[#allocation17 + $0xd4] sm:$0xf0]  ;;  %v8412_v20 = vld [vmem:[#allocation17 + $0x6c] sm:$0xf] }
 0x55b   :  { %v3963_v41 = vpop.f32.mrf.mxu3  ;;  %8668 = vrcp.f32 %v9770_v4  ;;  %v7558_v31 = vor.u32 %v8399_v46, %v7555_v15  ;;  %v4027_v39 = vand.u32 2147483648, %v9770_v4  ;;  %vm4021_vm14 = vweird.f32 %v9770_v4  ;;  %v7657_v46 = vld [vmem:[#allocation17 + $0xc8] sm:$0xf]  ;;  %v8424_v15 = vld [vmem:[#allocation17 + $0xcc] sm:$0xf] }
 0x55c   :  { %v9989_v41 = vld [vmem:[#allocation43_spill] sm:$0xff]  ;;  %v4025_v29 = vand.u32 2147483647, %v9770_v4 }
 0x55d   :  { %5017 = vmatpush.bf16.msra.mxu2 %v7638_v30  ;;  %v525_v11 = vadd.f32 %v9989_v41, %v9414_v14  ;;  %v9788_v30 = vpack.c.bf16 %v9631_v54, %v9573_v44  ;;  %v4028_v21 = vor.u32 1.1754944e-38, %v4027_v39 }
 0x55e   :  { %v8667_v58 = vpop.eup %8666  ;;  %4482 = vmatpush.bf16.msrb.mxu3 %v7476_v45  ;;  %vm4026_vm0 = vcmp.eq.f32.partialorder %v4025_v29, 8.507059e+37  ;;  %v8418_v29 = vld [vmem:[#allocation17 + $0x94] sm:$0xf0] }
 0x55f   :  { %v3999_v16 = vadd.f32 1.0, %v8667_v58 }
 0x561   :  { %8670 = vrcp.f32 %v3999_v16  ;;  %v8669_v6 = vpop.eup %8668  ;;  %5018 = vmatpush.bf16.msra.mxu2 %v7622_v33  ;;  %v4012_v62 = vand.u32 2147483648, %v3999_v16  ;;  %v4010_v56 = vand.u32 2147483647, %v3999_v16  ;;  %vm4006_vm10 = vweird.f32 %v3999_v16 }
 0x562   :  { %4483 = vmatpush.bf16.msrb.mxu3 %v7464_v63  ;;  %v4017_v3 = vmul.f32 %v8669_v6, %v9770_v4  ;;  %vm4022_vm13 = vweird.f32 %v8669_v6  ;;  %v9800_v63 = vpack.c.bf16 %v9718_v1, %v9660_v28 }
 0x563   :  { %v4013_v53 = vor.u32 1.1754944e-38, %v4012_v62  ;;  %vm4011_vm12 = vcmp.eq.f32.partialorder %v4010_v56, 8.507059e+37  ;;  %vm4023_vm15 = vmor %vm4021_vm14, %vm4022_vm13 }
 0x564   :  { %v4018_v10 = vsub.f32 1.0, %v4017_v3  ;;  %v8430_v3 = vld [vmem:[#allocation17 + $0xf4] sm:$0xf0] }
 0x565   :  { %4965 = vmatmul.bf16.vlgmr.msrb.gmra.mxu0 %v9775_v50  ;;  %5019 = vmatpush.bf16.msra.mxu2 %v7606_v32  ;;  %v9991_v32 = vld [vmem:[#allocation38_spill] sm:$0xff]  ;;  %v7674_v18 = vor.u32 %v8430_v3, %v7673_v17  ;;  %v7593_v17 = vld [vmem:[#allocation17 + $0x48] sm:$0xf]  ;;  %v8410_v3 = vld [vmem:[#allocation17 + $0x54] sm:$0xf0] }
 0x566   :  { %v4019_v55 = vmul.f32 %v8669_v6, %v4018_v10  ;;  %v376_v19 = vadd.f32 %v9991_v32, %v9348_v7  ;;  %v7658_v7 = vor.u32 %v8426_v5, %v7657_v46  ;;  %v7611_v32 = vld [vmem:[#allocation17 + $0x78] sm:$0xf0] }
 0x567   :  { %v8671_v2 = vpop.eup %8670  ;;  %5073 = vmatpush.bf16.msra.mxu0 %v7674_v18  ;;  %v7595_v18 = vld [vmem:[#allocation17 + $0x58] sm:$0xf0] }
 0x568   :  { %v4002_v23 = vmul.f32 %v8671_v2, %v3999_v16  ;;  %vm4007_vm9 = vweird.f32 %v8671_v2  ;;  %v4020_v22 = vadd.f32 %v8669_v6, %v4019_v55  ;;  %v7659_v55 = vld [vmem:[#allocation17 + $0xd8] sm:$0xf0] }
 0x569   :  { %5020 = vmatpush.bf16.msra.mxu2 %v7590_v0  ;;  %vm4008_vm11 = vmor %vm4006_vm10, %vm4007_vm9 }
 0x56a   :  { %v4003_v36 = vsub.f32 1.0, %v4002_v23  ;;  %v4024_v51 = vsel %vm4023_vm15, %v8669_v6, %v4020_v22 }
 0x56b   :  { %v4029_v14 = vsel %vm4026_vm0, %v4028_v21, %v4024_v51  ;;  %5074 = vmatpush.bf16.msra.mxu0 %v7658_v7  ;;  %v7579_v7 = vld [vmem:[#allocation17 + $0x38] sm:$0xf0] }
 0x56c   :  { %v4004_v57 = vmul.f32 %v8671_v2, %v4003_v36  ;;  %v4035_v49 = vsub.f32 1.0, %v4029_v14  ;;  %v4037_v52 = vmul.f32 %v4029_v14, %v9726_v12 }
 0x56d   :  { %5021 = vmatpush.bf16.msra.mxu2 %v7574_v34 }
 0x56e   :  { %v4005_v35 = vadd.f32 %v8671_v2, %v4004_v57 }
 0x570   :  { %v4009_v48 = vsel %vm4008_vm11, %v8671_v2, %v4005_v35  ;;  %v8428_v2 = vld [vmem:[#allocation17 + $0xec] sm:$0xf]  ;;  %v7662_v35 = vor.u32 %v8424_v15, %v7659_v55 }
 0x571   :  { %v4014_v27 = vsel %vm4011_vm12, %v4013_v53, %v4009_v48  ;;  %5022 = vmatpush.bf16.msra.mxu2 %v7558_v31  ;;  %v7678_v62 = vor.u32 %v8428_v2, %v7675_v26  ;;  %v7641_v53 = vld [vmem:[#allocation17 + $0xa8] sm:$0xf]  ;;  %v8422_v31 = vld [vmem:[#allocation17 + $0xb4] sm:$0xf0]  ;;  %v7643_v48 = vld [vmem:[#allocation17 + $0xb8] sm:$0xf0] }
 0x572   :  { %v4032_v45 = vmul.f32 %v4031_v8, %v4014_v27  ;;  %v8420_v8 = vld [vmem:[#allocation17 + $0xac] sm:$0xf]  ;;  %v7642_v22 = vor.u32 %v8422_v31, %v7641_v53 }
 0x573   :  { %v7646_v27 = vor.u32 %v8420_v8, %v7643_v48  ;;  %v8408_v2 = vld [vmem:[#allocation17 + $0x4c] sm:$0xf]  ;;  %v7793_v48 = vld [vmem:[#allocation17 + $0x1e0] sm:$0xf] }
 0x574   :  { %v4033_v47 = vadd.f32 %v4032_v45, %v525_v11  ;;  %5075 = vmatpush.bf16.msra.mxu0 %v7642_v22  ;;  %v7625_v45 = vld [vmem:[#allocation17 + $0x88] sm:$0xf]  ;;  %v8404_v55 = vld [vmem:[#allocation17 + $0x2c] sm:$0xf]  ;;  %v8461_v22 = vld [vmem:[#allocation17 + $0x1ec] sm:$0xf0] }
 0x575   :  { %4970 = vmatmul.bf16.gmra.mxu0 %v9788_v30  ;;  %v7626_v14 = vor.u32 %v8418_v29, %v7625_v45  ;;  %v7582_v31 = vor.u32 %v8404_v55, %v7579_v7  ;;  %v7561_v45 = vld [vmem:[#allocation17 + $0x8] sm:$0xf]  ;;  %v8402_v29 = vld [vmem:[#allocation17 + $0x14] sm:$0xf0]  ;;  %v7745_v55 = vld [vmem:[#allocation17 + $0x180] sm:$0xf] }
 0x576   :  { %8672 = vtanh.f32 %v4033_v47  ;;  %v8416_v47 = vld [vmem:[#allocation17 + $0x8c] sm:$0xf]  ;;  %v8449_v7 = vld [vmem:[#allocation17 + $0x18c] sm:$0xf0] }
 0x578   :  { %5076 = vmatpush.bf16.msra.mxu0 %v7626_v14  ;;  %v7562_v14 = vor.u32 %v8402_v29, %v7561_v45  ;;  %v8443_v45 = vld [vmem:[#allocation17 + $0x164] sm:$0xf]  ;;  %v9993_v29 = vld [vmem:[#allocation32_spill] sm:$0xff] }
 0x57c   :  { %v8673_v58 = vpop.eup %8672 }
 0x57d   :  { %v4036_v16 = vmul.f32 %v8673_v58, %v4035_v49  ;;  %v7627_v49 = vld [vmem:[#allocation17 + $0x98] sm:$0xf0] }
 0x57f   :  { %v9794_v33 = vadd.f32 %v4037_v52, %v4036_v16  ;;  %v7630_v52 = vor.u32 %v8416_v47, %v7627_v49  ;;  %v7609_v16 = vld [vmem:[#allocation17 + $0x68] sm:$0xf]  ;;  %v8400_v49 = vld [vmem:[#allocation17 + $0xc] sm:$0xf] }
 0x581   :  { %v4289_v4 = vpack.c.bf16 %v9794_v33, %v9794_v33 }
 0x583   :  { %4458 = vmatmul.bf16.vlgmr.msra.gmra.mxu1 %v4289_v4  ;;  %4471 = vmatmul.bf16.vlgmr.msrb.gmra.mxu2 %v4289_v4 }
 0x584   :  { %4484 = vmatmul.bf16.vlgmr.msrb.gmra.mxu3 %v4289_v4  ;;  %5131 = vmatpush.bf16.msrb.mxu2 %v7678_v62  ;;  %v8414_v4 = vld [vmem:[#allocation17 + $0x74] sm:$0xf0] }
 0x585   :  { %4975 = vmatmul.bf16.gmra.mxu0 %v9800_v63 }
 0x588   :  { %5132 = vmatpush.bf16.msrb.mxu2 %v7662_v35 }
 0x58c   :  { %5133 = vmatpush.bf16.msrb.mxu2 %v7646_v27  ;;  %v8459_v27 = vld [vmem:[#allocation17 + $0x1e4] sm:$0xf] }
 0x590   :  { %5134 = vmatpush.bf16.msrb.mxu2 %v7630_v52  ;;  %v7563_v52 = vld [vmem:[#allocation17 + $0x18] sm:$0xf0] }
 0x593   :  { %5023 = vmatmul.bf16.vlgmr.msra.gmra.mxu2 %v9775_v50 }
 0x5a3   :  { %5028 = vmatmul.bf16.gmra.mxu2 %v9788_v30 }
 0x5b3   :  { %5033 = vmatmul.bf16.gmra.mxu2 %v9800_v63 }
 0x5d2   :  { %v9806_v6 = vpop.f32.mrf.mxu0 }
 0x5d7   :  { %v4211_v0 = vpop.f32.mrf.mxu2  ;;  %v4224_v23 = vpop.f32.mrf.mxu3 }
 0x5d8   :  { %v4241_v10 = vadd.f32 %v4211_v0, %v347_v25  ;;  %v4242_v36 = vadd.f32 %v4224_v23, %v376_v19  ;;  %v7610_v25 = vor.u32 %v8414_v4, %v7609_v16  ;;  %v7614_v19 = vor.u32 %v8412_v20, %v7611_v32  ;;  %v7777_v32 = vld [vmem:[#allocation17 + $0x1c0] sm:$0xf] }
 0x5d9   :  { %v7594_v23 = vor.u32 %v8410_v3, %v7593_v17  ;;  %v4281_v16 = vadd.f32 %v9742_v60, %v9806_v6  ;;  %v7566_v20 = vor.u32 %v8400_v49, %v7563_v52  ;;  %v8455_v17 = vld [vmem:[#allocation17 + $0x1c4] sm:$0xf]  ;;  %v7779_v6 = vld [vmem:[#allocation17 + $0x1d0] sm:$0xf0] }
 0x5da   :  { %v7451_v34 = vmul.f32 -1.442695, %v4241_v10  ;;  %v7452_v57 = vmul.f32 -1.442695, %v4242_v36  ;;  %v4239_v56 = vpop.f32.mrf.mxu0  ;;  %5077 = vmatpush.bf16.msra.mxu0 %v7610_v25  ;;  %5135 = vmatpush.bf16.msrb.mxu2 %v7614_v19  ;;  %v7598_v36 = vor.u32 %v8408_v2, %v7595_v18  ;;  %v8457_v19 = vld [vmem:[#allocation17 + $0x1cc] sm:$0xf0] }
 0x5db   :  { %v8406_v56 = vld [vmem:[#allocation17 + $0x34] sm:$0xf0]  ;;  %v9992_v3 = vld [vmem:[#allocation39_spill] sm:$0xff]  ;;  %v7778_v60 = vor.u32 %v8457_v19, %v7777_v32  ;;  %v7715_v19 = vld [vmem:[#allocation17 + $0x150] sm:$0xf0] }
 0x5dc   :  { %8674 = vpow2.f32 %v7451_v34  ;;  %v405_v2 = vadd.f32 %v9992_v3, %v9358_v13  ;;  %v7761_v13 = vld [vmem:[#allocation17 + $0x1a0] sm:$0xf] }
 0x5dd   :  { %8676 = vpow2.f32 %v7452_v57  ;;  %v7577_v57 = vld [vmem:[#allocation17 + $0x28] sm:$0xf] }
 0x5de   :  { %5078 = vmatpush.bf16.msra.mxu0 %v7594_v23  ;;  %5136 = vmatpush.bf16.msrb.mxu2 %v7598_v36  ;;  %v7578_v15 = vor.u32 %v8406_v56, %v7577_v57  ;;  %v8451_v57 = vld [vmem:[#allocation17 + $0x1a4] sm:$0xf] }
 0x5df   :  { %v4213_v41 = vpop.f32.mrf.mxu2  ;;  %v4226_v11 = vpop.f32.mrf.mxu3 }
 0x5e0   :  { %v7794_v11 = vor.u32 %v8461_v22, %v7793_v48 }
 0x5e2   :  { %v8675_v39 = vpop.eup %8674  ;;  %5079 = vmatpush.bf16.msra.mxu0 %v7578_v15  ;;  %5137 = vmatpush.bf16.msrb.mxu2 %v7582_v31  ;;  %v7747_v31 = vld [vmem:[#allocation17 + $0x190] sm:$0xf0] }
 0x5e3   :  { %v8677_v51 = vpop.eup %8676  ;;  %v4249_v21 = vadd.f32 1.0, %v8675_v39  ;;  %v7795_v39 = vld [vmem:[#allocation17 + $0x1f0] sm:$0xf0]  ;;  %4986 = vmatpush.bf16.msrb.mxu1 %v7794_v11  ;;  %v7729_v11 = vld [vmem:[#allocation17 + $0x160] sm:$0xf] }
 0x5e4   :  { %v9812_v58 = vadd.f32 1.0, %v8677_v51  ;;  %v7798_v51 = vor.u32 %v8459_v27, %v7795_v39  ;;  %v8445_v39 = vld [vmem:[#allocation17 + $0x16c] sm:$0xf0] }
 0x5e5   :  { %8678 = vrcp.f32 %v4249_v21  ;;  %v4262_v46 = vand.u32 2147483648, %v4249_v21  ;;  %v4260_v53 = vand.u32 2147483647, %v4249_v21  ;;  %vm4256_vm2 = vweird.f32 %v4249_v21 }
 0x5e6   :  { %8680 = vrcp.f32 %v9812_v58  ;;  %5044 = vmatpush.bf16.msra.mxu3 %v7798_v51  ;;  %v4277_v18 = vand.u32 2147483648, %v9812_v58  ;;  %5080 = vmatpush.bf16.msra.mxu0 %v7562_v14  ;;  %vm4271_vm6 = vweird.f32 %v9812_v58  ;;  %v7730_v51 = vor.u32 %v8445_v39, %v7729_v11  ;;  %v7731_v14 = vld [vmem:[#allocation17 + $0x170] sm:$0xf0] }
 0x5e7   :  { %v4263_v47 = vor.u32 1.1754944e-38, %v4262_v46  ;;  %vm4261_vm4 = vcmp.eq.f32.partialorder %v4260_v53, 8.507059e+37  ;;  %5138 = vmatpush.bf16.msrb.mxu2 %v7566_v20  ;;  %4987 = vmatpush.bf16.msrb.mxu1 %v7778_v60  ;;  %v7746_v53 = vor.u32 %v8449_v7, %v7745_v55  ;;  %v7734_v52 = vor.u32 %v8443_v45, %v7731_v14  ;;  %v7713_v20 = vld [vmem:[#allocation17 + $0x140] sm:$0xf] }
 0x5e8   :  { %v4278_v56 = vor.u32 1.1754944e-38, %v4277_v18 }
 0x5eb   :  { %v8679_v0 = vpop.eup %8678 }
 0x5ec   :  { %v9815_v26 = vpop.eup %8680  ;;  %v4252_v10 = vmul.f32 %v8679_v0, %v4249_v21  ;;  %vm4257_vm1 = vweird.f32 %v8679_v0 }
 0x5ed   :  { %v4267_v62 = vmul.f32 %v9815_v26, %v9812_v58  ;;  %vm4258_vm3 = vmor %vm4256_vm2, %vm4257_vm1  ;;  %vm4272_vm5 = vweird.f32 %v9815_v26 }
 0x5ee   :  { %v4253_v34 = vsub.f32 1.0, %v4252_v10  ;;  %v7782_v10 = vor.u32 %v8455_v17, %v7779_v6  ;;  %vm4273_vm7 = vmor %vm4271_vm6, %vm4272_vm5  ;;  %v7697_v6 = vld [vmem:[#allocation17 + $0x120] sm:$0xf] }
 0x5ef   :  { %v4268_v5 = vsub.f32 1.0, %v4267_v62 }
 0x5f0   :  { %v4254_v35 = vmul.f32 %v8679_v0, %v4253_v34  ;;  %5045 = vmatpush.bf16.msra.mxu3 %v7782_v10  ;;  %v8453_v34 = vld [vmem:[#allocation17 + $0x1ac] sm:$0xf0]  ;;  %v8435_v10 = vld [vmem:[#allocation17 + $0x124] sm:$0xf] }
 0x5f1   :  { %v4269_v8 = vmul.f32 %v9815_v26, %v4268_v5  ;;  %v7762_v46 = vor.u32 %v8453_v34, %v7761_v13  ;;  %v7763_v5 = vld [vmem:[#allocation17 + $0x1b0] sm:$0xf0] }
 0x5f2   :  { %v4255_v41 = vadd.f32 %v8679_v0, %v4254_v35  ;;  %v7766_v15 = vor.u32 %v8451_v57, %v7763_v5  ;;  %v8447_v35 = vld [vmem:[#allocation17 + $0x184] sm:$0xf]  ;;  %v7699_v13 = vld [vmem:[#allocation17 + $0x130] sm:$0xf0]  ;;  %v7681_v57 = vld [vmem:[#allocation17 + $0x100] sm:$0xf] }
 0x5f3   :  { %v4270_v25 = vadd.f32 %v9815_v26, %v4269_v8  ;;  %4988 = vmatpush.bf16.msrb.mxu1 %v7762_v46  ;;  %v7702_v34 = vor.u32 %v8435_v10, %v7699_v13  ;;  %v8431_v46 = vld [vmem:[#allocation17 + $0x104] sm:$0xf]  ;;  %v8452_v13 = vld [vmem:[#allocation17 + $0x1ac] sm:$0xf] }
 0x5f4   :  { %v4259_v4 = vsel %vm4258_vm3, %v8679_v0, %v4255_v41  ;;  %v4275_v0 = vand.u32 2147483647, %v9812_v58  ;;  %5046 = vmatpush.bf16.msra.mxu3 %v7766_v15 }
 0x5f5   :  { %v4264_v21 = vsel %vm4261_vm4, %v4263_v47, %v4259_v4  ;;  %v4274_v62 = vsel %vm4273_vm7, %v9815_v26, %v4270_v25  ;;  %v7750_v26 = vor.u32 %v8447_v35, %v7747_v31  ;;  %v8439_v25 = vld [vmem:[#allocation17 + $0x144] sm:$0xf]  ;;  %v8460_v31 = vld [vmem:[#allocation17 + $0x1ec] sm:$0xf] }
 0x5f6   :  { %v4282_v23 = vmul.f32 %v4281_v16, %v4264_v21  ;;  %vm4276_vm8 = vcmp.eq.f32.partialorder %v4275_v0, 8.507059e+37  ;;  %v8441_v21 = vld [vmem:[#allocation17 + $0x14c] sm:$0xf0]  ;;  %v7718_v3 = vor.u32 %v8439_v25, %v7715_v19 }
 0x5f7   :  { %v4279_v58 = vsel %vm4276_vm8, %v4278_v56, %v4274_v62  ;;  %4989 = vmatpush.bf16.msrb.mxu1 %v7746_v53  ;;  %v7714_v32 = vor.u32 %v8441_v21, %v7713_v20  ;;  %v8437_v0 = vld [vmem:[#allocation17 + $0x12c] sm:$0xf0]  ;;  %v8458_v20 = vld [vmem:[#allocation17 + $0x1d4] sm:$0xf0] }
 0x5f8   :  { %v4283_v36 = vadd.f32 %v4282_v23, %v405_v2  ;;  %v4285_v8 = vsub.f32 1.0, %v4279_v58  ;;  %v4287_v41 = vmul.f32 %v4279_v58, %v9764_v40  ;;  %5047 = vmatpush.bf16.msra.mxu3 %v7750_v26  ;;  %v9994_v2 = vld [vmem:[#allocation40_spill] sm:$0xff]  ;;  %v7698_v62 = vor.u32 %v8437_v0, %v7697_v6  ;;  %v7683_v58 = vld [vmem:[#allocation17 + $0x110] sm:$0xf0] }
 0x5f9   :  { %v8433_v56 = vld [vmem:[#allocation17 + $0x10c] sm:$0xf0]  ;;  %v7686_v7 = vor.u32 %v8431_v46, %v7683_v58  ;;  %v9995_v46 = vld [vmem:[#allocation41_spill] sm:$0xff] }
 0x5fa   :  { %8682 = vtanh.f32 %v4283_v36  ;;  %v7682_v15 = vor.u32 %v8433_v56, %v7681_v57  ;;  %v7769_v57 = vld [vmem:[#allocation17 + $0x1a8] sm:$0xf]  ;;  %v8454_v58 = vld [vmem:[#allocation17 + $0x1b4] sm:$0xf0] }
 0x5fb   :  { %4990 = vmatpush.bf16.msrb.mxu1 %v7730_v51  ;;  %v7787_v51 = vld [vmem:[#allocation17 + $0x1d8] sm:$0xf0] }
 0x5fc   :  { %5048 = vmatpush.bf16.msra.mxu3 %v7734_v52 }
 0x5ff   :  { %4991 = vmatpush.bf16.msrb.mxu1 %v7714_v32 }
 0x600   :  { %v8683_v48 = vpop.eup %8682  ;;  %v4459_v22 = vpop.f32.mrf.mxu1  ;;  %5049 = vmatpush.bf16.msra.mxu3 %v7718_v3 }
 0x601   :  { %v4286_v27 = vmul.f32 %v8683_v48, %v4285_v8  ;;  %v4489_v47 = vadd.f32 %v4459_v22, %v9993_v29  ;;  %v7803_v8 = vld [vmem:[#allocation17 + $0x1f8] sm:$0xf0]  ;;  %v7801_v22 = vld [vmem:[#allocation17 + $0x1e8] sm:$0xf] }
 0x602   :  { %v7806_v48 = vor.u32 %v8460_v31, %v7803_v8  ;;  %v7753_v31 = vld [vmem:[#allocation17 + $0x188] sm:$0xf] }
 0x603   :  { %v9834_v49 = vadd.f32 %v4287_v41, %v4286_v27  ;;  %v7549_v16 = vmul.f32 -1.442695, %v4489_v47  ;;  %4992 = vmatpush.bf16.msrb.mxu1 %v7698_v62  ;;  %v8462_v27 = vld [vmem:[#allocation17 + $0x1f4] sm:$0xf0]  ;;  %v8456_v47 = vld [vmem:[#allocation17 + $0x1cc] sm:$0xf] }
 0x604   :  { %5050 = vmatpush.bf16.msra.mxu3 %v7702_v34  ;;  %v7802_v11 = vor.u32 %v8462_v27, %v7801_v22  ;;  %v7790_v52 = vor.u32 %v8456_v47, %v7787_v51  ;;  %v7771_v34 = vld [vmem:[#allocation17 + $0x1b8] sm:$0xf0]  ;;  %v7737_v47 = vld [vmem:[#allocation17 + $0x168] sm:$0xf] }
 0x605   :  { %v9838_v4 = vpack.c.bf16 %v9834_v49, %v9764_v40  ;;  %8684 = vpow2.f32 %v7549_v16  ;;  %v7785_v16 = vld [vmem:[#allocation17 + $0x1c8] sm:$0xf] }
 0x606   :  { %v4472_v17 = vpop.f32.mrf.mxu2  ;;  %v7786_v32 = vor.u32 %v8458_v20, %v7785_v16  ;;  %v7723_v16 = vld [vmem:[#allocation17 + $0x158] sm:$0xf0] }
 0x607   :  { %4980 = vmatmul.bf16.gmra.mxu0 %v9838_v4  ;;  %5038 = vmatmul.bf16.gmra.mxu2 %v9838_v4  ;;  %v4490_v23 = vadd.f32 %v4472_v17, %v9994_v2  ;;  %v9843_v18 = vpop.f32.mrf.mxu3 }
 0x608   :  { %v4461_v60 = vpop.f32.mrf.mxu1  ;;  %4993 = vmatpush.bf16.msrb.mxu1 %v7682_v15  ;;  %5051 = vmatpush.bf16.msra.mxu3 %v7686_v7  ;;  %v7774_v15 = vor.u32 %v8452_v13, %v7771_v34  ;;  %v4560_v34 = vpack.c.bf16 %v9593_v24, %v9639_v61 }
 0x609   :  { %v7550_v36 = vmul.f32 -1.442695, %v4490_v23  ;;  %v4529_v60 = vadd.f32 %v9779_v42, %v9843_v18  ;;  %v8448_v18 = vld [vmem:[#allocation17 + $0x18c] sm:$0xf] }
 0x60b   :  { %v8685_v5 = vpop.eup %8684  ;;  %8686 = vpow2.f32 %v7550_v36 }
 0x60c   :  { %v4497_v55 = vadd.f32 1.0, %v8685_v5  ;;  %5160 = vmatpush.bf16.msrb.mxu3 %v7806_v48  ;;  %5102 = vmatpush.bf16.msra.mxu1 %v7802_v11 }
 0x60e   :  { %8688 = vrcp.f32 %v4497_v55  ;;  %v4474_v35 = vpop.f32.mrf.mxu2  ;;  %v4510_v14 = vand.u32 2147483648, %v4497_v55  ;;  %v4508_v25 = vand.u32 2147483647, %v4497_v55  ;;  %vm4504_vm10 = vweird.f32 %v4497_v55 }
 0x60f   :  { %v4487_v53 = vpop.f32.mrf.mxu3 }
 0x610   :  { %5161 = vmatpush.bf16.msrb.mxu3 %v7790_v52  ;;  %5103 = vmatpush.bf16.msra.mxu1 %v7786_v32  ;;  %v4511_v2 = vor.u32 1.1754944e-38, %v4510_v14  ;;  %vm4509_vm12 = vcmp.eq.f32.partialorder %v4508_v25, 8.507059e+37  ;;  %v7755_v53 = vld [vmem:[#allocation17 + $0x198] sm:$0xf0]  ;;  %v8446_v14 = vld [vmem:[#allocation17 + $0x174] sm:$0xf0] }
 0x611   :  { %v8687_v26 = vpop.eup %8686  ;;  %v7758_v8 = vor.u32 %v8448_v18, %v7755_v53  ;;  %v8440_v52 = vld [vmem:[#allocation17 + $0x14c] sm:$0xf]  ;;  %v7738_v20 = vor.u32 %v8446_v14, %v7737_v47  ;;  %v8442_v25 = vld [vmem:[#allocation17 + $0x154] sm:$0xf0]  ;;  %v8475_v18 = vld [vmem:[#allocation20 + $0x60] sm:$0xff] }
 0x612   :  { %v4498_v41 = vadd.f32 1.0, %v8687_v26  ;;  %v8450_v26 = vld [vmem:[#allocation17 + $0x194] sm:$0xf0]  ;;  %v7726_v32 = vor.u32 %v8440_v52, %v7723_v16  ;;  %v8494_v47 = vld [vmem:[#allocation20 + $0xf8] sm:$0xff] }
 0x613   :  { %v7754_v22 = vor.u32 %v8450_v26, %v7753_v31  ;;  %v8465_v53 = vld [vmem:[#allocation20 + $0x10] sm:$0xff]  ;;  %v8464_v26 = vld [vmem:[#allocation20 + $0x8] sm:$0xff] }
 0x614   :  { %v8689_v39 = vpop.eup %8688  ;;  %8690 = vrcp.f32 %v4498_v41  ;;  %v4523_v6 = vand.u32 2147483647, %v4498_v41  ;;  %v4525_v36 = vand.u32 2147483648, %v4498_v41  ;;  %vm4519_vm14 = vweird.f32 %v4498_v41  ;;  %5162 = vmatpush.bf16.msrb.mxu3 %v7774_v15  ;;  %v8477_v15 = vld [vmem:[#allocation20 + $0x70] sm:$0xff] }
 0x615   :  { %v4500_v45 = vmul.f32 %v8689_v39, %v4497_v55  ;;  %vm4505_vm9 = vweird.f32 %v8689_v39  ;;  %v7770_v55 = vor.u32 %v8454_v58, %v7769_v57  ;;  %v4562_v57 = vpack.c.bf16 %v9506_v59, %v9552_v9  ;;  %v4966_v58 = vpop.f32.mrf.mxu0 }
 0x616   :  { %vm4506_vm11 = vmor %vm4504_vm10, %vm4505_vm9  ;;  %v4526_v7 = vor.u32 1.1754944e-38, %v4525_v36  ;;  %vm4524_vm0 = vcmp.eq.f32.partialorder %v4523_v6, 8.507059e+37  ;;  %v8432_v6 = vld [vmem:[#allocation17 + $0x10c] sm:$0xf]  ;;  %v7689_v36 = vld [vmem:[#allocation17 + $0x108] sm:$0xf] }
 0x617   :  { %5081 = vmatmul.bf16.vlgmr.msra.gmra.mxu0 %v9775_v50  ;;  %5139 = vmatmul.bf16.vlgmr.msrb.gmra.mxu2 %v9775_v50  ;;  %v4501_v29 = vsub.f32 1.0, %v4500_v45 }
 0x618   :  { %5104 = vmatpush.bf16.msra.mxu1 %v7770_v55  ;;  %5163 = vmatpush.bf16.msrb.mxu3 %v7758_v8  ;;  %v8467_v55 = vld [vmem:[#allocation20 + $0x20] sm:$0xff]  ;;  %v8474_v8 = vld [vmem:[#allocation20 + $0x58] sm:$0xff] }
 0x619   :  { %v4502_v21 = vmul.f32 %v8689_v39, %v4501_v29  ;;  %v7739_v29 = vld [vmem:[#allocation17 + $0x178] sm:$0xf0] }
 0x61a   :  { %v8691_v19 = vpop.eup %8690 }
 0x61b   :  { %v4515_v17 = vmul.f32 %v8691_v19, %v4498_v41  ;;  %v4503_v3 = vadd.f32 %v8689_v39, %v4502_v21  ;;  %vm4520_vm13 = vweird.f32 %v8691_v19  ;;  %v7721_v21 = vld [vmem:[#allocation17 + $0x148] sm:$0xf] }
 0x61c   :  { %vm4521_vm15 = vmor %vm4519_vm14, %vm4520_vm13  ;;  %5105 = vmatpush.bf16.msra.mxu1 %v7754_v22 }
 0x61d   :  { %v4516_v50 = vsub.f32 1.0, %v4515_v17  ;;  %v4507_v23 = vsel %vm4506_vm11, %v8689_v39, %v4503_v3  ;;  %v4558_v17 = vpack.c.bf16 %v9680_v38, %v9726_v12  ;;  %v8436_v3 = vld [vmem:[#allocation17 + $0x12c] sm:$0xf]  ;;  %v4968_v31 = vpop.f32.mrf.mxu0 }
 0x61e   :  { %v4512_v0 = vsel %vm4509_vm12, %v4511_v2, %v4507_v23  ;;  %v7707_v2 = vld [vmem:[#allocation17 + $0x138] sm:$0xf0] }
 0x61f   :  { %v4517_v10 = vmul.f32 %v8691_v19, %v4516_v50  ;;  %v4530_v62 = vmul.f32 %v4529_v60, %v4512_v0  ;;  %v7705_v50 = vld [vmem:[#allocation17 + $0x128] sm:$0xf]  ;;  %v7710_v23 = vor.u32 %v8436_v3, %v7707_v2  ;;  %v8438_v60 = vld [vmem:[#allocation17 + $0x134] sm:$0xf0]  ;;  %v7691_v0 = vld [vmem:[#allocation17 + $0x118] sm:$0xf0] }
 0x620   :  { %5106 = vmatpush.bf16.msra.mxu1 %v7738_v20  ;;  %v7694_v13 = vor.u32 %v8432_v6, %v7691_v0  ;;  %v8485_v20 = vld [vmem:[#allocation20 + $0xb0] sm:$0xff]  ;;  %v8484_v0 = vld [vmem:[#allocation20 + $0xa8] sm:$0xff] }
 0x621   :  { %v4518_v56 = vadd.f32 %v8691_v19, %v4517_v10  ;;  %v4531_v5 = vadd.f32 %v4530_v62, %v9995_v46  ;;  %v7706_v10 = vor.u32 %v8438_v60, %v7705_v50  ;;  %v8434_v62 = vld [vmem:[#allocation17 + $0x114] sm:$0xf0] }
 0x622   :  { %v8469_v46 = vld [vmem:[#allocation20 + $0x30] sm:$0xff] }
 0x623   :  { %v4522_v35 = vsel %vm4521_vm15, %v8691_v19, %v4518_v56  ;;  %8692 = vtanh.f32 %v4531_v5  ;;  %v7722_v19 = vor.u32 %v8442_v25, %v7721_v21  ;;  %v8470_v56 = vld [vmem:[#allocation20 + $0x38] sm:$0xff]  ;;  %v8468_v5 = vld [vmem:[#allocation20 + $0x28] sm:$0xff]  ;;  %v8493_v21 = vld [vmem:[#allocation20 + $0xf0] sm:$0xff] }
 0x624   :  { %v4527_v42 = vsel %vm4524_vm0, %v4526_v7, %v4522_v35  ;;  %5493 = vmatpush.bf16.msrb.mxu0 %v8470_v56  ;;  %v8476_v7 = vld [vmem:[#allocation20 + $0x68] sm:$0xff]  ;;  %v8466_v35 = vld [vmem:[#allocation20 + $0x18] sm:$0xff] }
 0x625   :  { %v4533_v48 = vsub.f32 1.0, %v4527_v42  ;;  %v4535_v11 = vmul.f32 %v4527_v42, %v9794_v33  ;;  %5107 = vmatpush.bf16.msra.mxu1 %v7722_v19  ;;  %v5024_v42 = vpop.f32.mrf.mxu2 }
 0x627   :  { %5086 = vmatmul.bf16.gmra.mxu0 %v9788_v30  ;;  %5144 = vmatmul.bf16.gmra.mxu2 %v9788_v30  ;;  %v8444_v30 = vld [vmem:[#allocation17 + $0x16c] sm:$0xf] }
 0x628   :  { %v7742_v51 = vor.u32 %v8444_v30, %v7739_v29  ;;  %5494 = vmatpush.bf16.msrb.mxu0 %v8469_v46  ;;  %v8486_v29 = vld [vmem:[#allocation20 + $0xb8] sm:$0xff] }
 0x629   :  { %v8693_v27 = vpop.eup %8692  ;;  %5108 = vmatpush.bf16.msra.mxu1 %v7706_v10  ;;  %5551 = vmatpush.bf16.msra.mxu2 %v8486_v29  ;;  %v8492_v10 = vld [vmem:[#allocation20 + $0xe8] sm:$0xff] }
 0x62a   :  { %v4534_v41 = vmul.f32 %v8693_v27, %v4533_v48  ;;  %5164 = vmatpush.bf16.msrb.mxu3 %v7742_v51  ;;  %v8473_v48 = vld [vmem:[#allocation20 + $0x50] sm:$0xff]  ;;  %v8463_v27 = vld [vmem:[#allocation20] sm:$0xff]  ;;  %v9867_v51 = vld [vmem:[#allocation18] sm:$0xf] }
 0x62b   :  { %v9870_v52 = vperm.slane %v9867_v51, 0  ;;  %v9874_v19 = vperm.slane %v9867_v51, 1 }
 0x62c   :  { %v9853_v39 = vadd.f32 %v4535_v11, %v4534_v41  ;;  %5495 = vmatpush.bf16.msrb.mxu0 %v8468_v5  ;;  %v8472_v41 = vld [vmem:[#allocation20 + $0x48] sm:$0xff]  ;;  %v4971_v11 = vpop.f32.mrf.mxu0 }
 0x62d   :  { %v5026_v22 = vpop.f32.mrf.mxu2  ;;  %v4967_v25 = vadd.f32 %v4966_v58, %v9870_v52  ;;  %5552 = vmatpush.bf16.msra.mxu2 %v8485_v20  ;;  %v4969_v2 = vadd.f32 %v4968_v31, %v9870_v52  ;;  %v5025_v6 = vadd.f32 %v5024_v42, %v9874_v19  ;;  %v8491_v58 = vld [vmem:[#allocation20 + $0xe0] sm:$0xff] }
 0x62e   :  { %v4556_v45 = vpack.c.bf16 %v9794_v33, %v9853_v39  ;;  %5165 = vmatpush.bf16.msrb.mxu3 %v7726_v32 }
 0x630   :  { %4994 = vmatmul.bf16.vlgmr.msrb.gmra.mxu1 %v4556_v45  ;;  %5052 = vmatmul.bf16.vlgmr.msra.gmra.mxu3 %v4556_v45 }
 0x631   :  { %5496 = vmatpush.bf16.msrb.mxu0 %v8467_v55  ;;  %5553 = vmatpush.bf16.msra.mxu2 %v8484_v0  ;;  %v4972_v55 = vadd.f32 %v4971_v11, %v9870_v52  ;;  %v8490_v11 = vld [vmem:[#allocation20 + $0xd8] sm:$0xff] }
 0x632   :  { %5166 = vmatpush.bf16.msrb.mxu3 %v7710_v23 }
 0x634   :  { %v4973_v14 = vpop.f32.mrf.mxu0 }
 0x635   :  { %5497 = vmatpush.bf16.msrb.mxu0 %v8466_v35  ;;  %v5029_v30 = vpop.f32.mrf.mxu2 }
 0x636   :  { %5167 = vmatpush.bf16.msrb.mxu3 %v7694_v13 }
 0x637   :  { %5091 = vmatmul.bf16.gmra.mxu0 %v9800_v63  ;;  %5149 = vmatmul.bf16.gmra.mxu2 %v9800_v63  ;;  %v7690_v63 = vor.u32 %v8434_v62, %v7689_v36  ;;  %v5027_v62 = vadd.f32 %v5026_v22, %v9874_v19  ;;  %v5030_v22 = vadd.f32 %v5029_v30, %v9874_v19 }
 0x639   :  { %5109 = vmatpush.bf16.msra.mxu1 %v7690_v63  ;;  %5498 = vmatpush.bf16.msrb.mxu0 %v8465_v53  ;;  %v4974_v53 = vadd.f32 %v4973_v14, %v9870_v52 }
 0x63a   :  { %5580 = vmatpush.bf16.msra.mxu3 %v8494_v47 }
 0x63c   :  { %v4976_v50 = vpop.f32.mrf.mxu0 }
 0x63d   :  { %5499 = vmatpush.bf16.msrb.mxu0 %v8464_v26  ;;  %v5031_v32 = vpop.f32.mrf.mxu2 }
 0x63e   :  { %5581 = vmatpush.bf16.msra.mxu3 %v8493_v21  ;;  %v5032_v29 = vadd.f32 %v5031_v32, %v9874_v19 }
 0x640   :  { %4999 = vmatmul.bf16.gmra.mxu1 %v4558_v17  ;;  %5057 = vmatmul.bf16.gmra.mxu3 %v4558_v17 }
 0x641   :  { %5500 = vmatpush.bf16.msrb.mxu0 %v8463_v27 }
 0x642   :  { %5582 = vmatpush.bf16.msra.mxu3 %v8492_v10 }
 0x645   :  { %v5034_v13 = vpop.f32.mrf.mxu2 }
 0x646   :  { %5583 = vmatpush.bf16.msra.mxu3 %v8491_v58 }
 0x647   :  { %5096 = vmatmul.bf16.gmra.mxu0 %v9838_v4  ;;  %5154 = vmatmul.bf16.gmra.mxu2 %v9838_v4  ;;  %v8478_v4 = vld [vmem:[#allocation20 + $0x78] sm:$0xff] }
 0x648   :  { %5522 = vmatpush.bf16.msrb.mxu1 %v8478_v4  ;;  %v4978_v4 = vpop.f32.mrf.mxu0 }
 0x649   :  { %v4979_v10 = vadd.f32 %v4978_v4, %v9870_v52 }
 0x64a   :  { %5584 = vmatpush.bf16.msra.mxu3 %v8490_v11 }
 0x64c   :  { %5523 = vmatpush.bf16.msrb.mxu1 %v8477_v15  ;;  %v8483_v15 = vld [vmem:[#allocation20 + $0xa0] sm:$0xff] }
 0x64d   :  { %5554 = vmatpush.bf16.msra.mxu2 %v8483_v15  ;;  %v5036_v31 = vpop.f32.mrf.mxu2 }
 0x650   :  { %5004 = vmatmul.bf16.gmra.mxu1 %v4560_v34  ;;  %5062 = vmatmul.bf16.gmra.mxu3 %v4560_v34 }
 0x651   :  { %5524 = vmatpush.bf16.msrb.mxu1 %v8476_v7 }
 0x655   :  { %5525 = vmatpush.bf16.msrb.mxu1 %v8475_v18 }
 0x659   :  { %5526 = vmatpush.bf16.msrb.mxu1 %v8474_v8 }
 0x65d   :  { %5527 = vmatpush.bf16.msrb.mxu1 %v8473_v48 }
 0x660   :  { %5009 = vmatmul.bf16.gmra.mxu1 %v4562_v57  ;;  %5067 = vmatmul.bf16.gmra.mxu3 %v4562_v57 }
 0x661   :  { %5528 = vmatpush.bf16.msrb.mxu1 %v8472_v41  ;;  %v8482_v41 = vld [vmem:[#allocation20 + $0x98] sm:$0xff] }
 0x662   :  { %5555 = vmatpush.bf16.msra.mxu2 %v8482_v41  ;;  %v8487_v41 = vld [vmem:[#allocation20 + $0xc0] sm:$0xff] }
 0x670   :  { %5110 = vmatmul.bf16.vlgmr.msra.gmra.mxu1 %v4556_v45  ;;  %5168 = vmatmul.bf16.vlgmr.msrb.gmra.mxu3 %v4556_v45  ;;  %v8471_v45 = vld [vmem:[#allocation20 + $0x40] sm:$0xff] }
 0x671   :  { %5529 = vmatpush.bf16.msrb.mxu1 %v8471_v45 }
 0x680   :  { %5115 = vmatmul.bf16.gmra.mxu1 %v4558_v17  ;;  %5173 = vmatmul.bf16.gmra.mxu3 %v4558_v17 }
 0x684   :  { %v4981_v27 = vpop.f32.mrf.mxu0 }
 0x68a   :  { %v5039_v20 = vpop.f32.mrf.mxu2 }
 0x690   :  { %5120 = vmatmul.bf16.gmra.mxu1 %v4560_v34  ;;  %5178 = vmatmul.bf16.gmra.mxu3 %v4560_v34 }
 0x6a0   :  { %5125 = vmatmul.bf16.gmra.mxu1 %v4562_v57  ;;  %5183 = vmatmul.bf16.gmra.mxu3 %v4562_v57 }
 0x6ad   :  { %v4995_v16 = vpop.f32.mrf.mxu1 }
 0x6ae   :  { %v4996_v17 = vadd.f32 %v4995_v16, %v4967_v25 }
 0x6b0   :  { %8694 = vtanh.f32 %v4996_v17  ;;  %v8481_v17 = vld [vmem:[#allocation20 + $0x90] sm:$0xff] }
 0x6b1   :  { %5556 = vmatpush.bf16.msra.mxu2 %v8481_v17 }
 0x6b3   :  { %v5053_v3 = vpop.f32.mrf.mxu3 }
 0x6b4   :  { %v5054_v36 = vadd.f32 %v5053_v3, %v5025_v6  ;;  %v8489_v3 = vld [vmem:[#allocation20 + $0xd0] sm:$0xff] }
 0x6b5   :  { %v4997_v23 = vpop.f32.mrf.mxu1  ;;  %5585 = vmatpush.bf16.msra.mxu3 %v8489_v3 }
 0x6b6   :  { %v4998_v60 = vadd.f32 %v4997_v23, %v4969_v2  ;;  %v8695_v57 = vpop.eup %8694  ;;  %v4977_v2 = vadd.f32 %v4976_v50, %v9870_v52  ;;  %v4983_v23 = vpop.f32.mrf.mxu0 }
 0x6b8   :  { %8696 = vtanh.f32 %v4998_v60 }
 0x6b9   :  { %8698 = vtanh.f32 %v5054_v36 }
 0x6bb   :  { %v5055_v63 = vpop.f32.mrf.mxu3 }
 0x6bc   :  { %v5056_v34 = vadd.f32 %v5055_v63, %v5027_v62 }
 0x6bd   :  { %v5000_v56 = vpop.f32.mrf.mxu1 }
 0x6be   :  { %v8697_v46 = vpop.eup %8696  ;;  %8700 = vtanh.f32 %v5056_v34  ;;  %v5001_v35 = vadd.f32 %v5000_v56, %v4972_v55  ;;  %v5035_v34 = vadd.f32 %v5034_v13, %v9874_v19  ;;  %v5037_v56 = vadd.f32 %v5036_v31, %v9874_v19  ;;  %v8488_v13 = vld [vmem:[#allocation20 + $0xc8] sm:$0xff] }
 0x6bf   :  { %v5221_v5 = vpack.c.bf16 %v8697_v46, %v8695_v57  ;;  %v8699_v7 = vpop.eup %8698  ;;  %v5041_v57 = vpop.f32.mrf.mxu2  ;;  %v8480_v46 = vld [vmem:[#allocation20 + $0x88] sm:$0xff]  ;;  %5586 = vmatpush.bf16.msra.mxu3 %v8488_v13 }
 0x6c0   :  { %8702 = vtanh.f32 %v5001_v35  ;;  %5557 = vmatpush.bf16.msra.mxu2 %v8480_v46  ;;  %v8479_v35 = vld [vmem:[#allocation20 + $0x80] sm:$0xff] }
 0x6c1   :  { %5501 = vmatmul.bf16.vlgmr.msrb.gmra.mxu0 %v5221_v5  ;;  %v5082_v5 = vpop.f32.mrf.mxu0 }
 0x6c3   :  { %v5058_v42 = vpop.f32.mrf.mxu3  ;;  %5587 = vmatpush.bf16.msra.mxu3 %v8487_v41 }
 0x6c4   :  { %v8701_v18 = vpop.eup %8700  ;;  %v5059_v45 = vadd.f32 %v5058_v42, %v5030_v22  ;;  %5558 = vmatpush.bf16.msra.mxu2 %v8479_v35  ;;  %v4984_v22 = vadd.f32 %v4983_v23, %v9870_v52 }
 0x6c5   :  { %v5222_v8 = vpack.c.bf16 %v8701_v18, %v8699_v7  ;;  %v5002_v26 = vpop.f32.mrf.mxu1  ;;  %v4982_v18 = vadd.f32 %v4981_v27, %v9870_v52  ;;  %v9892_v52 = vperm.slane %v9867_v51, 2 }
 0x6c6   :  { %v5003_v48 = vadd.f32 %v5002_v26, %v4974_v53  ;;  %v8703_v14 = vpop.eup %8702 }
 0x6c7   :  { %5530 = vmatmul.bf16.vlgmr.msrb.gmra.mxu1 %v5222_v8  ;;  %v5140_v53 = vpop.f32.mrf.mxu2 }
 0x6c8   :  { %8704 = vtanh.f32 %v5003_v48 }
 0x6c9   :  { %8706 = vtanh.f32 %v5059_v45  ;;  %v5084_v11 = vpop.f32.mrf.mxu0 }
 0x6cb   :  { %v5060_v47 = vpop.f32.mrf.mxu3 }
 0x6cc   :  { %v5061_v16 = vadd.f32 %v5060_v47, %v5032_v29 }
 0x6cd   :  { %v5005_v21 = vpop.f32.mrf.mxu1 }
 0x6ce   :  { %v8705_v25 = vpop.eup %8704  ;;  %8708 = vtanh.f32 %v5061_v16  ;;  %v5006_v60 = vadd.f32 %v5005_v21, %v4977_v2  ;;  %v5040_v16 = vadd.f32 %v5039_v20, %v9874_v19  ;;  %v5083_v20 = vadd.f32 %v5082_v5, %v9892_v52 }
 0x6cf   :  { %v5225_v30 = vpack.c.bf16 %v8705_v25, %v8703_v14  ;;  %v8707_v32 = vpop.eup %8706  ;;  %v5042_v14 = vadd.f32 %v5041_v57, %v9874_v19  ;;  %v5142_v21 = vpop.f32.mrf.mxu2 }
 0x6d0   :  { %8710 = vtanh.f32 %v5006_v60 }
 0x6d1   :  { %5506 = vmatmul.bf16.gmra.mxu0 %v5225_v30  ;;  %v5087_v23 = vpop.f32.mrf.mxu0 }
 0x6d3   :  { %v5063_v6 = vpop.f32.mrf.mxu3 }
 0x6d4   :  { %v8709_v0 = vpop.eup %8708  ;;  %v5064_v50 = vadd.f32 %v5063_v6, %v5035_v34  ;;  %v9896_v6 = vperm.slane %v9867_v51, 3 }
 0x6d5   :  { %v5007_v36 = vpop.f32.mrf.mxu1  ;;  %v5226_v62 = vpack.c.bf16 %v8709_v0, %v8707_v32 }
 0x6d6   :  { %v5008_v63 = vadd.f32 %v5007_v36, %v4979_v10  ;;  %v8711_v55 = vpop.eup %8710  ;;  %v5085_v36 = vadd.f32 %v5084_v11, %v9892_v52  ;;  %v5143_v5 = vadd.f32 %v5142_v21, %v9896_v6 }
 0x6d7   :  { %5535 = vmatmul.bf16.gmra.mxu1 %v5226_v62  ;;  %v5145_v62 = vpop.f32.mrf.mxu2 }
 0x6d8   :  { %8712 = vtanh.f32 %v5008_v63  ;;  %v5146_v11 = vadd.f32 %v5145_v62, %v9896_v6 }
 0x6d9   :  { %8714 = vtanh.f32 %v5064_v50  ;;  %v5141_v50 = vadd.f32 %v5140_v53, %v9896_v6 }
 0x6db   :  { %v5065_v15 = vpop.f32.mrf.mxu3 }
 0x6dc   :  { %v5066_v58 = vadd.f32 %v5065_v15, %v5037_v56  ;;  %v5089_v56 = vpop.f32.mrf.mxu0 }
 0x6dd   :  { %v5010_v4 = vpop.f32.mrf.mxu1 }
 0x6de   :  { %v8713_v7 = vpop.eup %8712  ;;  %8716 = vtanh.f32 %v5066_v58  ;;  %v5011_v8 = vadd.f32 %v5010_v4, %v4982_v18 }
 0x6df   :  { %v5229_v42 = vpack.c.bf16 %v8713_v7, %v8711_v55  ;;  %v8715_v31 = vpop.eup %8714  ;;  %v5147_v7 = vpop.f32.mrf.mxu2 }
 0x6e0   :  { %8718 = vtanh.f32 %v5011_v8 }
 0x6e1   :  { %5511 = vmatmul.bf16.gmra.mxu0 %v5229_v42  ;;  %v5088_v42 = vadd.f32 %v5087_v23, %v9892_v52 }
 0x6e3   :  { %v5068_v26 = vpop.f32.mrf.mxu3 }
 0x6e4   :  { %v8717_v48 = vpop.eup %8716  ;;  %v5069_v27 = vadd.f32 %v5068_v26, %v5040_v16  ;;  %v5092_v18 = vpop.f32.mrf.mxu0  ;;  %v5090_v26 = vadd.f32 %v5089_v56, %v9892_v52 }
 0x6e5   :  { %v5012_v45 = vpop.f32.mrf.mxu1  ;;  %v5230_v29 = vpack.c.bf16 %v8717_v48, %v8715_v31 }
 0x6e6   :  { %v5013_v47 = vadd.f32 %v5012_v45, %v4984_v22  ;;  %v8719_v17 = vpop.eup %8718 }
 0x6e7   :  { %5540 = vmatmul.bf16.gmra.mxu1 %v5230_v29  ;;  %v5150_v45 = vpop.f32.mrf.mxu2 }
 0x6e8   :  { %8720 = vtanh.f32 %v5013_v47  ;;  %v5148_v47 = vadd.f32 %v5147_v7, %v9896_v6  ;;  %v5151_v62 = vadd.f32 %v5150_v45, %v9896_v6 }
 0x6e9   :  { %8722 = vtanh.f32 %v5069_v27 }
 0x6eb   :  { %v5070_v25 = vpop.f32.mrf.mxu3 }
 0x6ec   :  { %v5071_v30 = vadd.f32 %v5070_v25, %v5042_v14  ;;  %v5094_v21 = vpop.f32.mrf.mxu0 }
 0x6ed   :  { %v5111_v3 = vpop.f32.mrf.mxu1 }
 0x6ee   :  { %v8721_v2 = vpop.eup %8720  ;;  %8724 = vtanh.f32 %v5071_v30  ;;  %v5112_v19 = vadd.f32 %v5111_v3, %v5083_v20  ;;  %v5093_v3 = vadd.f32 %v5092_v18, %v9892_v52 }
 0x6ef   :  { %v5233_v32 = vpack.c.bf16 %v8721_v2, %v8719_v17  ;;  %v8723_v60 = vpop.eup %8722  ;;  %v5152_v23 = vpop.f32.mrf.mxu2 }
 0x6f0   :  { %8726 = vtanh.f32 %v5112_v19  ;;  %v5095_v19 = vadd.f32 %v5094_v21, %v9892_v52 }
 0x6f1   :  { %5516 = vmatmul.bf16.gmra.mxu0 %v5233_v32 }
 0x6f3   :  { %v5169_v0 = vpop.f32.mrf.mxu3 }
 0x6f4   :  { %v8725_v10 = vpop.eup %8724  ;;  %v5170_v46 = vadd.f32 %v5169_v0, %v5141_v50 }
 0x6f5   :  { %v5113_v63 = vpop.f32.mrf.mxu1  ;;  %v5234_v34 = vpack.c.bf16 %v8725_v10, %v8723_v60 }
 0x6f6   :  { %v5114_v57 = vadd.f32 %v5113_v63, %v5085_v36  ;;  %v8727_v58 = vpop.eup %8726  ;;  %v5097_v63 = vpop.f32.mrf.mxu0 }
 0x6f7   :  { %5545 = vmatmul.bf16.gmra.mxu1 %v5234_v34 }
 0x6f8   :  { %8728 = vtanh.f32 %v5114_v57  ;;  %v5153_v57 = vadd.f32 %v5152_v23, %v9896_v6 }
 0x6f9   :  { %8730 = vtanh.f32 %v5170_v46 }
 0x6fb   :  { %v5171_v51 = vpop.f32.mrf.mxu3 }
 0x6fc   :  { %v5172_v15 = vadd.f32 %v5171_v51, %v5143_v5  ;;  %v5155_v5 = vpop.f32.mrf.mxu2 }
 0x6fd   :  { %v5116_v55 = vpop.f32.mrf.mxu1 }
 0x6fe   :  { %v8729_v4 = vpop.eup %8728  ;;  %8732 = vtanh.f32 %v5172_v15  ;;  %v5117_v53 = vadd.f32 %v5116_v55, %v5088_v42  ;;  %v5098_v55 = vadd.f32 %v5097_v63, %v9892_v52 }
 0x6ff   :  { %v5223_v35 = vpack.c.bf16 %v8729_v4, %v8727_v58  ;;  %v8731_v13 = vpop.eup %8730  ;;  %v5099_v4 = vpop.f32.mrf.mxu0 }
 0x700   :  { %8734 = vtanh.f32 %v5117_v53  ;;  %v5100_v18 = vadd.f32 %v5099_v4, %v9892_v52 }
 0x701   :  { %5559 = vmatmul.bf16.vlgmr.msra.gmra.mxu2 %v5223_v35 }
 0x703   :  { %v5174_v31 = vpop.f32.mrf.mxu3 }
 0x704   :  { %v8733_v8 = vpop.eup %8732  ;;  %v5175_v29 = vadd.f32 %v5174_v31, %v5146_v11 }
 0x705   :  { %v5224_v48 = vpack.c.bf16 %v8733_v8, %v8731_v13  ;;  %v5118_v22 = vpop.f32.mrf.mxu1 }
 0x706   :  { %v5119_v41 = vadd.f32 %v5118_v22, %v5090_v26  ;;  %v8735_v14 = vpop.eup %8734  ;;  %v5156_v26 = vadd.f32 %v5155_v5, %v9896_v6 }
 0x707   :  { %5588 = vmatmul.bf16.vlgmr.msra.gmra.mxu3 %v5224_v48  ;;  %v5157_v48 = vpop.f32.mrf.mxu2 }
 0x708   :  { %8736 = vtanh.f32 %v5119_v41  ;;  %v5158_v41 = vadd.f32 %v5157_v48, %v9896_v6 }
 0x709   :  { %8738 = vtanh.f32 %v5175_v29 }
 0x70b   :  { %v5176_v16 = vpop.f32.mrf.mxu3 }
 0x70c   :  { %v5177_v27 = vadd.f32 %v5176_v16, %v5148_v47 }
 0x70d   :  { %v5121_v25 = vpop.f32.mrf.mxu1 }
 0x70e   :  { %v8737_v30 = vpop.eup %8736  ;;  %8740 = vtanh.f32 %v5177_v27  ;;  %v5122_v32 = vadd.f32 %v5121_v25, %v5093_v3 }
 0x70f   :  { %v5227_v17 = vpack.c.bf16 %v8737_v30, %v8735_v14  ;;  %v8739_v2 = vpop.eup %8738 }
 0x710   :  { %8742 = vtanh.f32 %v5122_v32 }
 0x711   :  { %5564 = vmatmul.bf16.gmra.mxu2 %v5227_v17 }
 0x713   :  { %v5179_v20 = vpop.f32.mrf.mxu3 }
 0x714   :  { %v8741_v60 = vpop.eup %8740  ;;  %v5180_v34 = vadd.f32 %v5179_v20, %v5151_v62  ;;  %v5609_v20 = vld [vmem:[%s9950_s12] sm:$0xff] }
 0x715   :  { %v5123_v0 = vpop.f32.mrf.mxu1  ;;  %v5228_v10 = vpack.c.bf16 %v8741_v60, %v8739_v2 }
 0x716   :  { %v5124_v36 = vadd.f32 %v5123_v0, %v5095_v19  ;;  %v8743_v46 = vpop.eup %8742 }
 0x717   :  { %5593 = vmatmul.bf16.gmra.mxu3 %v5228_v10 }
 0x718   :  { %8744 = vtanh.f32 %v5124_v36 }
 0x719   :  { %8746 = vtanh.f32 %v5180_v34 }
 0x71b   :  { %v5181_v50 = vpop.f32.mrf.mxu3 }
 0x71c   :  { %v5182_v56 = vadd.f32 %v5181_v50, %v5153_v57 }
 0x71d   :  { %v5126_v51 = vpop.f32.mrf.mxu1 }
 0x71e   :  { %v8745_v15 = vpop.eup %8744  ;;  %8748 = vtanh.f32 %v5182_v56  ;;  %v5127_v35 = vadd.f32 %v5126_v51, %v5098_v55 }
 0x71f   :  { %v5231_v58 = vpack.c.bf16 %v8745_v15, %v8743_v46  ;;  %v8747_v7 = vpop.eup %8746 }
 0x720   :  { %8750 = vtanh.f32 %v5127_v35 }
 0x721   :  { %5569 = vmatmul.bf16.gmra.mxu2 %v5231_v58 }
 0x723   :  { %v5184_v42 = vpop.f32.mrf.mxu3 }
 0x724   :  { %v8749_v13 = vpop.eup %8748  ;;  %v5185_v22 = vadd.f32 %v5184_v42, %v5156_v26 }
 0x725   :  { %v5128_v53 = vpop.f32.mrf.mxu1  ;;  %v5232_v31 = vpack.c.bf16 %v8749_v13, %v8747_v7 }
 0x726   :  { %v5129_v8 = vadd.f32 %v5128_v53, %v5100_v18  ;;  %v8751_v29 = vpop.eup %8750 }
 0x727   :  { %5598 = vmatmul.bf16.gmra.mxu3 %v5232_v31 }
 0x728   :  { %8752 = vtanh.f32 %v5129_v8 }
 0x729   :  { %8754 = vtanh.f32 %v5185_v22 }
 0x72b   :  { %v5186_v11 = vpop.f32.mrf.mxu3 }
 0x72c   :  { %v5187_v45 = vadd.f32 %v5186_v11, %v5158_v41 }
 0x72e   :  { %v8753_v47 = vpop.eup %8752  ;;  %8756 = vtanh.f32 %v5187_v45 }
 0x72f   :  { %v5235_v16 = vpack.c.bf16 %v8753_v47, %v8751_v29  ;;  %v8755_v52 = vpop.eup %8754 }
 0x731   :  { %5574 = vmatmul.bf16.gmra.mxu2 %v5235_v16 }
 0x734   :  { %v8757_v27 = vpop.eup %8756 }
 0x735   :  { %v5236_v14 = vpack.c.bf16 %v8757_v27, %v8755_v52 }
 0x737   :  { %5603 = vmatmul.bf16.gmra.mxu3 %v5236_v14 }
 0x73e   :  { %v5502_v25 = vpop.f32.mrf.mxu0 }
 0x744   :  { %v5531_v21 = vpop.f32.mrf.mxu1 }
 0x745   :  { %v5532_v2 = vadd.f32 %v5531_v21, %v5502_v25 }
 0x746   :  { %v5504_v17 = vpop.f32.mrf.mxu0 }
 0x74c   :  { %v5533_v30 = vpop.f32.mrf.mxu1 }
 0x74d   :  { %v5534_v36 = vadd.f32 %v5533_v30, %v5504_v17 }
 0x74e   :  { %v5507_v19 = vpop.f32.mrf.mxu0 }
 0x754   :  { %v5536_v6 = vpop.f32.mrf.mxu1 }
 0x755   :  { %v5537_v5 = vadd.f32 %v5536_v6, %v5507_v19 }
 0x756   :  { %v5509_v46 = vpop.f32.mrf.mxu0 }
 0x75c   :  { %v5538_v57 = vpop.f32.mrf.mxu1 }
 0x75d   :  { %v5539_v35 = vadd.f32 %v5538_v57, %v5509_v46  ;;  %v8502_v57 = vld [vmem:[#allocation21 + $0x38] sm:$0xff] }
 0x75e   :  { %v5512_v42 = vpop.f32.mrf.mxu0  ;;  %5845 = vmatpush.bf16.msra.mxu0 %v8502_v57 }
 0x764   :  { %v5541_v7 = vpop.f32.mrf.mxu1 }
 0x765   :  { %v5542_v26 = vadd.f32 %v5541_v7, %v5512_v42 }
 0x766   :  { %v5514_v41 = vpop.f32.mrf.mxu0 }
 0x76c   :  { %v5543_v48 = vpop.f32.mrf.mxu1 }
 0x76d   :  { %v5544_v16 = vadd.f32 %v5543_v48, %v5514_v41 }
 0x76e   :  { %v5517_v25 = vpop.f32.mrf.mxu0 }
 0x774   :  { %v5546_v27 = vpop.f32.mrf.mxu1 }
 0x776   :  { %v5519_v19 = vpop.f32.mrf.mxu0 }
 0x784   :  { %v5560_v3 = vpop.f32.mrf.mxu2 }
 0x785   :  { %v5561_v23 = vadd.f32 %v5560_v3, %v5532_v2  ;;  %v5547_v3 = vadd.f32 %v5546_v27, %v5517_v25  ;;  %v8507_v25 = vld [vmem:[#allocation21 + $0x60] sm:$0xff] }
 0x78a   :  { %v5589_v32 = vpop.f32.mrf.mxu3 }
 0x78b   :  { %v5590_v60 = vadd.f32 %v5589_v32, %v5561_v23  ;;  %v5548_v32 = vpop.f32.mrf.mxu1 }
 0x78c   :  { %v5562_v0 = vpop.f32.mrf.mxu2 }
 0x78d   :  { %v5610_v10 = vmul.f32 %v5609_v20, %v5590_v60  ;;  %v5563_v62 = vadd.f32 %v5562_v0, %v5534_v36 }
 0x78f   :  { %5618 = vadd.xlane.f32.xlu0 %v5610_v10  ;;  %v5549_v10 = vadd.f32 %v5548_v32, %v5519_v19  ;;  %v8506_v32 = vld [vmem:[#allocation21 + $0x58] sm:$0xff] }
 0x792   :  { %v5591_v63 = vpop.f32.mrf.mxu3 }
 0x793   :  { %v5592_v34 = vadd.f32 %v5591_v63, %v5563_v62 }
 0x794   :  { %v5565_v50 = vpop.f32.mrf.mxu2 }
 0x795   :  { %v5611_v56 = vmul.f32 %v5609_v20, %v5592_v34  ;;  %v5566_v51 = vadd.f32 %v5565_v50, %v5537_v5  ;;  %v8510_v50 = vld [vmem:[#allocation21 + $0x78] sm:$0xff] }
 0x796   :  { %5858 = vmatpush.bf16.msra.mxu1 %v8510_v50 }
 0x797   :  { %5620 = vadd.xlane.f32.xlu0 %v5611_v56 }
 0x79a   :  { %v5594_v15 = vpop.f32.mrf.mxu3 }
 0x79b   :  { %v5595_v58 = vadd.f32 %v5594_v15, %v5566_v51 }
 0x79c   :  { %v5567_v55 = vpop.f32.mrf.mxu2 }
 0x79d   :  { %v5612_v4 = vmul.f32 %v5609_v20, %v5595_v58  ;;  %v5568_v13 = vadd.f32 %v5567_v55, %v5539_v35 }
 0x79f   :  { %5622 = vadd.xlane.f32.xlu1 %v5612_v4 }
 0x7a2   :  { %v5596_v18 = vpop.f32.mrf.mxu3 }
 0x7a3   :  { %v5597_v53 = vadd.f32 %v5596_v18, %v5568_v13 }
 0x7a4   :  { %v5570_v31 = vpop.f32.mrf.mxu2 }
 0x7a5   :  { %v5613_v8 = vmul.f32 %v5609_v20, %v5597_v53  ;;  %v5571_v22 = vadd.f32 %v5570_v31, %v5542_v26  ;;  %v8501_v31 = vld [vmem:[#allocation21 + $0x30] sm:$0xff] }
 0x7a6   :  { %5846 = vmatpush.bf16.msra.mxu0 %v8501_v31 }
 0x7a7   :  { %5624 = vadd.xlane.f32.xlu1 %v5613_v8  ;;  %v8509_v8 = vld [vmem:[#allocation21 + $0x70] sm:$0xff] }
 0x7a8   :  { %5859 = vmatpush.bf16.msra.mxu1 %v8509_v8 }
 0x7aa   :  { %v5599_v11 = vpop.f32.mrf.mxu3 }
 0x7ab   :  { %v5600_v45 = vadd.f32 %v5599_v11, %v5571_v22 }
 0x7ac   :  { %v5572_v29 = vpop.f32.mrf.mxu2 }
 0x7ad   :  { %v5614_v47 = vmul.f32 %v5609_v20, %v5600_v45  ;;  %v5573_v52 = vadd.f32 %v5572_v29, %v5544_v16  ;;  %v8500_v16 = vld [vmem:[#allocation21 + $0x28] sm:$0xff] }
 0x7ae   :  { %5847 = vmatpush.bf16.msra.mxu0 %v8500_v16 }
 0x7af   :  { %5626 = vadd.xlane.f32.xlu2 %v5614_v47 }
 0x7b2   :  { %v5601_v14 = vpop.f32.mrf.mxu3 }
 0x7b3   :  { %v5602_v21 = vadd.f32 %v5601_v14, %v5573_v52  ;;  %v8508_v52 = vld [vmem:[#allocation21 + $0x68] sm:$0xff] }
 0x7b4   :  { %v5575_v30 = vpop.f32.mrf.mxu2  ;;  %5860 = vmatpush.bf16.msra.mxu1 %v8508_v52 }
 0x7b5   :  { %v5615_v17 = vmul.f32 %v5609_v20, %v5602_v21  ;;  %v5576_v2 = vadd.f32 %v5575_v30, %v5547_v3  ;;  %v8499_v21 = vld [vmem:[#allocation21 + $0x20] sm:$0xff] }
 0x7b6   :  { %5848 = vmatpush.bf16.msra.mxu0 %v8499_v21 }
 0x7b7   :  { %5628 = vadd.xlane.f32.xlu2 %v5615_v17 }
 0x7b8   :  { %5861 = vmatpush.bf16.msra.mxu1 %v8507_v25 }
 0x7ba   :  { %v5604_v23 = vpop.f32.mrf.mxu3 }
 0x7bb   :  { %v5605_v6 = vadd.f32 %v5604_v23, %v5576_v2 }
 0x7bc   :  { %v5577_v0 = vpop.f32.mrf.mxu2  ;;  %5862 = vmatpush.bf16.msra.mxu1 %v8506_v32 }
 0x7bd   :  { %v5616_v60 = vmul.f32 %v5609_v20, %v5605_v6  ;;  %v5578_v36 = vadd.f32 %v5577_v0, %v5549_v10  ;;  %v8498_v6 = vld [vmem:[#allocation21 + $0x18] sm:$0xff] }
 0x7be   :  { %5849 = vmatpush.bf16.msra.mxu0 %v8498_v6 }
 0x7bf   :  { %5630 = vadd.xlane.f32.xlu0 %v5616_v60 }
 0x7c2   :  { %v5606_v62 = vpop.f32.mrf.mxu3 }
 0x7c3   :  { %v5607_v63 = vadd.f32 %v5606_v62, %v5578_v36 }
 0x7c5   :  { %v5617_v34 = vmul.f32 %v5609_v20, %v5607_v63  ;;  %v8497_v63 = vld [vmem:[#allocation21 + $0x10] sm:$0xff] }
 0x7c6   :  { %5850 = vmatpush.bf16.msra.mxu0 %v8497_v63 }
 0x7c7   :  { %5632 = vadd.xlane.f32.xlu1 %v5617_v34  ;;  %v8505_v34 = vld [vmem:[#allocation21 + $0x50] sm:$0xff] }
 0x7c8   :  { %5863 = vmatpush.bf16.msra.mxu1 %v8505_v34 }
 0x802   :  { %v5619_v56 = vpop.xlane.xlu0 %5618 }
 0x80a   :  { %v5621_v51 = vpop.xlane.xlu0 %5620 }
 0x812   :  { %v5623_v46 = vpop.xlane.xlu1 %5622 }
 0x81a   :  { %v5625_v15 = vpop.xlane.xlu1 %5624 }
 0x822   :  { %v5627_v5 = vpop.xlane.xlu2 %5626 }
 0x823   :  { %v5634_v35 = vmax.f32 %v5619_v56, %v5627_v5 }
 0x82a   :  { %v5629_v58 = vpop.xlane.xlu2 %5628 }
 0x82b   :  { %v5635_v4 = vmax.f32 %v5621_v51, %v5629_v58 }
 0x82d   :  { %v5638_v18 = vmax.f32 %v5634_v35, %v5635_v4  ;;  %v8503_v35 = vld [vmem:[#allocation21 + $0x40] sm:$0xff] }
 0x832   :  { %v5631_v55 = vpop.xlane.xlu0 %5630 }
 0x833   :  { %v5636_v42 = vmax.f32 %v5623_v46, %v5631_v55 }
 0x83a   :  { %v5633_v7 = vpop.xlane.xlu1 %5632 }
 0x83b   :  { %v5637_v13 = vmax.f32 %v5625_v15, %v5633_v7 }
 0x83d   :  { %v5639_v53 = vmax.f32 %v5636_v42, %v5637_v13 }
 0x83f   :  { %v5640_v20 = vmax.f32 %v5638_v18, %v5639_v53 }
 0x841   :  { %v5641_v26 = vsub.f32 %v5619_v56, %v5640_v20  ;;  %v5642_v48 = vsub.f32 %v5621_v51, %v5640_v20  ;;  %v5643_v22 = vsub.f32 %v5623_v46, %v5640_v20  ;;  %v5644_v41 = vsub.f32 %v5625_v15, %v5640_v20  ;;  %v8504_v51 = vld [vmem:[#allocation21 + $0x48] sm:$0xff] }
 0x842   :  { %v5645_v29 = vsub.f32 %v5627_v5, %v5640_v20  ;;  %v5646_v27 = vsub.f32 %v5629_v58, %v5640_v20  ;;  %v5647_v30 = vsub.f32 %v5631_v55, %v5640_v20  ;;  %v5648_v3 = vsub.f32 %v5633_v7, %v5640_v20  ;;  %v8496_v5 = vld [vmem:[#allocation21 + $0x8] sm:$0xff]  ;;  %5864 = vmatpush.bf16.msra.mxu1 %v8504_v51  ;;  %v8495_v7 = vld [vmem:[#allocation21] sm:$0xff] }
 0x843   :  { %v5649_v11 = vmul.f32 1.442695, %v5641_v26  ;;  %v5651_v45 = vmul.f32 1.442695, %v5642_v48  ;;  %v5653_v47 = vmul.f32 1.442695, %v5643_v22  ;;  %5851 = vmatpush.bf16.msra.mxu0 %v8496_v5 }
 0x844   :  { %v5655_v14 = vmul.f32 1.442695, %v5644_v41  ;;  %v5657_v17 = vmul.f32 1.442695, %v5645_v29  ;;  %v5659_v2 = vmul.f32 1.442695, %v5646_v27 }
 0x845   :  { %8758 = vpow2.f32 %v5649_v11  ;;  %v5661_v19 = vmul.f32 1.442695, %v5647_v30  ;;  %v5663_v36 = vmul.f32 1.442695, %v5648_v3 }
 0x846   :  { %8760 = vpow2.f32 %v5651_v45  ;;  %5865 = vmatpush.bf16.msra.mxu1 %v8503_v35 }
 0x847   :  { %8762 = vpow2.f32 %v5653_v47  ;;  %5852 = vmatpush.bf16.msra.mxu0 %v8495_v7 }
 0x848   :  { %8764 = vpow2.f32 %v5655_v14 }
 0x849   :  { %8766 = vpow2.f32 %v5657_v17 }
 0x84a   :  { %8768 = vpow2.f32 %v5659_v2 }
 0x84b   :  { %v8759_v23 = vpop.eup %8758  ;;  %8770 = vpow2.f32 %v5661_v19 }
 0x84c   :  { %v8761_v60 = vpop.eup %8760  ;;  %8772 = vpow2.f32 %v5663_v36 }
 0x84d   :  { %v5665_v0 = vadd.f32 %v8761_v60, %v8759_v23  ;;  %v8763_v10 = vpop.eup %8762 }
 0x84e   :  { %v8765_v57 = vpop.eup %8764 }
 0x84f   :  { %v5666_v62 = vadd.f32 %v8763_v10, %v5665_v0  ;;  %v8767_v56 = vpop.eup %8766 }
 0x850   :  { %v8769_v15 = vpop.eup %8768 }
 0x851   :  { %v5667_v50 = vadd.f32 %v8765_v57, %v5666_v62  ;;  %v8771_v55 = vpop.eup %8770 }
 0x852   :  { %v8773_v42 = vpop.eup %8772 }
 0x853   :  { %v5668_v46 = vadd.f32 %v8767_v56, %v5667_v50 }
 0x855   :  { %v5669_v58 = vadd.f32 %v8769_v15, %v5668_v46 }
 0x857   :  { %v5670_v4 = vadd.f32 %v8771_v55, %v5669_v58 }
 0x859   :  { %v5671_v13 = vadd.f32 %v8773_v42, %v5670_v4 }
 0x85b   :  { %8774 = vrcp.f32 %v5671_v13 }
 0x861   :  { %v8775_v18 = vpop.eup %8774 }
 0x862   :  { %v5673_v53 = vmul.f32 %v8775_v18, %v8759_v23  ;;  %v5674_v20 = vmul.f32 %v8775_v18, %v8761_v60  ;;  %v5675_v31 = vmul.f32 %v8775_v18, %v8763_v10  ;;  %v5676_v8 = vmul.f32 %v8775_v18, %v8765_v57 }
 0x863   :  { %v5677_v22 = vmul.f32 %v8775_v18, %v8767_v56  ;;  %v5678_v47 = vmul.f32 %v8775_v18, %v8769_v15  ;;  %v5679_v21 = vmul.f32 %v8775_v18, %v8771_v55 }
 0x864   :  { %v5681_v26 = vmul.f32 %v5673_v53, %v9482_v43  ;;  %v5683_v48 = vmul.f32 %v5674_v20, %v9544_v37  ;;  %v5685_v41 = vmul.f32 %v5675_v31, %v9573_v44  ;;  %v5682_v45 = vmul.f32 %v5673_v53, %v9853_v39 }
 0x865   :  { %v5684_v29 = vmul.f32 %v5674_v20, %v9794_v33  ;;  %v5687_v16 = vmul.f32 %v5676_v8, %v9631_v54  ;;  %v5686_v27 = vmul.f32 %v5675_v31, %v9726_v12  ;;  %v5689_v43 = vmul.f32 %v5677_v22, %v9660_v28 }
 0x866   :  { %v5697_v11 = vadd.f32 %v5683_v48, %v5681_v26  ;;  %v5688_v37 = vmul.f32 %v5676_v8, %v9680_v38  ;;  %v5680_v44 = vmul.f32 %v8775_v18, %v8773_v42  ;;  %v5691_v17 = vmul.f32 %v5678_v47, %v9718_v1 }
 0x867   :  { %v5704_v14 = vadd.f32 %v5684_v29, %v5682_v45  ;;  %v5690_v33 = vmul.f32 %v5677_v22, %v9639_v61  ;;  %v5693_v54 = vmul.f32 %v5679_v21, %v9764_v40  ;;  %v5692_v12 = vmul.f32 %v5678_v47, %v9593_v24  ;;  %v8533_v24 = vld [vmem:[%s9952_s14] ss:$0 sm:$0xff] }
 0x868   :  { %v5698_v52 = vadd.f32 %v5697_v11, %v5685_v41  ;;  %v5695_v6 = vmul.f32 %v5680_v44, %v9834_v49  ;;  %v5694_v32 = vmul.f32 %v5679_v21, %v9552_v9  ;;  %v5696_v60 = vmul.f32 %v5680_v44, %v9506_v59 }
 0x869   :  { %v5705_v30 = vadd.f32 %v5704_v14, %v5686_v27 }
 0x86a   :  { %v5699_v25 = vadd.f32 %v5698_v52, %v5687_v16 }
 0x86b   :  { %v5706_v3 = vadd.f32 %v5705_v30, %v5688_v37 }
 0x86c   :  { %v5700_v39 = vadd.f32 %v5699_v25, %v5689_v43 }
 0x86d   :  { %v5707_v23 = vadd.f32 %v5706_v3, %v5690_v33 }
 0x86e   :  { %v5701_v2 = vadd.f32 %v5700_v39, %v5691_v17 }
 0x86f   :  { %v5708_v38 = vadd.f32 %v5707_v23, %v5692_v12 }
 0x870   :  { %v5702_v28 = vadd.f32 %v5701_v2, %v5693_v54 }
 0x871   :  { %v5709_v1 = vadd.f32 %v5708_v38, %v5694_v32 }
 0x872   :  { %v5703_v19 = vadd.f32 %v5702_v28, %v5695_v6 }
 0x873   :  { %v5710_v10 = vadd.f32 %v5709_v1, %v5696_v60 }
 0x874   :  { %v5711_v0 = vpack.c.bf16 %v5703_v19, %v5703_v19 }
 0x875   :  { %v5712_v61 = vpack.c.bf16 %v5710_v10, %v5710_v10 }
 0x876   :  { %5853 = vmatmul.bf16.vlgmr.msra.gmra.mxu0 %v5711_v0 }
 0x877   :  { %5866 = vmatmul.bf16.vlgmr.msra.gmra.mxu1 %v5712_v61 }
 0x8f3   :  { %v5854_v40 = vpop.f32.mrf.mxu0 }
 0x8f4   :  { %v5855_v9 = vadd.f32 %v8533_v24, %v5854_v40  ;;  %v5867_v59 = vpop.f32.mrf.mxu1 }
 0x8f6   :  { %v5868_v49 = vadd.f32 %v5867_v59, %v5855_v9 }
 0x8f8   :  { %5871 = vst [vmem:[#allocation23] sm:$0xff] %v5868_v49 }
 0x8f9   :  { %5882 = dma.vmem_to_hbm [thread:$0]  %s5878_s25, 128, %s5880_s2, [#allocation5]  }
 0x8fb   :  { %v5856_v36 = vpop.f32.mrf.mxu0 }
 0x8fc   :  { %v5869_v62 = vpop.f32.mrf.mxu1 }
 0x8fd   :  { %9108 = dma.done.wait [#allocation5], 128  }
 0x8fe   :  { %9109 = vsyncadd [#allocation5], 4294967168 }
 0x8ff   :  { %5887 = vsyncpa [#allocation4], 1 }
 0x900   :  { %5888 = vsyncpa [#allocation7], 1 }
 0x901   :  { %5889 = vsyncpa [#allocation10], 1 }
 0x902   :  { %5890 = vsyncpa [#allocation13], 1 }
 0x903   :  { %5891 = vsyncpa [#allocation16], 1 }
 0x904   :  { %5892 = vsyncpa [#allocation19], 1 }
 0x905   :  { %5893 = vsyncpa [#allocation22], 1 }
 0x906   :  { %5894 = vsyncpa [#allocation5], 1 }

</bundles_post_ra>
